<compile_context>
chip_gen: v7x
topology: tpu7x:2x2x1
jax: 0.10.0
libtpu: 0.0.40
codegen_flags: <defaults>
</compile_context>

<pallas_src>
import jax
import jax.numpy as jnp
from jax import lax
from jax.experimental import pallas as pl
from jax.experimental.pallas import tpu as pltpu

LEAKY_SLOPE = 0.01   # PyTorch F.leaky_relu default negative slope
NUM_CLASSES = 2
LOGIT_PAD = 128      # lane-dense padded logits width
SUBLANE = 8          # pad batch to the f32 sublane width


# ---------------------------------------------------------------------------
# The single fused kernel
# ---------------------------------------------------------------------------
def fused_kernel(pT_ref, wc_ref, w1_ref, b1_ref, w2_ref, b2_ref, w3_ref,
                 b3_ref, logits_ref, emb_ref, conv_ref, acc_ref, h2_ref):
    # pT_ref    : (Npad, CKK, TP)   bf16  patch tile (all samples)
    # wc_ref    : (Cout, CKK)       bf16  conv weight
    # w1_ref    : (Cout, TP, TN)    bf16  fc1 weight tile (flatten perm folded)
    # b1_ref    : (1, TN)           f32   fc1 bias slab (+ conv-bias fold)
    # w2_ref    : (TN, H2)          f32   fc2 weight slab (rows for this j)
    # b2_ref    : (1, H2)           f32
    # w3_ref    : (H2, 128)         f32   fc3, lane-dense padded
    # b3_ref    : (1, 128)          f32
    # logits_ref: (Npad, 128)       f32   padded logits (cols [:2] real)
    # emb_ref   : (Npad, H2)        f32
    # conv_ref  : (Cout, Npad, TP)  bf16  conv cache, reused across j tiles
    # acc_ref   : (num_j, Npad, TN) f32   fc1 accumulator (all column slabs)
    # h2_ref    : (Npad, H2)        f32   fc2 accumulator
    t = pl.program_id(0)            # patch (fc1-reduction) tile, OUTER axis
    j = pl.program_id(1)            # fc1 output-column tile, INNER axis
    nt = pl.num_programs(0)
    nj = pl.num_programs(1)
    n_pad = pT_ref.shape[0]

    @pl.when(jnp.logical_and(t == 0, j == 0))
    def _init():
        acc_ref[...] = jnp.zeros_like(acc_ref)
        h2_ref[...] = jnp.zeros_like(h2_ref)

    # --- conv for this patch tile: independent of j, computed once per t ---
    @pl.when(j == 0)
    def _conv():
        wc = wc_ref[...]                                     # (Cout, CKK) bf16
        cols = []
        for n in range(n_pad):                               # Npad = 8, unrolled
            cols.append(jnp.dot(wc, pT_ref[n],
                                preferred_element_type=jnp.float32))
        # Batch-major layout (Cout, Npad, TP) for the fc1 batched contraction.
        conv_ref[...] = jnp.stack(cols, axis=1).astype(jnp.bfloat16)

    # --- fc1 tile contribution: one batched MXU contraction, M = Npad ------
    partial = lax.dot_general(
        conv_ref[...], w1_ref[...],
        dimension_numbers=(((2,), (1,)), ((0,), (0,))),
        preferred_element_type=jnp.float32)                  # (Cout, Npad, TN)
    acc_ref[j] += jnp.sum(partial, axis=0)                   # (Npad, TN)

    # --- fused head: a1 never leaves VMEM -----------------------------------
    @pl.when(t == nt - 1)
    def _fc2_partial():
        h1 = acc_ref[j] + b1_ref[...]                        # (Npad, TN)
        a1 = jnp.where(h1 > 0, h1, LEAKY_SLOPE * h1)
        h2_ref[...] += jnp.dot(a1, w2_ref[...],
                               preferred_element_type=jnp.float32)

    @pl.when(jnp.logical_and(t == nt - 1, j == nj - 1))
    def _finalize():
        h2 = h2_ref[...] + b2_ref[...]
        emb = jnp.where(h2 > 0, h2, LEAKY_SLOPE * h2)
        emb_ref[...] = emb
        logits_ref[...] = (jnp.dot(emb, w3_ref[...],
                                   preferred_element_type=jnp.float32)
                           + b3_ref[...])


def fused_forward(patches, wc_mat, w1_k, b1_eff, w2t, b2r, w3p, b3p, *,
                  tile_p, tile_n, vmem_limit_bytes=32 * 1024 * 1024):
    n_pad, ckk, p_total = patches.shape
    c_out = wc_mat.shape[0]
    h1 = b1_eff.shape[1]
    h2 = w2t.shape[1]
    pad = w3p.shape[1]
    # TODO(synk): ragged shapes would need padding instead of these asserts.
    assert p_total % tile_p == 0 and h1 % tile_n == 0
    assert tile_n % 128 == 0
    assert tile_p == p_total or tile_p % 128 == 0
    num_t = p_total // tile_p      # fc1 reduction tiles (outer, conv cached)
    num_j = h1 // tile_n           # fc1 column tiles (inner)

    return pl.pallas_call(
        fused_kernel,
        out_shape=(jax.ShapeDtypeStruct((n_pad, pad), jnp.float32),   # logits
                   jax.ShapeDtypeStruct((n_pad, h2), jnp.float32)),   # embedd.
        grid=(num_t, num_j),
        in_specs=[
            pl.BlockSpec((n_pad, ckk, tile_p), lambda t, j: (0, 0, t)),
            pl.BlockSpec((c_out, ckk), lambda t, j: (0, 0)),
            pl.BlockSpec((c_out, tile_p, tile_n), lambda t, j: (0, t, j)),
            pl.BlockSpec((1, tile_n), lambda t, j: (0, j)),
            pl.BlockSpec((tile_n, h2), lambda t, j: (j, 0)),
            pl.BlockSpec((1, h2), lambda t, j: (0, 0)),
            pl.BlockSpec((h2, pad), lambda t, j: (0, 0)),
            pl.BlockSpec((1, pad), lambda t, j: (0, 0)),
        ],
        out_specs=(pl.BlockSpec((n_pad, pad), lambda t, j: (0, 0)),
                   pl.BlockSpec((n_pad, h2), lambda t, j: (0, 0))),
        scratch_shapes=[
            pltpu.VMEM((c_out, n_pad, tile_p), jnp.bfloat16),   # conv cache
            pltpu.VMEM((num_j, n_pad, tile_n), jnp.float32),    # fc1 acc
            pltpu.VMEM((n_pad, h2), jnp.float32),               # fc2 acc
        ],
        compiler_params=pltpu.CompilerParams(
            # Both axes are sequential: t is the fc1 reduction, j shares the
            # conv cache / fc2 accumulator.  (A megacore split of j would
            # only pay off on v7x and would require un-fusing the head.)
            dimension_semantics=("arbitrary", "arbitrary"),
            vmem_limit_bytes=vmem_limit_bytes),
    )(patches, wc_mat, w1_k, b1_eff, w2t, b2r, w3p, b3p)


# ---------------------------------------------------------------------------
# Host-side one-time weight preparation (fold permutation + conv bias into W1)
# ---------------------------------------------------------------------------
def prepare_params(params, K):
    wc, bc, w1, b1, w2, b2, w3, b3 = params
    Cout, Cin = wc.shape[0], wc.shape[1]
    H1, F = w1.shape
    P = F // Cout
    CKK = Cin * K * K
    wc_mat = wc.reshape(Cout, CKK).astype(jnp.bfloat16)
    # fc1 weight (H1, F) -> (F, H1) -> (Cout, P, H1): row f = c*P + p, i.e.
    # PyTorch's channel-major flatten order folded into the weight layout.
    w1_k = w1.T.reshape(Cout, P, H1).astype(jnp.bfloat16)
    # conv bias contributes bc[c] * sum_p W1[c*P+p, :] to fc1 -> fold into b1.
    # Exact: the module has no nonlinearity between Conv2d and fc1.
    b1_eff = (b1 + bc @ w1_k.astype(jnp.float32).sum(axis=1)).reshape(1, H1)
    b1_eff = b1_eff.astype(jnp.float32)
    H2, H3 = w2.shape[0], w3.shape[0]
    w2t = w2.T.astype(jnp.float32)
    b2r = b2.reshape(1, H2).astype(jnp.float32)
    # fc3 padded to a lane-dense 128-wide slab; real logits are cols [:H3].
    w3p = jnp.zeros((H2, LOGIT_PAD), jnp.float32).at[:, :H3].set(w3.T)
    b3p = jnp.zeros((1, LOGIT_PAD), jnp.float32).at[0, :H3].set(b3)
    return (wc_mat, w1_k, b1_eff, w2t, b2r, w3p, b3p)


def _im2col_T(x, K):
    # patches_T[n, (ci,kh,kw), ph*Pw+pw] = x[n, ci, ph*K+kh, pw*K+kw]
    N, Cin, Hs, Ws = x.shape
    Ph, Pw = Hs // K, Ws // K
    return (x.reshape(N, Cin, Ph, K, Pw, K)
             .transpose(0, 1, 3, 5, 2, 4)
             .reshape(N, Cin * K * K, Ph * Pw))


def peftguard_forward(x, prepped, *, K=8, tile_p=None, tile_n=None):
    """x: (N, Cin, H, W) f32.  Returns (logits (N,2), embeddings (N,128))."""
    wc_mat, w1_k, b1_eff, w2t, b2r, w3p, b3p = prepped
    N = x.shape[0]
    Cout, P, H1 = w1_k.shape

    patches = _im2col_T(x, K).astype(jnp.bfloat16)   # bf16 patch stream
    n_pad = ((N + SUBLANE - 1) // SUBLANE) * SUBLANE  # pad batch to 8 rows
    if n_pad != N:
        patches = jnp.pad(patches, ((0, n_pad - N), (0, 0), (0, 0)))

    # Toy defaults: full extents -> grid (1, 1).  At real scale pick
    # (tile_p, tile_n) per generation (see module docstring).
    tp = tile_p if tile_p is not None else P
    tn = tile_n if tile_n is not None else H1

    logits_pad, emb = fused_forward(patches, wc_mat, w1_k, b1_eff,
                                    w2t, b2r, w3p, b3p, tile_p=tp, tile_n=tn)
    return logits_pad[:N, :NUM_CLASSES], emb[:N]


# ---------------------------------------------------------------------------
# Pure-JAX reference (mirrors the kernel's bf16 quantization of W1/patches;
# NOTE: this proves self-consistency of the fused/bf16 path, the fp32 PyTorch
# model would differ by ~bf16 rounding).
# ---------------------------------------------------------------------------
def reference_forward(x, params, prepped, K=8):
    wc, bc, w1, b1, w2, b2, w3, b3 = params
    wc_mat, w1_k, b1_eff, w2t, b2r, w3p, b3p = prepped
    N = x.shape[0]
    Cout, P, H1 = w1_k.shape
    patches = _im2col_T(x, K).astype(jnp.bfloat16).astype(jnp.float32)
    conv = jnp.einsum('ck,nkp->ncp', wc_mat.astype(jnp.float32), patches)
    conv = conv.astype(jnp.bfloat16).astype(jnp.float32)   # mirror conv cache
    feats = conv.reshape(N, Cout * P)                      # channel-major flat
    w1f = w1_k.astype(jnp.float32).reshape(Cout * P, H1)
    h1 = feats @ w1f + b1_eff
    a1 = jnp.where(h1 > 0, h1, LEAKY_SLOPE * h1)
    h2 = a1 @ w2t + b2r
    emb = jnp.where(h2 > 0, h2, LEAKY_SLOPE * h2)
    logits = emb @ w3.T + b3
    return logits, emb


# ---------------------------------------------------------------------------
# Deterministic synthetic parameters (shapes follow the module structure)
# ---------------------------------------------------------------------------
def init_params(key, in_channels, K, conv_out, flattened, h1, h2, h3):
    ks = jax.random.split(key, 8)
    def lin(kw, kb, fan_in, fan_out):
        w = jax.random.normal(kw, (fan_out, fan_in), jnp.float32) * (1.0 / jnp.sqrt(fan_in))
        b = jax.random.normal(kb, (fan_out,), jnp.float32) * 0.01
        return w, b
    wc = jax.random.normal(ks[0], (conv_out, in_channels, K, K), jnp.float32) * (
        1.0 / jnp.sqrt(in_channels * K * K))
    bc = jax.random.normal(ks[1], (conv_out,), jnp.float32) * 0.01
    w1, b1 = lin(ks[2], ks[3], flattened, h1)
    w2, b2 = lin(ks[4], ks[5], h1, h2)
    w3, b3 = lin(ks[6], ks[7], h2, h3)
    return (wc, bc, w1, b1, w2, b2, w3, b3)


if __name__ == "__main__":
    # Small shapes consistent with the module: batch=2, in_channels=4
    # (stand-in for target_number*32 = 64), spatial=128, kernel/stride=8
    # -> Ph=Pw=16, flattened = 16*16*16 = 4096; fc dims (512,128,2) kept.
    N, Cin, Hs, Ws, K = 2, 4, 128, 128, 8
    CONV_OUT = 16
    FLATTENED = (Hs // K) * (Ws // K) * CONV_OUT
    H1, H2, H3 = 512, 128, 2

    key = jax.random.PRNGKey(0)
    k_x, k_p = jax.random.split(key)
    x = jax.random.normal(k_x, (N, Cin, Hs, Ws), jnp.float32)
    params = init_params(k_p, Cin, K, CONV_OUT, FLATTENED, H1, H2, H3)

    prepped = prepare_params(params, K)          # one-time host-side weight prep
    fwd = jax.jit(lambda xx: peftguard_forward(xx, prepped, K=K))
    logits, embeddings = fwd(x)
    jax.block_until_ready((logits, embeddings))

    assert logits.shape == (N, H3) and embeddings.shape == (N, H2)

    # Validate fusion / folded permutation / bias-fold against a JAX reference.
    ref_logits, ref_emb = reference_forward(x, params, prepped, K=K)
    def nerr(a, b):
        return float(jnp.max(jnp.abs(a - b)) / (jnp.max(jnp.abs(b)) + 1e-6))
    assert nerr(embeddings, ref_emb) < 5e-2, ("embeddings mismatch", nerr(embeddings, ref_emb))
    assert nerr(logits, ref_logits) < 5e-2, ("logits mismatch", nerr(logits, ref_logits))
    print("KERNEL_OK")
</pallas_src>

<mosaic_0001>
module attributes {stable_mosaic.version = 11 : i64} {
  func.func @fused_kernel(%arg0: i32, %arg1: i32, %arg2: memref<8x256x256xbf16, #tpu.memory_space<vmem>>, %arg3: memref<16x256xbf16, #tpu.memory_space<vmem>>, %arg4: memref<16x256x512xbf16, #tpu.memory_space<vmem>>, %arg5: memref<1x512xf32, #tpu.memory_space<vmem>>, %arg6: memref<512x128xf32, #tpu.memory_space<vmem>>, %arg7: memref<1x128xf32, #tpu.memory_space<vmem>>, %arg8: memref<128x128xf32, #tpu.memory_space<vmem>>, %arg9: memref<1x128xf32, #tpu.memory_space<vmem>>, %arg10: memref<8x128xf32, #tpu.memory_space<vmem>>, %arg11: memref<8x128xf32, #tpu.memory_space<vmem>>, %arg12: memref<16x8x256xbf16, #tpu.memory_space<vmem>>, %arg13: memref<1x8x512xf32, #tpu.memory_space<vmem>>, %arg14: memref<8x128xf32, #tpu.memory_space<vmem>>) attributes {dimension_semantics = [#tpu.dimension_semantics<arbitrary>, #tpu.dimension_semantics<arbitrary>], iteration_bounds = array<i64: 1, 1>, scalar_prefetch = 0 : i64, scratch_operands = 3 : i64, tpu.core_type = #tpu.core_type<tc>, window_params = [{transform_indices = @transform_0, window_bounds = array<i64: 8, 256, 256>}, {pipeline_mode = #tpu.pipeline_mode<synchronous>, transform_indices = @transform_1, window_bounds = array<i64: 16, 256>}, {transform_indices = @transform_2, window_bounds = array<i64: 16, 256, 512>}, {transform_indices = @transform_3, window_bounds = array<i64: 1, 512>}, {transform_indices = @transform_4, window_bounds = array<i64: 512, 128>}, {pipeline_mode = #tpu.pipeline_mode<synchronous>, transform_indices = @transform_5, window_bounds = array<i64: 1, 128>}, {pipeline_mode = #tpu.pipeline_mode<synchronous>, transform_indices = @transform_6, window_bounds = array<i64: 128, 128>}, {pipeline_mode = #tpu.pipeline_mode<synchronous>, transform_indices = @transform_7, window_bounds = array<i64: 1, 128>}, {pipeline_mode = #tpu.pipeline_mode<synchronous>, transform_indices = @transform_8, window_bounds = array<i64: 8, 128>}, {pipeline_mode = #tpu.pipeline_mode<synchronous>, transform_indices = @transform_9, window_bounds = array<i64: 8, 128>}]} {
    %c0_i32 = arith.constant 0 : i32
    %0 = arith.cmpi eq, %arg0, %c0_i32 : i32
    %c0_i32_0 = arith.constant 0 : i32
    %1 = arith.cmpi eq, %arg1, %c0_i32_0 : i32
    %2 = arith.andi %0, %1 : i1
    %3 = arith.extui %2 : i1 to i32
    %c0_i32_1 = arith.constant 0 : i32
    %4 = arith.cmpi ne, %3, %c0_i32_1 : i32
    scf.if %4 {
      %cst_19 = arith.constant 0.000000e+00 : f32
      %28 = vector.broadcast %cst_19 : f32 to vector<1x8x512xf32>
      %c0_20 = arith.constant 0 : index
      %c0_21 = arith.constant 0 : index
      %c0_22 = arith.constant 0 : index
      %29 = vector.load %arg13[%c0_20, %c0_21, %c0_22] : memref<1x8x512xf32, #tpu.memory_space<vmem>>, vector<1x8x512xf32>
      tpu.vector_store %arg13[%c0_20, %c0_21, %c0_22], %28 {strides = array<i32>} : memref<1x8x512xf32, #tpu.memory_space<vmem>>, vector<1x8x512xf32>,
      %cst_23 = arith.constant 0.000000e+00 : f32
      %30 = vector.broadcast %cst_23 : f32 to vector<8x128xf32>
      %c0_24 = arith.constant 0 : index
      %c0_25 = arith.constant 0 : index
      %31 = vector.load %arg14[%c0_24, %c0_25] : memref<8x128xf32, #tpu.memory_space<vmem>>, vector<8x128xf32>
      tpu.vector_store %arg14[%c0_24, %c0_25], %30 {strides = array<i32>} : memref<8x128xf32, #tpu.memory_space<vmem>>, vector<8x128xf32>,
    } else {
    }
    %c0_i32_2 = arith.constant 0 : i32
    %5 = arith.cmpi eq, %arg1, %c0_i32_2 : i32
    %6 = arith.extui %5 : i1 to i32
    %c0_i32_3 = arith.constant 0 : i32
    %7 = arith.cmpi ne, %6, %c0_i32_3 : i32
    scf.if %7 {
      %c0_19 = arith.constant 0 : index
      %c0_20 = arith.constant 0 : index
      %28 = vector.load %arg3[%c0_19, %c0_20] : memref<16x256xbf16, #tpu.memory_space<vmem>>, vector<16x256xbf16>
      %c0_21 = arith.constant 0 : index
      %c0_22 = arith.constant 0 : index
      %c0_23 = arith.constant 0 : index
      %29 = vector.load %arg2[%c0_21, %c0_22, %c0_23] : memref<8x256x256xbf16, #tpu.memory_space<vmem>>, vector<1x256x256xbf16>
      %30 = vector.shape_cast %29 : vector<1x256x256xbf16> to vector<256x256xbf16>
      %cst_24 = arith.constant dense<0.000000e+00> : vector<16x256xf32>
      %31 = tpu.matmul %28, %30, %cst_24 {dimension_numbers = #tpu.dot_dimension_numbers<[1], [0], [0], [1], [0, 0, 1, 1], [], []>} : vector<16x256xbf16>, vector<256x256xbf16>, vector<16x256xf32> -> vector<16x256xf32>
      %c1 = arith.constant 1 : index
      %c0_25 = arith.constant 0 : index
      %c0_26 = arith.constant 0 : index
      %32 = vector.load %arg2[%c1, %c0_25, %c0_26] : memref<8x256x256xbf16, #tpu.memory_space<vmem>>, vector<1x256x256xbf16>
      %33 = vector.shape_cast %32 : vector<1x256x256xbf16> to vector<256x256xbf16>
      %cst_27 = arith.constant dense<0.000000e+00> : vector<16x256xf32>
      %34 = tpu.matmul %28, %33, %cst_27 {dimension_numbers = #tpu.dot_dimension_numbers<[1], [0], [0], [1], [0, 0, 1, 1], [], []>} : vector<16x256xbf16>, vector<256x256xbf16>, vector<16x256xf32> -> vector<16x256xf32>
      %c2 = arith.constant 2 : index
      %c0_28 = arith.constant 0 : index
      %c0_29 = arith.constant 0 : index
      %35 = vector.load %arg2[%c2, %c0_28, %c0_29] : memref<8x256x256xbf16, #tpu.memory_space<vmem>>, vector<1x256x256xbf16>
      %36 = vector.shape_cast %35 : vector<1x256x256xbf16> to vector<256x256xbf16>
      %cst_30 = arith.constant dense<0.000000e+00> : vector<16x256xf32>
      %37 = tpu.matmul %28, %36, %cst_30 {dimension_numbers = #tpu.dot_dimension_numbers<[1], [0], [0], [1], [0, 0, 1, 1], [], []>} : vector<16x256xbf16>, vector<256x256xbf16>, vector<16x256xf32> -> vector<16x256xf32>
      %c3 = arith.constant 3 : index
      %c0_31 = arith.constant 0 : index
      %c0_32 = arith.constant 0 : index
      %38 = vector.load %arg2[%c3, %c0_31, %c0_32] : memref<8x256x256xbf16, #tpu.memory_space<vmem>>, vector<1x256x256xbf16>
      %39 = vector.shape_cast %38 : vector<1x256x256xbf16> to vector<256x256xbf16>
      %cst_33 = arith.constant dense<0.000000e+00> : vector<16x256xf32>
      %40 = tpu.matmul %28, %39, %cst_33 {dimension_numbers = #tpu.dot_dimension_numbers<[1], [0], [0], [1], [0, 0, 1, 1], [], []>} : vector<16x256xbf16>, vector<256x256xbf16>, vector<16x256xf32> -> vector<16x256xf32>
      %c4 = arith.constant 4 : index
      %c0_34 = arith.constant 0 : index
      %c0_35 = arith.constant 0 : index
      %41 = vector.load %arg2[%c4, %c0_34, %c0_35] : memref<8x256x256xbf16, #tpu.memory_space<vmem>>, vector<1x256x256xbf16>
      %42 = vector.shape_cast %41 : vector<1x256x256xbf16> to vector<256x256xbf16>
      %cst_36 = arith.constant dense<0.000000e+00> : vector<16x256xf32>
      %43 = tpu.matmul %28, %42, %cst_36 {dimension_numbers = #tpu.dot_dimension_numbers<[1], [0], [0], [1], [0, 0, 1, 1], [], []>} : vector<16x256xbf16>, vector<256x256xbf16>, vector<16x256xf32> -> vector<16x256xf32>
      %c5 = arith.constant 5 : index
      %c0_37 = arith.constant 0 : index
      %c0_38 = arith.constant 0 : index
      %44 = vector.load %arg2[%c5, %c0_37, %c0_38] : memref<8x256x256xbf16, #tpu.memory_space<vmem>>, vector<1x256x256xbf16>
      %45 = vector.shape_cast %44 : vector<1x256x256xbf16> to vector<256x256xbf16>
      %cst_39 = arith.constant dense<0.000000e+00> : vector<16x256xf32>
      %46 = tpu.matmul %28, %45, %cst_39 {dimension_numbers = #tpu.dot_dimension_numbers<[1], [0], [0], [1], [0, 0, 1, 1], [], []>} : vector<16x256xbf16>, vector<256x256xbf16>, vector<16x256xf32> -> vector<16x256xf32>
      %c6 = arith.constant 6 : index
      %c0_40 = arith.constant 0 : index
      %c0_41 = arith.constant 0 : index
      %47 = vector.load %arg2[%c6, %c0_40, %c0_41] : memref<8x256x256xbf16, #tpu.memory_space<vmem>>, vector<1x256x256xbf16>
      %48 = vector.shape_cast %47 : vector<1x256x256xbf16> to vector<256x256xbf16>
      %cst_42 = arith.constant dense<0.000000e+00> : vector<16x256xf32>
      %49 = tpu.matmul %28, %48, %cst_42 {dimension_numbers = #tpu.dot_dimension_numbers<[1], [0], [0], [1], [0, 0, 1, 1], [], []>} : vector<16x256xbf16>, vector<256x256xbf16>, vector<16x256xf32> -> vector<16x256xf32>
      %c7 = arith.constant 7 : index
      %c0_43 = arith.constant 0 : index
      %c0_44 = arith.constant 0 : index
      %50 = vector.load %arg2[%c7, %c0_43, %c0_44] : memref<8x256x256xbf16, #tpu.memory_space<vmem>>, vector<1x256x256xbf16>
      %51 = vector.shape_cast %50 : vector<1x256x256xbf16> to vector<256x256xbf16>
      %cst_45 = arith.constant dense<0.000000e+00> : vector<16x256xf32>
      %52 = tpu.matmul %28, %51, %cst_45 {dimension_numbers = #tpu.dot_dimension_numbers<[1], [0], [0], [1], [0, 0, 1, 1], [], []>} : vector<16x256xbf16>, vector<256x256xbf16>, vector<16x256xf32> -> vector<16x256xf32>
      %53 = vector.shape_cast %31 : vector<16x256xf32> to vector<16x1x256xf32>
      %54 = vector.shape_cast %34 : vector<16x256xf32> to vector<16x1x256xf32>
      %55 = vector.shape_cast %37 : vector<16x256xf32> to vector<16x1x256xf32>
      %56 = vector.shape_cast %40 : vector<16x256xf32> to vector<16x1x256xf32>
      %57 = vector.shape_cast %43 : vector<16x256xf32> to vector<16x1x256xf32>
      %58 = vector.shape_cast %46 : vector<16x256xf32> to vector<16x1x256xf32>
      %59 = vector.shape_cast %49 : vector<16x256xf32> to vector<16x1x256xf32>
      %60 = vector.shape_cast %52 : vector<16x256xf32> to vector<16x1x256xf32>
      %61 = tpu.concatenate %53, %54, %55, %56, %57, %58, %59, %60 in 1 : vector<16x1x256xf32>, vector<16x1x256xf32>, vector<16x1x256xf32>, vector<16x1x256xf32>, vector<16x1x256xf32>, vector<16x1x256xf32>, vector<16x1x256xf32>, vector<16x1x256xf32> -> vector<16x8x256xf32>
      %62 = arith.truncf %61 : vector<16x8x256xf32> to vector<16x8x256xbf16>
      %c0_46 = arith.constant 0 : index
      %c0_47 = arith.constant 0 : index
      %c0_48 = arith.constant 0 : index
      %63 = vector.load %arg12[%c0_46, %c0_47, %c0_48] : memref<16x8x256xbf16, #tpu.memory_space<vmem>>, vector<16x8x256xbf16>
      tpu.vector_store %arg12[%c0_46, %c0_47, %c0_48], %62 {strides = array<i32>} : memref<16x8x256xbf16, #tpu.memory_space<vmem>>, vector<16x8x256xbf16>,
    } else {
    }
    %c0 = arith.constant 0 : index
    %c0_4 = arith.constant 0 : index
    %c0_5 = arith.constant 0 : index
    %8 = vector.load %arg12[%c0, %c0_4, %c0_5] : memref<16x8x256xbf16, #tpu.memory_space<vmem>>, vector<16x8x256xbf16>
    %c0_6 = arith.constant 0 : index
    %c0_7 = arith.constant 0 : index
    %c0_8 = arith.constant 0 : index
    %9 = vector.load %arg4[%c0_6, %c0_7, %c0_8] : memref<16x256x512xbf16, #tpu.memory_space<vmem>>, vector<16x256x512xbf16>
    %cst = arith.constant dense<0.000000e+00> : vector<16x8x512xf32>
    %10 = tpu.matmul %8, %9, %cst {dimension_numbers = #tpu.dot_dimension_numbers<[2], [1], [1], [2], [0, 0, 0, 1, 1, 2], [0], [0]>} : vector<16x8x256xbf16>, vector<16x256x512xbf16>, vector<16x8x512xf32> -> vector<16x8x512xf32>
    %11 = arith.index_cast %arg1 : i32 to index
    %c0_9 = arith.constant 0 : index
    %c0_10 = arith.constant 0 : index
    %12 = vector.load %arg13[%11, %c0_9, %c0_10] : memref<1x8x512xf32, #tpu.memory_space<vmem>>, vector<1x8x512xf32>
    %13 = vector.shape_cast %12 : vector<1x8x512xf32> to vector<8x512xf32>
    %cst_11 = arith.constant dense<0.000000e+00> : vector<8x512xf32>
    %14 = vector.multi_reduction <add>, %10, %cst_11 [0] : vector<16x8x512xf32> to vector<8x512xf32>
    %15 = arith.addf %13, %14 : vector<8x512xf32>
    %16 = arith.index_cast %arg1 : i32 to index
    %c0_12 = arith.constant 0 : index
    %c0_13 = arith.constant 0 : index
    %17 = vector.load %arg13[%16, %c0_12, %c0_13] : memref<1x8x512xf32, #tpu.memory_space<vmem>>, vector<1x8x512xf32>
    %18 = vector.shape_cast %17 : vector<1x8x512xf32> to vector<8x512xf32>
    %19 = vector.shape_cast %15 : vector<8x512xf32> to vector<1x8x512xf32>
    tpu.vector_store %arg13[%16, %c0_12, %c0_13], %19 {strides = array<i32>} : memref<1x8x512xf32, #tpu.memory_space<vmem>>, vector<1x8x512xf32>,
    %c0_i32_14 = arith.constant 0 : i32
    %20 = arith.cmpi eq, %arg0, %c0_i32_14 : i32
    %21 = arith.extui %20 : i1 to i32
    %c0_i32_15 = arith.constant 0 : i32
    %22 = arith.cmpi ne, %21, %c0_i32_15 : i32
    scf.if %22 {
      %28 = arith.index_cast %arg1 : i32 to index
      %c0_19 = arith.constant 0 : index
      %c0_20 = arith.constant 0 : index
      %29 = vector.load %arg13[%28, %c0_19, %c0_20] : memref<1x8x512xf32, #tpu.memory_space<vmem>>, vector<1x8x512xf32>
      %30 = vector.shape_cast %29 : vector<1x8x512xf32> to vector<8x512xf32>
      %c0_21 = arith.constant 0 : index
      %c0_22 = arith.constant 0 : index
      %31 = vector.load %arg5[%c0_21, %c0_22] : memref<1x512xf32, #tpu.memory_space<vmem>>, vector<1x512xf32>
      %32 = vector.broadcast %31 : vector<1x512xf32> to vector<8x512xf32>
      %33 = arith.addf %30, %32 : vector<8x512xf32>
      %cst_23 = arith.constant 0.000000e+00 : f32
      %34 = vector.broadcast %cst_23 : f32 to vector<8x512xf32>
      %35 = arith.cmpf ogt, %33, %34 : vector<8x512xf32>
      %cst_24 = arith.constant 0.00999999977 : f32
      %36 = vector.broadcast %cst_24 : f32 to vector<8x512xf32>
      %37 = arith.mulf %36, %33 : vector<8x512xf32>
      %38 = arith.select %35, %33, %37 : vector<8x512xi1>, vector<8x512xf32>
      %c0_25 = arith.constant 0 : index
      %c0_26 = arith.constant 0 : index
      %39 = vector.load %arg14[%c0_25, %c0_26] : memref<8x128xf32, #tpu.memory_space<vmem>>, vector<8x128xf32>
      %c0_27 = arith.constant 0 : index
      %c0_28 = arith.constant 0 : index
      %40 = vector.load %arg6[%c0_27, %c0_28] : memref<512x128xf32, #tpu.memory_space<vmem>>, vector<512x128xf32>
      %cst_29 = arith.constant dense<0.000000e+00> : vector<8x128xf32>
      %41 = tpu.matmul %38, %40, %cst_29 {dimension_numbers = #tpu.dot_dimension_numbers<[1], [0], [0], [1], [0, 0, 1, 1], [], []>} : vector<8x512xf32>, vector<512x128xf32>, vector<8x128xf32> -> vector<8x128xf32>
      %42 = arith.addf %39, %41 : vector<8x128xf32>
      %c0_30 = arith.constant 0 : index
      %c0_31 = arith.constant 0 : index
      %43 = vector.load %arg14[%c0_30, %c0_31] : memref<8x128xf32, #tpu.memory_space<vmem>>, vector<8x128xf32>
      tpu.vector_store %arg14[%c0_30, %c0_31], %42 {strides = array<i32>} : memref<8x128xf32, #tpu.memory_space<vmem>>, vector<8x128xf32>,
    } else {
    }
    %c0_i32_16 = arith.constant 0 : i32
    %23 = arith.cmpi eq, %arg0, %c0_i32_16 : i32
    %c0_i32_17 = arith.constant 0 : i32
    %24 = arith.cmpi eq, %arg1, %c0_i32_17 : i32
    %25 = arith.andi %23, %24 : i1
    %26 = arith.extui %25 : i1 to i32
    %c0_i32_18 = arith.constant 0 : i32
    %27 = arith.cmpi ne, %26, %c0_i32_18 : i32
    scf.if %27 {
      %c0_19 = arith.constant 0 : index
      %c0_20 = arith.constant 0 : index
      %28 = vector.load %arg14[%c0_19, %c0_20] : memref<8x128xf32, #tpu.memory_space<vmem>>, vector<8x128xf32>
      %c0_21 = arith.constant 0 : index
      %c0_22 = arith.constant 0 : index
      %29 = vector.load %arg7[%c0_21, %c0_22] : memref<1x128xf32, #tpu.memory_space<vmem>>, vector<1x128xf32>
      %30 = vector.broadcast %29 : vector<1x128xf32> to vector<8x128xf32>
      %31 = arith.addf %28, %30 : vector<8x128xf32>
      %cst_23 = arith.constant 0.000000e+00 : f32
      %32 = vector.broadcast %cst_23 : f32 to vector<8x128xf32>
      %33 = arith.cmpf ogt, %31, %32 : vector<8x128xf32>
      %cst_24 = arith.constant 0.00999999977 : f32
      %34 = vector.broadcast %cst_24 : f32 to vector<8x128xf32>
      %35 = arith.mulf %34, %31 : vector<8x128xf32>
      %36 = arith.select %33, %31, %35 : vector<8x128xi1>, vector<8x128xf32>
      %c0_25 = arith.constant 0 : index
      %c0_26 = arith.constant 0 : index
      %37 = vector.load %arg11[%c0_25, %c0_26] : memref<8x128xf32, #tpu.memory_space<vmem>>, vector<8x128xf32>
      tpu.vector_store %arg11[%c0_25, %c0_26], %36 {strides = array<i32>} : memref<8x128xf32, #tpu.memory_space<vmem>>, vector<8x128xf32>,
      %c0_27 = arith.constant 0 : index
      %c0_28 = arith.constant 0 : index
      %38 = vector.load %arg8[%c0_27, %c0_28] : memref<128x128xf32, #tpu.memory_space<vmem>>, vector<128x128xf32>
      %cst_29 = arith.constant dense<0.000000e+00> : vector<8x128xf32>
      %39 = tpu.matmul %36, %38, %cst_29 {dimension_numbers = #tpu.dot_dimension_numbers<[1], [0], [0], [1], [0, 0, 1, 1], [], []>} : vector<8x128xf32>, vector<128x128xf32>, vector<8x128xf32> -> vector<8x128xf32>
      %c0_30 = arith.constant 0 : index
      %c0_31 = arith.constant 0 : index
      %40 = vector.load %arg9[%c0_30, %c0_31] : memref<1x128xf32, #tpu.memory_space<vmem>>, vector<1x128xf32>
      %41 = vector.broadcast %40 : vector<1x128xf32> to vector<8x128xf32>
      %42 = arith.addf %39, %41 : vector<8x128xf32>
      %c0_32 = arith.constant 0 : index
      %c0_33 = arith.constant 0 : index
      %43 = vector.load %arg10[%c0_32, %c0_33] : memref<8x128xf32, #tpu.memory_space<vmem>>, vector<8x128xf32>
      tpu.vector_store %arg10[%c0_32, %c0_33], %42 {strides = array<i32>} : memref<8x128xf32, #tpu.memory_space<vmem>>, vector<8x128xf32>,
    } else {
    }
    return
  }
  func.func @transform_0(%arg0: i32, %arg1: i32) -> (i32, i32, i32) {
    %c0_i32 = arith.constant 0 : i32
    %c0_i32_0 = arith.constant 0 : i32
    %c0_i32_1 = arith.constant 0 : i32
    return %c0_i32, %c0_i32_0, %arg0 : i32, i32, i32
  }
  func.func @transform_1(%arg0: i32, %arg1: i32) -> (i32, i32) {
    %c0_i32 = arith.constant 0 : i32
    %c0_i32_0 = arith.constant 0 : i32
    %c0_i32_1 = arith.constant 0 : i32
    return %c0_i32, %c0_i32_0 : i32, i32
  }
  func.func @transform_2(%arg0: i32, %arg1: i32) -> (i32, i32, i32) {
    %c0_i32 = arith.constant 0 : i32
    %c0_i32_0 = arith.constant 0 : i32
    return %c0_i32, %arg0, %arg1 : i32, i32, i32
  }
  func.func @transform_3(%arg0: i32, %arg1: i32) -> (i32, i32) {
    %c0_i32 = arith.constant 0 : i32
    %c0_i32_0 = arith.constant 0 : i32
    return %c0_i32, %arg1 : i32, i32
  }
  func.func @transform_4(%arg0: i32, %arg1: i32) -> (i32, i32) {
    %c0_i32 = arith.constant 0 : i32
    %c0_i32_0 = arith.constant 0 : i32
    return %arg1, %c0_i32 : i32, i32
  }
  func.func @transform_5(%arg0: i32, %arg1: i32) -> (i32, i32) {
    %c0_i32 = arith.constant 0 : i32
    %c0_i32_0 = arith.constant 0 : i32
    %c0_i32_1 = arith.constant 0 : i32
    return %c0_i32, %c0_i32_0 : i32, i32
  }
  func.func @transform_6(%arg0: i32, %arg1: i32) -> (i32, i32) {
    %c0_i32 = arith.constant 0 : i32
    %c0_i32_0 = arith.constant 0 : i32
    %c0_i32_1 = arith.constant 0 : i32
    return %c0_i32, %c0_i32_0 : i32, i32
  }
  func.func @transform_7(%arg0: i32, %arg1: i32) -> (i32, i32) {
    %c0_i32 = arith.constant 0 : i32
    %c0_i32_0 = arith.constant 0 : i32
    %c0_i32_1 = arith.constant 0 : i32
    return %c0_i32, %c0_i32_0 : i32, i32
  }
  func.func @transform_8(%arg0: i32, %arg1: i32) -> (i32, i32) {
    %c0_i32 = arith.constant 0 : i32
    %c0_i32_0 = arith.constant 0 : i32
    %c0_i32_1 = arith.constant 0 : i32
    return %c0_i32, %c0_i32_0 : i32, i32
  }
  func.func @transform_9(%arg0: i32, %arg1: i32) -> (i32, i32) {
    %c0_i32 = arith.constant 0 : i32
    %c0_i32_0 = arith.constant 0 : i32
    %c0_i32_1 = arith.constant 0 : i32
    return %c0_i32, %c0_i32_0 : i32, i32
  }
}

</mosaic_0001>

<bundles_post_ra>
// kernel: _lambda_.1
= control target key start
LH: loop header
LB: loop body
LE: loop exit
PB: predicated region body
PF: predicated region fallthrough
CT: control target
= control target key end

     0   :  { %vm4056_vm0 = vcmask 1040384   ;;  %vm4089_vm1 = vcmask 1041408   ;;  %vm4122_vm2 = vcmask 1042432   ;;  %vm4155_vm3 = vcmask 1043456   ;;  %s22298_s0 = inlined_call_operand.vmem [shape: bf16[8,256,256], index: 0, kind: input, shape index: {}]   ;;  %s22299_s1 = inlined_call_operand.vmem [shape: bf16[16,256], index: 1, kind: input, shape index: {}]   ;;  %s22300_s2 = inlined_call_operand.vmem [shape: bf16[16,256,512], index: 2, kind: input, shape index: {}]   ;;  %s22301_s4 = inlined_call_operand.vmem [shape: f32[512,128], index: 4, kind: input, shape index: {}]   ;;  %s22302_s3 = inlined_call_operand.vmem [shape: f32[1,512], index: 3, kind: input, shape index: {}]   ;;  %s22303_s6 = inlined_call_operand.vmem [shape: f32[128,128], index: 6, kind: input, shape index: {}]   ;;  %s22304_s5 = inlined_call_operand.vmem [shape: f32[1,128], index: 5, kind: input, shape index: {}]   ;;  %s22305_s9 = inlined_call_operand.vmem [shape: f32[8,128], index: 9, kind: output, shape index: {1}]   ;;  %s22306_s7 = inlined_call_operand.vmem [shape: f32[1,128], index: 7, kind: input, shape index: {}]   ;;  %s22307_s8 = inlined_call_operand.vmem [shape: f32[8,128], index: 8, kind: output, shape index: {0}]  }
   0x1   :  { %v14277_v0 = vld [vmem:[%s22298_s0 + $0x4] ss:$8 sps:$4 sm:$0xff]   ;;  %v14281_v2 = vld [vmem:[%s22298_s0] ss:$8 sps:$4 sm:$0xff]   ;;  %v14283_v4 = vld [vmem:[%s22298_s0 + $0x14] ss:$8 sps:$4 sm:$0xff]  }
   0x2   :  { %v14279_v1 = vld [vmem:[%s22298_s0 + $0x104] ss:$8 sps:$4 sm:$0xff]   ;;  %249 = vmatprep.subr.bf16.mxu0 %v14277_v0  ;;  %v14282_v3 = vld [vmem:[%s22298_s0 + $0x100] ss:$8 sps:$4 sm:$0xff]   ;;  %v14285_v5 = vld [vmem:[%s22298_s0 + $0x114] ss:$8 sps:$4 sm:$0xff]  }
   0x3   :  { %485 = vmatprep.subr.bf16.mxu1 %v14279_v1  ;;  %250 = vmatpush1.bf16.msra.mxu0 %v14281_v2  ;;  %v14287_v6 = vld [vmem:[%s22298_s0 + $0x10] ss:$8 sps:$4 sm:$0xff]   ;;  %v14289_v8 = vld [vmem:[%s22298_s0 + $0x24] ss:$8 sps:$4 sm:$0xff]   ;;  %v14293_v10 = vld [vmem:[%s22298_s0 + $0x20] ss:$8 sps:$4 sm:$0xff]  }
   0x4   :  { %486 = vmatpush1.bf16.msra.mxu1 %v14282_v3  ;;  %251 = vmatprep.subr.bf16.mxu0 %v14283_v4  ;;  %v14288_v7 = vld [vmem:[%s22298_s0 + $0x110] ss:$8 sps:$4 sm:$0xff]   ;;  %v14291_v9 = vld [vmem:[%s22298_s0 + $0x124] ss:$8 sps:$4 sm:$0xff]   ;;  %v14294_v11 = vld [vmem:[%s22298_s0 + $0x120] ss:$8 sps:$4 sm:$0xff]  }
   0x5   :  { %487 = vmatprep.subr.bf16.mxu1 %v14285_v5  ;;  %v14295_v12 = vld [vmem:[%s22298_s0 + $0x34] ss:$8 sps:$4 sm:$0xff]   ;;  %v14299_v14 = vld [vmem:[%s22298_s0 + $0x30] ss:$8 sps:$4 sm:$0xff]   ;;  %v14301_v16 = vld [vmem:[%s22298_s0 + $0x44] ss:$8 sps:$4 sm:$0xff]  }
   0x6   :  { %v14297_v13 = vld [vmem:[%s22298_s0 + $0x134] ss:$8 sps:$4 sm:$0xff]   ;;  %v14300_v15 = vld [vmem:[%s22298_s0 + $0x130] ss:$8 sps:$4 sm:$0xff]   ;;  %v14303_v17 = vld [vmem:[%s22298_s0 + $0x144] ss:$8 sps:$4 sm:$0xff]  }
   0x7   :  { %252 = vmatpush1.bf16.msra.mxu0 %v14287_v6  ;;  %v14305_v18 = vld [vmem:[%s22298_s0 + $0x40] ss:$8 sps:$4 sm:$0xff]   ;;  %v14307_v20 = vld [vmem:[%s22298_s0 + $0x54] ss:$8 sps:$4 sm:$0xff]   ;;  %v14311_v22 = vld [vmem:[%s22298_s0 + $0x50] ss:$8 sps:$4 sm:$0xff]  }
   0x8   :  { %488 = vmatpush1.bf16.msra.mxu1 %v14288_v7  ;;  %253 = vmatprep.subr.bf16.mxu0 %v14289_v8  ;;  %v14306_v19 = vld [vmem:[%s22298_s0 + $0x140] ss:$8 sps:$4 sm:$0xff]   ;;  %v14309_v21 = vld [vmem:[%s22298_s0 + $0x154] ss:$8 sps:$4 sm:$0xff]   ;;  %v14312_v23 = vld [vmem:[%s22298_s0 + $0x150] ss:$8 sps:$4 sm:$0xff]  }
   0x9   :  { %489 = vmatprep.subr.bf16.mxu1 %v14291_v9  ;;  %v14313_v24 = vld [vmem:[%s22298_s0 + $0x64] ss:$8 sps:$4 sm:$0xff]   ;;  %v14317_v26 = vld [vmem:[%s22298_s0 + $0x60] ss:$8 sps:$4 sm:$0xff]   ;;  %v14319_v28 = vld [vmem:[%s22298_s0 + $0x74] ss:$8 sps:$4 sm:$0xff]  }
   0xa   :  { %v14315_v25 = vld [vmem:[%s22298_s0 + $0x164] ss:$8 sps:$4 sm:$0xff]   ;;  %v14318_v27 = vld [vmem:[%s22298_s0 + $0x160] ss:$8 sps:$4 sm:$0xff]   ;;  %v14321_v29 = vld [vmem:[%s22298_s0 + $0x174] ss:$8 sps:$4 sm:$0xff]  }
   0xb   :  { %254 = vmatpush1.bf16.msra.mxu0 %v14293_v10  ;;  %v14323_v30 = vld [vmem:[%s22298_s0 + $0x70] ss:$8 sps:$4 sm:$0xff]   ;;  %v14325_v32 = vld [vmem:[%s22298_s0 + $0x84] ss:$8 sps:$4 sm:$0xff]   ;;  %v14329_v34 = vld [vmem:[%s22298_s0 + $0x80] ss:$8 sps:$4 sm:$0xff]  }
   0xc   :  { %490 = vmatpush1.bf16.msra.mxu1 %v14294_v11  ;;  %255 = vmatprep.subr.bf16.mxu0 %v14295_v12  ;;  %v14324_v31 = vld [vmem:[%s22298_s0 + $0x170] ss:$8 sps:$4 sm:$0xff]   ;;  %v14327_v33 = vld [vmem:[%s22298_s0 + $0x184] ss:$8 sps:$4 sm:$0xff]   ;;  %v14330_v35 = vld [vmem:[%s22298_s0 + $0x180] ss:$8 sps:$4 sm:$0xff]  }
   0xd   :  { %491 = vmatprep.subr.bf16.mxu1 %v14297_v13  ;;  %v14331_v36 = vld [vmem:[%s22298_s0 + $0x94] ss:$8 sps:$4 sm:$0xff]   ;;  %v14335_v38 = vld [vmem:[%s22298_s0 + $0x90] ss:$8 sps:$4 sm:$0xff]   ;;  %v14337_v40 = vld [vmem:[%s22298_s0 + $0xa4] ss:$8 sps:$4 sm:$0xff]  }
   0xe   :  { %v14333_v37 = vld [vmem:[%s22298_s0 + $0x194] ss:$8 sps:$4 sm:$0xff]   ;;  %v14336_v39 = vld [vmem:[%s22298_s0 + $0x190] ss:$8 sps:$4 sm:$0xff]   ;;  %v14339_v41 = vld [vmem:[%s22298_s0 + $0x1a4] ss:$8 sps:$4 sm:$0xff]  }
   0xf   :  { %256 = vmatpush1.bf16.msra.mxu0 %v14299_v14  ;;  %v14341_v42 = vld [vmem:[%s22298_s0 + $0xa0] ss:$8 sps:$4 sm:$0xff]   ;;  %v14343_v44 = vld [vmem:[%s22298_s0 + $0xb4] ss:$8 sps:$4 sm:$0xff]   ;;  %v14347_v46 = vld [vmem:[%s22298_s0 + $0xb0] ss:$8 sps:$4 sm:$0xff]  }
  0x10   :  { %492 = vmatpush1.bf16.msra.mxu1 %v14300_v15  ;;  %257 = vmatprep.subr.bf16.mxu0 %v14301_v16  ;;  %v14342_v43 = vld [vmem:[%s22298_s0 + $0x1a0] ss:$8 sps:$4 sm:$0xff]   ;;  %v14345_v45 = vld [vmem:[%s22298_s0 + $0x1b4] ss:$8 sps:$4 sm:$0xff]   ;;  %v14348_v47 = vld [vmem:[%s22298_s0 + $0x1b0] ss:$8 sps:$4 sm:$0xff]  }
  0x11   :  { %493 = vmatprep.subr.bf16.mxu1 %v14303_v17  ;;  %v16403_v48 = vld [vmem:[%s22299_s1 + $0x4] ss:$8 sps:$4 sm:$0xff]   ;;  %v14353_v51 = vld [vmem:[%s22298_s0 + $0xc0] ss:$8 sps:$4 sm:$0xff]   ;;  %v14355_v53 = vld [vmem:[%s22298_s0 + $0xd4] ss:$8 sps:$4 sm:$0xff]  }
  0x12   :  { %v14349_v49 = vld [vmem:[%s22298_s0 + $0xc4] ss:$8 sps:$4 sm:$0xff]   ;;  %281 = vmatprep.mubr.bf16.mxu0 %v16403_v48  ;;  %517 = vmatprep.mubr.bf16.mxu1 %v16403_v48  ;;  %v14354_v52 = vld [vmem:[%s22298_s0 + $0x1c0] ss:$8 sps:$4 sm:$0xff]   ;;  %v14357_v54 = vld [vmem:[%s22298_s0 + $0x1d4] ss:$8 sps:$4 sm:$0xff]  }
  0x13   :  { %258 = vmatpush1.bf16.msra.mxu0 %v14305_v18  ;;  %v14351_v50 = vld [vmem:[%s22298_s0 + $0x1c4] ss:$8 sps:$4 sm:$0xff]   ;;  %v14359_v55 = vld [vmem:[%s22298_s0 + $0xd0] ss:$8 sps:$4 sm:$0xff]   ;;  %v14365_v59 = vld [vmem:[%s22298_s0 + $0xe0] ss:$8 sps:$4 sm:$0xff]  }
  0x14   :  { %494 = vmatpush1.bf16.msra.mxu1 %v14306_v19  ;;  %259 = vmatprep.subr.bf16.mxu0 %v14307_v20  ;;  %v14360_v56 = vld [vmem:[%s22298_s0 + $0x1d0] ss:$8 sps:$4 sm:$0xff]   ;;  %v14361_v57 = vld [vmem:[%s22298_s0 + $0xe4] ss:$8 sps:$4 sm:$0xff]   ;;  %v14366_v60 = vld [vmem:[%s22298_s0 + $0x1e0] ss:$8 sps:$4 sm:$0xff]  }
  0x15   :  { %495 = vmatprep.subr.bf16.mxu1 %v14309_v21  ;;  %v14363_v58 = vld [vmem:[%s22298_s0 + $0x1e4] ss:$8 sps:$4 sm:$0xff]   ;;  %v14367_v61 = vld [vmem:[%s22298_s0 + $0xf4] ss:$8 sps:$4 sm:$0xff]   ;;  %v14371_v63 = vld [vmem:[%s22298_s0 + $0xf0] ss:$8 sps:$4 sm:$0xff]  }
  0x16   :  { %v14369_v62 = vld [vmem:[%s22298_s0 + $0x1f4] ss:$8 sps:$4 sm:$0xff]   ;;  %v14372_v0 = vld [vmem:[%s22298_s0 + $0x1f0] ss:$8 sps:$4 sm:$0xff]   ;;  %v14378_v1 = vld [vmem:[%s22298_s0 + $0x204] ss:$8 sps:$4 sm:$0xff]  }
  0x17   :  { %260 = vmatpush1.bf16.msra.mxu0 %v14311_v22  ;;  %v14381_v2 = vld [vmem:[%s22298_s0 + $0x304] ss:$8 sps:$4 sm:$0xff]   ;;  %v16464_v3 = vld [vmem:[%s22299_s1] ss:$8 sps:$4 sm:$0xff]   ;;  %v14384_v6 = vld [vmem:[%s22298_s0 + $0x214] ss:$8 sps:$4 sm:$0xff]  }
  0x18   :  { %496 = vmatpush1.bf16.msra.mxu1 %v14312_v23  ;;  %261 = vmatprep.subr.bf16.mxu0 %v14313_v24  ;;  %v14376_v4 = vld [vmem:[%s22298_s0 + $0x200] ss:$8 sps:$4 sm:$0xff]   ;;  %v14387_v7 = vld [vmem:[%s22298_s0 + $0x314] ss:$8 sps:$4 sm:$0xff]   ;;  %v14382_v8 = vld [vmem:[%s22298_s0 + $0x210] ss:$8 sps:$4 sm:$0xff]  }
  0x19   :  { %497 = vmatprep.subr.bf16.mxu1 %v14315_v25  ;;  %v14379_v5 = vld [vmem:[%s22298_s0 + $0x300] ss:$8 sps:$4 sm:$0xff]   ;;  %v14385_v9 = vld [vmem:[%s22298_s0 + $0x310] ss:$8 sps:$4 sm:$0xff]   ;;  %v14390_v10 = vld [vmem:[%s22298_s0 + $0x224] ss:$8 sps:$4 sm:$0xff]  }
  0x1a   :  { %v14393_v11 = vld [vmem:[%s22298_s0 + $0x324] ss:$8 sps:$4 sm:$0xff]   ;;  %v14388_v12 = vld [vmem:[%s22298_s0 + $0x220] ss:$8 sps:$4 sm:$0xff]   ;;  %v14396_v14 = vld [vmem:[%s22298_s0 + $0x234] ss:$8 sps:$4 sm:$0xff]  }
  0x1b   :  { %262 = vmatpush1.bf16.msra.mxu0 %v14317_v26  ;;  %v14391_v13 = vld [vmem:[%s22298_s0 + $0x320] ss:$8 sps:$4 sm:$0xff]   ;;  %v14399_v15 = vld [vmem:[%s22298_s0 + $0x334] ss:$8 sps:$4 sm:$0xff]   ;;  %v14394_v16 = vld [vmem:[%s22298_s0 + $0x230] ss:$8 sps:$4 sm:$0xff]  }
  0x1c   :  { %498 = vmatpush1.bf16.msra.mxu1 %v14318_v27  ;;  %263 = vmatprep.subr.bf16.mxu0 %v14319_v28  ;;  %v14397_v17 = vld [vmem:[%s22298_s0 + $0x330] ss:$8 sps:$4 sm:$0xff]   ;;  %v14402_v18 = vld [vmem:[%s22298_s0 + $0x244] ss:$8 sps:$4 sm:$0xff]   ;;  %v14400_v20 = vld [vmem:[%s22298_s0 + $0x240] ss:$8 sps:$4 sm:$0xff]  }
  0x1d   :  { %499 = vmatprep.subr.bf16.mxu1 %v14321_v29  ;;  %v14405_v19 = vld [vmem:[%s22298_s0 + $0x344] ss:$8 sps:$4 sm:$0xff]   ;;  %v14403_v21 = vld [vmem:[%s22298_s0 + $0x340] ss:$8 sps:$4 sm:$0xff]   ;;  %v14408_v22 = vld [vmem:[%s22298_s0 + $0x254] ss:$8 sps:$4 sm:$0xff]  }
  0x1e   :  { %v14411_v23 = vld [vmem:[%s22298_s0 + $0x354] ss:$8 sps:$4 sm:$0xff]   ;;  %v14406_v24 = vld [vmem:[%s22298_s0 + $0x250] ss:$8 sps:$4 sm:$0xff]   ;;  %v14414_v26 = vld [vmem:[%s22298_s0 + $0x264] ss:$8 sps:$4 sm:$0xff]  }
  0x1f   :  { %264 = vmatpush1.bf16.msra.mxu0 %v14323_v30  ;;  %v14409_v25 = vld [vmem:[%s22298_s0 + $0x350] ss:$8 sps:$4 sm:$0xff]   ;;  %v14417_v27 = vld [vmem:[%s22298_s0 + $0x364] ss:$8 sps:$4 sm:$0xff]   ;;  %v14412_v28 = vld [vmem:[%s22298_s0 + $0x260] ss:$8 sps:$4 sm:$0xff]  }
  0x20   :  { %500 = vmatpush1.bf16.msra.mxu1 %v14324_v31  ;;  %265 = vmatprep.subr.bf16.mxu0 %v14325_v32  ;;  %v14415_v29 = vld [vmem:[%s22298_s0 + $0x360] ss:$8 sps:$4 sm:$0xff]   ;;  %v14420_v30 = vld [vmem:[%s22298_s0 + $0x274] ss:$8 sps:$4 sm:$0xff]   ;;  %v14418_v32 = vld [vmem:[%s22298_s0 + $0x270] ss:$8 sps:$4 sm:$0xff]  }
  0x21   :  { %501 = vmatprep.subr.bf16.mxu1 %v14327_v33  ;;  %v14423_v31 = vld [vmem:[%s22298_s0 + $0x374] ss:$8 sps:$4 sm:$0xff]   ;;  %v14421_v33 = vld [vmem:[%s22298_s0 + $0x370] ss:$8 sps:$4 sm:$0xff]   ;;  %vm4188_vm4 = vcmask 1044480   ;;  %vm4221_vm5 = vcmask 1045504  }
  0x22   :  { %vm4254_vm6 = vcmask 1046528   ;;  %vm16204_vm11 = vmmov 0  }
  0x23   :  { %266 = vmatpush1.bf16.msra.mxu0 %v14329_v34  ;;  %v14426_v34 = vld [vmem:[%s22298_s0 + $0x284] ss:$8 sps:$4 sm:$0xff]  }
  0x24   :  { %502 = vmatpush1.bf16.msra.mxu1 %v14330_v35  ;;  %267 = vmatprep.subr.bf16.mxu0 %v14331_v36  ;;  %v14429_v35 = vld [vmem:[%s22298_s0 + $0x384] ss:$8 sps:$4 sm:$0xff]   ;;  %v14424_v36 = vld [vmem:[%s22298_s0 + $0x280] ss:$8 sps:$4 sm:$0xff]  }
  0x25   :  { %503 = vmatprep.subr.bf16.mxu1 %v14333_v37  ;;  %v14427_v37 = vld [vmem:[%s22298_s0 + $0x380] ss:$8 sps:$4 sm:$0xff]  }
  0x27   :  { %268 = vmatpush1.bf16.msra.mxu0 %v14335_v38  ;;  %v14432_v38 = vld [vmem:[%s22298_s0 + $0x294] ss:$8 sps:$4 sm:$0xff]  }
  0x28   :  { %504 = vmatpush1.bf16.msra.mxu1 %v14336_v39  ;;  %269 = vmatprep.subr.bf16.mxu0 %v14337_v40  ;;  %v14435_v39 = vld [vmem:[%s22298_s0 + $0x394] ss:$8 sps:$4 sm:$0xff]   ;;  %v14430_v40 = vld [vmem:[%s22298_s0 + $0x290] ss:$8 sps:$4 sm:$0xff]  }
  0x29   :  { %505 = vmatprep.subr.bf16.mxu1 %v14339_v41  ;;  %v14433_v41 = vld [vmem:[%s22298_s0 + $0x390] ss:$8 sps:$4 sm:$0xff]  }
  0x2b   :  { %270 = vmatpush1.bf16.msra.mxu0 %v14341_v42  ;;  %v14438_v42 = vld [vmem:[%s22298_s0 + $0x2a4] ss:$8 sps:$4 sm:$0xff]  }
  0x2c   :  { %506 = vmatpush1.bf16.msra.mxu1 %v14342_v43  ;;  %271 = vmatprep.subr.bf16.mxu0 %v14343_v44  ;;  %v14441_v43 = vld [vmem:[%s22298_s0 + $0x3a4] ss:$8 sps:$4 sm:$0xff]   ;;  %v14436_v44 = vld [vmem:[%s22298_s0 + $0x2a0] ss:$8 sps:$4 sm:$0xff]  }
  0x2d   :  { %507 = vmatprep.subr.bf16.mxu1 %v14345_v45  ;;  %v14439_v45 = vld [vmem:[%s22298_s0 + $0x3a0] ss:$8 sps:$4 sm:$0xff]  }
  0x2f   :  { %272 = vmatpush1.bf16.msra.mxu0 %v14347_v46  ;;  %v14444_v46 = vld [vmem:[%s22298_s0 + $0x2b4] ss:$8 sps:$4 sm:$0xff]  }
  0x30   :  { %508 = vmatpush1.bf16.msra.mxu1 %v14348_v47  ;;  %273 = vmatprep.subr.bf16.mxu0 %v14349_v49  ;;  %v14447_v47 = vld [vmem:[%s22298_s0 + $0x3b4] ss:$8 sps:$4 sm:$0xff]   ;;  %v14442_v49 = vld [vmem:[%s22298_s0 + $0x2b0] ss:$8 sps:$4 sm:$0xff]  }
  0x31   :  { %509 = vmatprep.subr.bf16.mxu1 %v14351_v50  ;;  %v14445_v50 = vld [vmem:[%s22298_s0 + $0x3b0] ss:$8 sps:$4 sm:$0xff]  }
  0x33   :  { %274 = vmatpush1.bf16.msra.mxu0 %v14353_v51  ;;  %v14450_v51 = vld [vmem:[%s22298_s0 + $0x2c4] ss:$8 sps:$4 sm:$0xff]  }
  0x34   :  { %510 = vmatpush1.bf16.msra.mxu1 %v14354_v52  ;;  %275 = vmatprep.subr.bf16.mxu0 %v14355_v53  ;;  %v14453_v52 = vld [vmem:[%s22298_s0 + $0x3c4] ss:$8 sps:$4 sm:$0xff]   ;;  %v14448_v53 = vld [vmem:[%s22298_s0 + $0x2c0] ss:$8 sps:$4 sm:$0xff]  }
  0x35   :  { %511 = vmatprep.subr.bf16.mxu1 %v14357_v54  ;;  %v14451_v54 = vld [vmem:[%s22298_s0 + $0x3c0] ss:$8 sps:$4 sm:$0xff]  }
  0x37   :  { %276 = vmatpush1.bf16.msra.mxu0 %v14359_v55  ;;  %v14456_v55 = vld [vmem:[%s22298_s0 + $0x2d4] ss:$8 sps:$4 sm:$0xff]  }
  0x38   :  { %512 = vmatpush1.bf16.msra.mxu1 %v14360_v56  ;;  %277 = vmatprep.subr.bf16.mxu0 %v14361_v57  ;;  %v14459_v56 = vld [vmem:[%s22298_s0 + $0x3d4] ss:$8 sps:$4 sm:$0xff]   ;;  %v14454_v57 = vld [vmem:[%s22298_s0 + $0x2d0] ss:$8 sps:$4 sm:$0xff]  }
  0x39   :  { %513 = vmatprep.subr.bf16.mxu1 %v14363_v58  ;;  %v14457_v58 = vld [vmem:[%s22298_s0 + $0x3d0] ss:$8 sps:$4 sm:$0xff]  }
  0x3b   :  { %278 = vmatpush1.bf16.msra.mxu0 %v14365_v59  ;;  %v14462_v59 = vld [vmem:[%s22298_s0 + $0x2e4] ss:$8 sps:$4 sm:$0xff]  }
  0x3c   :  { %514 = vmatpush1.bf16.msra.mxu1 %v14366_v60  ;;  %279 = vmatprep.subr.bf16.mxu0 %v14367_v61  ;;  %v14465_v60 = vld [vmem:[%s22298_s0 + $0x3e4] ss:$8 sps:$4 sm:$0xff]   ;;  %v14460_v61 = vld [vmem:[%s22298_s0 + $0x2e0] ss:$8 sps:$4 sm:$0xff]  }
  0x3d   :  { %515 = vmatprep.subr.bf16.mxu1 %v14369_v62  ;;  %v14463_v62 = vld [vmem:[%s22298_s0 + $0x3e0] ss:$8 sps:$4 sm:$0xff]  }
  0x3f   :  { %280 = vmatpush1.bf16.msra.mxu0 %v14371_v63  ;;  %v14468_v63 = vld [vmem:[%s22298_s0 + $0x2f4] ss:$8 sps:$4 sm:$0xff]  }
  0x40   :  { %516 = vmatpush1.bf16.msra.mxu1 %v14372_v0  ;;  %721 = vmatprep.subr.bf16.mxu0 %v14378_v1  ;;  %v14471_v0 = vld [vmem:[%s22298_s0 + $0x3f4] ss:$8 sps:$4 sm:$0xff]   ;;  %v14466_v1 = vld [vmem:[%s22298_s0 + $0x2f0] ss:$8 sps:$4 sm:$0xff]  }
  0x41   :  { %957 = vmatprep.subr.bf16.mxu1 %v14381_v2  ;;  %v14469_v2 = vld [vmem:[%s22298_s0 + $0x3f0] ss:$8 sps:$4 sm:$0xff]  }
  0x42   :  { %282 = vmatmul.mubr.bf16.vlgmr.msra.gmra.mrb[0].mxu0 %v16464_v3 }
  0x43   :  { %518 = vmatmul.mubr.bf16.vlgmr.msra.gmra.mrb[0].mxu1 %v16464_v3  ;;  %722 = vmatpush1.bf16.msra.mxu0 %v14376_v4  ;;  %v14474_v4 = vld [vmem:[%s22298_s0 + $0x404] ss:$8 sps:$4 sm:$0xff]  }
  0x44   :  { %958 = vmatpush1.bf16.msra.mxu1 %v14379_v5  ;;  %723 = vmatprep.subr.bf16.mxu0 %v14384_v6  ;;  %v14477_v5 = vld [vmem:[%s22298_s0 + $0x504] ss:$8 sps:$4 sm:$0xff]   ;;  %v14472_v6 = vld [vmem:[%s22298_s0 + $0x400] ss:$8 sps:$4 sm:$0xff]  }
  0x45   :  { %959 = vmatprep.subr.bf16.mxu1 %v14387_v7  ;;  %753 = vmatprep.mubr.bf16.mxu0 %v16403_v48  ;;  %v14475_v7 = vld [vmem:[%s22298_s0 + $0x500] ss:$8 sps:$4 sm:$0xff]  }
  0x46   :  { %989 = vmatprep.mubr.bf16.mxu1 %v16403_v48 }
  0x47   :  { %724 = vmatpush1.bf16.msra.mxu0 %v14382_v8  ;;  %v14480_v8 = vld [vmem:[%s22298_s0 + $0x414] ss:$8 sps:$4 sm:$0xff]  }
  0x48   :  { %960 = vmatpush1.bf16.msra.mxu1 %v14385_v9  ;;  %725 = vmatprep.subr.bf16.mxu0 %v14390_v10  ;;  %v14483_v9 = vld [vmem:[%s22298_s0 + $0x514] ss:$8 sps:$4 sm:$0xff]   ;;  %v14478_v10 = vld [vmem:[%s22298_s0 + $0x410] ss:$8 sps:$4 sm:$0xff]  }
  0x49   :  { %961 = vmatprep.subr.bf16.mxu1 %v14393_v11  ;;  %v14481_v11 = vld [vmem:[%s22298_s0 + $0x510] ss:$8 sps:$4 sm:$0xff]  }
  0x4b   :  { %726 = vmatpush1.bf16.msra.mxu0 %v14388_v12  ;;  %v14486_v12 = vld [vmem:[%s22298_s0 + $0x424] ss:$8 sps:$4 sm:$0xff]  }
  0x4c   :  { %962 = vmatpush1.bf16.msra.mxu1 %v14391_v13  ;;  %727 = vmatprep.subr.bf16.mxu0 %v14396_v14  ;;  %v14489_v13 = vld [vmem:[%s22298_s0 + $0x524] ss:$8 sps:$4 sm:$0xff]   ;;  %v14484_v14 = vld [vmem:[%s22298_s0 + $0x420] ss:$8 sps:$4 sm:$0xff]  }
  0x4d   :  { %963 = vmatprep.subr.bf16.mxu1 %v14399_v15  ;;  %v14487_v15 = vld [vmem:[%s22298_s0 + $0x520] ss:$8 sps:$4 sm:$0xff]  }
  0x4f   :  { %728 = vmatpush1.bf16.msra.mxu0 %v14394_v16  ;;  %v14492_v16 = vld [vmem:[%s22298_s0 + $0x434] ss:$8 sps:$4 sm:$0xff]  }
  0x50   :  { %964 = vmatpush1.bf16.msra.mxu1 %v14397_v17  ;;  %729 = vmatprep.subr.bf16.mxu0 %v14402_v18  ;;  %v14490_v17 = vld [vmem:[%s22298_s0 + $0x430] ss:$8 sps:$4 sm:$0xff]  }
  0x51   :  { %965 = vmatprep.subr.bf16.mxu1 %v14405_v19  ;;  %v14493_v18 = vld [vmem:[%s22298_s0 + $0x530] ss:$8 sps:$4 sm:$0xff]   ;;  %v14498_v19 = vld [vmem:[%s22298_s0 + $0x444] ss:$8 sps:$4 sm:$0xff]  }
  0x53   :  { %730 = vmatpush1.bf16.msra.mxu0 %v14400_v20  ;;  %v14501_v20 = vld [vmem:[%s22298_s0 + $0x544] ss:$8 sps:$4 sm:$0xff]  }
  0x54   :  { %966 = vmatpush1.bf16.msra.mxu1 %v14403_v21  ;;  %731 = vmatprep.subr.bf16.mxu0 %v14408_v22  ;;  %v14496_v21 = vld [vmem:[%s22298_s0 + $0x440] ss:$8 sps:$4 sm:$0xff]  }
  0x55   :  { %967 = vmatprep.subr.bf16.mxu1 %v14411_v23  ;;  %v14499_v22 = vld [vmem:[%s22298_s0 + $0x540] ss:$8 sps:$4 sm:$0xff]   ;;  %v14504_v23 = vld [vmem:[%s22298_s0 + $0x454] ss:$8 sps:$4 sm:$0xff]  }
  0x57   :  { %732 = vmatpush1.bf16.msra.mxu0 %v14406_v24  ;;  %v14507_v24 = vld [vmem:[%s22298_s0 + $0x554] ss:$8 sps:$4 sm:$0xff]  }
  0x58   :  { %968 = vmatpush1.bf16.msra.mxu1 %v14409_v25  ;;  %733 = vmatprep.subr.bf16.mxu0 %v14414_v26  ;;  %v14502_v25 = vld [vmem:[%s22298_s0 + $0x450] ss:$8 sps:$4 sm:$0xff]  }
  0x59   :  { %969 = vmatprep.subr.bf16.mxu1 %v14417_v27  ;;  %v14505_v26 = vld [vmem:[%s22298_s0 + $0x550] ss:$8 sps:$4 sm:$0xff]   ;;  %v14510_v27 = vld [vmem:[%s22298_s0 + $0x464] ss:$8 sps:$4 sm:$0xff]  }
  0x5b   :  { %734 = vmatpush1.bf16.msra.mxu0 %v14412_v28  ;;  %v14513_v28 = vld [vmem:[%s22298_s0 + $0x564] ss:$8 sps:$4 sm:$0xff]  }
  0x5c   :  { %970 = vmatpush1.bf16.msra.mxu1 %v14415_v29  ;;  %735 = vmatprep.subr.bf16.mxu0 %v14420_v30  ;;  %v14508_v29 = vld [vmem:[%s22298_s0 + $0x460] ss:$8 sps:$4 sm:$0xff]  }
  0x5d   :  { %971 = vmatprep.subr.bf16.mxu1 %v14423_v31  ;;  %v14511_v30 = vld [vmem:[%s22298_s0 + $0x560] ss:$8 sps:$4 sm:$0xff]   ;;  %v14516_v31 = vld [vmem:[%s22298_s0 + $0x474] ss:$8 sps:$4 sm:$0xff]  }
  0x5f   :  { %736 = vmatpush1.bf16.msra.mxu0 %v14418_v32  ;;  %v14519_v32 = vld [vmem:[%s22298_s0 + $0x574] ss:$8 sps:$4 sm:$0xff]  }
  0x60   :  { %972 = vmatpush1.bf16.msra.mxu1 %v14421_v33  ;;  %737 = vmatprep.subr.bf16.mxu0 %v14426_v34  ;;  %v14514_v33 = vld [vmem:[%s22298_s0 + $0x470] ss:$8 sps:$4 sm:$0xff]  }
  0x61   :  { %973 = vmatprep.subr.bf16.mxu1 %v14429_v35  ;;  %v14517_v34 = vld [vmem:[%s22298_s0 + $0x570] ss:$8 sps:$4 sm:$0xff]   ;;  %v14522_v35 = vld [vmem:[%s22298_s0 + $0x484] ss:$8 sps:$4 sm:$0xff]  }
  0x63   :  { %738 = vmatpush1.bf16.msra.mxu0 %v14424_v36  ;;  %v14525_v36 = vld [vmem:[%s22298_s0 + $0x584] ss:$8 sps:$4 sm:$0xff]  }
  0x64   :  { %974 = vmatpush1.bf16.msra.mxu1 %v14427_v37  ;;  %739 = vmatprep.subr.bf16.mxu0 %v14432_v38  ;;  %v14520_v37 = vld [vmem:[%s22298_s0 + $0x480] ss:$8 sps:$4 sm:$0xff]  }
  0x65   :  { %975 = vmatprep.subr.bf16.mxu1 %v14435_v39  ;;  %v14523_v38 = vld [vmem:[%s22298_s0 + $0x580] ss:$8 sps:$4 sm:$0xff]   ;;  %v14528_v39 = vld [vmem:[%s22298_s0 + $0x494] ss:$8 sps:$4 sm:$0xff]  }
  0x67   :  { %740 = vmatpush1.bf16.msra.mxu0 %v14430_v40  ;;  %v14531_v40 = vld [vmem:[%s22298_s0 + $0x594] ss:$8 sps:$4 sm:$0xff]  }
  0x68   :  { %976 = vmatpush1.bf16.msra.mxu1 %v14433_v41  ;;  %741 = vmatprep.subr.bf16.mxu0 %v14438_v42  ;;  %v14526_v41 = vld [vmem:[%s22298_s0 + $0x490] ss:$8 sps:$4 sm:$0xff]  }
  0x69   :  { %977 = vmatprep.subr.bf16.mxu1 %v14441_v43  ;;  %v14529_v42 = vld [vmem:[%s22298_s0 + $0x590] ss:$8 sps:$4 sm:$0xff]   ;;  %v14534_v43 = vld [vmem:[%s22298_s0 + $0x4a4] ss:$8 sps:$4 sm:$0xff]  }
  0x6b   :  { %742 = vmatpush1.bf16.msra.mxu0 %v14436_v44  ;;  %v14537_v44 = vld [vmem:[%s22298_s0 + $0x5a4] ss:$8 sps:$4 sm:$0xff]  }
  0x6c   :  { %978 = vmatpush1.bf16.msra.mxu1 %v14439_v45  ;;  %743 = vmatprep.subr.bf16.mxu0 %v14444_v46  ;;  %v14532_v45 = vld [vmem:[%s22298_s0 + $0x4a0] ss:$8 sps:$4 sm:$0xff]  }
  0x6d   :  { %979 = vmatprep.subr.bf16.mxu1 %v14447_v47  ;;  %v14535_v46 = vld [vmem:[%s22298_s0 + $0x5a0] ss:$8 sps:$4 sm:$0xff]   ;;  %v14540_v47 = vld [vmem:[%s22298_s0 + $0x4b4] ss:$8 sps:$4 sm:$0xff]  }
  0x6f   :  { %744 = vmatpush1.bf16.msra.mxu0 %v14442_v49  ;;  %v14543_v49 = vld [vmem:[%s22298_s0 + $0x5b4] ss:$8 sps:$4 sm:$0xff]  }
  0x70   :  { %980 = vmatpush1.bf16.msra.mxu1 %v14445_v50  ;;  %745 = vmatprep.subr.bf16.mxu0 %v14450_v51  ;;  %v14538_v50 = vld [vmem:[%s22298_s0 + $0x4b0] ss:$8 sps:$4 sm:$0xff]  }
  0x71   :  { %981 = vmatprep.subr.bf16.mxu1 %v14453_v52  ;;  %v14541_v51 = vld [vmem:[%s22298_s0 + $0x5b0] ss:$8 sps:$4 sm:$0xff]   ;;  %v14546_v52 = vld [vmem:[%s22298_s0 + $0x4c4] ss:$8 sps:$4 sm:$0xff]  }
  0x73   :  { %746 = vmatpush1.bf16.msra.mxu0 %v14448_v53  ;;  %v14549_v53 = vld [vmem:[%s22298_s0 + $0x5c4] ss:$8 sps:$4 sm:$0xff]  }
  0x74   :  { %982 = vmatpush1.bf16.msra.mxu1 %v14451_v54  ;;  %747 = vmatprep.subr.bf16.mxu0 %v14456_v55  ;;  %v14544_v54 = vld [vmem:[%s22298_s0 + $0x4c0] ss:$8 sps:$4 sm:$0xff]  }
  0x75   :  { %983 = vmatprep.subr.bf16.mxu1 %v14459_v56  ;;  %v14547_v55 = vld [vmem:[%s22298_s0 + $0x5c0] ss:$8 sps:$4 sm:$0xff]   ;;  %v14552_v56 = vld [vmem:[%s22298_s0 + $0x4d4] ss:$8 sps:$4 sm:$0xff]  }
  0x77   :  { %748 = vmatpush1.bf16.msra.mxu0 %v14454_v57  ;;  %v14555_v57 = vld [vmem:[%s22298_s0 + $0x5d4] ss:$8 sps:$4 sm:$0xff]  }
  0x78   :  { %984 = vmatpush1.bf16.msra.mxu1 %v14457_v58  ;;  %749 = vmatprep.subr.bf16.mxu0 %v14462_v59  ;;  %v14550_v58 = vld [vmem:[%s22298_s0 + $0x4d0] ss:$8 sps:$4 sm:$0xff]  }
  0x79   :  { %985 = vmatprep.subr.bf16.mxu1 %v14465_v60  ;;  %v14553_v59 = vld [vmem:[%s22298_s0 + $0x5d0] ss:$8 sps:$4 sm:$0xff]   ;;  %v14558_v60 = vld [vmem:[%s22298_s0 + $0x4e4] ss:$8 sps:$4 sm:$0xff]  }
  0x7b   :  { %750 = vmatpush1.bf16.msra.mxu0 %v14460_v61  ;;  %v14561_v61 = vld [vmem:[%s22298_s0 + $0x5e4] ss:$8 sps:$4 sm:$0xff]  }
  0x7c   :  { %986 = vmatpush1.bf16.msra.mxu1 %v14463_v62  ;;  %751 = vmatprep.subr.bf16.mxu0 %v14468_v63  ;;  %v14556_v62 = vld [vmem:[%s22298_s0 + $0x4e0] ss:$8 sps:$4 sm:$0xff]  }
  0x7d   :  { %987 = vmatprep.subr.bf16.mxu1 %v14471_v0  ;;  %v14559_v63 = vld [vmem:[%s22298_s0 + $0x5e0] ss:$8 sps:$4 sm:$0xff]   ;;  %v14564_v0 = vld [vmem:[%s22298_s0 + $0x4f4] ss:$8 sps:$4 sm:$0xff]  }
  0x7f   :  { %752 = vmatpush1.bf16.msra.mxu0 %v14466_v1  ;;  %v14567_v1 = vld [vmem:[%s22298_s0 + $0x5f4] ss:$8 sps:$4 sm:$0xff]  }
  0x80   :  { %988 = vmatpush1.bf16.msra.mxu1 %v14469_v2  ;;  %1193 = vmatprep.subr.bf16.mxu0 %v14474_v4  ;;  %v14562_v2 = vld [vmem:[%s22298_s0 + $0x4f0] ss:$8 sps:$4 sm:$0xff]  }
  0x81   :  { %1429 = vmatprep.subr.bf16.mxu1 %v14477_v5  ;;  %v14565_v4 = vld [vmem:[%s22298_s0 + $0x5f0] ss:$8 sps:$4 sm:$0xff]   ;;  %v14570_v5 = vld [vmem:[%s22298_s0 + $0x604] ss:$8 sps:$4 sm:$0xff]  }
  0x82   :  { %754 = vmatmul.mubr.bf16.vlgmr.msra.gmra.mrb[4].mxu0 %v16464_v3 }
  0x83   :  { %990 = vmatmul.mubr.bf16.vlgmr.msra.gmra.mrb[4].mxu1 %v16464_v3  ;;  %1194 = vmatpush1.bf16.msra.mxu0 %v14472_v6  ;;  %v14573_v6 = vld [vmem:[%s22298_s0 + $0x704] ss:$8 sps:$4 sm:$0xff]  }
  0x84   :  { %1430 = vmatpush1.bf16.msra.mxu1 %v14475_v7  ;;  %1195 = vmatprep.subr.bf16.mxu0 %v14480_v8  ;;  %v14568_v7 = vld [vmem:[%s22298_s0 + $0x600] ss:$8 sps:$4 sm:$0xff]  }
  0x85   :  { %1431 = vmatprep.subr.bf16.mxu1 %v14483_v9  ;;  %1225 = vmatprep.mubr.bf16.mxu0 %v16403_v48  ;;  %v14571_v8 = vld [vmem:[%s22298_s0 + $0x700] ss:$8 sps:$4 sm:$0xff]   ;;  %v14576_v9 = vld [vmem:[%s22298_s0 + $0x614] ss:$8 sps:$4 sm:$0xff]  }
  0x86   :  { %1461 = vmatprep.mubr.bf16.mxu1 %v16403_v48  ;;  %v14495_v48 = vld [vmem:[%s22298_s0 + $0x534] ss:$8 sps:$4 sm:$0xff]  }
  0x87   :  { %1196 = vmatpush1.bf16.msra.mxu0 %v14478_v10  ;;  %v14579_v10 = vld [vmem:[%s22298_s0 + $0x714] ss:$8 sps:$4 sm:$0xff]  }
  0x88   :  { %1432 = vmatpush1.bf16.msra.mxu1 %v14481_v11  ;;  %1197 = vmatprep.subr.bf16.mxu0 %v14486_v12  ;;  %v14574_v11 = vld [vmem:[%s22298_s0 + $0x610] ss:$8 sps:$4 sm:$0xff]  }
  0x89   :  { %1433 = vmatprep.subr.bf16.mxu1 %v14489_v13  ;;  %v14577_v12 = vld [vmem:[%s22298_s0 + $0x710] ss:$8 sps:$4 sm:$0xff]   ;;  %v14582_v13 = vld [vmem:[%s22298_s0 + $0x624] ss:$8 sps:$4 sm:$0xff]  }
  0x8b   :  { %1198 = vmatpush1.bf16.msra.mxu0 %v14484_v14  ;;  %v16200_v14 = vld [vmem:[%s22299_s1 + $0x4] ss:$8 sps:$4 sm:$0xff]  }
  0x8c   :  { %1434 = vmatpush1.bf16.msra.mxu1 %v14487_v15  ;;  %1199 = vmatprep.subr.bf16.mxu0 %v14492_v16  ;;  %v14580_v15 = vld [vmem:[%s22298_s0 + $0x620] ss:$8 sps:$4 sm:$0xff]  }
  0x8d   :  { %1435 = vmatprep.subr.bf16.mxu1 %v14495_v48  ;;  %v14583_v16 = vld [vmem:[%s22298_s0 + $0x720] ss:$8 sps:$4 sm:$0xff]   ;;  %v14588_v48 = vld [vmem:[%s22298_s0 + $0x634] ss:$8 sps:$4 sm:$0xff]  }
  0x8f   :  { %1200 = vmatpush1.bf16.msra.mxu0 %v14490_v17  ;;  %v14591_v17 = vld [vmem:[%s22298_s0 + $0x734] ss:$8 sps:$4 sm:$0xff]  }
  0x90   :  { %1436 = vmatpush1.bf16.msra.mxu1 %v14493_v18  ;;  %1201 = vmatprep.subr.bf16.mxu0 %v14498_v19  ;;  %v14586_v18 = vld [vmem:[%s22298_s0 + $0x630] ss:$8 sps:$4 sm:$0xff]  }
  0x91   :  { %1437 = vmatprep.subr.bf16.mxu1 %v14501_v20  ;;  %v14589_v19 = vld [vmem:[%s22298_s0 + $0x730] ss:$8 sps:$4 sm:$0xff]   ;;  %v14594_v20 = vld [vmem:[%s22298_s0 + $0x644] ss:$8 sps:$4 sm:$0xff]  }
  0x93   :  { %1202 = vmatpush1.bf16.msra.mxu0 %v14496_v21  ;;  %v14597_v21 = vld [vmem:[%s22298_s0 + $0x744] ss:$8 sps:$4 sm:$0xff]  }
  0x94   :  { %1438 = vmatpush1.bf16.msra.mxu1 %v14499_v22  ;;  %1203 = vmatprep.subr.bf16.mxu0 %v14504_v23  ;;  %v14592_v22 = vld [vmem:[%s22298_s0 + $0x640] ss:$8 sps:$4 sm:$0xff]  }
  0x95   :  { %1439 = vmatprep.subr.bf16.mxu1 %v14507_v24  ;;  %v14595_v23 = vld [vmem:[%s22298_s0 + $0x740] ss:$8 sps:$4 sm:$0xff]   ;;  %v14600_v24 = vld [vmem:[%s22298_s0 + $0x654] ss:$8 sps:$4 sm:$0xff]  }
  0x97   :  { %1204 = vmatpush1.bf16.msra.mxu0 %v14502_v25  ;;  %v14603_v25 = vld [vmem:[%s22298_s0 + $0x754] ss:$8 sps:$4 sm:$0xff]  }
  0x98   :  { %1440 = vmatpush1.bf16.msra.mxu1 %v14505_v26  ;;  %1205 = vmatprep.subr.bf16.mxu0 %v14510_v27  ;;  %v14598_v26 = vld [vmem:[%s22298_s0 + $0x650] ss:$8 sps:$4 sm:$0xff]  }
  0x99   :  { %1441 = vmatprep.subr.bf16.mxu1 %v14513_v28  ;;  %v14601_v27 = vld [vmem:[%s22298_s0 + $0x750] ss:$8 sps:$4 sm:$0xff]   ;;  %v14606_v28 = vld [vmem:[%s22298_s0 + $0x664] ss:$8 sps:$4 sm:$0xff]  }
  0x9b   :  { %1206 = vmatpush1.bf16.msra.mxu0 %v14508_v29  ;;  %v14609_v29 = vld [vmem:[%s22298_s0 + $0x764] ss:$8 sps:$4 sm:$0xff]  }
  0x9c   :  { %1442 = vmatpush1.bf16.msra.mxu1 %v14511_v30  ;;  %1207 = vmatprep.subr.bf16.mxu0 %v14516_v31  ;;  %v14604_v30 = vld [vmem:[%s22298_s0 + $0x660] ss:$8 sps:$4 sm:$0xff]  }
  0x9d   :  { %1443 = vmatprep.subr.bf16.mxu1 %v14519_v32  ;;  %v14607_v31 = vld [vmem:[%s22298_s0 + $0x760] ss:$8 sps:$4 sm:$0xff]   ;;  %v14612_v32 = vld [vmem:[%s22298_s0 + $0x674] ss:$8 sps:$4 sm:$0xff]  }
  0x9f   :  { %1208 = vmatpush1.bf16.msra.mxu0 %v14514_v33  ;;  %v14615_v33 = vld [vmem:[%s22298_s0 + $0x774] ss:$8 sps:$4 sm:$0xff]  }
  0xa0   :  { %1444 = vmatpush1.bf16.msra.mxu1 %v14517_v34  ;;  %1209 = vmatprep.subr.bf16.mxu0 %v14522_v35  ;;  %v14610_v34 = vld [vmem:[%s22298_s0 + $0x670] ss:$8 sps:$4 sm:$0xff]  }
  0xa1   :  { %1445 = vmatprep.subr.bf16.mxu1 %v14525_v36  ;;  %v14613_v35 = vld [vmem:[%s22298_s0 + $0x770] ss:$8 sps:$4 sm:$0xff]   ;;  %v14618_v36 = vld [vmem:[%s22298_s0 + $0x684] ss:$8 sps:$4 sm:$0xff]  }
  0xa3   :  { %1210 = vmatpush1.bf16.msra.mxu0 %v14520_v37  ;;  %v14621_v37 = vld [vmem:[%s22298_s0 + $0x784] ss:$8 sps:$4 sm:$0xff]  }
  0xa4   :  { %1446 = vmatpush1.bf16.msra.mxu1 %v14523_v38  ;;  %1211 = vmatprep.subr.bf16.mxu0 %v14528_v39  ;;  %v14616_v38 = vld [vmem:[%s22298_s0 + $0x680] ss:$8 sps:$4 sm:$0xff]  }
  0xa5   :  { %1447 = vmatprep.subr.bf16.mxu1 %v14531_v40  ;;  %v14619_v39 = vld [vmem:[%s22298_s0 + $0x780] ss:$8 sps:$4 sm:$0xff]   ;;  %v14624_v40 = vld [vmem:[%s22298_s0 + $0x694] ss:$8 sps:$4 sm:$0xff]  }
  0xa7   :  { %1212 = vmatpush1.bf16.msra.mxu0 %v14526_v41  ;;  %v14627_v41 = vld [vmem:[%s22298_s0 + $0x794] ss:$8 sps:$4 sm:$0xff]  }
  0xa8   :  { %1448 = vmatpush1.bf16.msra.mxu1 %v14529_v42  ;;  %1213 = vmatprep.subr.bf16.mxu0 %v14534_v43  ;;  %v14622_v42 = vld [vmem:[%s22298_s0 + $0x690] ss:$8 sps:$4 sm:$0xff]  }
  0xa9   :  { %1449 = vmatprep.subr.bf16.mxu1 %v14537_v44  ;;  %v14625_v43 = vld [vmem:[%s22298_s0 + $0x790] ss:$8 sps:$4 sm:$0xff]   ;;  %v14630_v44 = vld [vmem:[%s22298_s0 + $0x6a4] ss:$8 sps:$4 sm:$0xff]  }
  0xab   :  { %1214 = vmatpush1.bf16.msra.mxu0 %v14532_v45  ;;  %v14633_v45 = vld [vmem:[%s22298_s0 + $0x7a4] ss:$8 sps:$4 sm:$0xff]  }
  0xac   :  { %1450 = vmatpush1.bf16.msra.mxu1 %v14535_v46  ;;  %1215 = vmatprep.subr.bf16.mxu0 %v14540_v47  ;;  %v14628_v46 = vld [vmem:[%s22298_s0 + $0x6a0] ss:$8 sps:$4 sm:$0xff]  }
  0xad   :  { %1451 = vmatprep.subr.bf16.mxu1 %v14543_v49  ;;  %v14631_v47 = vld [vmem:[%s22298_s0 + $0x7a0] ss:$8 sps:$4 sm:$0xff]   ;;  %v14636_v49 = vld [vmem:[%s22298_s0 + $0x6b4] ss:$8 sps:$4 sm:$0xff]  }
  0xaf   :  { %1216 = vmatpush1.bf16.msra.mxu0 %v14538_v50  ;;  %v14639_v50 = vld [vmem:[%s22298_s0 + $0x7b4] ss:$8 sps:$4 sm:$0xff]  }
  0xb0   :  { %1452 = vmatpush1.bf16.msra.mxu1 %v14541_v51  ;;  %1217 = vmatprep.subr.bf16.mxu0 %v14546_v52  ;;  %v14634_v51 = vld [vmem:[%s22298_s0 + $0x6b0] ss:$8 sps:$4 sm:$0xff]  }
  0xb1   :  { %1453 = vmatprep.subr.bf16.mxu1 %v14549_v53  ;;  %v14637_v52 = vld [vmem:[%s22298_s0 + $0x7b0] ss:$8 sps:$4 sm:$0xff]   ;;  %v14642_v53 = vld [vmem:[%s22298_s0 + $0x6c4] ss:$8 sps:$4 sm:$0xff]  }
  0xb3   :  { %1218 = vmatpush1.bf16.msra.mxu0 %v14544_v54  ;;  %v14645_v54 = vld [vmem:[%s22298_s0 + $0x7c4] ss:$8 sps:$4 sm:$0xff]  }
  0xb4   :  { %1454 = vmatpush1.bf16.msra.mxu1 %v14547_v55  ;;  %1219 = vmatprep.subr.bf16.mxu0 %v14552_v56  ;;  %v14640_v55 = vld [vmem:[%s22298_s0 + $0x6c0] ss:$8 sps:$4 sm:$0xff]  }
  0xb5   :  { %1455 = vmatprep.subr.bf16.mxu1 %v14555_v57  ;;  %v14643_v56 = vld [vmem:[%s22298_s0 + $0x7c0] ss:$8 sps:$4 sm:$0xff]   ;;  %v14648_v57 = vld [vmem:[%s22298_s0 + $0x6d4] ss:$8 sps:$4 sm:$0xff]  }
  0xb7   :  { %1220 = vmatpush1.bf16.msra.mxu0 %v14550_v58  ;;  %v14651_v58 = vld [vmem:[%s22298_s0 + $0x7d4] ss:$8 sps:$4 sm:$0xff]  }
  0xb8   :  { %1456 = vmatpush1.bf16.msra.mxu1 %v14553_v59  ;;  %1221 = vmatprep.subr.bf16.mxu0 %v14558_v60  ;;  %v14646_v59 = vld [vmem:[%s22298_s0 + $0x6d0] ss:$8 sps:$4 sm:$0xff]  }
  0xb9   :  { %1457 = vmatprep.subr.bf16.mxu1 %v14561_v61  ;;  %v14649_v60 = vld [vmem:[%s22298_s0 + $0x7d0] ss:$8 sps:$4 sm:$0xff]   ;;  %v14654_v61 = vld [vmem:[%s22298_s0 + $0x6e4] ss:$8 sps:$4 sm:$0xff]  }
  0xbb   :  { %1222 = vmatpush1.bf16.msra.mxu0 %v14556_v62  ;;  %v14657_v62 = vld [vmem:[%s22298_s0 + $0x7e4] ss:$8 sps:$4 sm:$0xff]  }
  0xbc   :  { %1458 = vmatpush1.bf16.msra.mxu1 %v14559_v63  ;;  %1223 = vmatprep.subr.bf16.mxu0 %v14564_v0  ;;  %v14652_v63 = vld [vmem:[%s22298_s0 + $0x6e0] ss:$8 sps:$4 sm:$0xff]  }
  0xbd   :  { %1459 = vmatprep.subr.bf16.mxu1 %v14567_v1  ;;  %v14655_v0 = vld [vmem:[%s22298_s0 + $0x7e0] ss:$8 sps:$4 sm:$0xff]   ;;  %v14660_v1 = vld [vmem:[%s22298_s0 + $0x6f4] ss:$8 sps:$4 sm:$0xff]  }
  0xbf   :  { %1224 = vmatpush1.bf16.msra.mxu0 %v14562_v2  ;;  %v14663_v2 = vld [vmem:[%s22298_s0 + $0x7f4] ss:$8 sps:$4 sm:$0xff]  }
  0xc0   :  { %1460 = vmatpush1.bf16.msra.mxu1 %v14565_v4  ;;  %1665 = vmatprep.subr.bf16.mxu0 %v14570_v5  ;;  %v14658_v4 = vld [vmem:[%s22298_s0 + $0x6f0] ss:$8 sps:$4 sm:$0xff]  }
  0xc1   :  { %1901 = vmatprep.subr.bf16.mxu1 %v14573_v6  ;;  %v14661_v5 = vld [vmem:[%s22298_s0 + $0x7f0] ss:$8 sps:$4 sm:$0xff]   ;;  %v16201_v6 = vld [vmem:[%s22299_s1] ss:$8 sps:$4 sm:$0xff]  }
  0xc2   :  { %1226 = vmatmul.mubr.bf16.vlgmr.msra.gmra.mrb[8].mxu0 %v16464_v3 }
  0xc3   :  { %1462 = vmatmul.mubr.bf16.vlgmr.msra.gmra.mrb[8].mxu1 %v16464_v3  ;;  %1666 = vmatpush1.bf16.msra.mxu0 %v14568_v7  ;;  %v14585_v3 = vld [vmem:[%s22298_s0 + $0x724] ss:$8 sps:$4 sm:$0xff]   ;;  %v16202_v7 = vmov 1966171168  }
  0xc4   :  { %1902 = vmatpush1.bf16.msra.mxu1 %v14571_v8  ;;  %1667 = vmatprep.subr.bf16.mxu0 %v14576_v9  ;;  %v1951_v8 = vunpack.c.l.s4 %v16202_v7  ;;  %v1953_v9 = vlaneseq }
  0xc5   :  { %1903 = vmatprep.subr.bf16.mxu1 %v14579_v10  ;;  %1697 = vmatprep.mubr.bf16.mxu0 %v16200_v14 }
  0xc6   :  { %1933 = vmatprep.mubr.bf16.mxu1 %v16200_v14  ;;  %v1952_v10 = vunpack.c.0.s8 %v1951_v8 }
  0xc7   :  { %1668 = vmatpush1.bf16.msra.mxu0 %v14574_v11  ;;  %v17052_v11 = vshrl.u32 %v1953_v9, 7 }
  0xc8   :  { %1904 = vmatpush1.bf16.msra.mxu1 %v14577_v12  ;;  %1669 = vmatprep.subr.bf16.mxu0 %v14582_v13 }
  0xc9   :  { %1905 = vmatprep.subr.bf16.mxu1 %v14585_v3  ;;  %22327 = vst [vmem:[#allocation5_spill] sm:$0xff] %v17052_v11  ;;  %v17055_v3 = vsub.s32 %v1952_v10, %v17052_v11 }
  0xcb   :  { %1670 = vmatpush1.bf16.msra.mxu0 %v14580_v15  ;;  %22328 = vst [vmem:[#allocation6_spill] sm:$0xff] %v17055_v3 }
  0xcc   :  { %1906 = vmatpush1.bf16.msra.mxu1 %v14583_v16  ;;  %1671 = vmatprep.subr.bf16.mxu0 %v14588_v48 }
  0xcd   :  { %1907 = vmatprep.subr.bf16.mxu1 %v14591_v17 }
  0xcf   :  { %1672 = vmatpush1.bf16.msra.mxu0 %v14586_v18 }
  0xd0   :  { %1908 = vmatpush1.bf16.msra.mxu1 %v14589_v19  ;;  %1673 = vmatprep.subr.bf16.mxu0 %v14594_v20 }
  0xd1   :  { %1909 = vmatprep.subr.bf16.mxu1 %v14597_v21  ;;  %v17062_v21 = vsub.s32 0, %v17052_v11 }
  0xd3   :  { %1674 = vmatpush1.bf16.msra.mxu0 %v14592_v22  ;;  %v17065_v22 = vsub.s32 1, %v17052_v11 }
  0xd4   :  { %1910 = vmatpush1.bf16.msra.mxu1 %v14595_v23  ;;  %1675 = vmatprep.subr.bf16.mxu0 %v14600_v24 }
  0xd5   :  { %1911 = vmatprep.subr.bf16.mxu1 %v14603_v25 }
  0xd7   :  { %1676 = vmatpush1.bf16.msra.mxu0 %v14598_v26 }
  0xd8   :  { %1912 = vmatpush1.bf16.msra.mxu1 %v14601_v27  ;;  %1677 = vmatprep.subr.bf16.mxu0 %v14606_v28 }
  0xd9   :  { %1913 = vmatprep.subr.bf16.mxu1 %v14609_v29 }
  0xdb   :  { %1678 = vmatpush1.bf16.msra.mxu0 %v14604_v30 }
  0xdc   :  { %1914 = vmatpush1.bf16.msra.mxu1 %v14607_v31  ;;  %1679 = vmatprep.subr.bf16.mxu0 %v14612_v32 }
  0xdd   :  { %1915 = vmatprep.subr.bf16.mxu1 %v14615_v33 }
  0xdf   :  { %1680 = vmatpush1.bf16.msra.mxu0 %v14610_v34 }
  0xe0   :  { %1916 = vmatpush1.bf16.msra.mxu1 %v14613_v35  ;;  %1681 = vmatprep.subr.bf16.mxu0 %v14618_v36 }
  0xe1   :  { %1917 = vmatprep.subr.bf16.mxu1 %v14621_v37 }
  0xe3   :  { %1682 = vmatpush1.bf16.msra.mxu0 %v14616_v38 }
  0xe4   :  { %1918 = vmatpush1.bf16.msra.mxu1 %v14619_v39  ;;  %1683 = vmatprep.subr.bf16.mxu0 %v14624_v40 }
  0xe5   :  { %1919 = vmatprep.subr.bf16.mxu1 %v14627_v41 }
  0xe7   :  { %1684 = vmatpush1.bf16.msra.mxu0 %v14622_v42 }
  0xe8   :  { %1920 = vmatpush1.bf16.msra.mxu1 %v14625_v43  ;;  %1685 = vmatprep.subr.bf16.mxu0 %v14630_v44 }
  0xe9   :  { %1921 = vmatprep.subr.bf16.mxu1 %v14633_v45 }
  0xeb   :  { %1686 = vmatpush1.bf16.msra.mxu0 %v14628_v46 }
  0xec   :  { %1922 = vmatpush1.bf16.msra.mxu1 %v14631_v47  ;;  %1687 = vmatprep.subr.bf16.mxu0 %v14636_v49 }
  0xed   :  { %1923 = vmatprep.subr.bf16.mxu1 %v14639_v50 }
  0xef   :  { %1688 = vmatpush1.bf16.msra.mxu0 %v14634_v51 }
  0xf0   :  { %1924 = vmatpush1.bf16.msra.mxu1 %v14637_v52  ;;  %1689 = vmatprep.subr.bf16.mxu0 %v14642_v53 }
  0xf1   :  { %1925 = vmatprep.subr.bf16.mxu1 %v14645_v54 }
  0xf3   :  { %1690 = vmatpush1.bf16.msra.mxu0 %v14640_v55 }
  0xf4   :  { %1926 = vmatpush1.bf16.msra.mxu1 %v14643_v56  ;;  %1691 = vmatprep.subr.bf16.mxu0 %v14648_v57 }
  0xf5   :  { %1927 = vmatprep.subr.bf16.mxu1 %v14651_v58 }
  0xf7   :  { %1692 = vmatpush1.bf16.msra.mxu0 %v14646_v59 }
  0xf8   :  { %1928 = vmatpush1.bf16.msra.mxu1 %v14649_v60  ;;  %1693 = vmatprep.subr.bf16.mxu0 %v14654_v61 }
  0xf9   :  { %1929 = vmatprep.subr.bf16.mxu1 %v14657_v62 }
  0xfb   :  { %1694 = vmatpush1.bf16.msra.mxu0 %v14652_v63 }
  0xfc   :  { %1930 = vmatpush1.bf16.msra.mxu1 %v14655_v0  ;;  %1695 = vmatprep.subr.bf16.mxu0 %v14660_v1 }
  0xfd   :  { %1931 = vmatprep.subr.bf16.mxu1 %v14663_v2 }
  0xff   :  { %1696 = vmatpush1.bf16.msra.mxu0 %v14658_v4 }
 0x100   :  { %1932 = vmatpush1.bf16.msra.mxu1 %v14661_v5 }
 0x102   :  { %1698 = vmatmul.mubr.bf16.vlgmr.msra.gmra.mrb[12].mxu0 %v16201_v6 }
 0x103   :  { %1934 = vmatmul.mubr.bf16.vlgmr.msra.gmra.mrb[12].mxu1 %v16201_v6 }
 0x115   :  { %v283_v12 = vpop.f32.mrb[0].mxu0 }
 0x116   :  { %v519_v13 = vpop.f32.mrb[0].mxu1  ;;  %v285_v14 = vpop.f32.mrb[1].mxu0 }
 0x117   :  { %v521_v15 = vpop.f32.mrb[1].mxu1  ;;  %v1948_v16 = vcombine.low %v283_v12, %v285_v14  ;;  %v1949_v48 = vcombine.high %v283_v12, %v285_v14  ;;  %v17057_v19 = vpop.f32.mrb[2].mxu0 }
 0x118   :  { %v2052_v17 = vcombine.low %v519_v13, %v521_v15  ;;  %v2053_v18 = vcombine.high %v519_v13, %v521_v15  ;;  %v17059_v20 = vpop.f32.mrb[2].mxu1  ;;  %v17067_v23 = vpop.f32.mrb[3].mxu0 }
 0x119   :  { %v17069_v24 = vpop.f32.mrb[3].mxu1  ;;  %v1956_v25 = vrot.slane %v1948_v16, %v17055_v3  ;;  %v1963_v26 = vrot.slane %v1949_v48, %v17055_v3  ;;  %v1998_v29 = vcombine.low %v17057_v19, %v17067_v23  ;;  %v1999_v30 = vcombine.high %v17057_v19, %v17067_v23 }
 0x11a   :  { %v2060_v27 = vrot.slane %v2052_v17, %v17055_v3  ;;  %v2067_v28 = vrot.slane %v2053_v18, %v17055_v3  ;;  %v2102_v31 = vcombine.low %v17059_v20, %v17069_v24  ;;  %v2103_v32 = vcombine.high %v17059_v20, %v17069_v24 }
 0x11b   :  { %v1964_v33 = vcombine.high %v1956_v25, %v1956_v25  ;;  %v1965_v34 = vcombine.high %v1963_v26, %v1963_v26  ;;  %v1972_v35 = vrot.slane %v1956_v25, %v17055_v3  ;;  %v1979_v36 = vrot.slane %v1963_v26, %v17055_v3 }
 0x11c   :  { %v2068_v37 = vcombine.high %v2060_v27, %v2060_v27  ;;  %v2069_v38 = vcombine.high %v2067_v28, %v2067_v28  ;;  %v2076_v39 = vrot.slane %v2060_v27, %v17055_v3  ;;  %v2083_v40 = vrot.slane %v2067_v28, %v17055_v3 }
 0x11d   :  { %v1986_v41 = vrot.slane %v1964_v33, %v17055_v3  ;;  %v1993_v42 = vrot.slane %v1965_v34, %v17055_v3  ;;  %v1994_v43 = vcombine.high %v1972_v35, %v1972_v35  ;;  %v1995_v44 = vcombine.high %v1979_v36, %v1979_v36 }
 0x11e   :  { %v2779_v45 = vrot.slane %v1972_v35, %v17062_v21  ;;  %v2783_v46 = vrot.slane %v1972_v35, %v17065_v22  ;;  %v2811_v47 = vrot.slane %v1979_v36, %v17062_v21  ;;  %v2815_v49 = vrot.slane %v1979_v36, %v17065_v22 }
 0x11f   :  { %v1996_v50 = vcombine.high %v1986_v41, %v1986_v41  ;;  %v1997_v51 = vcombine.high %v1993_v42, %v1993_v42  ;;  %v2787_v52 = vrot.slane %v1986_v41, %v17062_v21  ;;  %v2791_v53 = vrot.slane %v1986_v41, %v17065_v22 }
 0x120   :  { %v2795_v54 = vrot.slane %v1994_v43, %v17062_v21  ;;  %v2799_v55 = vrot.slane %v1994_v43, %v17065_v22  ;;  %v2819_v56 = vrot.slane %v1993_v42, %v17062_v21  ;;  %v2823_v57 = vrot.slane %v1993_v42, %v17065_v22 }
 0x121   :  { %v2803_v58 = vrot.slane %v1996_v50, %v17062_v21  ;;  %v2807_v59 = vrot.slane %v1996_v50, %v17065_v22  ;;  %v2827_v60 = vrot.slane %v1995_v44, %v17062_v21  ;;  %v2831_v61 = vrot.slane %v1995_v44, %v17065_v22 }
 0x122   :  { %v2835_v62 = vrot.slane %v1997_v51, %v17062_v21  ;;  %v2839_v63 = vrot.slane %v1997_v51, %v17065_v22  ;;  %v2090_v0 = vrot.slane %v2068_v37, %v17055_v3  ;;  %v2097_v1 = vrot.slane %v2069_v38, %v17055_v3 }
 0x123   :  { %v2098_v2 = vcombine.high %v2076_v39, %v2076_v39  ;;  %v2099_v4 = vcombine.high %v2083_v40, %v2083_v40  ;;  %v2939_v5 = vrot.slane %v2076_v39, %v17062_v21  ;;  %v2943_v6 = vrot.slane %v2076_v39, %v17065_v22 }
 0x124   :  { %v2100_v7 = vcombine.high %v2090_v0, %v2090_v0  ;;  %v2101_v8 = vcombine.high %v2097_v1, %v2097_v1  ;;  %v2947_v9 = vrot.slane %v2090_v0, %v17062_v21  ;;  %v2951_v10 = vrot.slane %v2090_v0, %v17065_v22 }
 0x125   :  { %v2955_v12 = vrot.slane %v2098_v2, %v17062_v21  ;;  %v2959_v13 = vrot.slane %v2098_v2, %v17065_v22  ;;  %v2971_v14 = vrot.slane %v2083_v40, %v17062_v21  ;;  %v2975_v15 = vrot.slane %v2083_v40, %v17065_v22 }
 0x126   :  { %v2963_v16 = vrot.slane %v2100_v7, %v17062_v21  ;;  %v2967_v48 = vrot.slane %v2100_v7, %v17065_v22  ;;  %v2979_v17 = vrot.slane %v2097_v1, %v17062_v21  ;;  %v2983_v18 = vrot.slane %v2097_v1, %v17065_v22 }
 0x127   :  { %v2987_v25 = vrot.slane %v2099_v4, %v17062_v21  ;;  %v2991_v26 = vrot.slane %v2099_v4, %v17065_v22  ;;  %v2995_v27 = vrot.slane %v2101_v8, %v17062_v21  ;;  %v2999_v28 = vrot.slane %v2101_v8, %v17065_v22 }
 0x128   :  { %v17124_v33 = vsel %vm4056_vm0, %v2779_v45, %v2939_v5  ;;  %v17127_v34 = vsel %vm4056_vm0, %v2783_v46, %v2943_v6  ;;  %v17130_v35 = vsel %vm4056_vm0, %v2787_v52, %v2947_v9  ;;  %v17133_v36 = vsel %vm4056_vm0, %v2791_v53, %v2951_v10 }
 0x129   :  { %v17136_v37 = vsel %vm4056_vm0, %v2795_v54, %v2955_v12  ;;  %v17139_v38 = vsel %vm4056_vm0, %v2799_v55, %v2959_v13  ;;  %v17142_v39 = vsel %vm4056_vm0, %v2803_v58, %v2963_v16  ;;  %v17145_v40 = vsel %vm4056_vm0, %v2811_v47, %v2971_v14 }
 0x12a   :  { %v17148_v41 = vsel %vm4056_vm0, %v2815_v49, %v2975_v15  ;;  %v17151_v42 = vsel %vm4056_vm0, %v2819_v56, %v2979_v17  ;;  %v17154_v43 = vsel %vm4056_vm0, %v2823_v57, %v2983_v18  ;;  %v17157_v44 = vsel %vm4056_vm0, %v2827_v60, %v2987_v25 }
 0x12b   :  { %v17160_v45 = vsel %vm4056_vm0, %v2831_v61, %v2991_v26  ;;  %v17163_v46 = vsel %vm4056_vm0, %v2835_v62, %v2995_v27  ;;  %v2006_v47 = vrot.slane %v1998_v29, %v17055_v3  ;;  %v2013_v49 = vrot.slane %v1999_v30, %v17055_v3 }
 0x12c   :  { %v2110_v50 = vrot.slane %v2102_v31, %v17055_v3  ;;  %v2117_v51 = vrot.slane %v2103_v32, %v17055_v3  ;;  %v17182_v52 = vsel %vm4056_vm0, %v2807_v59, %v2967_v48  ;;  %v17185_v29 = vsel %vm4056_vm0, %v2839_v63, %v2999_v28 }
 0x12d   :  { %v2014_v53 = vcombine.high %v2006_v47, %v2006_v47  ;;  %v2015_v54 = vcombine.high %v2013_v49, %v2013_v49  ;;  %v2022_v19 = vrot.slane %v2006_v47, %v17055_v3  ;;  %v17189_v23 = vrot.slane %v2013_v49, %v17055_v3  ;;  %v14664_v47 = vld [vmem:[%s22300_s2] ss:$16 sps:$4 sm:$0xff]  }
 0x12e   :  { %v2118_v30 = vcombine.high %v2110_v50, %v2110_v50  ;;  %v2119_v31 = vcombine.high %v2117_v51, %v2117_v51  ;;  %v2126_v55 = vrot.slane %v2110_v50, %v17055_v3  ;;  %v17193_v20 = vrot.slane %v2117_v51, %v17055_v3 }
 0x12f   :  { %v2036_v24 = vrot.slane %v2014_v53, %v17055_v3  ;;  %v17197_v32 = vrot.slane %v2015_v54, %v17055_v3  ;;  %v2044_v56 = vcombine.high %v2022_v19, %v2022_v19  ;;  %v17201_v57 = vcombine.high %v17189_v23, %v17189_v23  ;;  %v14666_v54 = vld [vmem:[%s22300_s2 + $0x4] ss:$16 sps:$4 sm:$0xff]  }
 0x130   :  { %v2843_v58 = vrot.slane %v2022_v19, %v17062_v21  ;;  %v2847_v59 = vrot.slane %v2022_v19, %v17065_v22  ;;  %v2875_v60 = vrot.slane %v17189_v23, %v17062_v21  ;;  %v2879_v61 = vrot.slane %v17189_v23, %v17065_v22  ;;  %5798 = vmatprep.subr.bf16.mxu0 %v14666_v54  ;;  %v14699_v54 = vld [vmem:[%s22300_s2 + $0xac] ss:$16 sps:$4 sm:$0xff]  }
 0x131   :  { %v17209_v62 = vcombine.high %v2036_v24, %v2036_v24  ;;  %v17213_v63 = vcombine.high %v17197_v32, %v17197_v32  ;;  %v2851_v0 = vrot.slane %v2036_v24, %v17062_v21  ;;  %v2855_v1 = vrot.slane %v2036_v24, %v17065_v22  ;;  %5799 = vmatpush1.bf16.msra.mxu0 %v14664_v47  ;;  %v14690_v47 = vld [vmem:[%s22300_s2 + $0x84] ss:$16 sps:$4 sm:$0xff]  }
 0x132   :  { %v2859_v2 = vrot.slane %v2044_v56, %v17062_v21  ;;  %v2863_v4 = vrot.slane %v2044_v56, %v17065_v22  ;;  %v2883_v5 = vrot.slane %v17197_v32, %v17062_v21  ;;  %v2887_v6 = vrot.slane %v17197_v32, %v17065_v22 }
 0x133   :  { %v2867_v7 = vrot.slane %v17209_v62, %v17062_v21  ;;  %v2871_v8 = vrot.slane %v17209_v62, %v17065_v22  ;;  %v2891_v9 = vrot.slane %v17201_v57, %v17062_v21  ;;  %v2895_v10 = vrot.slane %v17201_v57, %v17065_v22  ;;  %v14672_v62 = vld [vmem:[%s22300_s2 + $0x24] ss:$16 sps:$4 sm:$0xff]  }
 0x134   :  { %v2899_v12 = vrot.slane %v17213_v63, %v17062_v21  ;;  %v2903_v13 = vrot.slane %v17213_v63, %v17065_v22  ;;  %v2140_v14 = vrot.slane %v2118_v30, %v17055_v3  ;;  %v2147_v15 = vrot.slane %v2119_v31, %v17055_v3  ;;  %5800 = vmatprep.subr.bf16.mxu0 %v14672_v62  ;;  %v14714_v62 = vld [vmem:[%s22300_s2 + $0x104] ss:$16 sps:$4 sm:$0xff]  }
 0x135   :  { %v2148_v16 = vcombine.high %v2126_v55, %v2126_v55  ;;  %v2149_v48 = vcombine.high %v17193_v20, %v17193_v20  ;;  %v3003_v17 = vrot.slane %v2126_v55, %v17062_v21  ;;  %v3007_v18 = vrot.slane %v2126_v55, %v17065_v22  ;;  %v14667_v55 = vld [vmem:[%s22300_s2 + $0x8] ss:$16 sps:$4 sm:$0xff]  }
 0x136   :  { %v2150_v25 = vcombine.high %v2140_v14, %v2140_v14  ;;  %v2151_v26 = vcombine.high %v2147_v15, %v2147_v15  ;;  %v3011_v27 = vrot.slane %v2140_v14, %v17062_v21  ;;  %v3015_v28 = vrot.slane %v2140_v14, %v17065_v22 }
 0x137   :  { %v3019_v49 = vrot.slane %v2148_v16, %v17062_v21  ;;  %v3023_v50 = vrot.slane %v2148_v16, %v17065_v22  ;;  %v3035_v51 = vrot.slane %v17193_v20, %v17062_v21  ;;  %v3039_v53 = vrot.slane %v17193_v20, %v17065_v22  ;;  %v14669_v20 = vld [vmem:[%s22300_s2 + $0xc] ss:$16 sps:$4 sm:$0xff]  }
 0x138   :  { %v3027_v19 = vrot.slane %v2150_v25, %v17062_v21  ;;  %v3031_v23 = vrot.slane %v2150_v25, %v17065_v22  ;;  %v3043_v30 = vrot.slane %v2147_v15, %v17062_v21  ;;  %v3047_v31 = vrot.slane %v2147_v15, %v17065_v22  ;;  %5839 = vmatprep.subr.bf16.mxu1 %v14669_v20  ;;  %v14703_v20 = vld [vmem:[%s22300_s2 + $0xc8] ss:$16 sps:$4 sm:$0xff]  }
 0x139   :  { %v3051_v24 = vrot.slane %v2149_v48, %v17062_v21  ;;  %v3055_v32 = vrot.slane %v2149_v48, %v17065_v22  ;;  %v3059_v56 = vrot.slane %v2151_v26, %v17062_v21  ;;  %v3063_v57 = vrot.slane %v2151_v26, %v17065_v22  ;;  %v14670_v48 = vld [vmem:[%s22300_s2 + $0x20] ss:$16 sps:$4 sm:$0xff]   ;;  %5840 = vmatpush1.bf16.msra.mxu1 %v14667_v55 }
 0x13a   :  { %v17273_v63 = vsel %vm4056_vm0, %v2843_v58, %v3003_v17  ;;  %v17276_v14 = vsel %vm4056_vm0, %v2847_v59, %v3007_v18  ;;  %v17279_v15 = vsel %vm4056_vm0, %v2851_v0, %v3011_v27  ;;  %v17282_v16 = vsel %vm4056_vm0, %v2855_v1, %v3015_v28  ;;  %v14675_v1 = vld [vmem:[%s22300_s2 + $0x2c] ss:$16 sps:$4 sm:$0xff]   ;;  %v14678_v18 = vld [vmem:[%s22300_s2 + $0x44] ss:$16 sps:$4 sm:$0xff]   ;;  %5801 = vmatpush1.bf16.msra.mxu0 %v14670_v48  ;;  %v14685_v28 = vld [vmem:[%s22300_s2 + $0x68] ss:$16 sps:$4 sm:$0xff]  }
 0x13b   :  { %22329 = vst [vmem:[#allocation7_spill] sm:$0xff] %v17282_v16  ;;  %v17288_v25 = vsel %vm4056_vm0, %v2859_v2, %v3019_v49  ;;  %v17291_v58 = vsel %vm4056_vm0, %v2863_v4, %v3023_v50  ;;  %v17294_v59 = vsel %vm4056_vm0, %v2867_v7, %v3027_v19  ;;  %v17297_v0 = vsel %vm4056_vm0, %v2875_v60, %v3035_v51  ;;  %v14673_v60 = vld [vmem:[%s22300_s2 + $0x28] ss:$16 sps:$4 sm:$0xff]   ;;  %v14684_v27 = vld [vmem:[%s22300_s2 + $0x64] ss:$16 sps:$4 sm:$0xff]  }
 0x13c   :  { %22330 = vst [vmem:[#allocation8_spill] sm:$0xff] %v17291_v58  ;;  %v17303_v17 = vsel %vm4056_vm0, %v2879_v61, %v3039_v53  ;;  %v17306_v2 = vsel %vm4056_vm0, %v2883_v5, %v3043_v30  ;;  %v17309_v4 = vsel %vm4056_vm0, %v2887_v6, %v3047_v31  ;;  %v17312_v7 = vsel %vm4056_vm0, %v2891_v9, %v3051_v24  ;;  %v14681_v6 = vld [vmem:[%s22300_s2 + $0x4c] ss:$16 sps:$4 sm:$0xff]   ;;  %v14688_v50 = vld [vmem:[%s22300_s2 + $0x80] ss:$16 sps:$4 sm:$0xff]  }
 0x13d   :  { %22331 = vst [vmem:[#allocation9_spill] sm:$0xff] %v17309_v4  ;;  %v17321_v61 = vsel %vm4056_vm0, %v2895_v10, %v3055_v32  ;;  %v17324_v5 = vsel %vm4056_vm0, %v2899_v12, %v3059_v56  ;;  %5841 = vmatprep.subr.bf16.mxu1 %v14675_v1  ;;  %v17330_v9 = vsel %vm4056_vm0, %v2871_v8, %v3031_v23  ;;  %v14676_v10 = vld [vmem:[%s22300_s2 + $0x40] ss:$16 sps:$4 sm:$0xff]   ;;  %v14679_v12 = vld [vmem:[%s22300_s2 + $0x48] ss:$16 sps:$4 sm:$0xff]  }
 0x13e   :  { %22332 = vst [vmem:[#allocation10_spill] sm:$0xff] %v17321_v61  ;;  %22333 = vst [vmem:[#allocation11_spill] sm:$0xff] %v17330_v9  ;;  %v17333_v26 = vsel %vm4056_vm0, %v2903_v13, %v3063_v57  ;;  %5842 = vmatpush1.bf16.msra.mxu1 %v14673_v60  ;;  %5802 = vmatprep.subr.bf16.mxu0 %v14678_v18  ;;  %v14687_v8 = vld [vmem:[%s22300_s2 + $0x6c] ss:$16 sps:$4 sm:$0xff]   ;;  %v14682_v13 = vld [vmem:[%s22300_s2 + $0x60] ss:$16 sps:$4 sm:$0xff]  }
 0x13f   :  { %22334 = vst [vmem:[#allocation12_spill] sm:$0xff] %v17333_v26  ;;  %5843 = vmatprep.subr.bf16.mxu1 %v14681_v6  ;;  %5803 = vmatpush1.bf16.msra.mxu0 %v14676_v10  ;;  %v14693_v49 = vld [vmem:[%s22300_s2 + $0x8c] ss:$16 sps:$4 sm:$0xff]   ;;  %v14691_v51 = vld [vmem:[%s22300_s2 + $0x88] ss:$16 sps:$4 sm:$0xff]  }
 0x140   :  { %5804 = vmatprep.subr.bf16.mxu0 %v14684_v27  ;;  %v14696_v53 = vld [vmem:[%s22300_s2 + $0xa4] ss:$16 sps:$4 sm:$0xff]   ;;  %v14694_v19 = vld [vmem:[%s22300_s2 + $0xa0] ss:$16 sps:$4 sm:$0xff]   ;;  %v14697_v23 = vld [vmem:[%s22300_s2 + $0xa8] ss:$16 sps:$4 sm:$0xff]  }
 0x141   :  { %v14702_v30 = vld [vmem:[%s22300_s2 + $0xc4] ss:$16 sps:$4 sm:$0xff]   ;;  %v14705_v31 = vld [vmem:[%s22300_s2 + $0xcc] ss:$16 sps:$4 sm:$0xff]   ;;  %v14700_v55 = vld [vmem:[%s22300_s2 + $0xc0] ss:$16 sps:$4 sm:$0xff]  }
 0x142   :  { %5844 = vmatpush1.bf16.msra.mxu1 %v14679_v12  ;;  %v14708_v24 = vld [vmem:[%s22300_s2 + $0xe4] ss:$16 sps:$4 sm:$0xff]   ;;  %v14711_v32 = vld [vmem:[%s22300_s2 + $0xec] ss:$16 sps:$4 sm:$0xff]   ;;  %v14706_v56 = vld [vmem:[%s22300_s2 + $0xe0] ss:$16 sps:$4 sm:$0xff]  }
 0x143   :  { %5845 = vmatprep.subr.bf16.mxu1 %v14687_v8  ;;  %5805 = vmatpush1.bf16.msra.mxu0 %v14682_v13  ;;  %v14709_v57 = vld [vmem:[%s22300_s2 + $0xe8] ss:$16 sps:$4 sm:$0xff]   ;;  %v14717_v60 = vld [vmem:[%s22300_s2 + $0x10c] ss:$16 sps:$4 sm:$0xff]   ;;  %v14730_v4 = vld [vmem:[%s22300_s2 + $0x160] ss:$16 sps:$4 sm:$0xff]  }
 0x144   :  { %5806 = vmatprep.subr.bf16.mxu0 %v14690_v47  ;;  %v14712_v47 = vld [vmem:[%s22300_s2 + $0x100] ss:$16 sps:$4 sm:$0xff]  }
 0x146   :  { %5846 = vmatpush1.bf16.msra.mxu1 %v14685_v28 }
 0x147   :  { %5847 = vmatprep.subr.bf16.mxu1 %v14693_v49  ;;  %5807 = vmatpush1.bf16.msra.mxu0 %v14688_v50  ;;  %v14715_v49 = vld [vmem:[%s22300_s2 + $0x108] ss:$16 sps:$4 sm:$0xff]  }
 0x148   :  { %5808 = vmatprep.subr.bf16.mxu0 %v14696_v53  ;;  %v14720_v53 = vld [vmem:[%s22300_s2 + $0x124] ss:$16 sps:$4 sm:$0xff]  }
 0x14a   :  { %5848 = vmatpush1.bf16.msra.mxu1 %v14691_v51 }
 0x14b   :  { %5849 = vmatprep.subr.bf16.mxu1 %v14699_v54  ;;  %5809 = vmatpush1.bf16.msra.mxu0 %v14694_v19 }
 0x14c   :  { %5810 = vmatprep.subr.bf16.mxu0 %v14702_v30 }
 0x14e   :  { %5850 = vmatpush1.bf16.msra.mxu1 %v14697_v23 }
 0x14f   :  { %5851 = vmatprep.subr.bf16.mxu1 %v14705_v31  ;;  %5811 = vmatpush1.bf16.msra.mxu0 %v14700_v55  ;;  %v14718_v31 = vld [vmem:[%s22300_s2 + $0x120] ss:$16 sps:$4 sm:$0xff]   ;;  %v14723_v55 = vld [vmem:[%s22300_s2 + $0x12c] ss:$16 sps:$4 sm:$0xff]  }
 0x150   :  { %5812 = vmatprep.subr.bf16.mxu0 %v14708_v24 }
 0x152   :  { %5852 = vmatpush1.bf16.msra.mxu1 %v14703_v20 }
 0x153   :  { %5853 = vmatprep.subr.bf16.mxu1 %v14711_v32  ;;  %5813 = vmatpush1.bf16.msra.mxu0 %v14706_v56 }
 0x154   :  { %5814 = vmatprep.subr.bf16.mxu0 %v14714_v62 }
 0x155   :  { %v755_v48 = vpop.f32.mrb[4].mxu0 }
 0x156   :  { %v991_v1 = vpop.f32.mrb[4].mxu1  ;;  %v757_v18 = vpop.f32.mrb[5].mxu0  ;;  %5854 = vmatpush1.bf16.msra.mxu1 %v14709_v57  ;;  %v14721_v57 = vld [vmem:[%s22300_s2 + $0x128] ss:$16 sps:$4 sm:$0xff]  }
 0x157   :  { %v993_v6 = vpop.f32.mrb[5].mxu1  ;;  %v2156_v10 = vcombine.low %v755_v48, %v757_v18  ;;  %v2157_v12 = vcombine.high %v755_v48, %v757_v18  ;;  %v17407_v13 = vpop.f32.mrb[6].mxu0  ;;  %5855 = vmatprep.subr.bf16.mxu1 %v14717_v60  ;;  %5815 = vmatpush1.bf16.msra.mxu0 %v14712_v47  ;;  %v14726_v18 = vld [vmem:[%s22300_s2 + $0x144] ss:$16 sps:$4 sm:$0xff]  }
 0x158   :  { %v2260_v27 = vcombine.low %v991_v1, %v993_v6  ;;  %v2261_v8 = vcombine.high %v991_v1, %v993_v6  ;;  %v17409_v28 = vpop.f32.mrb[6].mxu1  ;;  %v17417_v50 = vpop.f32.mrb[7].mxu0  ;;  %5816 = vmatprep.subr.bf16.mxu0 %v14720_v53  ;;  %v14727_v53 = vld [vmem:[%s22300_s2 + $0x148] ss:$16 sps:$4 sm:$0xff]  }
 0x159   :  { %v17419_v51 = vpop.f32.mrb[7].mxu1  ;;  %v2164_v54 = vrot.slane %v2156_v10, %v17055_v3  ;;  %v2171_v19 = vrot.slane %v2157_v12, %v17055_v3  ;;  %v14729_v12 = vld [vmem:[%s22300_s2 + $0x14c] ss:$16 sps:$4 sm:$0xff]  }
 0x15a   :  { %v17427_v23 = vrot.slane %v2260_v27, %v17055_v3  ;;  %v17430_v30 = vrot.slane %v2261_v8, %v17055_v3  ;;  %5856 = vmatpush1.bf16.msra.mxu1 %v14715_v49 }
 0x15b   :  { %v2172_v62 = vcombine.high %v2164_v54, %v2164_v54  ;;  %v2173_v48 = vcombine.high %v2171_v19, %v2171_v19  ;;  %v2180_v1 = vrot.slane %v2164_v54, %v17055_v3  ;;  %v2187_v60 = vrot.slane %v2171_v19, %v17055_v3  ;;  %v14724_v19 = vld [vmem:[%s22300_s2 + $0x140] ss:$16 sps:$4 sm:$0xff]   ;;  %5857 = vmatprep.subr.bf16.mxu1 %v14723_v55 }
 0x15c   :  { %v2276_v6 = vcombine.high %v17427_v23, %v17427_v23  ;;  %v2277_v10 = vcombine.high %v17430_v30, %v17430_v30  ;;  %5817 = vmatpush1.bf16.msra.mxu0 %v14718_v31 }
 0x15d   :  { %v17462_v27 = vrot.slane %v2172_v62, %v17055_v3  ;;  %v17465_v8 = vrot.slane %v2173_v48, %v17055_v3  ;;  %v17467_v47 = vcombine.high %v2180_v1, %v2180_v1  ;;  %v17469_v54 = vcombine.high %v2187_v60, %v2187_v60  ;;  %5818 = vmatprep.subr.bf16.mxu0 %v14726_v18  ;;  %v14733_v18 = vld [vmem:[%s22300_s2 + $0x168] ss:$16 sps:$4 sm:$0xff]  }
 0x15e   :  { %v3099_v49 = vrot.slane %v2180_v1, %v17062_v21  ;;  %v3103_v56 = vrot.slane %v2180_v1, %v17065_v22  ;;  %v17478_v62 = vrot.slane %v17427_v23, %v17055_v3  ;;  %v17482_v48 = vrot.slane %v17430_v30, %v17055_v3  ;;  %v14732_v30 = vld [vmem:[%s22300_s2 + $0x164] ss:$16 sps:$4 sm:$0xff]   ;;  %5858 = vmatpush1.bf16.msra.mxu1 %v14721_v57 }
 0x15f   :  { %v17489_v32 = vcombine.high %v17462_v27, %v17462_v27  ;;  %v17493_v1 = vcombine.high %v17465_v8, %v17465_v8  ;;  %v3107_v23 = vrot.slane %v17462_v27, %v17062_v21  ;;  %v3131_v24 = vrot.slane %v2187_v60, %v17062_v21  ;;  %5859 = vmatprep.subr.bf16.mxu1 %v14729_v12  ;;  %v14738_v12 = vld [vmem:[%s22300_s2 + $0x184] ss:$16 sps:$4 sm:$0xff]  }
 0x160   :  { %v3115_v20 = vrot.slane %v17467_v47, %v17062_v21  ;;  %v3135_v11 = vrot.slane %v2187_v60, %v17065_v22  ;;  %v3139_v26 = vrot.slane %v17465_v8, %v17062_v21  ;;  %v3147_v55 = vrot.slane %v17469_v54, %v17062_v21  ;;  %v14735_v60 = vld [vmem:[%s22300_s2 + $0x16c] ss:$16 sps:$4 sm:$0xff]   ;;  %5819 = vmatpush1.bf16.msra.mxu0 %v14724_v19 }
 0x161   :  { %v3123_v31 = vrot.slane %v17489_v32, %v17062_v21  ;;  %v3155_v9 = vrot.slane %v17493_v1, %v17062_v21  ;;  %v4090_v57 = vsel %vm4089_vm1, %v17124_v33, %v3099_v49  ;;  %v4091_v61 = vsel %vm4089_vm1, %v17127_v34, %v3103_v56  ;;  %5820 = vmatprep.subr.bf16.mxu0 %v14732_v30 }
 0x162   :  { %v4092_v58 = vsel %vm4089_vm1, %v17130_v35, %v3107_v23  ;;  %v17537_v33 = vsel %vm4089_vm1, %v17136_v37, %v3115_v20  ;;  %v4098_v56 = vsel %vm4089_vm1, %v17145_v40, %v3131_v24  ;;  %v17550_v49 = vsel %vm4089_vm1, %v17148_v41, %v3135_v11  ;;  %5860 = vmatpush1.bf16.msra.mxu1 %v14727_v53  ;;  %v14741_v40 = vld [vmem:[%s22300_s2 + $0x18c] ss:$16 sps:$4 sm:$0xff]  }
 0x163   :  { %v17541_v34 = vsel %vm4089_vm1, %v17142_v39, %v3123_v31  ;;  %v17554_v35 = vsel %vm4089_vm1, %v17151_v42, %v3139_v26  ;;  %v17558_v37 = vsel %vm4089_vm1, %v17157_v44, %v3147_v55  ;;  %v17562_v39 = vsel %vm4089_vm1, %v17163_v46, %v3155_v9  ;;  %v14736_v46 = vld [vmem:[%s22300_s2 + $0x180] ss:$16 sps:$4 sm:$0xff]   ;;  %5861 = vmatprep.subr.bf16.mxu1 %v14735_v60  ;;  %v14747_v55 = vld [vmem:[%s22300_s2 + $0x1ac] ss:$16 sps:$4 sm:$0xff]  }
 0x164   :  { %v17570_v41 = vrot.slane %v2276_v6, %v17055_v3  ;;  %v17573_v42 = vrot.slane %v2277_v10, %v17055_v3  ;;  %v17577_v44 = vcombine.high %v17478_v62, %v17478_v62  ;;  %v17586_v26 = vcombine.high %v17482_v48, %v17482_v48  ;;  %v14739_v6 = vld [vmem:[%s22300_s2 + $0x188] ss:$16 sps:$4 sm:$0xff]   ;;  %v14744_v10 = vld [vmem:[%s22300_s2 + $0x1a4] ss:$16 sps:$4 sm:$0xff]   ;;  %5821 = vmatpush1.bf16.msra.mxu0 %v14730_v4 }
 0x165   :  { %v3259_v20 = vrot.slane %v17478_v62, %v17062_v21  ;;  %v3291_v24 = vrot.slane %v17482_v48, %v17062_v21  ;;  %v3263_v23 = vrot.slane %v17478_v62, %v17065_v22  ;;  %5822 = vmatprep.subr.bf16.mxu0 %v14738_v12  ;;  %v22337_v30 = vcombine.low %v17407_v13, %v17417_v50 }
 0x166   :  { %v17600_v19 = vcombine.high %v17570_v41, %v17570_v41  ;;  %v17604_v53 = vcombine.high %v17573_v42, %v17573_v42  ;;  %v3267_v31 = vrot.slane %v17570_v41, %v17062_v21  ;;  %5862 = vmatpush1.bf16.msra.mxu1 %v14733_v18  ;;  %v22338_v12 = vcombine.high %v17407_v13, %v17417_v50  ;;  %v14745_v13 = vld [vmem:[%s22300_s2 + $0x1a8] ss:$16 sps:$4 sm:$0xff]  }
 0x167   :  { %v17634_v18 = vsel %vm4122_vm2, %v4090_v57, %v3259_v20  ;;  %v17637_v4 = vsel %vm4122_vm2, %v4098_v56, %v3291_v24  ;;  %5863 = vmatprep.subr.bf16.mxu1 %v14741_v40  ;;  %v2214_v11 = vrot.slane %v22337_v30, %v17055_v3  ;;  %v22339_v62 = vcombine.low %v17409_v28, %v17419_v51  ;;  %v14742_v20 = vld [vmem:[%s22300_s2 + $0x1a0] ss:$16 sps:$4 sm:$0xff]  }
 0x168   :  { %22335 = vst [vmem:[#allocation13_spill] sm:$0xff] %v17634_v18  ;;  %22336 = vst [vmem:[#allocation14_spill] sm:$0xff] %v17637_v4  ;;  %v2221_v9 = vrot.slane %v22338_v12, %v17055_v3  ;;  %v22340_v56 = vcombine.high %v17409_v28, %v17419_v51  ;;  %5823 = vmatpush1.bf16.msra.mxu0 %v14736_v46  ;;  %v17666_v50 = vsel %vm4122_vm2, %v4091_v61, %v3263_v23  ;;  %v14750_v61 = vld [vmem:[%s22300_s2 + $0x1c4] ss:$16 sps:$4 sm:$0xff]  }
 0x169   :  { %v17651_v57 = vrot.slane %v22339_v62, %v17055_v3  ;;  %5824 = vmatprep.subr.bf16.mxu0 %v14744_v10  ;;  %22341 = vst [vmem:[#allocation15_spill] sm:$0xff] %v17666_v50  ;;  %v22342_v24 = vrot.slane %v17462_v27, %v17065_v22  ;;  %v17676_v51 = vsel %vm4122_vm2, %v4092_v58, %v3267_v31 }
 0x16a   :  { %v17657_v40 = vrot.slane %v22340_v56, %v17055_v3  ;;  %5864 = vmatpush1.bf16.msra.mxu1 %v14739_v6  ;;  %22343 = vst [vmem:[#allocation16_spill] sm:$0xff] %v17676_v51  ;;  %v2222_v46 = vcombine.high %v2214_v11, %v2214_v11  ;;  %v2223_v6 = vcombine.high %v2221_v9, %v2221_v9  ;;  %v14759_v51 = vld [vmem:[%s22300_s2 + $0x1ec] ss:$16 sps:$4 sm:$0xff]  }
 0x16b   :  { %v17673_v28 = vsel %vm4089_vm1, %v17133_v36, %v22342_v24  ;;  %v2230_v10 = vrot.slane %v2214_v11, %v17055_v3  ;;  %v2237_v30 = vrot.slane %v2221_v9, %v17055_v3  ;;  %5865 = vmatprep.subr.bf16.mxu1 %v14747_v55  ;;  %v2326_v58 = vcombine.high %v17651_v57, %v17651_v57  ;;  %v14748_v11 = vld [vmem:[%s22300_s2 + $0x1c0] ss:$16 sps:$4 sm:$0xff]   ;;  %v14751_v9 = vld [vmem:[%s22300_s2 + $0x1c8] ss:$16 sps:$4 sm:$0xff]   ;;  %v14753_v55 = vld [vmem:[%s22300_s2 + $0x1cc] ss:$16 sps:$4 sm:$0xff]  }
 0x16c   :  { %v2327_v23 = vcombine.high %v17657_v40, %v17657_v40  ;;  %v17701_v31 = vrot.slane %v2222_v46, %v17055_v3  ;;  %v17704_v62 = vrot.slane %v2223_v6, %v17055_v3  ;;  %5825 = vmatpush1.bf16.msra.mxu0 %v14742_v20  ;;  %v14756_v24 = vld [vmem:[%s22300_s2 + $0x1e4] ss:$16 sps:$4 sm:$0xff]   ;;  %v17717_v46 = vrot.slane %v17651_v57, %v17055_v3 }
 0x16d   :  { %v17706_v12 = vcombine.high %v2230_v10, %v2230_v10  ;;  %v17708_v56 = vcombine.high %v2237_v30, %v2237_v30  ;;  %v3163_v27 = vrot.slane %v2230_v10, %v17062_v21  ;;  %v3167_v36 = vrot.slane %v2230_v10, %v17065_v22  ;;  %5826 = vmatprep.subr.bf16.mxu0 %v14750_v61 }
 0x16e   :  { %22344 = vst [vmem:[#allocation17_spill] sm:$0xff] %v17704_v62  ;;  %v17721_v6 = vrot.slane %v17657_v40, %v17055_v3  ;;  %5866 = vmatpush1.bf16.msra.mxu1 %v14745_v13  ;;  %v17725_v20 = vcombine.high %v17701_v31, %v17701_v31  ;;  %v17729_v16 = vcombine.high %v17704_v62, %v17704_v62 }
 0x16f   :  { %22345 = vst [vmem:[#allocation18_spill] sm:$0xff] %v17706_v12  ;;  %v3171_v10 = vrot.slane %v17701_v31, %v17062_v21  ;;  %v3195_v60 = vrot.slane %v2237_v30, %v17062_v21  ;;  %v3179_v40 = vrot.slane %v17706_v12, %v17062_v21  ;;  %v3199_v13 = vrot.slane %v2237_v30, %v17065_v22 }
 0x170   :  { %22346 = vst [vmem:[#allocation19_spill] sm:$0xff] %v17725_v20  ;;  %v3203_v4 = vrot.slane %v17704_v62, %v17062_v21  ;;  %5867 = vmatprep.subr.bf16.mxu1 %v14753_v55  ;;  %v3187_v61 = vrot.slane %v17725_v20, %v17062_v21  ;;  %v3211_v30 = vrot.slane %v17708_v56, %v17062_v21  ;;  %v14754_v55 = vld [vmem:[%s22300_s2 + $0x1e0] ss:$16 sps:$4 sm:$0xff]  }
 0x171   :  { %5827 = vmatpush1.bf16.msra.mxu0 %v14748_v11  ;;  %v3219_v18 = vrot.slane %v17729_v16, %v17062_v21  ;;  %v4106_v12 = vsel %vm4089_vm1, %v17273_v63, %v3163_v27  ;;  %v17763_v57 = vsel %vm4089_vm1, %v17276_v14, %v3167_v36  ;;  %v14757_v11 = vld [vmem:[%s22300_s2 + $0x1e8] ss:$16 sps:$4 sm:$0xff]   ;;  %v4108_v62 = vsel %vm4089_vm1, %v17279_v15, %v3171_v10  ;;  %v14762_v14 = vld [vmem:[%s22300_s2 + $0x204] ss:$16 sps:$4 sm:$0xff]   ;;  %v14765_v15 = vld [vmem:[%s22300_s2 + $0x20c] ss:$16 sps:$4 sm:$0xff]  }
 0x172   :  { %5868 = vmatpush1.bf16.msra.mxu1 %v14751_v9  ;;  %v17772_v50 = vsel %vm4089_vm1, %v17288_v25, %v3179_v40  ;;  %v17776_v20 = vsel %vm4089_vm1, %v17294_v59, %v3187_v61  ;;  %v4114_v63 = vsel %vm4089_vm1, %v17297_v0, %v3195_v60  ;;  %5828 = vmatprep.subr.bf16.mxu0 %v14756_v24 }
 0x173   :  { %v17788_v25 = vsel %vm4089_vm1, %v17303_v17, %v3199_v13  ;;  %v17792_v59 = vsel %vm4089_vm1, %v17306_v2, %v3203_v4  ;;  %v17796_v0 = vsel %vm4089_vm1, %v17312_v7, %v3211_v30  ;;  %v17800_v60 = vsel %vm4089_vm1, %v17324_v5, %v3219_v18  ;;  %5869 = vmatprep.subr.bf16.mxu1 %v14759_v51 }
 0x174   :  { %v3215_v27 = vrot.slane %v17708_v56, %v17065_v22  ;;  %v2348_v36 = vrot.slane %v2326_v58, %v17055_v3  ;;  %v2355_v17 = vrot.slane %v2327_v23, %v17055_v3  ;;  %v2356_v2 = vcombine.high %v17717_v46, %v17717_v46 }
 0x175   :  { %5829 = vmatpush1.bf16.msra.mxu0 %v14754_v55  ;;  %v3223_v7 = vrot.slane %v17729_v16, %v17065_v22  ;;  %v2357_v4 = vcombine.high %v17721_v6, %v17721_v6  ;;  %v3323_v5 = vrot.slane %v17717_v46, %v17062_v21  ;;  %v3355_v18 = vrot.slane %v17721_v6, %v17062_v21 }
 0x176   :  { %5870 = vmatpush1.bf16.msra.mxu1 %v14757_v11  ;;  %v2358_v51 = vcombine.high %v2348_v36, %v2348_v36  ;;  %v2359_v58 = vcombine.high %v2355_v17, %v2355_v17  ;;  %v3327_v23 = vrot.slane %v17717_v46, %v17065_v22  ;;  %v3359_v9 = vrot.slane %v17721_v6, %v17065_v22 }
 0x177   :  { %6207 = vmatprep.subr.bf16.mxu0 %v14762_v14  ;;  %v3331_v16 = vrot.slane %v2348_v36, %v17062_v21  ;;  %v3335_v56 = vrot.slane %v2348_v36, %v17065_v22  ;;  %v3339_v24 = vrot.slane %v2356_v2, %v17062_v21  ;;  %v3343_v10 = vrot.slane %v2356_v2, %v17065_v22 }
 0x178   :  { %6248 = vmatprep.subr.bf16.mxu1 %v14765_v15  ;;  %v3347_v40 = vrot.slane %v2358_v51, %v17062_v21  ;;  %v3351_v13 = vrot.slane %v2358_v51, %v17065_v22  ;;  %v3363_v61 = vrot.slane %v2355_v17, %v17062_v21  ;;  %v3367_v46 = vrot.slane %v2355_v17, %v17065_v22 }
 0x179   :  { %v3371_v6 = vrot.slane %v2357_v4, %v17062_v21  ;;  %v3375_v30 = vrot.slane %v2357_v4, %v17065_v22  ;;  %v17831_v55 = vsel %vm4122_vm2, %v4106_v12, %v3323_v5  ;;  %v17834_v11 = vsel %vm4122_vm2, %v4114_v63, %v3355_v18 }
 0x17a   :  { %22347 = vst [vmem:[#allocation20_spill] sm:$0xff] %v17834_v11  ;;  %v3379_v14 = vrot.slane %v2359_v58, %v17062_v21  ;;  %v3383_v15 = vrot.slane %v2359_v58, %v17065_v22  ;;  %v22348_v36 = vrot.slane %v17570_v41, %v17065_v22  ;;  %v22349_v2 = vrot.slane %v17467_v47, %v17065_v22 }
 0x17b   :  { %v22350_v63 = vrot.slane %v17577_v44, %v17065_v22  ;;  %v22351_v5 = vrot.slane %v17577_v44, %v17062_v21  ;;  %v22354_v44 = vrot.slane %v17600_v19, %v17065_v22  ;;  %v22357_v58 = vrot.slane %v17573_v42, %v17062_v21 }
 0x17c   :  { %v17843_v17 = vsel %vm4122_vm2, %v17673_v28, %v22348_v36  ;;  %v4095_v12 = vsel %vm4089_vm1, %v17139_v38, %v22349_v2  ;;  %v22352_v28 = vrot.slane %v17489_v32, %v17065_v22  ;;  %v22353_v38 = vrot.slane %v17600_v19, %v17062_v21 }
 0x17d   :  { %v17854_v4 = vsel %vm4122_vm2, %v4095_v12, %v22350_v63  ;;  %v17861_v41 = vsel %vm4122_vm2, %v17537_v33, %v22351_v5  ;;  %v22355_v33 = vrot.slane %v17482_v48, %v17065_v22  ;;  %v17898_v19 = vsel %vm4122_vm2, %v17554_v35, %v22357_v58  ;;  %v22366_v5 = vld [vmem:[#allocation7_spill] sm:$0xff] }
 0x17e   :  { %v4097_v47 = vsel %vm4089_vm1, %v17182_v52, %v22352_v28  ;;  %v17873_v18 = vsel %vm4122_vm2, %v17541_v34, %v22353_v38  ;;  %v22356_v52 = vrot.slane %v17465_v8, %v17065_v22  ;;  %v22358_v48 = vrot.slane %v17573_v42, %v17065_v22  ;;  %v22367_v38 = vld [vmem:[#allocation18_spill] sm:$0xff] }
 0x17f   :  { %v17879_v51 = vsel %vm4122_vm2, %v4097_v47, %v22354_v44  ;;  %v17886_v32 = vsel %vm4122_vm2, %v17550_v49, %v22355_v33  ;;  %v22359_v49 = vrot.slane %v17469_v54, %v17065_v22  ;;  %v22361_v35 = vrot.slane %v17493_v1, %v17065_v22  ;;  %v22369_v44 = vld [vmem:[#allocation8_spill] sm:$0xff] }
 0x180   :  { %v4101_v34 = vsel %vm4089_vm1, %v17154_v43, %v22356_v52  ;;  %v22360_v43 = vrot.slane %v17586_v26, %v17062_v21  ;;  %v22362_v12 = vrot.slane %v17586_v26, %v17065_v22  ;;  %v22365_v26 = vrot.slane %v17701_v31, %v17065_v22 }
 0x181   :  { %v17904_v36 = vsel %vm4122_vm2, %v4101_v34, %v22358_v48  ;;  %v4103_v8 = vsel %vm4089_vm1, %v17160_v45, %v22359_v49  ;;  %v4105_v42 = vsel %vm4089_vm1, %v17185_v29, %v22361_v35  ;;  %v22363_v45 = vrot.slane %v17604_v53, %v17065_v22 }
 0x182   :  { %v17916_v2 = vsel %vm4122_vm2, %v17558_v37, %v22360_v43  ;;  %v17927_v54 = vsel %vm4122_vm2, %v4103_v8, %v22362_v12  ;;  %v22364_v37 = vrot.slane %v17604_v53, %v17062_v21  ;;  %v17944_v29 = vsel %vm4122_vm2, %v17763_v57, %v3327_v23  ;;  %v22370_v23 = vld [vmem:[#allocation19_spill] sm:$0xff] }
 0x183   :  { %v17933_v63 = vsel %vm4122_vm2, %v4105_v42, %v22363_v45  ;;  %v4109_v28 = vsel %vm4089_vm1, %v22366_v5, %v22365_v26  ;;  %v17952_v47 = vsel %vm4122_vm2, %v4108_v62, %v3331_v16  ;;  %v22368_v53 = vrot.slane %v22367_v38, %v17065_v22  ;;  %v22372_v16 = vld [vmem:[#allocation11_spill] sm:$0xff] }
 0x184   :  { %v17940_v1 = vsel %vm4122_vm2, %v17562_v39, %v22364_v37  ;;  %v17961_v33 = vsel %vm4122_vm2, %v17772_v50, %v3339_v24  ;;  %v17964_v57 = vsel %vm4122_vm2, %v4109_v28, %v3335_v56  ;;  %v22371_v62 = vrot.slane %v22370_v23, %v17065_v22  ;;  %v22374_v56 = vld [vmem:[#allocation17_spill] sm:$0xff] }
 0x185   :  { %v4111_v39 = vsel %vm4089_vm1, %v22369_v44, %v22368_v53  ;;  %v17976_v34 = vsel %vm4122_vm2, %v17776_v20, %v3347_v40  ;;  %v17983_v50 = vsel %vm4122_vm2, %v17788_v25, %v3359_v9  ;;  %v22375_v24 = vrot.slane %v22374_v56, %v17065_v22  ;;  %v22379_v40 = vld [vmem:[#allocation10_spill] sm:$0xff]  ;;  %v22381_v9 = vld [vmem:[#allocation12_spill] sm:$0xff] }
 0x186   :  { %v17967_v31 = vsel %vm4122_vm2, %v4111_v39, %v3343_v10  ;;  %v4113_v52 = vsel %vm4089_vm1, %v22372_v16, %v22371_v62  ;;  %22373 = vst [vmem:[#allocation7_spill] sm:$0xff] %v17983_v50  ;;  %v22376_v10 = vld [vmem:[#allocation9_spill] sm:$0xff]  ;;  %v17992_v49 = vsel %vm4122_vm2, %v17792_v59, %v3363_v61  ;;  %v18001_v25 = vsel %vm4122_vm2, %v17796_v0, %v3371_v6 }
 0x187   :  { %v17979_v58 = vsel %vm4122_vm2, %v4113_v52, %v3351_v13  ;;  %v4117_v48 = vsel %vm4089_vm1, %v22376_v10, %v22375_v24  ;;  %22377 = vst [vmem:[#allocation18_spill] sm:$0xff] %v17992_v49  ;;  %v4119_v13 = vsel %vm4089_vm1, %v22379_v40, %v3215_v27  ;;  %22380 = vst [vmem:[#allocation19_spill] sm:$0xff] %v18001_v25 }
 0x188   :  { %v17995_v20 = vsel %vm4122_vm2, %v4117_v48, %v3367_v46  ;;  %v4121_v8 = vsel %vm4089_vm1, %v22381_v9, %v3223_v7  ;;  %v18006_v43 = vsel %vm4122_vm2, %v4119_v13, %v3375_v30  ;;  %v18013_v59 = vsel %vm4122_vm2, %v17800_v60, %v3379_v14 }
 0x189   :  { %22378 = vst [vmem:[#allocation8_spill] sm:$0xff] %v17995_v20  ;;  %22382 = vst [vmem:[#allocation11_spill] sm:$0xff] %v18006_v43  ;;  %v18009_v35 = vsel %vm4122_vm2, %v4121_v8, %v3383_v15 }
 0x18a   :  { %22383 = vst [vmem:[#allocation17_spill] sm:$0xff] %v18009_v35  ;;  %22384 = vst [vmem:[#allocation9_spill] sm:$0xff] %v18013_v59 }
 0x195   :  { %v1227_v61 = vpop.f32.mrb[8].mxu0 }
 0x196   :  { %v1463_v46 = vpop.f32.mrb[8].mxu1  ;;  %v1229_v27 = vpop.f32.mrb[9].mxu0 }
 0x197   :  { %v1465_v42 = vpop.f32.mrb[9].mxu1  ;;  %v2364_v12 = vcombine.low %v1227_v61, %v1229_v27  ;;  %v2365_v0 = vcombine.high %v1227_v61, %v1229_v27  ;;  %v18015_v37 = vpop.f32.mrb[10].mxu0 }
 0x198   :  { %v2468_v6 = vcombine.low %v1463_v46, %v1465_v42  ;;  %v2469_v45 = vcombine.high %v1463_v46, %v1465_v42  ;;  %v18017_v7 = vpop.f32.mrb[10].mxu1  ;;  %v18019_v30 = vpop.f32.mrb[11].mxu0 }
 0x199   :  { %v18021_v15 = vpop.f32.mrb[11].mxu1  ;;  %v2372_v26 = vrot.slane %v2364_v12, %v17055_v3  ;;  %v2379_v60 = vrot.slane %v2365_v0, %v17055_v3  ;;  %v2414_v28 = vcombine.low %v18015_v37, %v18019_v30  ;;  %v2415_v38 = vcombine.high %v18015_v37, %v18019_v30  ;;  %v22385_v0 = vld [vmem:[#allocation15_spill] sm:$0xff] }
 0x19a   :  { %v2476_v14 = vrot.slane %v2468_v6, %v17055_v3  ;;  %v2483_v5 = vrot.slane %v2469_v45, %v17055_v3  ;;  %v2518_v53 = vcombine.low %v18017_v7, %v18021_v15  ;;  %v2519_v44 = vcombine.high %v18017_v7, %v18021_v15  ;;  %v22386_v6 = vld [vmem:[#allocation13_spill] sm:$0xff] }
 0x19b   :  { %v2380_v39 = vcombine.high %v2372_v26, %v2372_v26  ;;  %v2381_v23 = vcombine.high %v2379_v60, %v2379_v60  ;;  %v2388_v62 = vrot.slane %v2372_v26, %v17055_v3  ;;  %v18037_v16 = vrot.slane %v2379_v60, %v17055_v3 }
 0x19c   :  { %v2484_v52 = vcombine.high %v2476_v14, %v2476_v14  ;;  %v2485_v56 = vcombine.high %v2483_v5, %v2483_v5  ;;  %v18040_v24 = vrot.slane %v2476_v14, %v17055_v3  ;;  %v18043_v10 = vrot.slane %v2483_v5, %v17055_v3 }
 0x19d   :  { %v18046_v48 = vrot.slane %v2380_v39, %v17055_v3  ;;  %v18049_v40 = vrot.slane %v2381_v23, %v17055_v3  ;;  %v18051_v13 = vcombine.high %v2388_v62, %v2388_v62  ;;  %v18055_v9 = vcombine.high %v18037_v16, %v18037_v16 }
 0x19e   :  { %v3419_v8 = vrot.slane %v2388_v62, %v17062_v21  ;;  %v3423_v61 = vrot.slane %v2388_v62, %v17065_v22  ;;  %v18096_v23 = vrot.slane %v2484_v52, %v17055_v3  ;;  %v18099_v62 = vrot.slane %v2485_v56, %v17055_v3 }
 0x19f   :  { %v18065_v42 = vcombine.high %v18046_v48, %v18046_v48  ;;  %v18069_v12 = vcombine.high %v18049_v40, %v18049_v40  ;;  %v18103_v7 = vcombine.high %v18040_v24, %v18040_v24  ;;  %v18107_v60 = vcombine.high %v18043_v10, %v18043_v10 }
 0x1a0   :  { %v18115_v52 = vcombine.high %v18096_v23, %v18096_v23  ;;  %v18119_v56 = vcombine.high %v18099_v62, %v18099_v62  ;;  %v2422_v26 = vrot.slane %v2414_v28, %v17055_v3  ;;  %v2429_v37 = vrot.slane %v2415_v38, %v17055_v3 }
 0x1a1   :  { %v2526_v45 = vrot.slane %v2518_v53, %v17055_v3  ;;  %v2533_v14 = vrot.slane %v2519_v44, %v17055_v3  ;;  %v4157_v30 = vsel %vm4155_vm3, %v22385_v0, %v3423_v61  ;;  %v4156_v46 = vsel %vm4155_vm3, %v22386_v6, %v3419_v8 }
 0x1a2   :  { %v2430_v5 = vcombine.high %v2422_v26, %v2422_v26  ;;  %v2431_v39 = vcombine.high %v2429_v37, %v2429_v37  ;;  %v18154_v27 = vrot.slane %v2422_v26, %v17055_v3  ;;  %v18157_v15 = vrot.slane %v2429_v37, %v17055_v3 }
 0x1a3   :  { %v2534_v28 = vcombine.high %v2526_v45, %v2526_v45  ;;  %v2535_v38 = vcombine.high %v2533_v14, %v2533_v14  ;;  %v18160_v53 = vrot.slane %v2526_v45, %v17055_v3  ;;  %v18163_v44 = vrot.slane %v2533_v14, %v17055_v3 }
 0x1a4   :  { %22387 = vst [vmem:[#allocation10_spill] sm:$0xff] %v18157_v15  ;;  %v18166_v61 = vrot.slane %v2430_v5, %v17055_v3  ;;  %v18169_v8 = vrot.slane %v2431_v39, %v17055_v3  ;;  %v18173_v0 = vcombine.high %v18154_v27, %v18154_v27  ;;  %v18177_v6 = vcombine.high %v18157_v15, %v18157_v15 }
 0x1a5   :  { %v2556_v35 = vrot.slane %v2534_v28, %v17055_v3  ;;  %v18221_v43 = vrot.slane %v2535_v38, %v17055_v3  ;;  %v18225_v25 = vcombine.high %v18160_v53, %v18160_v53  ;;  %v18229_v37 = vcombine.high %v18163_v44, %v18163_v44 }
 0x1a6   :  { %22388 = vst [vmem:[#allocation12_spill] sm:$0xff] %v18169_v8  ;;  %22389 = vst [vmem:[#allocation15_spill] sm:$0xff] %v18177_v6  ;;  %v18189_v5 = vcombine.high %v18166_v61, %v18166_v61  ;;  %v18193_v39 = vcombine.high %v18169_v8, %v18169_v8  ;;  %v3643_v26 = vrot.slane %v18160_v53, %v17062_v21 }
 0x1a7   :  { %22391 = vst [vmem:[#allocation21_spill] sm:$0xff] %v18221_v43  ;;  %22392 = vst [vmem:[#allocation22_spill] sm:$0xff] %v18229_v37  ;;  %v3647_v14 = vrot.slane %v18160_v53, %v17065_v22  ;;  %v18235_v59 = vcombine.high %v2556_v35, %v2556_v35  ;;  %v18239_v28 = vcombine.high %v18221_v43, %v18221_v43 }
 0x1a8   :  { %22390 = vst [vmem:[#allocation13_spill] sm:$0xff] %v18193_v39  ;;  %v3651_v38 = vrot.slane %v2556_v35, %v17062_v21  ;;  %v3655_v45 = vrot.slane %v2556_v35, %v17065_v22  ;;  %v3659_v3 = vrot.slane %v18225_v25, %v17062_v21  ;;  %v3663_v39 = vrot.slane %v18225_v25, %v17065_v22 }
 0x1a9   :  { %22393 = vst [vmem:[#allocation23_spill] sm:$0xff] %v18239_v28  ;;  %v3675_v6 = vrot.slane %v18163_v44, %v17062_v21  ;;  %v3679_v53 = vrot.slane %v18163_v44, %v17065_v22  ;;  %v3667_v49 = vrot.slane %v18235_v59, %v17062_v21  ;;  %v3687_v35 = vrot.slane %v18221_v43, %v17065_v22  ;;  %v22398_v28 = vld [vmem:[#allocation16_spill] sm:$0xff] }
 0x1aa   :  { %v3695_v25 = vrot.slane %v18229_v37, %v17065_v22  ;;  %v22394_v44 = vrot.slane %v18040_v24, %v17065_v22  ;;  %v22395_v20 = vrot.slane %v18040_v24, %v17062_v21  ;;  %v22396_v8 = vrot.slane %v18046_v48, %v17065_v22 }
 0x1ab   :  { %v22397_v11 = vrot.slane %v18046_v48, %v17062_v21 }
 0x1ac   :  { %v18267_v50 = vsel %vm4188_vm4, %v4157_v30, %v22394_v44  ;;  %v18273_v43 = vsel %vm4188_vm4, %v4156_v46, %v22395_v20  ;;  %v4159_v37 = vsel %vm4155_vm3, %v17843_v17, %v22396_v8  ;;  %v22399_v30 = vrot.slane %v18051_v13, %v17065_v22 }
 0x1ad   :  { %v4158_v15 = vsel %vm4155_vm3, %v22398_v28, %v22397_v11  ;;  %v22400_v20 = vrot.slane %v18051_v13, %v17062_v21  ;;  %v22401_v17 = vrot.slane %v18096_v23, %v17065_v22  ;;  %v22402_v11 = vrot.slane %v18096_v23, %v17062_v21 }
 0x1ae   :  { %v4161_v24 = vsel %vm4155_vm3, %v17854_v4, %v22399_v30  ;;  %v22403_v4 = vrot.slane %v18103_v7, %v17065_v22  ;;  %v22405_v23 = vrot.slane %v18065_v42, %v17065_v22  ;;  %v22406_v44 = vrot.slane %v18065_v42, %v17062_v21 }
 0x1af   :  { %v4160_v46 = vsel %vm4155_vm3, %v17861_v41, %v22400_v20  ;;  %v18299_v48 = vsel %vm4188_vm4, %v4159_v37, %v22401_v17  ;;  %v18305_v8 = vsel %vm4188_vm4, %v4158_v15, %v22402_v11  ;;  %v22404_v41 = vrot.slane %v18103_v7, %v17062_v21  ;;  %v22411_v17 = vld [vmem:[#allocation14_spill] sm:$0xff] }
 0x1b0   :  { %v18311_v13 = vsel %vm4188_vm4, %v4161_v24, %v22403_v4  ;;  %v3607_v37 = vrot.slane %v18115_v52, %v17065_v22  ;;  %v4163_v15 = vsel %vm4155_vm3, %v17879_v51, %v22405_v23  ;;  %v4162_v30 = vsel %vm4155_vm3, %v17873_v18, %v22406_v44 }
 0x1b1   :  { %v18317_v28 = vsel %vm4188_vm4, %v4160_v46, %v22404_v41  ;;  %v22407_v7 = vrot.slane %v18037_v16, %v17065_v22  ;;  %v22408_v20 = vrot.slane %v18115_v52, %v17062_v21  ;;  %v22409_v51 = vrot.slane %v18043_v10, %v17065_v22 }
 0x1b2   :  { %v22410_v18 = vrot.slane %v18037_v16, %v17062_v21  ;;  %v18359_v4 = vsel %vm4188_vm4, %v4163_v15, %v3607_v37  ;;  %v22413_v41 = vrot.slane %v18043_v10, %v17062_v21  ;;  %v22414_v16 = vrot.slane %v18099_v62, %v17065_v22 }
 0x1b3   :  { %v4165_v24 = vsel %vm4155_vm3, %v17886_v32, %v22407_v7  ;;  %v18340_v46 = vsel %vm4188_vm4, %v4162_v30, %v22408_v20  ;;  %v22412_v32 = vrot.slane %v18049_v40, %v17065_v22  ;;  %v22415_v30 = vrot.slane %v18049_v40, %v17062_v21 }
 0x1b4   :  { %v18346_v42 = vsel %vm4188_vm4, %v4165_v24, %v22409_v51  ;;  %v4164_v11 = vsel %vm4155_vm3, %v22411_v17, %v22410_v18  ;;  %v22416_v37 = vrot.slane %v18099_v62, %v17062_v21  ;;  %v22417_v15 = vrot.slane %v18055_v9, %v17065_v22 }
 0x1b5   :  { %v4167_v52 = vsel %vm4155_vm3, %v17904_v36, %v22412_v32  ;;  %v18365_v23 = vsel %vm4188_vm4, %v4164_v11, %v22413_v41  ;;  %v4166_v36 = vsel %vm4155_vm3, %v17898_v19, %v22415_v30  ;;  %v22418_v24 = vrot.slane %v18055_v9, %v17062_v21 }
 0x1b6   :  { %v18371_v44 = vsel %vm4188_vm4, %v4167_v52, %v22414_v16  ;;  %v18382_v10 = vsel %vm4188_vm4, %v4166_v36, %v22416_v37  ;;  %v4169_v7 = vsel %vm4155_vm3, %v17927_v54, %v22417_v15  ;;  %v3639_v19 = vrot.slane %v18119_v56, %v17065_v22 }
 0x1b7   :  { %v4168_v40 = vsel %vm4155_vm3, %v17916_v2, %v22418_v24  ;;  %v22419_v62 = vrot.slane %v18107_v60, %v17065_v22  ;;  %v22420_v51 = vrot.slane %v18107_v60, %v17062_v21  ;;  %v22421_v9 = vrot.slane %v18069_v12, %v17065_v22  ;;  %v22436_v24 = vld [vmem:[#allocation20_spill] sm:$0xff] }
 0x1b8   :  { %v22422_v18 = vrot.slane %v18069_v12, %v17062_v21  ;;  %v22423_v60 = vrot.slane %v18119_v56, %v17062_v21  ;;  %v22424_v52 = vrot.slane %v18154_v27, %v17065_v22  ;;  %v22425_v12 = vrot.slane %v18154_v27, %v17062_v21 }
 0x1b9   :  { %v18400_v20 = vsel %vm4188_vm4, %v4169_v7, %v22419_v62  ;;  %v18406_v54 = vsel %vm4188_vm4, %v4168_v40, %v22420_v51  ;;  %v4171_v2 = vsel %vm4155_vm3, %v17933_v63, %v22421_v9  ;;  %v22426_v16 = vrot.slane %v18166_v61, %v17065_v22  ;;  %v22439_v62 = vld [vmem:[#allocation8_spill] sm:$0xff] }
 0x1ba   :  { %v4170_v17 = vsel %vm4155_vm3, %v17940_v1, %v22422_v18  ;;  %v18419_v11 = vsel %vm4188_vm4, %v4171_v2, %v3639_v19  ;;  %v4173_v63 = vsel %vm4155_vm3, %v17944_v29, %v22424_v52  ;;  %v4172_v1 = vsel %vm4155_vm3, %v17831_v55, %v22425_v12  ;;  %v22437_v19 = vld [vmem:[#allocation12_spill] sm:$0xff] }
 0x1bb   :  { %v18425_v32 = vsel %vm4188_vm4, %v4170_v17, %v22423_v60  ;;  %v18438_v41 = vsel %vm4188_vm4, %v4173_v63, %v3647_v14  ;;  %v18441_v56 = vsel %vm4188_vm4, %v4172_v1, %v3643_v26  ;;  %v4175_v30 = vsel %vm4155_vm3, %v17964_v57, %v22426_v16  ;;  %v22444_v60 = vld [vmem:[#allocation18_spill] sm:$0xff]  ;;  %v22445_v63 = vld [vmem:[#allocation15_spill] sm:$0xff] }
 0x1bc   :  { %v22427_v29 = vrot.slane %v18166_v61, %v17062_v21  ;;  %v18454_v55 = vsel %vm4188_vm4, %v4175_v30, %v3655_v45  ;;  %v22428_v26 = vrot.slane %v18173_v0, %v17065_v22  ;;  %v22429_v57 = vrot.slane %v18173_v0, %v17062_v21 }
 0x1bd   :  { %v22430_v37 = vrot.slane %v18189_v5, %v17065_v22  ;;  %v22431_v0 = vrot.slane %v18189_v5, %v17062_v21  ;;  %v22443_v17 = vrot.slane %v22437_v19, %v17062_v21  ;;  %v22446_v12 = vrot.slane %v22445_v63, %v17065_v22 }
 0x1be   :  { %v4174_v27 = vsel %vm4155_vm3, %v17952_v47, %v22427_v29  ;;  %v4177_v36 = vsel %vm4155_vm3, %v17967_v31, %v22428_v26  ;;  %v4176_v61 = vsel %vm4155_vm3, %v17961_v33, %v22429_v57  ;;  %v22454_v26 = vld [vmem:[#allocation22_spill] sm:$0xff] }
 0x1bf   :  { %v18457_v14 = vsel %vm4188_vm4, %v4174_v27, %v3651_v38  ;;  %v18470_v47 = vsel %vm4188_vm4, %v4177_v36, %v3663_v39  ;;  %v18473_v45 = vsel %vm4188_vm4, %v4176_v61, %v3659_v3  ;;  %v3671_v38 = vrot.slane %v18235_v59, %v17065_v22  ;;  %v22432_v39 = vld [vmem:[#allocation10_spill] sm:$0xff]  ;;  %v22434_v3 = vld [vmem:[#allocation7_spill] sm:$0xff] }
 0x1c0   :  { %v4179_v31 = vsel %vm4155_vm3, %v17979_v58, %v22430_v37  ;;  %v4178_v33 = vsel %vm4155_vm3, %v17976_v34, %v22431_v0  ;;  %v22433_v15 = vrot.slane %v22432_v39, %v17065_v22  ;;  %v22435_v59 = vrot.slane %v22432_v39, %v17062_v21  ;;  %v22457_v61 = vld [vmem:[#allocation23_spill] sm:$0xff]  ;;  %v22458_v37 = vld [vmem:[#allocation13_spill] sm:$0xff] }
 0x1c1   :  { %v22438_v58 = vrot.slane %v22437_v19, %v17065_v22  ;;  %v18503_v34 = vsel %vm4188_vm4, %v4179_v31, %v3671_v38  ;;  %v18506_v51 = vsel %vm4188_vm4, %v4178_v33, %v3667_v49  ;;  %v4182_v52 = vsel %vm4155_vm3, %v22444_v60, %v22443_v17  ;;  %v22447_v49 = vld [vmem:[#allocation11_spill] sm:$0xff]  ;;  %v22460_v0 = vld [vmem:[#allocation17_spill] sm:$0xff] }
 0x1c2   :  { %v4181_v7 = vsel %vm4155_vm3, %v22434_v3, %v22433_v15  ;;  %v4180_v40 = vsel %vm4155_vm3, %v22436_v24, %v22435_v59  ;;  %22440 = vst [vmem:[#allocation16_spill] sm:$0xff] %v18503_v34  ;;  %v4185_v1 = vsel %vm4155_vm3, %v22447_v49, %v22446_v12  ;;  %v22455_v36 = vrot.slane %v22454_v26, %v17062_v21 }
 0x1c3   :  { %v4183_v5 = vsel %vm4155_vm3, %v22439_v62, %v22438_v58  ;;  %v18509_v9 = vsel %vm4188_vm4, %v4181_v7, %v3679_v53  ;;  %v18512_v2 = vsel %vm4188_vm4, %v4180_v40, %v3675_v6  ;;  %v22448_v53 = vrot.slane %v22445_v63, %v17062_v21  ;;  %v22449_v6 = vld [vmem:[#allocation19_spill] sm:$0xff] }
 0x1c4   :  { %22441 = vst [vmem:[#allocation14_spill] sm:$0xff] %v18512_v2  ;;  %v18515_v18 = vsel %vm4188_vm4, %v4183_v5, %v3687_v35  ;;  %v22450_v35 = vld [vmem:[#allocation21_spill] sm:$0xff]  ;;  %v18539_v27 = vsel %vm4188_vm4, %v4185_v1, %v3695_v25  ;;  %v3703_v38 = vrot.slane %v22457_v61, %v17065_v22  ;;  %v22459_v31 = vrot.slane %v22458_v37, %v17065_v22  ;;  %v22466_v1 = vld [vmem:[#allocation6_spill] sm:$0xff] }
 0x1c5   :  { %22442 = vst [vmem:[#allocation10_spill] sm:$0xff] %v18515_v18  ;;  %v4184_v16 = vsel %vm4155_vm3, %v22449_v6, %v22448_v53  ;;  %v22451_v30 = vrot.slane %v22450_v35, %v17062_v21  ;;  %22453 = vst [vmem:[#allocation20_spill] sm:$0xff] %v18539_v27  ;;  %v22461_v39 = vrot.slane %v22458_v37, %v17062_v21  ;;  %v22462_v25 = vld [vmem:[#allocation9_spill] sm:$0xff]  ;;  %v14771_v27 = vld [vmem:[%s22300_s2 + $0x22c] ss:$16 sps:$4 sm:$0xff]  }
 0x1c6   :  { %v18545_v57 = vsel %vm4188_vm4, %v4184_v16, %v22455_v36  ;;  %v4187_v33 = vsel %vm4155_vm3, %v22460_v0, %v22459_v31  ;;  %v22464_v7 = vrot.slane %v22457_v61, %v17062_v21 }
 0x1c7   :  { %v18536_v29 = vsel %vm4188_vm4, %v4182_v52, %v22451_v30  ;;  %22456 = vst [vmem:[#allocation12_spill] sm:$0xff] %v18545_v57  ;;  %v4186_v15 = vsel %vm4155_vm3, %v22462_v25, %v22461_v39  ;;  %v18560_v3 = vsel %vm4188_vm4, %v4187_v33, %v3703_v38  ;;  %v14768_v57 = vld [vmem:[%s22300_s2 + $0x224] ss:$16 sps:$4 sm:$0xff]  }
 0x1c8   :  { %22452 = vst [vmem:[#allocation7_spill] sm:$0xff] %v18536_v29  ;;  %22463 = vst [vmem:[#allocation8_spill] sm:$0xff] %v18560_v3  ;;  %v18566_v59 = vsel %vm4188_vm4, %v4186_v15, %v22464_v7 }
 0x1c9   :  { %22465 = vst [vmem:[#allocation18_spill] sm:$0xff] %v18566_v59 }
 0x1d5   :  { %v1699_v24 = vpop.f32.mrb[12].mxu0 }
 0x1d6   :  { %v1935_v40 = vpop.f32.mrb[12].mxu1  ;;  %v1701_v19 = vpop.f32.mrb[13].mxu0 }
 0x1d7   :  { %v1937_v58 = vpop.f32.mrb[13].mxu1  ;;  %v2572_v62 = vcombine.low %v1699_v24, %v1701_v19  ;;  %v2573_v5 = vcombine.high %v1699_v24, %v1701_v19  ;;  %v1703_v52 = vpop.f32.mrb[14].mxu0 }
 0x1d8   :  { %v2676_v17 = vcombine.low %v1935_v40, %v1937_v58  ;;  %v2677_v60 = vcombine.high %v1935_v40, %v1937_v58  ;;  %v1939_v63 = vpop.f32.mrb[14].mxu1  ;;  %v1705_v12 = vpop.f32.mrb[15].mxu0 }
 0x1d9   :  { %v1941_v49 = vpop.f32.mrb[15].mxu1  ;;  %v2580_v53 = vrot.slane %v2572_v62, %v22466_v1  ;;  %v2587_v6 = vrot.slane %v2573_v5, %v22466_v1  ;;  %v2622_v16 = vcombine.low %v1703_v52, %v1705_v12  ;;  %v2623_v35 = vcombine.high %v1703_v52, %v1705_v12 }
 0x1da   :  { %v2726_v30 = vcombine.low %v1939_v63, %v1941_v49  ;;  %v2727_v26 = vcombine.high %v1939_v63, %v1941_v49  ;;  %v2684_v31 = vrot.slane %v2676_v17, %v22466_v1  ;;  %v2691_v0 = vrot.slane %v2677_v60, %v22466_v1 }
 0x1db   :  { %v2596_v36 = vrot.slane %v2580_v53, %v22466_v1  ;;  %v2588_v61 = vcombine.high %v2580_v53, %v2580_v53  ;;  %v2589_v38 = vcombine.high %v2587_v6, %v2587_v6  ;;  %v18572_v37 = vrot.slane %v2587_v6, %v22466_v1 }
 0x1dc   :  { %v2692_v24 = vcombine.high %v2684_v31, %v2684_v31  ;;  %v2693_v40 = vcombine.high %v2691_v0, %v2691_v0  ;;  %v2700_v19 = vrot.slane %v2684_v31, %v22466_v1  ;;  %v18589_v58 = vrot.slane %v2691_v0, %v22466_v1 }
 0x1dd   :  { %v3743_v33 = vrot.slane %v2596_v36, %v17065_v22  ;;  %v2610_v39 = vrot.slane %v2588_v61, %v22466_v1  ;;  %v18579_v25 = vrot.slane %v2589_v38, %v22466_v1  ;;  %v18581_v15 = vcombine.high %v2596_v36, %v2596_v36 }
 0x1de   :  { %v18585_v7 = vcombine.high %v18572_v37, %v18572_v37  ;;  %v2630_v62 = vrot.slane %v2622_v16, %v22466_v1  ;;  %v3739_v52 = vrot.slane %v2596_v36, %v17062_v21  ;;  %v18614_v36 = vrot.slane %v2726_v30, %v22466_v1 }
 0x1df   :  { %v4223_v5 = vsel %vm4221_vm5, %v18267_v50, %v3743_v33  ;;  %v18594_v17 = vcombine.high %v2610_v39, %v2610_v39  ;;  %v18598_v60 = vcombine.high %v18579_v25, %v18579_v25  ;;  %v3747_v12 = vrot.slane %v2610_v39, %v17062_v21 }
 0x1e0   :  { %v3755_v49 = vrot.slane %v18581_v15, %v17062_v21  ;;  %v2637_v50 = vrot.slane %v2623_v35, %v22466_v1  ;;  %v18617_v61 = vrot.slane %v2727_v26, %v22466_v1  ;;  %v2714_v38 = vrot.slane %v2692_v24, %v22466_v1  ;;  %v14760_v24 = vld [vmem:[%s22300_s2 + $0x200] ss:$16 sps:$4 sm:$0xff]  }
 0x1e1   :  { %v18621_v31 = vrot.slane %v2693_v40, %v22466_v1  ;;  %v2638_v0 = vcombine.high %v2630_v62, %v2630_v62  ;;  %v3903_v35 = vrot.slane %v2700_v19, %v17065_v22  ;;  %v3763_v33 = vrot.slane %v18594_v17, %v17062_v21 }
 0x1e2   :  { %v2722_v6 = vcombine.high %v2700_v19, %v2700_v19  ;;  %v3899_v30 = vrot.slane %v2700_v19, %v17062_v21  ;;  %v18631_v26 = vcombine.high %v18589_v58, %v18589_v58  ;;  %v2639_v40 = vcombine.high %v2637_v50, %v2637_v50 }
 0x1e3   :  { %v18636_v63 = vrot.slane %v2630_v62, %v22466_v1  ;;  %v18639_v53 = vrot.slane %v2637_v50, %v22466_v1  ;;  %v18647_v3 = vrot.slane %v18614_v36, %v22466_v1  ;;  %v14763_v62 = vld [vmem:[%s22300_s2 + $0x208] ss:$16 sps:$4 sm:$0xff]   ;;  %v18656_v50 = vrot.slane %v2638_v0, %v22466_v1 }
 0x1e4   :  { %v18660_v16 = vrot.slane %v18617_v61, %v22466_v1  ;;  %v4256_v19 = vsel %vm4254_vm6, %v4223_v5, %v3903_v35  ;;  %v4222_v59 = vsel %vm4221_vm5, %v18273_v43, %v3739_v52  ;;  %v3751_v18 = vrot.slane %v2610_v39, %v17065_v22 }
 0x1e5   :  { %v14032_v29 = vpack.c.bf16 %v4256_v19, %v4256_v19  ;;  %v4255_v0 = vsel %vm4254_vm6, %v4222_v59, %v3899_v30  ;;  %v3911_v34 = vrot.slane %v2714_v38, %v17065_v22  ;;  %v3907_v5 = vrot.slane %v2714_v38, %v17062_v21 }
 0x1e6   :  { %v14031_v2 = vpack.c.bf16 %v4255_v0, %v4255_v0  ;;  %v4224_v43 = vsel %vm4221_vm5, %v18305_v8, %v3747_v12  ;;  %v3759_v52 = vrot.slane %v18581_v15, %v17065_v22  ;;  %v4225_v35 = vsel %vm4221_vm5, %v18299_v48, %v3751_v18  ;;  %v14766_v18 = vld [vmem:[%s22300_s2 + $0x220] ss:$16 sps:$4 sm:$0xff]   ;;  %v14777_v12 = vld [vmem:[%s22300_s2 + $0x24c] ss:$16 sps:$4 sm:$0xff]  }
 0x1e7   :  { %5830 = vmatprep.mubr.bf16.mxu0 %v14032_v29  ;;  %5871 = vmatprep.mubr.bf16.mxu1 %v14032_v29  ;;  %v3919_v59 = vrot.slane %v2722_v6, %v17065_v22  ;;  %v3915_v39 = vrot.slane %v2722_v6, %v17062_v21  ;;  %v4258_v30 = vsel %vm4254_vm6, %v4225_v35, %v3911_v34  ;;  %v14769_v34 = vld [vmem:[%s22300_s2 + $0x228] ss:$16 sps:$4 sm:$0xff]   ;;  %v14780_v35 = vld [vmem:[%s22300_s2 + $0x264] ss:$16 sps:$4 sm:$0xff]  }
 0x1e8   :  { %5831 = vmatmul.mubr.bf16.vlgmr.msra.gmra.mrb[16].mxu0 %v14031_v2  ;;  %5872 = vmatmul.mubr.bf16.vlgmr.msra.gmra.mrb[16].mxu1 %v14031_v2  ;;  %v18685_v19 = vsel %vm4254_vm6, %v4224_v43, %v3907_v5  ;;  %v4227_v8 = vsel %vm4221_vm5, %v18311_v13, %v3759_v52  ;;  %v18690_v15 = vrot.slane %v2639_v40, %v22466_v1  ;;  %v14774_v2 = vld [vmem:[%s22300_s2 + $0x244] ss:$16 sps:$4 sm:$0xff]   ;;  %v14772_v40 = vld [vmem:[%s22300_s2 + $0x240] ss:$16 sps:$4 sm:$0xff]  }
 0x1e9   :  { %6208 = vmatpush1.bf16.msra.mxu0 %v14760_v24  ;;  %6249 = vmatpush1.bf16.msra.mxu1 %v14763_v62  ;;  %v14034_v48 = vpack.c.bf16 %v4258_v30, %v4258_v30  ;;  %v18702_v13 = vsel %vm4254_vm6, %v4227_v8, %v3919_v59  ;;  %v18706_v29 = vcombine.high %v18636_v63, %v18636_v63  ;;  %v14778_v8 = vld [vmem:[%s22300_s2 + $0x260] ss:$16 sps:$4 sm:$0xff]  }
 0x1ea   :  { %6209 = vmatprep.subr.bf16.mxu0 %v14768_v57  ;;  %6250 = vmatprep.subr.bf16.mxu1 %v14771_v27  ;;  %v4226_v6 = vsel %vm4221_vm5, %v18317_v28, %v3755_v49  ;;  %v2724_v24 = vcombine.high %v2714_v38, %v2714_v38  ;;  %v3767_v27 = vrot.slane %v18594_v17, %v17065_v22  ;;  %v14775_v28 = vld [vmem:[%s22300_s2 + $0x248] ss:$16 sps:$4 sm:$0xff]  }
 0x1eb   :  { %6239 = vmatprep.mubr.bf16.mxu0 %v14034_v48  ;;  %6280 = vmatprep.mubr.bf16.mxu1 %v14034_v48  ;;  %v18717_v62 = vsel %vm4254_vm6, %v4226_v6, %v3915_v39  ;;  %v4228_v57 = vsel %vm4221_vm5, %v18340_v46, %v3763_v33  ;;  %v18725_v0 = vcombine.high %v18639_v53, %v18639_v53  ;;  %v14781_v48 = vld [vmem:[%s22300_s2 + $0x268] ss:$16 sps:$4 sm:$0xff]  }
 0x1ec   :  { %v3927_v49 = vrot.slane %v2724_v24, %v17065_v22  ;;  %v3923_v38 = vrot.slane %v2724_v24, %v17062_v21  ;;  %v3935_v5 = vrot.slane %v18589_v58, %v17065_v22  ;;  %v4229_v46 = vsel %vm4221_vm5, %v18359_v4, %v3767_v27  ;;  %v14783_v4 = vld [vmem:[%s22300_s2 + $0x26c] ss:$16 sps:$4 sm:$0xff]  }
 0x1ed   :  { %6210 = vmatpush1.bf16.msra.mxu0 %v14766_v18  ;;  %6251 = vmatpush1.bf16.msra.mxu1 %v14769_v34  ;;  %v22467_v17 = vrot.slane %v18572_v37, %v17065_v22  ;;  %v22468_v43 = vrot.slane %v18572_v37, %v17062_v21  ;;  %v3803_v39 = vrot.slane %v18636_v63, %v17062_v21 }
 0x1ee   :  { %6211 = vmatprep.subr.bf16.mxu0 %v14774_v2  ;;  %6252 = vmatprep.subr.bf16.mxu1 %v14777_v12  ;;  %v18753_v59 = vsel %vm4254_vm6, %v4229_v46, %v3927_v49  ;;  %v3807_v30 = vrot.slane %v18636_v63, %v17065_v22  ;;  %v22469_v18 = vrot.slane %v18589_v58, %v17062_v21  ;;  %v14786_v49 = vld [vmem:[%s22300_s2 + $0x284] ss:$16 sps:$4 sm:$0xff]   ;;  %v14787_v46 = vld [vmem:[%s22300_s2 + $0x288] ss:$16 sps:$4 sm:$0xff]  }
 0x1ef   :  { %v4231_v33 = vsel %vm4221_vm5, %v18346_v42, %v22467_v17  ;;  %v4230_v52 = vsel %vm4221_vm5, %v18365_v23, %v22468_v43  ;;  %v18756_v42 = vsel %vm4254_vm6, %v4228_v57, %v3923_v38  ;;  %v18763_v23 = vcombine.high %v18656_v50, %v18656_v50 }
 0x1f0   :  { %v18759_v37 = vsel %vm4254_vm6, %v4231_v33, %v3935_v5  ;;  %v18779_v34 = vsel %vm4254_vm6, %v4230_v52, %v22469_v18  ;;  %v3811_v2 = vrot.slane %v18656_v50, %v17062_v21  ;;  %v3783_v63 = vrot.slane %v18579_v25, %v17065_v22  ;;  %v14784_v5 = vld [vmem:[%s22300_s2 + $0x280] ss:$16 sps:$4 sm:$0xff]  }
 0x1f1   :  { %v3943_v12 = vrot.slane %v18621_v31, %v17065_v22  ;;  %v3939_v6 = vrot.slane %v18621_v31, %v17062_v21  ;;  %6212 = vmatpush1.bf16.msra.mxu0 %v14772_v40  ;;  %6253 = vmatpush1.bf16.msra.mxu1 %v14775_v28  ;;  %v22470_v58 = vrot.slane %v18579_v25, %v17062_v21  ;;  %v14789_v40 = vld [vmem:[%s22300_s2 + $0x28c] ss:$16 sps:$4 sm:$0xff]  }
 0x1f2   :  { %v3791_v27 = vrot.slane %v18585_v7, %v17065_v22  ;;  %v3951_v57 = vrot.slane %v18631_v26, %v17065_v22  ;;  %6213 = vmatprep.subr.bf16.mxu0 %v14780_v35  ;;  %6254 = vmatprep.subr.bf16.mxu1 %v14783_v4  ;;  %v4233_v25 = vsel %vm4221_vm5, %v18371_v44, %v3783_v63  ;;  %v14792_v63 = vld [vmem:[%s22300_s2 + $0x2a4] ss:$16 sps:$4 sm:$0xff]  }
 0x1f3   :  { %v4232_v24 = vsel %vm4221_vm5, %v18382_v10, %v22470_v58  ;;  %v3947_v28 = vrot.slane %v18631_v26, %v17062_v21  ;;  %v3819_v38 = vrot.slane %v18706_v29, %v17062_v21  ;;  %v18820_v17 = vsel %vm4254_vm6, %v4233_v25, %v3943_v12  ;;  %v14793_v58 = vld [vmem:[%s22300_s2 + $0x2a8] ss:$16 sps:$4 sm:$0xff]   ;;  %v14798_v25 = vld [vmem:[%s22300_s2 + $0x2c4] ss:$16 sps:$4 sm:$0xff]  }
 0x1f4   :  { %v18807_v10 = vsel %vm4254_vm6, %v4232_v24, %v3939_v6  ;;  %v4235_v44 = vsel %vm4221_vm5, %v18400_v20, %v3791_v27  ;;  %v22471_v26 = vrot.slane %v18585_v7, %v17062_v21  ;;  %v3963_v43 = vrot.slane %v18647_v3, %v17062_v21  ;;  %v14790_v6 = vld [vmem:[%s22300_s2 + $0x2a0] ss:$16 sps:$4 sm:$0xff]  }
 0x1f5   :  { %v18832_v52 = vsel %vm4254_vm6, %v4235_v44, %v3951_v57  ;;  %v2725_v4 = vcombine.high %v18621_v31, %v18621_v31  ;;  %v22472_v20 = vcombine.high %v18614_v36, %v18614_v36  ;;  %6214 = vmatpush1.bf16.msra.mxu0 %v14778_v8  ;;  %6255 = vmatpush1.bf16.msra.mxu1 %v14781_v48  ;;  %v14795_v31 = vld [vmem:[%s22300_s2 + $0x2ac] ss:$16 sps:$4 sm:$0xff]  }
 0x1f6   :  { %v4234_v33 = vsel %vm4221_vm5, %v18406_v54, %v22471_v26  ;;  %v2772_v54 = vcombine.high %v18647_v3, %v18647_v3  ;;  %v3799_v18 = vrot.slane %v18598_v60, %v17065_v22  ;;  %6215 = vmatprep.subr.bf16.mxu0 %v14786_v49  ;;  %6256 = vmatprep.subr.bf16.mxu1 %v14789_v40 }
 0x1f7   :  { %v18835_v35 = vsel %vm4254_vm6, %v4234_v33, %v3947_v28  ;;  %v2764_v7 = vrot.slane %v22472_v20, %v22466_v1  ;;  %v3959_v36 = vrot.slane %v2725_v4, %v17065_v22  ;;  %v3955_v12 = vrot.slane %v2725_v4, %v17062_v21 }
 0x1f8   :  { %v22473_v8 = vrot.slane %v18598_v60, %v17062_v21  ;;  %v4237_v24 = vsel %vm4221_vm5, %v18419_v11, %v3799_v18  ;;  %v3967_v27 = vrot.slane %v18647_v3, %v17065_v22  ;;  %v4239_v60 = vsel %vm4221_vm5, %v18438_v41, %v3807_v30 }
 0x1f9   :  { %v18875_v57 = vsel %vm4254_vm6, %v4237_v24, %v3959_v36  ;;  %v3815_v11 = vrot.slane %v18656_v50, %v17065_v22  ;;  %v3835_v3 = vrot.slane %v18639_v53, %v17062_v21  ;;  %v3839_v41 = vrot.slane %v18639_v53, %v17065_v22  ;;  %6216 = vmatpush1.bf16.msra.mxu0 %v14784_v5  ;;  %v14801_v53 = vld [vmem:[%s22300_s2 + $0x2cc] ss:$16 sps:$4 sm:$0xff]   ;;  %v14796_v5 = vld [vmem:[%s22300_s2 + $0x2c0] ss:$16 sps:$4 sm:$0xff]  }
 0x1fa   :  { %v4236_v48 = vsel %vm4221_vm5, %v18425_v32, %v22473_v8  ;;  %v4238_v32 = vsel %vm4221_vm5, %v18441_v56, %v3803_v39  ;;  %6257 = vmatpush1.bf16.msra.mxu1 %v14787_v46  ;;  %v18890_v56 = vsel %vm4254_vm6, %v4239_v60, %v3967_v27  ;;  %v18894_v39 = vcombine.high %v18690_v15, %v18690_v15  ;;  %v14799_v46 = vld [vmem:[%s22300_s2 + $0x2c8] ss:$16 sps:$4 sm:$0xff]  }
 0x1fb   :  { %v18878_v49 = vsel %vm4254_vm6, %v4236_v48, %v3955_v12  ;;  %v18881_v40 = vsel %vm4254_vm6, %v4238_v32, %v3963_v43  ;;  %v3827_v30 = vrot.slane %v18763_v23, %v17062_v21  ;;  %6217 = vmatprep.subr.bf16.mxu0 %v14792_v63  ;;  %6258 = vmatprep.subr.bf16.mxu1 %v14795_v31  ;;  %v14802_v12 = vld [vmem:[%s22300_s2 + $0x2e0] ss:$16 sps:$4 sm:$0xff]   ;;  %v14805_v8 = vld [vmem:[%s22300_s2 + $0x2e8] ss:$16 sps:$4 sm:$0xff]  }
 0x1fc   :  { %v3975_v28 = vrot.slane %v2764_v7, %v17065_v22  ;;  %v4241_v44 = vsel %vm4221_vm5, %v18454_v55, %v3815_v11  ;;  %v3971_v26 = vrot.slane %v2764_v7, %v17062_v21  ;;  %v4240_v33 = vsel %vm4221_vm5, %v18457_v14, %v3811_v2  ;;  %v14807_v2 = vld [vmem:[%s22300_s2 + $0x2ec] ss:$16 sps:$4 sm:$0xff]  }
 0x1fd   :  { %v3823_v43 = vrot.slane %v18706_v29, %v17065_v22  ;;  %v3983_v20 = vrot.slane %v2772_v54, %v17065_v22  ;;  %v3979_v18 = vrot.slane %v2772_v54, %v17062_v21  ;;  %v4242_v55 = vsel %vm4221_vm5, %v18473_v45, %v3819_v38  ;;  %6218 = vmatpush1.bf16.msra.mxu0 %v14790_v6  ;;  %v14804_v45 = vld [vmem:[%s22300_s2 + $0x2e4] ss:$16 sps:$4 sm:$0xff]   ;;  %v22475_v24 = vld [vmem:[#allocation14_spill] sm:$0xff] }
 0x1fe   :  { %v18922_v4 = vsel %vm4254_vm6, %v4241_v44, %v3975_v28  ;;  %v3843_v63 = vrot.slane %v18690_v15, %v17062_v21  ;;  %6259 = vmatpush1.bf16.msra.mxu1 %v14793_v58  ;;  %v18931_v14 = vsel %vm4254_vm6, %v4240_v33, %v3971_v26  ;;  %v3995_v29 = vrot.slane %v18660_v16, %v17062_v21  ;;  %v22478_v33 = vld [vmem:[#allocation7_spill] sm:$0xff] }
 0x1ff   :  { %v4243_v50 = vsel %vm4221_vm5, %v18470_v47, %v3823_v43  ;;  %6219 = vmatprep.subr.bf16.mxu0 %v14798_v25  ;;  %6260 = vmatprep.subr.bf16.mxu1 %v14801_v53  ;;  %v18947_v54 = vsel %vm4254_vm6, %v4242_v55, %v3979_v18  ;;  %v22474_v47 = vcombine.high %v18617_v61, %v18617_v61  ;;  %v14811_v25 = vld [vmem:[%s22300_s2 + $0x308] ss:$16 sps:$4 sm:$0xff]   ;;  %v14816_v18 = vld [vmem:[%s22300_s2 + $0x324] ss:$16 sps:$4 sm:$0xff]   ;;  %v14819_v55 = vld [vmem:[%s22300_s2 + $0x32c] ss:$16 sps:$4 sm:$0xff]  }
 0x200   :  { %v18944_v38 = vsel %vm4254_vm6, %v4243_v50, %v3983_v20  ;;  %v2773_v36 = vcombine.high %v18660_v16, %v18660_v16  ;;  %v2774_v48 = vcombine.high %v2764_v7, %v2764_v7  ;;  %v3831_v6 = vrot.slane %v18763_v23, %v17065_v22  ;;  %v22476_v7 = vld [vmem:[#allocation16_spill] sm:$0xff] }
 0x201   :  { %v2771_v31 = vrot.slane %v22474_v47, %v22466_v1  ;;  %v4244_v58 = vsel %vm4221_vm5, %v18506_v51, %v3827_v30  ;;  %v3999_v1 = vrot.slane %v18660_v16, %v17065_v22  ;;  %v4247_v61 = vsel %vm4221_vm5, %v18509_v9, %v3839_v41  ;;  %6220 = vmatpush1.bf16.msra.mxu0 %v14796_v5  ;;  %v14810_v51 = vld [vmem:[%s22300_s2 + $0x304] ss:$16 sps:$4 sm:$0xff]   ;;  %v14813_v9 = vld [vmem:[%s22300_s2 + $0x30c] ss:$16 sps:$4 sm:$0xff]   ;;  %v14808_v30 = vld [vmem:[%s22300_s2 + $0x300] ss:$16 sps:$4 sm:$0xff]  }
 0x202   :  { %v4246_v27 = vsel %vm4221_vm5, %v22475_v24, %v3835_v3  ;;  %6261 = vmatpush1.bf16.msra.mxu1 %v14799_v46  ;;  %v3991_v60 = vrot.slane %v2774_v48, %v17065_v22  ;;  %v4245_v32 = vsel %vm4221_vm5, %v22476_v7, %v3831_v6  ;;  %v3987_v23 = vrot.slane %v2774_v48, %v17062_v21  ;;  %v22477_v46 = vld [vmem:[#allocation10_spill] sm:$0xff]  ;;  %v22479_v47 = vld [vmem:[#allocation20_spill] sm:$0xff] }
 0x203   :  { %6221 = vmatprep.subr.bf16.mxu0 %v14804_v45  ;;  %6262 = vmatprep.subr.bf16.mxu1 %v14807_v2  ;;  %v18982_v16 = vsel %vm4254_vm6, %v4247_v61, %v3999_v1  ;;  %v18985_v11 = vsel %vm4254_vm6, %v4246_v27, %v3995_v29  ;;  %v3847_v3 = vrot.slane %v18690_v15, %v17065_v22  ;;  %v14817_v45 = vld [vmem:[%s22300_s2 + $0x328] ss:$16 sps:$4 sm:$0xff]   ;;  %v14822_v61 = vld [vmem:[%s22300_s2 + $0x344] ss:$16 sps:$4 sm:$0xff]   ;;  %v14825_v24 = vld [vmem:[%s22300_s2 + $0x34c] ss:$16 sps:$4 sm:$0xff]  }
 0x204   :  { %v3851_v41 = vrot.slane %v18725_v0, %v17062_v21  ;;  %v18998_v53 = vsel %vm4254_vm6, %v4245_v32, %v3991_v60  ;;  %v19001_v28 = vsel %vm4254_vm6, %v4244_v58, %v3987_v23  ;;  %v3859_v15 = vrot.slane %v18894_v39, %v17062_v21  ;;  %v14823_v32 = vld [vmem:[%s22300_s2 + $0x348] ss:$16 sps:$4 sm:$0xff]  }
 0x205   :  { %v4007_v5 = vrot.slane %v2771_v31, %v17065_v22  ;;  %v4249_v44 = vsel %vm4221_vm5, %v22477_v46, %v3847_v3  ;;  %6222 = vmatpush1.bf16.msra.mxu0 %v14802_v12  ;;  %v4003_v26 = vrot.slane %v2771_v31, %v17062_v21  ;;  %v4248_v43 = vsel %vm4221_vm5, %v22478_v33, %v3843_v63  ;;  %v22482_v23 = vld [vmem:[#allocation8_spill] sm:$0xff]  ;;  %v14840_v33 = vld [vmem:[%s22300_s2 + $0x3a4] ss:$16 sps:$4 sm:$0xff]  }
 0x206   :  { %6263 = vmatpush1.bf16.msra.mxu1 %v14805_v8  ;;  %v3855_v20 = vrot.slane %v18725_v0, %v17065_v22  ;;  %6223 = vmatprep.subr.bf16.mxu0 %v14810_v51  ;;  %v4015_v29 = vrot.slane %v2773_v36, %v17065_v22  ;;  %v4011_v63 = vrot.slane %v2773_v36, %v17062_v21  ;;  %v14814_v0 = vld [vmem:[%s22300_s2 + $0x320] ss:$16 sps:$4 sm:$0xff]   ;;  %v22480_v8 = vld [vmem:[#allocation12_spill] sm:$0xff] }
 0x207   :  { %6264 = vmatprep.subr.bf16.mxu1 %v14813_v9  ;;  %v19020_v50 = vsel %vm4254_vm6, %v4249_v44, %v4007_v5  ;;  %v19031_v2 = vsel %vm4254_vm6, %v4248_v43, %v4003_v26  ;;  %v4250_v48 = vsel %vm4221_vm5, %v22480_v8, %v3851_v41  ;;  %v2775_v58 = vcombine.high %v2771_v31, %v2771_v31  ;;  %v22481_v31 = vld [vmem:[#allocation18_spill] sm:$0xff]  ;;  %v14828_v41 = vld [vmem:[%s22300_s2 + $0x364] ss:$16 sps:$4 sm:$0xff]   ;;  %v14832_v44 = vld [vmem:[%s22300_s2 + $0x380] ss:$16 sps:$4 sm:$0xff]  }
 0x208   :  { %v4251_v12 = vsel %vm4221_vm5, %v22479_v47, %v3855_v20  ;;  %v19041_v36 = vsel %vm4254_vm6, %v4250_v48, %v4011_v63  ;;  %v3863_v1 = vrot.slane %v18894_v39, %v17065_v22  ;;  %v4252_v7 = vsel %vm4221_vm5, %v22481_v31, %v3859_v15  ;;  %v14820_v39 = vld [vmem:[%s22300_s2 + $0x340] ss:$16 sps:$4 sm:$0xff]   ;;  %v14829_v15 = vld [vmem:[%s22300_s2 + $0x368] ss:$16 sps:$4 sm:$0xff]   ;;  %v14834_v5 = vld [vmem:[%s22300_s2 + $0x384] ss:$16 sps:$4 sm:$0xff]  }
 0x209   :  { %v19038_v6 = vsel %vm4254_vm6, %v4251_v12, %v4015_v29  ;;  %6224 = vmatpush1.bf16.msra.mxu0 %v14808_v30  ;;  %v4023_v27 = vrot.slane %v2775_v58, %v17065_v22  ;;  %v4019_v60 = vrot.slane %v2775_v58, %v17062_v21  ;;  %v14831_v30 = vld [vmem:[%s22300_s2 + $0x36c] ss:$16 sps:$4 sm:$0xff]   ;;  %v14835_v26 = vld [vmem:[%s22300_s2 + $0x388] ss:$16 sps:$4 sm:$0xff]   ;;  %v14838_v20 = vld [vmem:[%s22300_s2 + $0x3a0] ss:$16 sps:$4 sm:$0xff]   ;;  %v14036_v31 = vpack.c.bf16 %v18702_v13, %v18702_v13 }
 0x20a   :  { %6265 = vmatpush1.bf16.msra.mxu1 %v14811_v25  ;;  %6225 = vmatprep.subr.bf16.mxu0 %v14816_v18  ;;  %v4253_v51 = vsel %vm4221_vm5, %v22482_v23, %v3863_v1  ;;  %v14826_v25 = vld [vmem:[%s22300_s2 + $0x360] ss:$16 sps:$4 sm:$0xff]   ;;  %v14837_v46 = vld [vmem:[%s22300_s2 + $0x38c] ss:$16 sps:$4 sm:$0xff]   ;;  %v14841_v18 = vld [vmem:[%s22300_s2 + $0x3a8] ss:$16 sps:$4 sm:$0xff]  }
 0x20b   :  { %6266 = vmatprep.subr.bf16.mxu1 %v14819_v55  ;;  %v19064_v9 = vsel %vm4254_vm6, %v4253_v51, %v4023_v27  ;;  %v19067_v3 = vsel %vm4254_vm6, %v4252_v7, %v4019_v60  ;;  %v14843_v43 = vld [vmem:[%s22300_s2 + $0x3ac] ss:$16 sps:$4 sm:$0xff]   ;;  %v14846_v55 = vld [vmem:[%s22300_s2 + $0x3c4] ss:$16 sps:$4 sm:$0xff]   ;;  %v14844_v63 = vld [vmem:[%s22300_s2 + $0x3c0] ss:$16 sps:$4 sm:$0xff]   ;;  %v14033_v60 = vpack.c.bf16 %v18685_v19, %v18685_v19 }
 0x20c   :  { %v14849_v29 = vld [vmem:[%s22300_s2 + $0x3cc] ss:$16 sps:$4 sm:$0xff]   ;;  %v14850_v12 = vld [vmem:[%s22300_s2 + $0x3e0] ss:$16 sps:$4 sm:$0xff]   ;;  %v14853_v8 = vld [vmem:[%s22300_s2 + $0x3e8] ss:$16 sps:$4 sm:$0xff]  }
 0x20d   :  { %6226 = vmatpush1.bf16.msra.mxu0 %v14814_v0  ;;  %v14847_v0 = vld [vmem:[%s22300_s2 + $0x3c8] ss:$16 sps:$4 sm:$0xff]   ;;  %v14855_v47 = vld [vmem:[%s22300_s2 + $0x3ec] ss:$16 sps:$4 sm:$0xff]   ;;  %v14858_v48 = vld [vmem:[%s22300_s2 + $0x404] ss:$16 sps:$4 sm:$0xff]  }
 0x20e   :  { %6267 = vmatpush1.bf16.msra.mxu1 %v14817_v45  ;;  %6227 = vmatprep.subr.bf16.mxu0 %v14822_v61  ;;  %v14852_v45 = vld [vmem:[%s22300_s2 + $0x3e4] ss:$16 sps:$4 sm:$0xff]   ;;  %v14861_v58 = vld [vmem:[%s22300_s2 + $0x40c] ss:$16 sps:$4 sm:$0xff]   ;;  %v14856_v1 = vld [vmem:[%s22300_s2 + $0x400] ss:$16 sps:$4 sm:$0xff]  }
 0x20f   :  { %6268 = vmatprep.subr.bf16.mxu1 %v14825_v24  ;;  %v14859_v61 = vld [vmem:[%s22300_s2 + $0x408] ss:$16 sps:$4 sm:$0xff]   ;;  %v14864_v24 = vld [vmem:[%s22300_s2 + $0x424] ss:$16 sps:$4 sm:$0xff]   ;;  %v14867_v27 = vld [vmem:[%s22300_s2 + $0x42c] ss:$16 sps:$4 sm:$0xff]  }
 0x210   :  { %v14862_v7 = vld [vmem:[%s22300_s2 + $0x420] ss:$16 sps:$4 sm:$0xff]   ;;  %v14870_v19 = vld [vmem:[%s22300_s2 + $0x444] ss:$16 sps:$4 sm:$0xff]   ;;  %v14873_v13 = vld [vmem:[%s22300_s2 + $0x44c] ss:$16 sps:$4 sm:$0xff]  }
 0x211   :  { %6228 = vmatpush1.bf16.msra.mxu0 %v14820_v39  ;;  %v14865_v39 = vld [vmem:[%s22300_s2 + $0x428] ss:$16 sps:$4 sm:$0xff]   ;;  %v14876_v51 = vld [vmem:[%s22300_s2 + $0x464] ss:$16 sps:$4 sm:$0xff]  }
 0x212   :  { %6269 = vmatpush1.bf16.msra.mxu1 %v14823_v32  ;;  %6229 = vmatprep.subr.bf16.mxu0 %v14828_v41  ;;  %v14868_v32 = vld [vmem:[%s22300_s2 + $0x440] ss:$16 sps:$4 sm:$0xff]   ;;  %v14871_v23 = vld [vmem:[%s22300_s2 + $0x448] ss:$16 sps:$4 sm:$0xff]  }
 0x213   :  { %6270 = vmatprep.subr.bf16.mxu1 %v14831_v30  ;;  %v14874_v41 = vld [vmem:[%s22300_s2 + $0x460] ss:$16 sps:$4 sm:$0xff]   ;;  %v14879_v30 = vld [vmem:[%s22300_s2 + $0x46c] ss:$16 sps:$4 sm:$0xff]  }
 0x215   :  { %6230 = vmatpush1.bf16.msra.mxu0 %v14826_v25  ;;  %v14877_v25 = vld [vmem:[%s22300_s2 + $0x468] ss:$16 sps:$4 sm:$0xff]  }
 0x216   :  { %6271 = vmatpush1.bf16.msra.mxu1 %v14829_v15  ;;  %6231 = vmatprep.subr.bf16.mxu0 %v14834_v5  ;;  %v14882_v15 = vld [vmem:[%s22300_s2 + $0x484] ss:$16 sps:$4 sm:$0xff]   ;;  %v14880_v5 = vld [vmem:[%s22300_s2 + $0x480] ss:$16 sps:$4 sm:$0xff]  }
 0x217   :  { %6272 = vmatprep.subr.bf16.mxu1 %v14837_v46  ;;  %v14885_v46 = vld [vmem:[%s22300_s2 + $0x48c] ss:$16 sps:$4 sm:$0xff]  }
 0x219   :  { %6232 = vmatpush1.bf16.msra.mxu0 %v14832_v44  ;;  %v14883_v44 = vld [vmem:[%s22300_s2 + $0x488] ss:$16 sps:$4 sm:$0xff]  }
 0x21a   :  { %6273 = vmatpush1.bf16.msra.mxu1 %v14835_v26  ;;  %6233 = vmatprep.subr.bf16.mxu0 %v14840_v33  ;;  %v14888_v26 = vld [vmem:[%s22300_s2 + $0x4a4] ss:$16 sps:$4 sm:$0xff]   ;;  %v14886_v33 = vld [vmem:[%s22300_s2 + $0x4a0] ss:$16 sps:$4 sm:$0xff]  }
 0x21b   :  { %6274 = vmatprep.subr.bf16.mxu1 %v14843_v43  ;;  %v14891_v43 = vld [vmem:[%s22300_s2 + $0x4ac] ss:$16 sps:$4 sm:$0xff]  }
 0x21d   :  { %6234 = vmatpush1.bf16.msra.mxu0 %v14838_v20  ;;  %v14889_v20 = vld [vmem:[%s22300_s2 + $0x4a8] ss:$16 sps:$4 sm:$0xff]  }
 0x21e   :  { %6275 = vmatpush1.bf16.msra.mxu1 %v14841_v18  ;;  %6235 = vmatprep.subr.bf16.mxu0 %v14846_v55  ;;  %v14894_v18 = vld [vmem:[%s22300_s2 + $0x4c4] ss:$16 sps:$4 sm:$0xff]   ;;  %v14897_v55 = vld [vmem:[%s22300_s2 + $0x4cc] ss:$16 sps:$4 sm:$0xff]  }
 0x21f   :  { %6276 = vmatprep.subr.bf16.mxu1 %v14849_v29  ;;  %v14892_v29 = vld [vmem:[%s22300_s2 + $0x4c0] ss:$16 sps:$4 sm:$0xff]  }
 0x221   :  { %6236 = vmatpush1.bf16.msra.mxu0 %v14844_v63  ;;  %v14895_v63 = vld [vmem:[%s22300_s2 + $0x4c8] ss:$16 sps:$4 sm:$0xff]  }
 0x222   :  { %6277 = vmatpush1.bf16.msra.mxu1 %v14847_v0  ;;  %6237 = vmatprep.subr.bf16.mxu0 %v14852_v45  ;;  %v14900_v0 = vld [vmem:[%s22300_s2 + $0x4e4] ss:$16 sps:$4 sm:$0xff]   ;;  %v14898_v45 = vld [vmem:[%s22300_s2 + $0x4e0] ss:$16 sps:$4 sm:$0xff]  }
 0x223   :  { %6278 = vmatprep.subr.bf16.mxu1 %v14855_v47  ;;  %v14903_v47 = vld [vmem:[%s22300_s2 + $0x4ec] ss:$16 sps:$4 sm:$0xff]  }
 0x225   :  { %6238 = vmatpush1.bf16.msra.mxu0 %v14850_v12  ;;  %v14901_v12 = vld [vmem:[%s22300_s2 + $0x4e8] ss:$16 sps:$4 sm:$0xff]  }
 0x226   :  { %6279 = vmatpush1.bf16.msra.mxu1 %v14853_v8  ;;  %6616 = vmatprep.subr.bf16.mxu0 %v14858_v48  ;;  %v14906_v8 = vld [vmem:[%s22300_s2 + $0x504] ss:$16 sps:$4 sm:$0xff]   ;;  %v14904_v48 = vld [vmem:[%s22300_s2 + $0x500] ss:$16 sps:$4 sm:$0xff]  }
 0x227   :  { %6657 = vmatprep.subr.bf16.mxu1 %v14861_v58  ;;  %v14909_v58 = vld [vmem:[%s22300_s2 + $0x50c] ss:$16 sps:$4 sm:$0xff]  }
 0x228   :  { %6240 = vmatmul.mubr.bf16.vlgmr.msra.gmra.mrb[20].mxu0 %v14033_v60 }
 0x229   :  { %6281 = vmatmul.mubr.bf16.vlgmr.msra.gmra.mrb[20].mxu1 %v14033_v60  ;;  %6617 = vmatpush1.bf16.msra.mxu0 %v14856_v1  ;;  %v14907_v1 = vld [vmem:[%s22300_s2 + $0x508] ss:$16 sps:$4 sm:$0xff]  }
 0x22a   :  { %6648 = vmatprep.mubr.bf16.mxu0 %v14036_v31  ;;  %6658 = vmatpush1.bf16.msra.mxu1 %v14859_v61  ;;  %v14912_v61 = vld [vmem:[%s22300_s2 + $0x524] ss:$16 sps:$4 sm:$0xff]   ;;  %v14913_v60 = vld [vmem:[%s22300_s2 + $0x528] ss:$16 sps:$4 sm:$0xff]  }
 0x22b   :  { %6689 = vmatprep.mubr.bf16.mxu1 %v14036_v31  ;;  %6618 = vmatprep.subr.bf16.mxu0 %v14864_v24  ;;  %v14910_v24 = vld [vmem:[%s22300_s2 + $0x520] ss:$16 sps:$4 sm:$0xff]   ;;  %v14918_v31 = vld [vmem:[%s22300_s2 + $0x544] ss:$16 sps:$4 sm:$0xff]  }
 0x22c   :  { %6659 = vmatprep.subr.bf16.mxu1 %v14867_v27  ;;  %v14915_v27 = vld [vmem:[%s22300_s2 + $0x52c] ss:$16 sps:$4 sm:$0xff]  }
 0x22d   :  { %6619 = vmatpush1.bf16.msra.mxu0 %v14862_v7  ;;  %v14916_v7 = vld [vmem:[%s22300_s2 + $0x540] ss:$16 sps:$4 sm:$0xff]  }
 0x22e   :  { %6660 = vmatpush1.bf16.msra.mxu1 %v14865_v39  ;;  %6620 = vmatprep.subr.bf16.mxu0 %v14870_v19  ;;  %v14921_v39 = vld [vmem:[%s22300_s2 + $0x54c] ss:$16 sps:$4 sm:$0xff]   ;;  %v14919_v19 = vld [vmem:[%s22300_s2 + $0x548] ss:$16 sps:$4 sm:$0xff]  }
 0x22f   :  { %6661 = vmatprep.subr.bf16.mxu1 %v14873_v13  ;;  %v14924_v13 = vld [vmem:[%s22300_s2 + $0x564] ss:$16 sps:$4 sm:$0xff]  }
 0x231   :  { %6621 = vmatpush1.bf16.msra.mxu0 %v14868_v32  ;;  %v14922_v32 = vld [vmem:[%s22300_s2 + $0x560] ss:$16 sps:$4 sm:$0xff]  }
 0x232   :  { %6662 = vmatpush1.bf16.msra.mxu1 %v14871_v23  ;;  %6622 = vmatprep.subr.bf16.mxu0 %v14876_v51  ;;  %v14927_v23 = vld [vmem:[%s22300_s2 + $0x56c] ss:$16 sps:$4 sm:$0xff]   ;;  %v14925_v51 = vld [vmem:[%s22300_s2 + $0x568] ss:$16 sps:$4 sm:$0xff]  }
 0x233   :  { %6663 = vmatprep.subr.bf16.mxu1 %v14879_v30  ;;  %v14928_v30 = vld [vmem:[%s22300_s2 + $0x580] ss:$16 sps:$4 sm:$0xff]  }
 0x235   :  { %6623 = vmatpush1.bf16.msra.mxu0 %v14874_v41  ;;  %v14930_v41 = vld [vmem:[%s22300_s2 + $0x584] ss:$16 sps:$4 sm:$0xff]  }
 0x236   :  { %6664 = vmatpush1.bf16.msra.mxu1 %v14877_v25  ;;  %6624 = vmatprep.subr.bf16.mxu0 %v14882_v15  ;;  %v14933_v25 = vld [vmem:[%s22300_s2 + $0x58c] ss:$16 sps:$4 sm:$0xff]   ;;  %v14931_v15 = vld [vmem:[%s22300_s2 + $0x588] ss:$16 sps:$4 sm:$0xff]  }
 0x237   :  { %6665 = vmatprep.subr.bf16.mxu1 %v14885_v46  ;;  %v14934_v46 = vld [vmem:[%s22300_s2 + $0x5a0] ss:$16 sps:$4 sm:$0xff]  }
 0x239   :  { %6625 = vmatpush1.bf16.msra.mxu0 %v14880_v5  ;;  %v14936_v5 = vld [vmem:[%s22300_s2 + $0x5a4] ss:$16 sps:$4 sm:$0xff]  }
 0x23a   :  { %6666 = vmatpush1.bf16.msra.mxu1 %v14883_v44  ;;  %6626 = vmatprep.subr.bf16.mxu0 %v14888_v26  ;;  %v14939_v44 = vld [vmem:[%s22300_s2 + $0x5ac] ss:$16 sps:$4 sm:$0xff]   ;;  %v14937_v26 = vld [vmem:[%s22300_s2 + $0x5a8] ss:$16 sps:$4 sm:$0xff]  }
 0x23b   :  { %6667 = vmatprep.subr.bf16.mxu1 %v14891_v43  ;;  %v14940_v43 = vld [vmem:[%s22300_s2 + $0x5c0] ss:$16 sps:$4 sm:$0xff]  }
 0x23d   :  { %6627 = vmatpush1.bf16.msra.mxu0 %v14886_v33  ;;  %v14942_v33 = vld [vmem:[%s22300_s2 + $0x5c4] ss:$16 sps:$4 sm:$0xff]  }
 0x23e   :  { %6668 = vmatpush1.bf16.msra.mxu1 %v14889_v20  ;;  %6628 = vmatprep.subr.bf16.mxu0 %v14894_v18  ;;  %v14945_v20 = vld [vmem:[%s22300_s2 + $0x5cc] ss:$16 sps:$4 sm:$0xff]   ;;  %v14943_v18 = vld [vmem:[%s22300_s2 + $0x5c8] ss:$16 sps:$4 sm:$0xff]  }
 0x23f   :  { %6669 = vmatprep.subr.bf16.mxu1 %v14897_v55  ;;  %v14948_v55 = vld [vmem:[%s22300_s2 + $0x5e4] ss:$16 sps:$4 sm:$0xff]  }
 0x241   :  { %6629 = vmatpush1.bf16.msra.mxu0 %v14892_v29  ;;  %v14946_v29 = vld [vmem:[%s22300_s2 + $0x5e0] ss:$16 sps:$4 sm:$0xff]  }
 0x242   :  { %6670 = vmatpush1.bf16.msra.mxu1 %v14895_v63  ;;  %6630 = vmatprep.subr.bf16.mxu0 %v14900_v0  ;;  %v14951_v63 = vld [vmem:[%s22300_s2 + $0x5ec] ss:$16 sps:$4 sm:$0xff]   ;;  %v14949_v0 = vld [vmem:[%s22300_s2 + $0x5e8] ss:$16 sps:$4 sm:$0xff]  }
 0x243   :  { %6671 = vmatprep.subr.bf16.mxu1 %v14903_v47  ;;  %v14952_v47 = vld [vmem:[%s22300_s2 + $0x600] ss:$16 sps:$4 sm:$0xff]  }
 0x245   :  { %6631 = vmatpush1.bf16.msra.mxu0 %v14898_v45  ;;  %v14954_v45 = vld [vmem:[%s22300_s2 + $0x604] ss:$16 sps:$4 sm:$0xff]  }
 0x246   :  { %6672 = vmatpush1.bf16.msra.mxu1 %v14901_v12  ;;  %6632 = vmatprep.subr.bf16.mxu0 %v14906_v8  ;;  %v14957_v12 = vld [vmem:[%s22300_s2 + $0x60c] ss:$16 sps:$4 sm:$0xff]   ;;  %v14955_v8 = vld [vmem:[%s22300_s2 + $0x608] ss:$16 sps:$4 sm:$0xff]  }
 0x247   :  { %6673 = vmatprep.subr.bf16.mxu1 %v14909_v58  ;;  %v14035_v58 = vpack.c.bf16 %v18717_v62, %v18717_v62  ;;  %v14961_v62 = vld [vmem:[%s22300_s2 + $0x628] ss:$16 sps:$4 sm:$0xff]  }
 0x249   :  { %6633 = vmatpush1.bf16.msra.mxu0 %v14904_v48  ;;  %v14960_v48 = vld [vmem:[%s22300_s2 + $0x624] ss:$16 sps:$4 sm:$0xff]  }
 0x24a   :  { %6674 = vmatpush1.bf16.msra.mxu1 %v14907_v1  ;;  %6634 = vmatprep.subr.bf16.mxu0 %v14912_v61  ;;  %v14963_v1 = vld [vmem:[%s22300_s2 + $0x62c] ss:$16 sps:$4 sm:$0xff]   ;;  %v14038_v61 = vpack.c.bf16 %v18753_v59, %v18753_v59 }
 0x24b   :  { %6675 = vmatprep.subr.bf16.mxu1 %v14915_v27  ;;  %v14966_v27 = vld [vmem:[%s22300_s2 + $0x644] ss:$16 sps:$4 sm:$0xff]   ;;  %v14969_v59 = vld [vmem:[%s22300_s2 + $0x64c] ss:$16 sps:$4 sm:$0xff]  }
 0x24d   :  { %6635 = vmatpush1.bf16.msra.mxu0 %v14910_v24  ;;  %v14958_v24 = vld [vmem:[%s22300_s2 + $0x620] ss:$16 sps:$4 sm:$0xff]  }
 0x24e   :  { %6676 = vmatpush1.bf16.msra.mxu1 %v14913_v60  ;;  %6636 = vmatprep.subr.bf16.mxu0 %v14918_v31  ;;  %v14964_v60 = vld [vmem:[%s22300_s2 + $0x640] ss:$16 sps:$4 sm:$0xff]   ;;  %v14967_v31 = vld [vmem:[%s22300_s2 + $0x648] ss:$16 sps:$4 sm:$0xff]  }
 0x24f   :  { %6677 = vmatprep.subr.bf16.mxu1 %v14921_v39  ;;  %v14970_v39 = vld [vmem:[%s22300_s2 + $0x660] ss:$16 sps:$4 sm:$0xff]  }
 0x251   :  { %6637 = vmatpush1.bf16.msra.mxu0 %v14916_v7  ;;  %v14972_v7 = vld [vmem:[%s22300_s2 + $0x664] ss:$16 sps:$4 sm:$0xff]  }
 0x252   :  { %6678 = vmatpush1.bf16.msra.mxu1 %v14919_v19  ;;  %6638 = vmatprep.subr.bf16.mxu0 %v14924_v13  ;;  %v14975_v19 = vld [vmem:[%s22300_s2 + $0x66c] ss:$16 sps:$4 sm:$0xff]   ;;  %v14973_v13 = vld [vmem:[%s22300_s2 + $0x668] ss:$16 sps:$4 sm:$0xff]  }
 0x253   :  { %6679 = vmatprep.subr.bf16.mxu1 %v14927_v23  ;;  %v14976_v23 = vld [vmem:[%s22300_s2 + $0x680] ss:$16 sps:$4 sm:$0xff]  }
 0x255   :  { %6639 = vmatpush1.bf16.msra.mxu0 %v14922_v32  ;;  %v14978_v32 = vld [vmem:[%s22300_s2 + $0x684] ss:$16 sps:$4 sm:$0xff]  }
 0x256   :  { %6680 = vmatpush1.bf16.msra.mxu1 %v14925_v51  ;;  %6640 = vmatprep.subr.bf16.mxu0 %v14930_v41  ;;  %v14981_v51 = vld [vmem:[%s22300_s2 + $0x68c] ss:$16 sps:$4 sm:$0xff]   ;;  %v14979_v41 = vld [vmem:[%s22300_s2 + $0x688] ss:$16 sps:$4 sm:$0xff]  }
 0x257   :  { %6681 = vmatprep.subr.bf16.mxu1 %v14933_v25  ;;  %v14982_v25 = vld [vmem:[%s22300_s2 + $0x6a0] ss:$16 sps:$4 sm:$0xff]  }
 0x259   :  { %6641 = vmatpush1.bf16.msra.mxu0 %v14928_v30  ;;  %v14984_v30 = vld [vmem:[%s22300_s2 + $0x6a4] ss:$16 sps:$4 sm:$0xff]  }
 0x25a   :  { %6682 = vmatpush1.bf16.msra.mxu1 %v14931_v15  ;;  %6642 = vmatprep.subr.bf16.mxu0 %v14936_v5  ;;  %v14987_v15 = vld [vmem:[%s22300_s2 + $0x6ac] ss:$16 sps:$4 sm:$0xff]   ;;  %v14985_v5 = vld [vmem:[%s22300_s2 + $0x6a8] ss:$16 sps:$4 sm:$0xff]  }
 0x25b   :  { %6683 = vmatprep.subr.bf16.mxu1 %v14939_v44  ;;  %v14993_v44 = vld [vmem:[%s22300_s2 + $0x6cc] ss:$16 sps:$4 sm:$0xff]  }
 0x25d   :  { %6643 = vmatpush1.bf16.msra.mxu0 %v14934_v46  ;;  %v14990_v46 = vld [vmem:[%s22300_s2 + $0x6c4] ss:$16 sps:$4 sm:$0xff]  }
 0x25e   :  { %6684 = vmatpush1.bf16.msra.mxu1 %v14937_v26  ;;  %6644 = vmatprep.subr.bf16.mxu0 %v14942_v33  ;;  %v14988_v26 = vld [vmem:[%s22300_s2 + $0x6c0] ss:$16 sps:$4 sm:$0xff]   ;;  %v14991_v33 = vld [vmem:[%s22300_s2 + $0x6c8] ss:$16 sps:$4 sm:$0xff]  }
 0x25f   :  { %6685 = vmatprep.subr.bf16.mxu1 %v14945_v20  ;;  %v14994_v20 = vld [vmem:[%s22300_s2 + $0x6e0] ss:$16 sps:$4 sm:$0xff]  }
 0x261   :  { %6645 = vmatpush1.bf16.msra.mxu0 %v14940_v43  ;;  %v14996_v43 = vld [vmem:[%s22300_s2 + $0x6e4] ss:$16 sps:$4 sm:$0xff]  }
 0x262   :  { %6686 = vmatpush1.bf16.msra.mxu1 %v14943_v18  ;;  %6646 = vmatprep.subr.bf16.mxu0 %v14948_v55  ;;  %v14999_v18 = vld [vmem:[%s22300_s2 + $0x6ec] ss:$16 sps:$4 sm:$0xff]   ;;  %v14997_v55 = vld [vmem:[%s22300_s2 + $0x6e8] ss:$16 sps:$4 sm:$0xff]  }
 0x263   :  { %6687 = vmatprep.subr.bf16.mxu1 %v14951_v63  ;;  %v15000_v63 = vld [vmem:[%s22300_s2 + $0x700] ss:$16 sps:$4 sm:$0xff]  }
 0x265   :  { %6647 = vmatpush1.bf16.msra.mxu0 %v14946_v29  ;;  %v15002_v29 = vld [vmem:[%s22300_s2 + $0x704] ss:$16 sps:$4 sm:$0xff]  }
 0x266   :  { %6688 = vmatpush1.bf16.msra.mxu1 %v14949_v0  ;;  %7025 = vmatprep.subr.bf16.mxu0 %v14954_v45  ;;  %v15005_v0 = vld [vmem:[%s22300_s2 + $0x70c] ss:$16 sps:$4 sm:$0xff]   ;;  %v15003_v45 = vld [vmem:[%s22300_s2 + $0x708] ss:$16 sps:$4 sm:$0xff]  }
 0x267   :  { %7066 = vmatprep.subr.bf16.mxu1 %v14957_v12  ;;  %v15006_v12 = vld [vmem:[%s22300_s2 + $0x720] ss:$16 sps:$4 sm:$0xff]  }
 0x268   :  { %6649 = vmatmul.mubr.bf16.vlgmr.msra.gmra.mrb[24].mxu0 %v14035_v58 }
 0x269   :  { %6690 = vmatmul.mubr.bf16.vlgmr.msra.gmra.mrb[24].mxu1 %v14035_v58  ;;  %7026 = vmatpush1.bf16.msra.mxu0 %v14952_v47  ;;  %v15008_v47 = vld [vmem:[%s22300_s2 + $0x724] ss:$16 sps:$4 sm:$0xff]  }
 0x26a   :  { %7057 = vmatprep.mubr.bf16.mxu0 %v14038_v61  ;;  %7067 = vmatpush1.bf16.msra.mxu1 %v14955_v8  ;;  %v15011_v8 = vld [vmem:[%s22300_s2 + $0x72c] ss:$16 sps:$4 sm:$0xff]   ;;  %v15014_v58 = vld [vmem:[%s22300_s2 + $0x744] ss:$16 sps:$4 sm:$0xff]  }
 0x26b   :  { %7098 = vmatprep.mubr.bf16.mxu1 %v14038_v61  ;;  %7027 = vmatprep.subr.bf16.mxu0 %v14960_v48  ;;  %v15009_v48 = vld [vmem:[%s22300_s2 + $0x728] ss:$16 sps:$4 sm:$0xff]   ;;  %v15017_v61 = vld [vmem:[%s22300_s2 + $0x74c] ss:$16 sps:$4 sm:$0xff]  }
 0x26c   :  { %7068 = vmatprep.subr.bf16.mxu1 %v14963_v1  ;;  %v15012_v1 = vld [vmem:[%s22300_s2 + $0x740] ss:$16 sps:$4 sm:$0xff]  }
 0x26d   :  { %7028 = vmatpush1.bf16.msra.mxu0 %v14958_v24  ;;  %v15015_v24 = vld [vmem:[%s22300_s2 + $0x748] ss:$16 sps:$4 sm:$0xff]  }
 0x26e   :  { %7069 = vmatpush1.bf16.msra.mxu1 %v14961_v62  ;;  %7029 = vmatprep.subr.bf16.mxu0 %v14966_v27  ;;  %v15020_v62 = vld [vmem:[%s22300_s2 + $0x764] ss:$16 sps:$4 sm:$0xff]   ;;  %v15018_v27 = vld [vmem:[%s22300_s2 + $0x760] ss:$16 sps:$4 sm:$0xff]  }
 0x26f   :  { %7070 = vmatprep.subr.bf16.mxu1 %v14969_v59  ;;  %v15023_v59 = vld [vmem:[%s22300_s2 + $0x76c] ss:$16 sps:$4 sm:$0xff]  }
 0x271   :  { %7030 = vmatpush1.bf16.msra.mxu0 %v14964_v60  ;;  %v15021_v60 = vld [vmem:[%s22300_s2 + $0x768] ss:$16 sps:$4 sm:$0xff]  }
 0x272   :  { %7071 = vmatpush1.bf16.msra.mxu1 %v14967_v31  ;;  %7031 = vmatprep.subr.bf16.mxu0 %v14972_v7  ;;  %v15026_v31 = vld [vmem:[%s22300_s2 + $0x784] ss:$16 sps:$4 sm:$0xff]   ;;  %v15024_v7 = vld [vmem:[%s22300_s2 + $0x780] ss:$16 sps:$4 sm:$0xff]  }
 0x273   :  { %7072 = vmatprep.subr.bf16.mxu1 %v14975_v19  ;;  %v15027_v19 = vld [vmem:[%s22300_s2 + $0x788] ss:$16 sps:$4 sm:$0xff]  }
 0x275   :  { %7032 = vmatpush1.bf16.msra.mxu0 %v14970_v39  ;;  %v15029_v39 = vld [vmem:[%s22300_s2 + $0x78c] ss:$16 sps:$4 sm:$0xff]  }
 0x276   :  { %7073 = vmatpush1.bf16.msra.mxu1 %v14973_v13  ;;  %7033 = vmatprep.subr.bf16.mxu0 %v14978_v32  ;;  %v15032_v13 = vld [vmem:[%s22300_s2 + $0x7a4] ss:$16 sps:$4 sm:$0xff]   ;;  %v15030_v32 = vld [vmem:[%s22300_s2 + $0x7a0] ss:$16 sps:$4 sm:$0xff]  }
 0x277   :  { %7074 = vmatprep.subr.bf16.mxu1 %v14981_v51  ;;  %v15033_v51 = vld [vmem:[%s22300_s2 + $0x7a8] ss:$16 sps:$4 sm:$0xff]  }
 0x279   :  { %7034 = vmatpush1.bf16.msra.mxu0 %v14976_v23  ;;  %v15035_v23 = vld [vmem:[%s22300_s2 + $0x7ac] ss:$16 sps:$4 sm:$0xff]  }
 0x27a   :  { %7075 = vmatpush1.bf16.msra.mxu1 %v14979_v41  ;;  %7035 = vmatprep.subr.bf16.mxu0 %v14984_v30  ;;  %v15038_v41 = vld [vmem:[%s22300_s2 + $0x7c4] ss:$16 sps:$4 sm:$0xff]   ;;  %v15036_v30 = vld [vmem:[%s22300_s2 + $0x7c0] ss:$16 sps:$4 sm:$0xff]  }
 0x27b   :  { %7076 = vmatprep.subr.bf16.mxu1 %v14987_v15  ;;  %v15039_v15 = vld [vmem:[%s22300_s2 + $0x7c8] ss:$16 sps:$4 sm:$0xff]  }
 0x27d   :  { %7036 = vmatpush1.bf16.msra.mxu0 %v14982_v25  ;;  %v15041_v25 = vld [vmem:[%s22300_s2 + $0x7cc] ss:$16 sps:$4 sm:$0xff]  }
 0x27e   :  { %7077 = vmatpush1.bf16.msra.mxu1 %v14985_v5  ;;  %7037 = vmatprep.subr.bf16.mxu0 %v14990_v46  ;;  %v15044_v5 = vld [vmem:[%s22300_s2 + $0x7e4] ss:$16 sps:$4 sm:$0xff]   ;;  %v15042_v46 = vld [vmem:[%s22300_s2 + $0x7e0] ss:$16 sps:$4 sm:$0xff]  }
 0x27f   :  { %7078 = vmatprep.subr.bf16.mxu1 %v14993_v44  ;;  %v15047_v44 = vld [vmem:[%s22300_s2 + $0x7ec] ss:$16 sps:$4 sm:$0xff]  }
 0x281   :  { %7038 = vmatpush1.bf16.msra.mxu0 %v14988_v26  ;;  %v15045_v26 = vld [vmem:[%s22300_s2 + $0x7e8] ss:$16 sps:$4 sm:$0xff]  }
 0x282   :  { %7079 = vmatpush1.bf16.msra.mxu1 %v14991_v33  ;;  %7039 = vmatprep.subr.bf16.mxu0 %v14996_v43  ;;  %v15050_v33 = vld [vmem:[%s22300_s2 + $0x804] ss:$16 sps:$4 sm:$0xff]   ;;  %v15048_v43 = vld [vmem:[%s22300_s2 + $0x800] ss:$16 sps:$4 sm:$0xff]  }
 0x283   :  { %7080 = vmatprep.subr.bf16.mxu1 %v14999_v18  ;;  %v15051_v18 = vld [vmem:[%s22300_s2 + $0x808] ss:$16 sps:$4 sm:$0xff]  }
 0x285   :  { %7040 = vmatpush1.bf16.msra.mxu0 %v14994_v20  ;;  %v15053_v20 = vld [vmem:[%s22300_s2 + $0x80c] ss:$16 sps:$4 sm:$0xff]  }
 0x286   :  { %7081 = vmatpush1.bf16.msra.mxu1 %v14997_v55  ;;  %7041 = vmatprep.subr.bf16.mxu0 %v15002_v29  ;;  %v15056_v55 = vld [vmem:[%s22300_s2 + $0x824] ss:$16 sps:$4 sm:$0xff]   ;;  %v14037_v29 = vpack.c.bf16 %v18756_v42, %v18756_v42  ;;  %v15057_v42 = vld [vmem:[%s22300_s2 + $0x828] ss:$16 sps:$4 sm:$0xff]  }
 0x287   :  { %7082 = vmatprep.subr.bf16.mxu1 %v15005_v0  ;;  %v14040_v0 = vpack.c.bf16 %v18759_v37, %v18759_v37  ;;  %v15065_v37 = vld [vmem:[%s22300_s2 + $0x84c] ss:$16 sps:$4 sm:$0xff]  }
 0x289   :  { %7042 = vmatpush1.bf16.msra.mxu0 %v15000_v63  ;;  %v15059_v63 = vld [vmem:[%s22300_s2 + $0x82c] ss:$16 sps:$4 sm:$0xff]  }
 0x28a   :  { %7083 = vmatpush1.bf16.msra.mxu1 %v15003_v45  ;;  %7043 = vmatprep.subr.bf16.mxu0 %v15008_v47  ;;  %v15054_v45 = vld [vmem:[%s22300_s2 + $0x820] ss:$16 sps:$4 sm:$0xff]   ;;  %v15062_v47 = vld [vmem:[%s22300_s2 + $0x844] ss:$16 sps:$4 sm:$0xff]  }
 0x28b   :  { %7084 = vmatprep.subr.bf16.mxu1 %v15011_v8  ;;  %v15063_v8 = vld [vmem:[%s22300_s2 + $0x848] ss:$16 sps:$4 sm:$0xff]  }
 0x28d   :  { %7044 = vmatpush1.bf16.msra.mxu0 %v15006_v12  ;;  %v15060_v12 = vld [vmem:[%s22300_s2 + $0x840] ss:$16 sps:$4 sm:$0xff]  }
 0x28e   :  { %7085 = vmatpush1.bf16.msra.mxu1 %v15009_v48  ;;  %7045 = vmatprep.subr.bf16.mxu0 %v15014_v58  ;;  %v15068_v48 = vld [vmem:[%s22300_s2 + $0x864] ss:$16 sps:$4 sm:$0xff]   ;;  %v15066_v58 = vld [vmem:[%s22300_s2 + $0x860] ss:$16 sps:$4 sm:$0xff]  }
 0x28f   :  { %7086 = vmatprep.subr.bf16.mxu1 %v15017_v61  ;;  %v15069_v61 = vld [vmem:[%s22300_s2 + $0x868] ss:$16 sps:$4 sm:$0xff]  }
 0x291   :  { %7046 = vmatpush1.bf16.msra.mxu0 %v15012_v1  ;;  %v15071_v1 = vld [vmem:[%s22300_s2 + $0x86c] ss:$16 sps:$4 sm:$0xff]  }
 0x292   :  { %7087 = vmatpush1.bf16.msra.mxu1 %v15015_v24  ;;  %7047 = vmatprep.subr.bf16.mxu0 %v15020_v62  ;;  %v15074_v24 = vld [vmem:[%s22300_s2 + $0x884] ss:$16 sps:$4 sm:$0xff]   ;;  %v15072_v62 = vld [vmem:[%s22300_s2 + $0x880] ss:$16 sps:$4 sm:$0xff]  }
 0x293   :  { %7088 = vmatprep.subr.bf16.mxu1 %v15023_v59  ;;  %v15075_v59 = vld [vmem:[%s22300_s2 + $0x888] ss:$16 sps:$4 sm:$0xff]  }
 0x295   :  { %7048 = vmatpush1.bf16.msra.mxu0 %v15018_v27  ;;  %v15077_v27 = vld [vmem:[%s22300_s2 + $0x88c] ss:$16 sps:$4 sm:$0xff]  }
 0x296   :  { %7089 = vmatpush1.bf16.msra.mxu1 %v15021_v60  ;;  %7049 = vmatprep.subr.bf16.mxu0 %v15026_v31  ;;  %v15080_v60 = vld [vmem:[%s22300_s2 + $0x8a4] ss:$16 sps:$4 sm:$0xff]   ;;  %v15078_v31 = vld [vmem:[%s22300_s2 + $0x8a0] ss:$16 sps:$4 sm:$0xff]  }
 0x297   :  { %7090 = vmatprep.subr.bf16.mxu1 %v15029_v39  ;;  %v15081_v39 = vld [vmem:[%s22300_s2 + $0x8a8] ss:$16 sps:$4 sm:$0xff]  }
 0x299   :  { %7050 = vmatpush1.bf16.msra.mxu0 %v15024_v7  ;;  %v15083_v7 = vld [vmem:[%s22300_s2 + $0x8ac] ss:$16 sps:$4 sm:$0xff]  }
 0x29a   :  { %7091 = vmatpush1.bf16.msra.mxu1 %v15027_v19  ;;  %7051 = vmatprep.subr.bf16.mxu0 %v15032_v13  ;;  %v15086_v19 = vld [vmem:[%s22300_s2 + $0x8c4] ss:$16 sps:$4 sm:$0xff]   ;;  %v15089_v13 = vld [vmem:[%s22300_s2 + $0x8cc] ss:$16 sps:$4 sm:$0xff]  }
 0x29b   :  { %7092 = vmatprep.subr.bf16.mxu1 %v15035_v23 }
 0x29d   :  { %7052 = vmatpush1.bf16.msra.mxu0 %v15030_v32 }
 0x29e   :  { %7093 = vmatpush1.bf16.msra.mxu1 %v15033_v51  ;;  %7053 = vmatprep.subr.bf16.mxu0 %v15038_v41  ;;  %v15084_v51 = vld [vmem:[%s22300_s2 + $0x8c0] ss:$16 sps:$4 sm:$0xff]  }
 0x29f   :  { %7094 = vmatprep.subr.bf16.mxu1 %v15041_v25 }
 0x2a1   :  { %7054 = vmatpush1.bf16.msra.mxu0 %v15036_v30 }
 0x2a2   :  { %7095 = vmatpush1.bf16.msra.mxu1 %v15039_v15  ;;  %7055 = vmatprep.subr.bf16.mxu0 %v15044_v5 }
 0x2a3   :  { %7096 = vmatprep.subr.bf16.mxu1 %v15047_v44  ;;  %v15087_v44 = vld [vmem:[%s22300_s2 + $0x8c8] ss:$16 sps:$4 sm:$0xff]  }
 0x2a5   :  { %7056 = vmatpush1.bf16.msra.mxu0 %v15042_v46 }
 0x2a6   :  { %7097 = vmatpush1.bf16.msra.mxu1 %v15045_v26  ;;  %7434 = vmatprep.subr.bf16.mxu0 %v15050_v33  ;;  %v15092_v26 = vld [vmem:[%s22300_s2 + $0x8e4] ss:$16 sps:$4 sm:$0xff]   ;;  %v15095_v33 = vld [vmem:[%s22300_s2 + $0x8ec] ss:$16 sps:$4 sm:$0xff]  }
 0x2a7   :  { %7475 = vmatprep.subr.bf16.mxu1 %v15053_v20  ;;  %v15093_v20 = vld [vmem:[%s22300_s2 + $0x8e8] ss:$16 sps:$4 sm:$0xff]  }
 0x2a8   :  { %7058 = vmatmul.mubr.bf16.vlgmr.msra.gmra.mrb[28].mxu0 %v14037_v29 }
 0x2a9   :  { %7099 = vmatmul.mubr.bf16.vlgmr.msra.gmra.mrb[28].mxu1 %v14037_v29  ;;  %7435 = vmatpush1.bf16.msra.mxu0 %v15048_v43  ;;  %v15090_v43 = vld [vmem:[%s22300_s2 + $0x8e0] ss:$16 sps:$4 sm:$0xff]   ;;  %v15101_v29 = vld [vmem:[%s22300_s2 + $0x90c] ss:$16 sps:$4 sm:$0xff]  }
 0x2aa   :  { %7466 = vmatprep.mubr.bf16.mxu0 %v14040_v0  ;;  %7476 = vmatpush1.bf16.msra.mxu1 %v15051_v18  ;;  %v15098_v18 = vld [vmem:[%s22300_s2 + $0x904] ss:$16 sps:$4 sm:$0xff]  }
 0x2ab   :  { %7507 = vmatprep.mubr.bf16.mxu1 %v14040_v0  ;;  %7436 = vmatprep.subr.bf16.mxu0 %v15056_v55  ;;  %v15096_v55 = vld [vmem:[%s22300_s2 + $0x900] ss:$16 sps:$4 sm:$0xff]   ;;  %v15104_v0 = vld [vmem:[%s22300_s2 + $0x924] ss:$16 sps:$4 sm:$0xff]  }
 0x2ac   :  { %7477 = vmatprep.subr.bf16.mxu1 %v15059_v63  ;;  %v15099_v63 = vld [vmem:[%s22300_s2 + $0x908] ss:$16 sps:$4 sm:$0xff]  }
 0x2ad   :  { %7437 = vmatpush1.bf16.msra.mxu0 %v15054_v45  ;;  %v15102_v45 = vld [vmem:[%s22300_s2 + $0x920] ss:$16 sps:$4 sm:$0xff]  }
 0x2ae   :  { %7478 = vmatpush1.bf16.msra.mxu1 %v15057_v42  ;;  %7438 = vmatprep.subr.bf16.mxu0 %v15062_v47  ;;  %v15107_v42 = vld [vmem:[%s22300_s2 + $0x92c] ss:$16 sps:$4 sm:$0xff]   ;;  %v15105_v47 = vld [vmem:[%s22300_s2 + $0x928] ss:$16 sps:$4 sm:$0xff]  }
 0x2af   :  { %7479 = vmatprep.subr.bf16.mxu1 %v15065_v37  ;;  %v15110_v37 = vld [vmem:[%s22300_s2 + $0x944] ss:$16 sps:$4 sm:$0xff]  }
 0x2b1   :  { %7439 = vmatpush1.bf16.msra.mxu0 %v15060_v12  ;;  %v15108_v12 = vld [vmem:[%s22300_s2 + $0x940] ss:$16 sps:$4 sm:$0xff]  }
 0x2b2   :  { %7480 = vmatpush1.bf16.msra.mxu1 %v15063_v8  ;;  %7440 = vmatprep.subr.bf16.mxu0 %v15068_v48  ;;  %v15113_v8 = vld [vmem:[%s22300_s2 + $0x94c] ss:$16 sps:$4 sm:$0xff]   ;;  %v15111_v48 = vld [vmem:[%s22300_s2 + $0x948] ss:$16 sps:$4 sm:$0xff]  }
 0x2b3   :  { %7481 = vmatprep.subr.bf16.mxu1 %v15071_v1  ;;  %v15114_v1 = vld [vmem:[%s22300_s2 + $0x960] ss:$16 sps:$4 sm:$0xff]  }
 0x2b5   :  { %7441 = vmatpush1.bf16.msra.mxu0 %v15066_v58  ;;  %v15116_v58 = vld [vmem:[%s22300_s2 + $0x964] ss:$16 sps:$4 sm:$0xff]  }
 0x2b6   :  { %7482 = vmatpush1.bf16.msra.mxu1 %v15069_v61  ;;  %7442 = vmatprep.subr.bf16.mxu0 %v15074_v24  ;;  %v15119_v61 = vld [vmem:[%s22300_s2 + $0x96c] ss:$16 sps:$4 sm:$0xff]   ;;  %v15117_v24 = vld [vmem:[%s22300_s2 + $0x968] ss:$16 sps:$4 sm:$0xff]  }
 0x2b7   :  { %7483 = vmatprep.subr.bf16.mxu1 %v15077_v27  ;;  %v15120_v27 = vld [vmem:[%s22300_s2 + $0x980] ss:$16 sps:$4 sm:$0xff]  }
 0x2b9   :  { %7443 = vmatpush1.bf16.msra.mxu0 %v15072_v62  ;;  %v15122_v62 = vld [vmem:[%s22300_s2 + $0x984] ss:$16 sps:$4 sm:$0xff]  }
 0x2ba   :  { %7484 = vmatpush1.bf16.msra.mxu1 %v15075_v59  ;;  %7444 = vmatprep.subr.bf16.mxu0 %v15080_v60  ;;  %v15125_v59 = vld [vmem:[%s22300_s2 + $0x98c] ss:$16 sps:$4 sm:$0xff]   ;;  %v15123_v60 = vld [vmem:[%s22300_s2 + $0x988] ss:$16 sps:$4 sm:$0xff]  }
 0x2bb   :  { %v19603_v32 = vpop.f32.mrb[16].mxu0  ;;  %v19605_v23 = vpop.f32.mrb[16].mxu1  ;;  %7485 = vmatprep.subr.bf16.mxu1 %v15083_v7  ;;  %v15126_v7 = vld [vmem:[%s22300_s2 + $0x9a0] ss:$16 sps:$4 sm:$0xff]  }
 0x2bc   :  { %v19610_v41 = vpop.f32.mrb[17].mxu0  ;;  %v19612_v30 = vpop.f32.mrb[17].mxu1 }
 0x2bd   :  { %7445 = vmatpush1.bf16.msra.mxu0 %v15078_v31  ;;  %v5836_v25 = vpop.f32.mrb[18].mxu0  ;;  %v5877_v15 = vpop.f32.mrb[18].mxu1  ;;  %v15128_v31 = vld [vmem:[%s22300_s2 + $0x9a4] ss:$16 sps:$4 sm:$0xff]  }
 0x2be   :  { %7486 = vmatpush1.bf16.msra.mxu1 %v15081_v39  ;;  %v5837_v5 = vpop.f32.mrb[19].mxu0  ;;  %v5878_v46 = vpop.f32.mrb[19].mxu1  ;;  %7446 = vmatprep.subr.bf16.mxu0 %v15086_v19  ;;  %v15131_v39 = vld [vmem:[%s22300_s2 + $0x9ac] ss:$16 sps:$4 sm:$0xff]   ;;  %v15129_v19 = vld [vmem:[%s22300_s2 + $0x9a8] ss:$16 sps:$4 sm:$0xff]  }
 0x2bf   :  { %7487 = vmatprep.subr.bf16.mxu1 %v15089_v13  ;;  %v15134_v13 = vld [vmem:[%s22300_s2 + $0x9c4] ss:$16 sps:$4 sm:$0xff]   ;;  %v15137_v25 = vld [vmem:[%s22300_s2 + $0x9cc] ss:$16 sps:$4 sm:$0xff]   ;;  %v15135_v15 = vld [vmem:[%s22300_s2 + $0x9c8] ss:$16 sps:$4 sm:$0xff]  }
 0x2c0   :  { %v15140_v5 = vld [vmem:[%s22300_s2 + $0x9e4] ss:$16 sps:$4 sm:$0xff]   ;;  %v15138_v46 = vld [vmem:[%s22300_s2 + $0x9e0] ss:$16 sps:$4 sm:$0xff]  }
 0x2c1   :  { %7447 = vmatpush1.bf16.msra.mxu0 %v15084_v51  ;;  %v15132_v51 = vld [vmem:[%s22300_s2 + $0x9c0] ss:$16 sps:$4 sm:$0xff]  }
 0x2c2   :  { %7488 = vmatpush1.bf16.msra.mxu1 %v15087_v44  ;;  %7448 = vmatprep.subr.bf16.mxu0 %v15092_v26  ;;  %v15143_v44 = vld [vmem:[%s22300_s2 + $0x9ec] ss:$16 sps:$4 sm:$0xff]   ;;  %v15141_v26 = vld [vmem:[%s22300_s2 + $0x9e8] ss:$16 sps:$4 sm:$0xff]  }
 0x2c3   :  { %7489 = vmatprep.subr.bf16.mxu1 %v15095_v33  ;;  %v15146_v33 = vld [vmem:[%s22300_s2 + $0xa04] ss:$16 sps:$4 sm:$0xff]  }
 0x2c5   :  { %7449 = vmatpush1.bf16.msra.mxu0 %v15090_v43  ;;  %v15144_v43 = vld [vmem:[%s22300_s2 + $0xa00] ss:$16 sps:$4 sm:$0xff]  }
 0x2c6   :  { %7490 = vmatpush1.bf16.msra.mxu1 %v15093_v20  ;;  %7450 = vmatprep.subr.bf16.mxu0 %v15098_v18  ;;  %v15149_v20 = vld [vmem:[%s22300_s2 + $0xa0c] ss:$16 sps:$4 sm:$0xff]   ;;  %v15147_v18 = vld [vmem:[%s22300_s2 + $0xa08] ss:$16 sps:$4 sm:$0xff]  }
 0x2c7   :  { %7491 = vmatprep.subr.bf16.mxu1 %v15101_v29  ;;  %v14039_v29 = vpack.c.bf16 %v18779_v34, %v18779_v34  ;;  %v15153_v34 = vld [vmem:[%s22300_s2 + $0xa28] ss:$16 sps:$4 sm:$0xff]  }
 0x2c9   :  { %7451 = vmatpush1.bf16.msra.mxu0 %v15096_v55  ;;  %v15152_v55 = vld [vmem:[%s22300_s2 + $0xa24] ss:$16 sps:$4 sm:$0xff]  }
 0x2ca   :  { %7492 = vmatpush1.bf16.msra.mxu1 %v15099_v63  ;;  %7452 = vmatprep.subr.bf16.mxu0 %v15104_v0  ;;  %v15155_v63 = vld [vmem:[%s22300_s2 + $0xa2c] ss:$16 sps:$4 sm:$0xff]   ;;  %v14042_v0 = vpack.c.bf16 %v18820_v17, %v18820_v17 }
 0x2cb   :  { %7493 = vmatprep.subr.bf16.mxu1 %v15107_v42  ;;  %v15158_v42 = vld [vmem:[%s22300_s2 + $0xa44] ss:$16 sps:$4 sm:$0xff]   ;;  %v15161_v17 = vld [vmem:[%s22300_s2 + $0xa4c] ss:$16 sps:$4 sm:$0xff]  }
 0x2cd   :  { %7453 = vmatpush1.bf16.msra.mxu0 %v15102_v45  ;;  %v15150_v45 = vld [vmem:[%s22300_s2 + $0xa20] ss:$16 sps:$4 sm:$0xff]  }
 0x2ce   :  { %7494 = vmatpush1.bf16.msra.mxu1 %v15105_v47  ;;  %7454 = vmatprep.subr.bf16.mxu0 %v15110_v37  ;;  %v15156_v47 = vld [vmem:[%s22300_s2 + $0xa40] ss:$16 sps:$4 sm:$0xff]   ;;  %v15159_v37 = vld [vmem:[%s22300_s2 + $0xa48] ss:$16 sps:$4 sm:$0xff]  }
 0x2cf   :  { %7495 = vmatprep.subr.bf16.mxu1 %v15113_v8  ;;  %v15162_v8 = vld [vmem:[%s22300_s2 + $0xa60] ss:$16 sps:$4 sm:$0xff]  }
 0x2d1   :  { %7455 = vmatpush1.bf16.msra.mxu0 %v15108_v12  ;;  %v15164_v12 = vld [vmem:[%s22300_s2 + $0xa64] ss:$16 sps:$4 sm:$0xff]  }
 0x2d2   :  { %7496 = vmatpush1.bf16.msra.mxu1 %v15111_v48  ;;  %7456 = vmatprep.subr.bf16.mxu0 %v15116_v58  ;;  %v15167_v48 = vld [vmem:[%s22300_s2 + $0xa6c] ss:$16 sps:$4 sm:$0xff]   ;;  %v15165_v58 = vld [vmem:[%s22300_s2 + $0xa68] ss:$16 sps:$4 sm:$0xff]  }
 0x2d3   :  { %7497 = vmatprep.subr.bf16.mxu1 %v15119_v61  ;;  %v15168_v61 = vld [vmem:[%s22300_s2 + $0xa80] ss:$16 sps:$4 sm:$0xff]  }
 0x2d5   :  { %7457 = vmatpush1.bf16.msra.mxu0 %v15114_v1  ;;  %v15170_v1 = vld [vmem:[%s22300_s2 + $0xa84] ss:$16 sps:$4 sm:$0xff]  }
 0x2d6   :  { %7498 = vmatpush1.bf16.msra.mxu1 %v15117_v24  ;;  %7458 = vmatprep.subr.bf16.mxu0 %v15122_v62  ;;  %v15173_v24 = vld [vmem:[%s22300_s2 + $0xa8c] ss:$16 sps:$4 sm:$0xff]   ;;  %v15171_v62 = vld [vmem:[%s22300_s2 + $0xa88] ss:$16 sps:$4 sm:$0xff]  }
 0x2d7   :  { %7499 = vmatprep.subr.bf16.mxu1 %v15125_v59  ;;  %v15174_v59 = vld [vmem:[%s22300_s2 + $0xaa0] ss:$16 sps:$4 sm:$0xff]  }
 0x2d9   :  { %7459 = vmatpush1.bf16.msra.mxu0 %v15120_v27  ;;  %v15176_v27 = vld [vmem:[%s22300_s2 + $0xaa4] ss:$16 sps:$4 sm:$0xff]  }
 0x2da   :  { %7500 = vmatpush1.bf16.msra.mxu1 %v15123_v60  ;;  %7460 = vmatprep.subr.bf16.mxu0 %v15128_v31  ;;  %v15179_v60 = vld [vmem:[%s22300_s2 + $0xaac] ss:$16 sps:$4 sm:$0xff]   ;;  %v15177_v31 = vld [vmem:[%s22300_s2 + $0xaa8] ss:$16 sps:$4 sm:$0xff]  }
 0x2db   :  { %7501 = vmatprep.subr.bf16.mxu1 %v15131_v39  ;;  %v15185_v39 = vld [vmem:[%s22300_s2 + $0xacc] ss:$16 sps:$4 sm:$0xff]  }
 0x2dd   :  { %7461 = vmatpush1.bf16.msra.mxu0 %v15126_v7  ;;  %v15182_v7 = vld [vmem:[%s22300_s2 + $0xac4] ss:$16 sps:$4 sm:$0xff]  }
 0x2de   :  { %7502 = vmatpush1.bf16.msra.mxu1 %v15129_v19  ;;  %7462 = vmatprep.subr.bf16.mxu0 %v15134_v13 }
 0x2df   :  { %7503 = vmatprep.subr.bf16.mxu1 %v15137_v25 }
 0x2e1   :  { %7463 = vmatpush1.bf16.msra.mxu0 %v15132_v51  ;;  %v15180_v51 = vld [vmem:[%s22300_s2 + $0xac0] ss:$16 sps:$4 sm:$0xff]  }
 0x2e2   :  { %7504 = vmatpush1.bf16.msra.mxu1 %v15135_v15  ;;  %7464 = vmatprep.subr.bf16.mxu0 %v15140_v5 }
 0x2e3   :  { %7505 = vmatprep.subr.bf16.mxu1 %v15143_v44 }
 0x2e5   :  { %7465 = vmatpush1.bf16.msra.mxu0 %v15138_v46 }
 0x2e6   :  { %7506 = vmatpush1.bf16.msra.mxu1 %v15141_v26  ;;  %7843 = vmatprep.subr.bf16.mxu0 %v15146_v33 }
 0x2e7   :  { %7884 = vmatprep.subr.bf16.mxu1 %v15149_v20 }
 0x2e8   :  { %7467 = vmatmul.mubr.bf16.vlgmr.msra.gmra.mrb[32].mxu0 %v14039_v29 }
 0x2e9   :  { %7508 = vmatmul.mubr.bf16.vlgmr.msra.gmra.mrb[32].mxu1 %v14039_v29  ;;  %7844 = vmatpush1.bf16.msra.mxu0 %v15144_v43  ;;  %v15194_v29 = vld [vmem:[%s22300_s2 + $0xb04] ss:$16 sps:$4 sm:$0xff]  }
 0x2ea   :  { %7875 = vmatprep.mubr.bf16.mxu0 %v14042_v0  ;;  %7885 = vmatpush1.bf16.msra.mxu1 %v15147_v18 }
 0x2eb   :  { %7916 = vmatprep.mubr.bf16.mxu1 %v14042_v0  ;;  %7845 = vmatprep.subr.bf16.mxu0 %v15152_v55  ;;  %v15189_v55 = vld [vmem:[%s22300_s2 + $0xae8] ss:$16 sps:$4 sm:$0xff]   ;;  %v15197_v0 = vld [vmem:[%s22300_s2 + $0xb0c] ss:$16 sps:$4 sm:$0xff]  }
 0x2ec   :  { %7886 = vmatprep.subr.bf16.mxu1 %v15155_v63  ;;  %v15192_v63 = vld [vmem:[%s22300_s2 + $0xb00] ss:$16 sps:$4 sm:$0xff]  }
 0x2ed   :  { %7846 = vmatpush1.bf16.msra.mxu0 %v15150_v45  ;;  %v15195_v45 = vld [vmem:[%s22300_s2 + $0xb08] ss:$16 sps:$4 sm:$0xff]  }
 0x2ee   :  { %7887 = vmatpush1.bf16.msra.mxu1 %v15153_v34  ;;  %7847 = vmatprep.subr.bf16.mxu0 %v15158_v42  ;;  %v15200_v34 = vld [vmem:[%s22300_s2 + $0xb24] ss:$16 sps:$4 sm:$0xff]   ;;  %v15198_v42 = vld [vmem:[%s22300_s2 + $0xb20] ss:$16 sps:$4 sm:$0xff]  }
 0x2ef   :  { %7888 = vmatprep.subr.bf16.mxu1 %v15161_v17  ;;  %v15203_v17 = vld [vmem:[%s22300_s2 + $0xb2c] ss:$16 sps:$4 sm:$0xff]  }
 0x2f1   :  { %7848 = vmatpush1.bf16.msra.mxu0 %v15156_v47  ;;  %v15201_v47 = vld [vmem:[%s22300_s2 + $0xb28] ss:$16 sps:$4 sm:$0xff]  }
 0x2f2   :  { %7889 = vmatpush1.bf16.msra.mxu1 %v15159_v37  ;;  %7849 = vmatprep.subr.bf16.mxu0 %v15164_v12  ;;  %v15206_v37 = vld [vmem:[%s22300_s2 + $0xb44] ss:$16 sps:$4 sm:$0xff]   ;;  %v15204_v12 = vld [vmem:[%s22300_s2 + $0xb40] ss:$16 sps:$4 sm:$0xff]  }
 0x2f3   :  { %7890 = vmatprep.subr.bf16.mxu1 %v15167_v48  ;;  %v15207_v48 = vld [vmem:[%s22300_s2 + $0xb48] ss:$16 sps:$4 sm:$0xff]  }
 0x2f5   :  { %7850 = vmatpush1.bf16.msra.mxu0 %v15162_v8  ;;  %v15209_v8 = vld [vmem:[%s22300_s2 + $0xb4c] ss:$16 sps:$4 sm:$0xff]  }
 0x2f6   :  { %7891 = vmatpush1.bf16.msra.mxu1 %v15165_v58  ;;  %7851 = vmatprep.subr.bf16.mxu0 %v15170_v1  ;;  %v15212_v58 = vld [vmem:[%s22300_s2 + $0xb64] ss:$16 sps:$4 sm:$0xff]   ;;  %v15210_v1 = vld [vmem:[%s22300_s2 + $0xb60] ss:$16 sps:$4 sm:$0xff]  }
 0x2f7   :  { %7892 = vmatprep.subr.bf16.mxu1 %v15173_v24  ;;  %v15213_v24 = vld [vmem:[%s22300_s2 + $0xb68] ss:$16 sps:$4 sm:$0xff]  }
 0x2f9   :  { %7852 = vmatpush1.bf16.msra.mxu0 %v15168_v61  ;;  %v15215_v61 = vld [vmem:[%s22300_s2 + $0xb6c] ss:$16 sps:$4 sm:$0xff]  }
 0x2fa   :  { %7893 = vmatpush1.bf16.msra.mxu1 %v15171_v62  ;;  %7853 = vmatprep.subr.bf16.mxu0 %v15176_v27  ;;  %v15218_v62 = vld [vmem:[%s22300_s2 + $0xb84] ss:$16 sps:$4 sm:$0xff]   ;;  %v15216_v27 = vld [vmem:[%s22300_s2 + $0xb80] ss:$16 sps:$4 sm:$0xff]  }
 0x2fb   :  { %v6241_v19 = vpop.f32.mrb[20].mxu0  ;;  %7894 = vmatprep.subr.bf16.mxu1 %v15179_v60  ;;  %v15219_v60 = vld [vmem:[%s22300_s2 + $0xb88] ss:$16 sps:$4 sm:$0xff]  }
 0x2fc   :  { %v6282_v13 = vpop.f32.mrb[20].mxu1  ;;  %v19811_v25 = vadd.f32 %v6241_v19, %v19603_v32  ;;  %v6243_v5 = vpop.f32.mrb[21].mxu0  ;;  %v15183_v32 = vld [vmem:[%s22300_s2 + $0xac8] ss:$16 sps:$4 sm:$0xff]  }
 0x2fd   :  { %v19814_v15 = vadd.f32 %v6282_v13, %v19605_v23  ;;  %v6284_v46 = vpop.f32.mrb[21].mxu1  ;;  %v19817_v44 = vadd.f32 %v6243_v5, %v19610_v41  ;;  %v6245_v33 = vpop.f32.mrb[22].mxu0  ;;  %7854 = vmatpush1.bf16.msra.mxu0 %v15174_v59  ;;  %v15188_v23 = vld [vmem:[%s22300_s2 + $0xae4] ss:$16 sps:$4 sm:$0xff]   ;;  %v15191_v41 = vld [vmem:[%s22300_s2 + $0xaec] ss:$16 sps:$4 sm:$0xff]  }
 0x2fe   :  { %v19820_v26 = vadd.f32 %v6284_v46, %v19612_v30  ;;  %v6286_v43 = vpop.f32.mrb[22].mxu1  ;;  %7895 = vmatpush1.bf16.msra.mxu1 %v15177_v31  ;;  %v6246_v20 = vpop.f32.mrb[23].mxu0  ;;  %7855 = vmatprep.subr.bf16.mxu0 %v15182_v7  ;;  %v15186_v30 = vld [vmem:[%s22300_s2 + $0xae0] ss:$16 sps:$4 sm:$0xff]   ;;  %v15221_v59 = vld [vmem:[%s22300_s2 + $0xb8c] ss:$16 sps:$4 sm:$0xff]  }
 0x2ff   :  { %v6287_v18 = vpop.f32.mrb[23].mxu1  ;;  %7896 = vmatprep.subr.bf16.mxu1 %v15185_v39  ;;  %v15224_v31 = vld [vmem:[%s22300_s2 + $0xba4] ss:$16 sps:$4 sm:$0xff]   ;;  %v15222_v7 = vld [vmem:[%s22300_s2 + $0xba0] ss:$16 sps:$4 sm:$0xff]  }
 0x300   :  { %v15227_v39 = vld [vmem:[%s22300_s2 + $0xbac] ss:$16 sps:$4 sm:$0xff]   ;;  %v15225_v19 = vld [vmem:[%s22300_s2 + $0xba8] ss:$16 sps:$4 sm:$0xff]   ;;  %v15230_v13 = vld [vmem:[%s22300_s2 + $0xbc4] ss:$16 sps:$4 sm:$0xff]  }
 0x301   :  { %7856 = vmatpush1.bf16.msra.mxu0 %v15180_v51  ;;  %v15228_v51 = vld [vmem:[%s22300_s2 + $0xbc0] ss:$16 sps:$4 sm:$0xff]   ;;  %v15233_v5 = vld [vmem:[%s22300_s2 + $0xbcc] ss:$16 sps:$4 sm:$0xff]   ;;  %v15231_v46 = vld [vmem:[%s22300_s2 + $0xbc8] ss:$16 sps:$4 sm:$0xff]  }
 0x302   :  { %7897 = vmatpush1.bf16.msra.mxu1 %v15183_v32  ;;  %7857 = vmatprep.subr.bf16.mxu0 %v15188_v23  ;;  %v15236_v33 = vld [vmem:[%s22300_s2 + $0xbe4] ss:$16 sps:$4 sm:$0xff]   ;;  %v15234_v43 = vld [vmem:[%s22300_s2 + $0xbe0] ss:$16 sps:$4 sm:$0xff]   ;;  %v15239_v20 = vld [vmem:[%s22300_s2 + $0xbec] ss:$16 sps:$4 sm:$0xff]  }
 0x303   :  { %7898 = vmatprep.subr.bf16.mxu1 %v15191_v41  ;;  %v15237_v18 = vld [vmem:[%s22300_s2 + $0xbe8] ss:$16 sps:$4 sm:$0xff]   ;;  %v15242_v32 = vld [vmem:[%s22300_s2 + $0xc04] ss:$16 sps:$4 sm:$0xff]   ;;  %v15240_v23 = vld [vmem:[%s22300_s2 + $0xc00] ss:$16 sps:$4 sm:$0xff]  }
 0x304   :  { %v15245_v41 = vld [vmem:[%s22300_s2 + $0xc0c] ss:$16 sps:$4 sm:$0xff]  }
 0x305   :  { %7858 = vmatpush1.bf16.msra.mxu0 %v15186_v30  ;;  %v15243_v30 = vld [vmem:[%s22300_s2 + $0xc08] ss:$16 sps:$4 sm:$0xff]  }
 0x306   :  { %7899 = vmatpush1.bf16.msra.mxu1 %v15189_v55  ;;  %7859 = vmatprep.subr.bf16.mxu0 %v15194_v29  ;;  %v15248_v55 = vld [vmem:[%s22300_s2 + $0xc24] ss:$16 sps:$4 sm:$0xff]   ;;  %v14041_v29 = vpack.c.bf16 %v18807_v10, %v18807_v10  ;;  %v15249_v10 = vld [vmem:[%s22300_s2 + $0xc28] ss:$16 sps:$4 sm:$0xff]  }
 0x307   :  { %7900 = vmatprep.subr.bf16.mxu1 %v15197_v0  ;;  %v14044_v0 = vpack.c.bf16 %v18832_v52, %v18832_v52  ;;  %v15257_v52 = vld [vmem:[%s22300_s2 + $0xc4c] ss:$16 sps:$4 sm:$0xff]  }
 0x309   :  { %7860 = vmatpush1.bf16.msra.mxu0 %v15192_v63  ;;  %v15251_v63 = vld [vmem:[%s22300_s2 + $0xc2c] ss:$16 sps:$4 sm:$0xff]  }
 0x30a   :  { %7901 = vmatpush1.bf16.msra.mxu1 %v15195_v45  ;;  %7861 = vmatprep.subr.bf16.mxu0 %v15200_v34  ;;  %v15246_v45 = vld [vmem:[%s22300_s2 + $0xc20] ss:$16 sps:$4 sm:$0xff]   ;;  %v15254_v34 = vld [vmem:[%s22300_s2 + $0xc44] ss:$16 sps:$4 sm:$0xff]  }
 0x30b   :  { %7902 = vmatprep.subr.bf16.mxu1 %v15203_v17  ;;  %v15255_v17 = vld [vmem:[%s22300_s2 + $0xc48] ss:$16 sps:$4 sm:$0xff]  }
 0x30d   :  { %7862 = vmatpush1.bf16.msra.mxu0 %v15198_v42  ;;  %v15252_v42 = vld [vmem:[%s22300_s2 + $0xc40] ss:$16 sps:$4 sm:$0xff]  }
 0x30e   :  { %7903 = vmatpush1.bf16.msra.mxu1 %v15201_v47  ;;  %7863 = vmatprep.subr.bf16.mxu0 %v15206_v37  ;;  %v15260_v47 = vld [vmem:[%s22300_s2 + $0xc64] ss:$16 sps:$4 sm:$0xff]   ;;  %v15258_v37 = vld [vmem:[%s22300_s2 + $0xc60] ss:$16 sps:$4 sm:$0xff]  }
 0x30f   :  { %7904 = vmatprep.subr.bf16.mxu1 %v15209_v8  ;;  %v15261_v8 = vld [vmem:[%s22300_s2 + $0xc68] ss:$16 sps:$4 sm:$0xff]  }
 0x311   :  { %7864 = vmatpush1.bf16.msra.mxu0 %v15204_v12  ;;  %v15263_v12 = vld [vmem:[%s22300_s2 + $0xc6c] ss:$16 sps:$4 sm:$0xff]  }
 0x312   :  { %7905 = vmatpush1.bf16.msra.mxu1 %v15207_v48  ;;  %7865 = vmatprep.subr.bf16.mxu0 %v15212_v58  ;;  %v15266_v48 = vld [vmem:[%s22300_s2 + $0xc84] ss:$16 sps:$4 sm:$0xff]   ;;  %v15264_v58 = vld [vmem:[%s22300_s2 + $0xc80] ss:$16 sps:$4 sm:$0xff]  }
 0x313   :  { %7906 = vmatprep.subr.bf16.mxu1 %v15215_v61  ;;  %v15267_v61 = vld [vmem:[%s22300_s2 + $0xc88] ss:$16 sps:$4 sm:$0xff]  }
 0x315   :  { %7866 = vmatpush1.bf16.msra.mxu0 %v15210_v1  ;;  %v15269_v1 = vld [vmem:[%s22300_s2 + $0xc8c] ss:$16 sps:$4 sm:$0xff]  }
 0x316   :  { %7907 = vmatpush1.bf16.msra.mxu1 %v15213_v24  ;;  %7867 = vmatprep.subr.bf16.mxu0 %v15218_v62  ;;  %v15272_v24 = vld [vmem:[%s22300_s2 + $0xca4] ss:$16 sps:$4 sm:$0xff]   ;;  %v15275_v62 = vld [vmem:[%s22300_s2 + $0xcac] ss:$16 sps:$4 sm:$0xff]  }
 0x317   :  { %7908 = vmatprep.subr.bf16.mxu1 %v15221_v59  ;;  %v15273_v59 = vld [vmem:[%s22300_s2 + $0xca8] ss:$16 sps:$4 sm:$0xff]  }
 0x319   :  { %7868 = vmatpush1.bf16.msra.mxu0 %v15216_v27  ;;  %v15270_v27 = vld [vmem:[%s22300_s2 + $0xca0] ss:$16 sps:$4 sm:$0xff]  }
 0x31a   :  { %7909 = vmatpush1.bf16.msra.mxu1 %v15219_v60  ;;  %7869 = vmatprep.subr.bf16.mxu0 %v15224_v31  ;;  %v15278_v60 = vld [vmem:[%s22300_s2 + $0xcc4] ss:$16 sps:$4 sm:$0xff]  }
 0x31b   :  { %7910 = vmatprep.subr.bf16.mxu1 %v15227_v39 }
 0x31d   :  { %7870 = vmatpush1.bf16.msra.mxu0 %v15222_v7  ;;  %v15281_v7 = vld [vmem:[%s22300_s2 + $0xccc] ss:$16 sps:$4 sm:$0xff]  }
 0x31e   :  { %7911 = vmatpush1.bf16.msra.mxu1 %v15225_v19  ;;  %7871 = vmatprep.subr.bf16.mxu0 %v15230_v13 }
 0x31f   :  { %7912 = vmatprep.subr.bf16.mxu1 %v15233_v5 }
 0x321   :  { %7872 = vmatpush1.bf16.msra.mxu0 %v15228_v51 }
 0x322   :  { %7913 = vmatpush1.bf16.msra.mxu1 %v15231_v46  ;;  %7873 = vmatprep.subr.bf16.mxu0 %v15236_v33 }
 0x323   :  { %7914 = vmatprep.subr.bf16.mxu1 %v15239_v20 }
 0x325   :  { %7874 = vmatpush1.bf16.msra.mxu0 %v15234_v43  ;;  %v15276_v43 = vld [vmem:[%s22300_s2 + $0xcc0] ss:$16 sps:$4 sm:$0xff]  }
 0x326   :  { %7915 = vmatpush1.bf16.msra.mxu1 %v15237_v18  ;;  %8252 = vmatprep.subr.bf16.mxu0 %v15242_v32 }
 0x327   :  { %8293 = vmatprep.subr.bf16.mxu1 %v15245_v41  ;;  %v15285_v41 = vld [vmem:[%s22300_s2 + $0xce8] ss:$16 sps:$4 sm:$0xff]  }
 0x328   :  { %7876 = vmatmul.mubr.bf16.vlgmr.msra.gmra.mrb[36].mxu0 %v14041_v29 }
 0x329   :  { %7917 = vmatmul.mubr.bf16.vlgmr.msra.gmra.mrb[36].mxu1 %v14041_v29  ;;  %8253 = vmatpush1.bf16.msra.mxu0 %v15240_v23  ;;  %v15287_v23 = vld [vmem:[%s22300_s2 + $0xcec] ss:$16 sps:$4 sm:$0xff]   ;;  %v15288_v29 = vld [vmem:[%s22300_s2 + $0xd00] ss:$16 sps:$4 sm:$0xff]  }
 0x32a   :  { %8284 = vmatprep.mubr.bf16.mxu0 %v14044_v0  ;;  %8294 = vmatpush1.bf16.msra.mxu1 %v15243_v30  ;;  %v15290_v30 = vld [vmem:[%s22300_s2 + $0xd04] ss:$16 sps:$4 sm:$0xff]  }
 0x32b   :  { %8325 = vmatprep.mubr.bf16.mxu1 %v14044_v0  ;;  %8254 = vmatprep.subr.bf16.mxu0 %v15248_v55  ;;  %v15293_v55 = vld [vmem:[%s22300_s2 + $0xd0c] ss:$16 sps:$4 sm:$0xff]   ;;  %v15296_v0 = vld [vmem:[%s22300_s2 + $0xd24] ss:$16 sps:$4 sm:$0xff]  }
 0x32c   :  { %8295 = vmatprep.subr.bf16.mxu1 %v15251_v63  ;;  %v15291_v63 = vld [vmem:[%s22300_s2 + $0xd08] ss:$16 sps:$4 sm:$0xff]  }
 0x32d   :  { %8255 = vmatpush1.bf16.msra.mxu0 %v15246_v45  ;;  %v15299_v45 = vld [vmem:[%s22300_s2 + $0xd2c] ss:$16 sps:$4 sm:$0xff]  }
 0x32e   :  { %8296 = vmatpush1.bf16.msra.mxu1 %v15249_v10  ;;  %8256 = vmatprep.subr.bf16.mxu0 %v15254_v34  ;;  %v15294_v10 = vld [vmem:[%s22300_s2 + $0xd20] ss:$16 sps:$4 sm:$0xff]   ;;  %v15297_v34 = vld [vmem:[%s22300_s2 + $0xd28] ss:$16 sps:$4 sm:$0xff]  }
 0x32f   :  { %8297 = vmatprep.subr.bf16.mxu1 %v15257_v52  ;;  %v15302_v52 = vld [vmem:[%s22300_s2 + $0xd44] ss:$16 sps:$4 sm:$0xff]  }
 0x331   :  { %8257 = vmatpush1.bf16.msra.mxu0 %v15252_v42  ;;  %v15305_v42 = vld [vmem:[%s22300_s2 + $0xd4c] ss:$16 sps:$4 sm:$0xff]  }
 0x332   :  { %8298 = vmatpush1.bf16.msra.mxu1 %v15255_v17  ;;  %8258 = vmatprep.subr.bf16.mxu0 %v15260_v47  ;;  %v15300_v17 = vld [vmem:[%s22300_s2 + $0xd40] ss:$16 sps:$4 sm:$0xff]   ;;  %v15303_v47 = vld [vmem:[%s22300_s2 + $0xd48] ss:$16 sps:$4 sm:$0xff]  }
 0x333   :  { %8299 = vmatprep.subr.bf16.mxu1 %v15263_v12  ;;  %v15311_v12 = vld [vmem:[%s22300_s2 + $0xd6c] ss:$16 sps:$4 sm:$0xff]  }
 0x335   :  { %8259 = vmatpush1.bf16.msra.mxu0 %v15258_v37  ;;  %v15308_v37 = vld [vmem:[%s22300_s2 + $0xd64] ss:$16 sps:$4 sm:$0xff]  }
 0x336   :  { %8300 = vmatpush1.bf16.msra.mxu1 %v15261_v8  ;;  %8260 = vmatprep.subr.bf16.mxu0 %v15266_v48  ;;  %v15306_v8 = vld [vmem:[%s22300_s2 + $0xd60] ss:$16 sps:$4 sm:$0xff]   ;;  %v15309_v48 = vld [vmem:[%s22300_s2 + $0xd68] ss:$16 sps:$4 sm:$0xff]  }
 0x337   :  { %8301 = vmatprep.subr.bf16.mxu1 %v15269_v1  ;;  %v15317_v1 = vld [vmem:[%s22300_s2 + $0xd8c] ss:$16 sps:$4 sm:$0xff]  }
 0x339   :  { %8261 = vmatpush1.bf16.msra.mxu0 %v15264_v58  ;;  %v15314_v58 = vld [vmem:[%s22300_s2 + $0xd84] ss:$16 sps:$4 sm:$0xff]  }
 0x33a   :  { %8302 = vmatpush1.bf16.msra.mxu1 %v15267_v61  ;;  %8262 = vmatprep.subr.bf16.mxu0 %v15272_v24  ;;  %v15312_v61 = vld [vmem:[%s22300_s2 + $0xd80] ss:$16 sps:$4 sm:$0xff]   ;;  %v15315_v24 = vld [vmem:[%s22300_s2 + $0xd88] ss:$16 sps:$4 sm:$0xff]  }
 0x33b   :  { %v6650_v31 = vpop.f32.mrb[24].mxu0  ;;  %8303 = vmatprep.subr.bf16.mxu1 %v15275_v62  ;;  %v15320_v62 = vld [vmem:[%s22300_s2 + $0xda4] ss:$16 sps:$4 sm:$0xff]  }
 0x33c   :  { %v20016_v39 = vadd.f32 %v19811_v25, %v6650_v31  ;;  %v6691_v19 = vpop.f32.mrb[24].mxu1  ;;  %v6652_v13 = vpop.f32.mrb[25].mxu0  ;;  %v15326_v31 = vld [vmem:[%s22300_s2 + $0xdc4] ss:$16 sps:$4 sm:$0xff]  }
 0x33d   :  { %v20019_v51 = vadd.f32 %v19814_v15, %v6691_v19  ;;  %v20022_v5 = vadd.f32 %v19817_v44, %v6652_v13  ;;  %v6693_v46 = vpop.f32.mrb[25].mxu1  ;;  %v6654_v33 = vpop.f32.mrb[26].mxu0  ;;  %8263 = vmatpush1.bf16.msra.mxu0 %v15270_v27  ;;  %v15279_v15 = vld [vmem:[%s22300_s2 + $0xcc8] ss:$16 sps:$4 sm:$0xff]   ;;  %v15284_v44 = vld [vmem:[%s22300_s2 + $0xce4] ss:$16 sps:$4 sm:$0xff]  }
 0x33e   :  { %v20028_v20 = vadd.f32 %v19820_v26, %v6693_v46  ;;  %v6695_v25 = vpop.f32.mrb[26].mxu1  ;;  %8304 = vmatpush1.bf16.msra.mxu1 %v15273_v59  ;;  %v6655_v18 = vpop.f32.mrb[27].mxu0  ;;  %8264 = vmatprep.subr.bf16.mxu0 %v15278_v60  ;;  %v15282_v26 = vld [vmem:[%s22300_s2 + $0xce0] ss:$16 sps:$4 sm:$0xff]   ;;  %v15323_v27 = vld [vmem:[%s22300_s2 + $0xdac] ss:$16 sps:$4 sm:$0xff]  }
 0x33f   :  { %v6696_v32 = vpop.f32.mrb[27].mxu1  ;;  %8305 = vmatprep.subr.bf16.mxu1 %v15281_v7  ;;  %v15318_v59 = vld [vmem:[%s22300_s2 + $0xda0] ss:$16 sps:$4 sm:$0xff]   ;;  %v15321_v60 = vld [vmem:[%s22300_s2 + $0xda8] ss:$16 sps:$4 sm:$0xff]  }
 0x340   :  { %v15329_v7 = vld [vmem:[%s22300_s2 + $0xdcc] ss:$16 sps:$4 sm:$0xff]   ;;  %v15324_v19 = vld [vmem:[%s22300_s2 + $0xdc0] ss:$16 sps:$4 sm:$0xff]   ;;  %v15327_v13 = vld [vmem:[%s22300_s2 + $0xdc8] ss:$16 sps:$4 sm:$0xff]   ;;  %v14043_v32 = vpack.c.bf16 %v18835_v35, %v18835_v35 }
 0x341   :  { %8265 = vmatpush1.bf16.msra.mxu0 %v15276_v43  ;;  %v15332_v46 = vld [vmem:[%s22300_s2 + $0xde4] ss:$16 sps:$4 sm:$0xff]   ;;  %v15335_v33 = vld [vmem:[%s22300_s2 + $0xdec] ss:$16 sps:$4 sm:$0xff]   ;;  %v15330_v43 = vld [vmem:[%s22300_s2 + $0xde0] ss:$16 sps:$4 sm:$0xff]  }
 0x342   :  { %8306 = vmatpush1.bf16.msra.mxu1 %v15279_v15  ;;  %8266 = vmatprep.subr.bf16.mxu0 %v15284_v44  ;;  %v15333_v25 = vld [vmem:[%s22300_s2 + $0xde8] ss:$16 sps:$4 sm:$0xff]   ;;  %v15338_v18 = vld [vmem:[%s22300_s2 + $0xe04] ss:$16 sps:$4 sm:$0xff]   ;;  %v15341_v15 = vld [vmem:[%s22300_s2 + $0xe0c] ss:$16 sps:$4 sm:$0xff]  }
 0x343   :  { %8307 = vmatprep.subr.bf16.mxu1 %v15287_v23  ;;  %v15336_v44 = vld [vmem:[%s22300_s2 + $0xe00] ss:$16 sps:$4 sm:$0xff]   ;;  %v15339_v23 = vld [vmem:[%s22300_s2 + $0xe08] ss:$16 sps:$4 sm:$0xff]  }
 0x344   :  { %v15342_v35 = vld [vmem:[%s22300_s2 + $0xe20] ss:$16 sps:$4 sm:$0xff]  }
 0x345   :  { %8267 = vmatpush1.bf16.msra.mxu0 %v15282_v26  ;;  %v15344_v26 = vld [vmem:[%s22300_s2 + $0xe24] ss:$16 sps:$4 sm:$0xff]  }
 0x346   :  { %8308 = vmatpush1.bf16.msra.mxu1 %v15285_v41  ;;  %8268 = vmatprep.subr.bf16.mxu0 %v15290_v30  ;;  %v14046_v41 = vpack.c.bf16 %v18875_v57, %v18875_v57  ;;  %v15347_v30 = vld [vmem:[%s22300_s2 + $0xe2c] ss:$16 sps:$4 sm:$0xff]   ;;  %v15350_v57 = vld [vmem:[%s22300_s2 + $0xe44] ss:$16 sps:$4 sm:$0xff]  }
 0x347   :  { %8309 = vmatprep.subr.bf16.mxu1 %v15293_v55  ;;  %v15345_v55 = vld [vmem:[%s22300_s2 + $0xe28] ss:$16 sps:$4 sm:$0xff]  }
 0x349   :  { %8269 = vmatpush1.bf16.msra.mxu0 %v15288_v29  ;;  %v15353_v29 = vld [vmem:[%s22300_s2 + $0xe4c] ss:$16 sps:$4 sm:$0xff]  }
 0x34a   :  { %8310 = vmatpush1.bf16.msra.mxu1 %v15291_v63  ;;  %8270 = vmatprep.subr.bf16.mxu0 %v15296_v0  ;;  %v15348_v63 = vld [vmem:[%s22300_s2 + $0xe40] ss:$16 sps:$4 sm:$0xff]   ;;  %v15351_v0 = vld [vmem:[%s22300_s2 + $0xe48] ss:$16 sps:$4 sm:$0xff]  }
 0x34b   :  { %8311 = vmatprep.subr.bf16.mxu1 %v15299_v45  ;;  %v15356_v45 = vld [vmem:[%s22300_s2 + $0xe64] ss:$16 sps:$4 sm:$0xff]  }
 0x34d   :  { %8271 = vmatpush1.bf16.msra.mxu0 %v15294_v10  ;;  %v15359_v10 = vld [vmem:[%s22300_s2 + $0xe6c] ss:$16 sps:$4 sm:$0xff]  }
 0x34e   :  { %8312 = vmatpush1.bf16.msra.mxu1 %v15297_v34  ;;  %8272 = vmatprep.subr.bf16.mxu0 %v15302_v52  ;;  %v15354_v34 = vld [vmem:[%s22300_s2 + $0xe60] ss:$16 sps:$4 sm:$0xff]   ;;  %v15357_v52 = vld [vmem:[%s22300_s2 + $0xe68] ss:$16 sps:$4 sm:$0xff]  }
 0x34f   :  { %8313 = vmatprep.subr.bf16.mxu1 %v15305_v42  ;;  %v15362_v42 = vld [vmem:[%s22300_s2 + $0xe84] ss:$16 sps:$4 sm:$0xff]  }
 0x351   :  { %8273 = vmatpush1.bf16.msra.mxu0 %v15300_v17  ;;  %v15365_v17 = vld [vmem:[%s22300_s2 + $0xe8c] ss:$16 sps:$4 sm:$0xff]  }
 0x352   :  { %8314 = vmatpush1.bf16.msra.mxu1 %v15303_v47  ;;  %8274 = vmatprep.subr.bf16.mxu0 %v15308_v37  ;;  %v15360_v47 = vld [vmem:[%s22300_s2 + $0xe80] ss:$16 sps:$4 sm:$0xff]   ;;  %v15363_v37 = vld [vmem:[%s22300_s2 + $0xe88] ss:$16 sps:$4 sm:$0xff]  }
 0x353   :  { %8315 = vmatprep.subr.bf16.mxu1 %v15311_v12  ;;  %v15368_v12 = vld [vmem:[%s22300_s2 + $0xea4] ss:$16 sps:$4 sm:$0xff]  }
 0x355   :  { %8275 = vmatpush1.bf16.msra.mxu0 %v15306_v8  ;;  %v15371_v8 = vld [vmem:[%s22300_s2 + $0xeac] ss:$16 sps:$4 sm:$0xff]  }
 0x356   :  { %8316 = vmatpush1.bf16.msra.mxu1 %v15309_v48  ;;  %8276 = vmatprep.subr.bf16.mxu0 %v15314_v58  ;;  %v15366_v48 = vld [vmem:[%s22300_s2 + $0xea0] ss:$16 sps:$4 sm:$0xff]   ;;  %v15369_v58 = vld [vmem:[%s22300_s2 + $0xea8] ss:$16 sps:$4 sm:$0xff]  }
 0x357   :  { %8317 = vmatprep.subr.bf16.mxu1 %v15317_v1  ;;  %v15374_v1 = vld [vmem:[%s22300_s2 + $0xec4] ss:$16 sps:$4 sm:$0xff]  }
 0x359   :  { %8277 = vmatpush1.bf16.msra.mxu0 %v15312_v61 }
 0x35a   :  { %8318 = vmatpush1.bf16.msra.mxu1 %v15315_v24  ;;  %8278 = vmatprep.subr.bf16.mxu0 %v15320_v62  ;;  %v15377_v24 = vld [vmem:[%s22300_s2 + $0xecc] ss:$16 sps:$4 sm:$0xff]  }
 0x35b   :  { %8319 = vmatprep.subr.bf16.mxu1 %v15323_v27 }
 0x35d   :  { %8279 = vmatpush1.bf16.msra.mxu0 %v15318_v59 }
 0x35e   :  { %8320 = vmatpush1.bf16.msra.mxu1 %v15321_v60  ;;  %8280 = vmatprep.subr.bf16.mxu0 %v15326_v31 }
 0x35f   :  { %8321 = vmatprep.subr.bf16.mxu1 %v15329_v7 }
 0x361   :  { %8281 = vmatpush1.bf16.msra.mxu0 %v15324_v19 }
 0x362   :  { %8322 = vmatpush1.bf16.msra.mxu1 %v15327_v13  ;;  %8282 = vmatprep.subr.bf16.mxu0 %v15332_v46  ;;  %v15372_v13 = vld [vmem:[%s22300_s2 + $0xec0] ss:$16 sps:$4 sm:$0xff]  }
 0x363   :  { %8323 = vmatprep.subr.bf16.mxu1 %v15335_v33 }
 0x365   :  { %8283 = vmatpush1.bf16.msra.mxu0 %v15330_v43 }
 0x366   :  { %8324 = vmatpush1.bf16.msra.mxu1 %v15333_v25  ;;  %8661 = vmatprep.subr.bf16.mxu0 %v15338_v18  ;;  %v15383_v25 = vld [vmem:[%s22300_s2 + $0xeec] ss:$16 sps:$4 sm:$0xff]   ;;  %v15381_v18 = vld [vmem:[%s22300_s2 + $0xee8] ss:$16 sps:$4 sm:$0xff]  }
 0x367   :  { %8702 = vmatprep.subr.bf16.mxu1 %v15341_v15  ;;  %v15386_v15 = vld [vmem:[%s22300_s2 + $0xf04] ss:$16 sps:$4 sm:$0xff]  }
 0x368   :  { %8285 = vmatmul.mubr.bf16.vlgmr.msra.gmra.mrb[40].mxu0 %v14043_v32 }
 0x369   :  { %8326 = vmatmul.mubr.bf16.vlgmr.msra.gmra.mrb[40].mxu1 %v14043_v32  ;;  %8662 = vmatpush1.bf16.msra.mxu0 %v15336_v44  ;;  %v15389_v44 = vld [vmem:[%s22300_s2 + $0xf0c] ss:$16 sps:$4 sm:$0xff]   ;;  %v15384_v32 = vld [vmem:[%s22300_s2 + $0xf00] ss:$16 sps:$4 sm:$0xff]  }
 0x36a   :  { %8693 = vmatprep.mubr.bf16.mxu0 %v14046_v41  ;;  %8703 = vmatpush1.bf16.msra.mxu1 %v15339_v23  ;;  %v15387_v23 = vld [vmem:[%s22300_s2 + $0xf08] ss:$16 sps:$4 sm:$0xff]  }
 0x36b   :  { %8734 = vmatprep.mubr.bf16.mxu1 %v14046_v41  ;;  %8663 = vmatprep.subr.bf16.mxu0 %v15344_v26  ;;  %v15392_v26 = vld [vmem:[%s22300_s2 + $0xf24] ss:$16 sps:$4 sm:$0xff]   ;;  %v15395_v41 = vld [vmem:[%s22300_s2 + $0xf2c] ss:$16 sps:$4 sm:$0xff]  }
 0x36c   :  { %8704 = vmatprep.subr.bf16.mxu1 %v15347_v30  ;;  %v15390_v30 = vld [vmem:[%s22300_s2 + $0xf20] ss:$16 sps:$4 sm:$0xff]  }
 0x36d   :  { %8664 = vmatpush1.bf16.msra.mxu0 %v15342_v35  ;;  %v15393_v35 = vld [vmem:[%s22300_s2 + $0xf28] ss:$16 sps:$4 sm:$0xff]  }
 0x36e   :  { %8705 = vmatpush1.bf16.msra.mxu1 %v15345_v55  ;;  %8665 = vmatprep.subr.bf16.mxu0 %v15350_v57  ;;  %v15398_v55 = vld [vmem:[%s22300_s2 + $0xf44] ss:$16 sps:$4 sm:$0xff]   ;;  %v15401_v57 = vld [vmem:[%s22300_s2 + $0xf4c] ss:$16 sps:$4 sm:$0xff]  }
 0x36f   :  { %8706 = vmatprep.subr.bf16.mxu1 %v15353_v29  ;;  %v15396_v29 = vld [vmem:[%s22300_s2 + $0xf40] ss:$16 sps:$4 sm:$0xff]  }
 0x371   :  { %8666 = vmatpush1.bf16.msra.mxu0 %v15348_v63  ;;  %v15399_v63 = vld [vmem:[%s22300_s2 + $0xf48] ss:$16 sps:$4 sm:$0xff]  }
 0x372   :  { %8707 = vmatpush1.bf16.msra.mxu1 %v15351_v0  ;;  %8667 = vmatprep.subr.bf16.mxu0 %v15356_v45  ;;  %v15404_v0 = vld [vmem:[%s22300_s2 + $0xf64] ss:$16 sps:$4 sm:$0xff]   ;;  %v15407_v45 = vld [vmem:[%s22300_s2 + $0xf6c] ss:$16 sps:$4 sm:$0xff]  }
 0x373   :  { %8708 = vmatprep.subr.bf16.mxu1 %v15359_v10  ;;  %v15402_v10 = vld [vmem:[%s22300_s2 + $0xf60] ss:$16 sps:$4 sm:$0xff]  }
 0x375   :  { %8668 = vmatpush1.bf16.msra.mxu0 %v15354_v34  ;;  %v15405_v34 = vld [vmem:[%s22300_s2 + $0xf68] ss:$16 sps:$4 sm:$0xff]  }
 0x376   :  { %8709 = vmatpush1.bf16.msra.mxu1 %v15357_v52  ;;  %8669 = vmatprep.subr.bf16.mxu0 %v15362_v42  ;;  %v15410_v52 = vld [vmem:[%s22300_s2 + $0xf84] ss:$16 sps:$4 sm:$0xff]   ;;  %v15413_v42 = vld [vmem:[%s22300_s2 + $0xf8c] ss:$16 sps:$4 sm:$0xff]  }
 0x377   :  { %8710 = vmatprep.subr.bf16.mxu1 %v15365_v17  ;;  %v15408_v17 = vld [vmem:[%s22300_s2 + $0xf80] ss:$16 sps:$4 sm:$0xff]  }
 0x379   :  { %8670 = vmatpush1.bf16.msra.mxu0 %v15360_v47  ;;  %v15411_v47 = vld [vmem:[%s22300_s2 + $0xf88] ss:$16 sps:$4 sm:$0xff]  }
 0x37a   :  { %8711 = vmatpush1.bf16.msra.mxu1 %v15363_v37  ;;  %8671 = vmatprep.subr.bf16.mxu0 %v15368_v12  ;;  %v15416_v37 = vld [vmem:[%s22300_s2 + $0xfa4] ss:$16 sps:$4 sm:$0xff]   ;;  %v15419_v12 = vld [vmem:[%s22300_s2 + $0xfac] ss:$16 sps:$4 sm:$0xff]  }
 0x37b   :  { %v7059_v61 = vpop.f32.mrb[28].mxu0  ;;  %8712 = vmatprep.subr.bf16.mxu1 %v15371_v8  ;;  %v15414_v8 = vld [vmem:[%s22300_s2 + $0xfa0] ss:$16 sps:$4 sm:$0xff]  }
 0x37c   :  { %v20224_v62 = vadd.f32 %v20016_v39, %v7059_v61  ;;  %v7100_v27 = vpop.f32.mrb[28].mxu1  ;;  %v7061_v59 = vpop.f32.mrb[29].mxu0  ;;  %v15420_v61 = vld [vmem:[%s22300_s2 + $0xfc0] ss:$16 sps:$4 sm:$0xff]  }
 0x37d   :  { %v20227_v60 = vadd.f32 %v20019_v51, %v7100_v27  ;;  %v20230_v31 = vadd.f32 %v20022_v5, %v7061_v59  ;;  %v7102_v7 = vpop.f32.mrb[29].mxu1  ;;  %v7063_v19 = vpop.f32.mrb[30].mxu0  ;;  %8672 = vmatpush1.bf16.msra.mxu0 %v15366_v48  ;;  %v15375_v51 = vld [vmem:[%s22300_s2 + $0xec8] ss:$16 sps:$4 sm:$0xff]   ;;  %v15380_v5 = vld [vmem:[%s22300_s2 + $0xee4] ss:$16 sps:$4 sm:$0xff]  }
 0x37e   :  { %v20236_v46 = vadd.f32 %v20028_v20, %v7102_v7  ;;  %v7104_v39 = vpop.f32.mrb[30].mxu1  ;;  %8713 = vmatpush1.bf16.msra.mxu1 %v15369_v58  ;;  %v7064_v33 = vpop.f32.mrb[31].mxu0  ;;  %8673 = vmatprep.subr.bf16.mxu0 %v15374_v1  ;;  %v15378_v20 = vld [vmem:[%s22300_s2 + $0xee0] ss:$16 sps:$4 sm:$0xff]   ;;  %v15417_v48 = vld [vmem:[%s22300_s2 + $0xfa8] ss:$16 sps:$4 sm:$0xff]  }
 0x37f   :  { %v7105_v43 = vpop.f32.mrb[31].mxu1  ;;  %8714 = vmatprep.subr.bf16.mxu1 %v15377_v24  ;;  %v15422_v58 = vld [vmem:[%s22300_s2 + $0xfc4] ss:$16 sps:$4 sm:$0xff]   ;;  %v15425_v1 = vld [vmem:[%s22300_s2 + $0xfcc] ss:$16 sps:$4 sm:$0xff]  }
 0x380   :  { %v15423_v24 = vld [vmem:[%s22300_s2 + $0xfc8] ss:$16 sps:$4 sm:$0xff]   ;;  %v15428_v27 = vld [vmem:[%s22300_s2 + $0xfe4] ss:$16 sps:$4 sm:$0xff]   ;;  %v15431_v59 = vld [vmem:[%s22300_s2 + $0xfec] ss:$16 sps:$4 sm:$0xff]  }
 0x381   :  { %8674 = vmatpush1.bf16.msra.mxu0 %v15372_v13  ;;  %v15426_v7 = vld [vmem:[%s22300_s2 + $0xfe0] ss:$16 sps:$4 sm:$0xff]   ;;  %v15429_v19 = vld [vmem:[%s22300_s2 + $0xfe8] ss:$16 sps:$4 sm:$0xff]   ;;  %v15434_v13 = vld [vmem:[%s22300_s2 + $0x1004] ss:$16 sps:$4 sm:$0xff]  }
 0x382   :  { %8715 = vmatpush1.bf16.msra.mxu1 %v15375_v51  ;;  %8675 = vmatprep.subr.bf16.mxu0 %v15380_v5  ;;  %v15437_v39 = vld [vmem:[%s22300_s2 + $0x100c] ss:$16 sps:$4 sm:$0xff]   ;;  %v15432_v33 = vld [vmem:[%s22300_s2 + $0x1000] ss:$16 sps:$4 sm:$0xff]   ;;  %v14045_v51 = vpack.c.bf16 %v18878_v49, %v18878_v49  ;;  %v15435_v5 = vld [vmem:[%s22300_s2 + $0x1008] ss:$16 sps:$4 sm:$0xff]  }
 0x383   :  { %8716 = vmatprep.subr.bf16.mxu1 %v15383_v25  ;;  %v15440_v43 = vld [vmem:[%s22300_s2 + $0x1024] ss:$16 sps:$4 sm:$0xff]   ;;  %v14048_v25 = vpack.c.bf16 %v18890_v56, %v18890_v56  ;;  %v15438_v49 = vld [vmem:[%s22300_s2 + $0x1020] ss:$16 sps:$4 sm:$0xff]  }
 0x384   :  { %v15446_v56 = vld [vmem:[%s22300_s2 + $0x1044] ss:$16 sps:$4 sm:$0xff]  }
 0x385   :  { %8676 = vmatpush1.bf16.msra.mxu0 %v15378_v20  ;;  %v15443_v20 = vld [vmem:[%s22300_s2 + $0x102c] ss:$16 sps:$4 sm:$0xff]  }
 0x386   :  { %8717 = vmatpush1.bf16.msra.mxu1 %v15381_v18  ;;  %8677 = vmatprep.subr.bf16.mxu0 %v15386_v15  ;;  %v15441_v18 = vld [vmem:[%s22300_s2 + $0x1028] ss:$16 sps:$4 sm:$0xff]   ;;  %v15449_v15 = vld [vmem:[%s22300_s2 + $0x104c] ss:$16 sps:$4 sm:$0xff]  }
 0x387   :  { %8718 = vmatprep.subr.bf16.mxu1 %v15389_v44  ;;  %v15444_v44 = vld [vmem:[%s22300_s2 + $0x1040] ss:$16 sps:$4 sm:$0xff]  }
 0x389   :  { %8678 = vmatpush1.bf16.msra.mxu0 %v15384_v32  ;;  %v15447_v32 = vld [vmem:[%s22300_s2 + $0x1048] ss:$16 sps:$4 sm:$0xff]  }
 0x38a   :  { %8719 = vmatpush1.bf16.msra.mxu1 %v15387_v23  ;;  %8679 = vmatprep.subr.bf16.mxu0 %v15392_v26  ;;  %v15452_v23 = vld [vmem:[%s22300_s2 + $0x1064] ss:$16 sps:$4 sm:$0xff]   ;;  %v15455_v26 = vld [vmem:[%s22300_s2 + $0x106c] ss:$16 sps:$4 sm:$0xff]  }
 0x38b   :  { %8720 = vmatprep.subr.bf16.mxu1 %v15395_v41  ;;  %v15450_v41 = vld [vmem:[%s22300_s2 + $0x1060] ss:$16 sps:$4 sm:$0xff]  }
 0x38d   :  { %8680 = vmatpush1.bf16.msra.mxu0 %v15390_v30  ;;  %v15453_v30 = vld [vmem:[%s22300_s2 + $0x1068] ss:$16 sps:$4 sm:$0xff]  }
 0x38e   :  { %8721 = vmatpush1.bf16.msra.mxu1 %v15393_v35  ;;  %8681 = vmatprep.subr.bf16.mxu0 %v15398_v55  ;;  %v15458_v35 = vld [vmem:[%s22300_s2 + $0x1084] ss:$16 sps:$4 sm:$0xff]   ;;  %v15461_v55 = vld [vmem:[%s22300_s2 + $0x108c] ss:$16 sps:$4 sm:$0xff]  }
 0x38f   :  { %8722 = vmatprep.subr.bf16.mxu1 %v15401_v57  ;;  %v15456_v57 = vld [vmem:[%s22300_s2 + $0x1080] ss:$16 sps:$4 sm:$0xff]  }
 0x391   :  { %8682 = vmatpush1.bf16.msra.mxu0 %v15396_v29  ;;  %v15459_v29 = vld [vmem:[%s22300_s2 + $0x1088] ss:$16 sps:$4 sm:$0xff]  }
 0x392   :  { %8723 = vmatpush1.bf16.msra.mxu1 %v15399_v63  ;;  %8683 = vmatprep.subr.bf16.mxu0 %v15404_v0  ;;  %v15464_v63 = vld [vmem:[%s22300_s2 + $0x10a4] ss:$16 sps:$4 sm:$0xff]   ;;  %v15467_v0 = vld [vmem:[%s22300_s2 + $0x10ac] ss:$16 sps:$4 sm:$0xff]  }
 0x393   :  { %8724 = vmatprep.subr.bf16.mxu1 %v15407_v45  ;;  %v15462_v45 = vld [vmem:[%s22300_s2 + $0x10a0] ss:$16 sps:$4 sm:$0xff]  }
 0x395   :  { %8684 = vmatpush1.bf16.msra.mxu0 %v15402_v10  ;;  %v15465_v10 = vld [vmem:[%s22300_s2 + $0x10a8] ss:$16 sps:$4 sm:$0xff]  }
 0x396   :  { %8725 = vmatpush1.bf16.msra.mxu1 %v15405_v34  ;;  %8685 = vmatprep.subr.bf16.mxu0 %v15410_v52  ;;  %v15470_v34 = vld [vmem:[%s22300_s2 + $0x10c4] ss:$16 sps:$4 sm:$0xff]  }
 0x397   :  { %8726 = vmatprep.subr.bf16.mxu1 %v15413_v42  ;;  %v15473_v42 = vld [vmem:[%s22300_s2 + $0x10cc] ss:$16 sps:$4 sm:$0xff]  }
 0x399   :  { %8686 = vmatpush1.bf16.msra.mxu0 %v15408_v17 }
 0x39a   :  { %8727 = vmatpush1.bf16.msra.mxu1 %v15411_v47  ;;  %8687 = vmatprep.subr.bf16.mxu0 %v15416_v37 }
 0x39b   :  { %8728 = vmatprep.subr.bf16.mxu1 %v15419_v12 }
 0x39d   :  { %8688 = vmatpush1.bf16.msra.mxu0 %v15414_v8 }
 0x39e   :  { %8729 = vmatpush1.bf16.msra.mxu1 %v15417_v48  ;;  %8689 = vmatprep.subr.bf16.mxu0 %v15422_v58 }
 0x39f   :  { %8730 = vmatprep.subr.bf16.mxu1 %v15425_v1  ;;  %v15468_v1 = vld [vmem:[%s22300_s2 + $0x10c0] ss:$16 sps:$4 sm:$0xff]  }
 0x3a1   :  { %8690 = vmatpush1.bf16.msra.mxu0 %v15420_v61 }
 0x3a2   :  { %8731 = vmatpush1.bf16.msra.mxu1 %v15423_v24  ;;  %8691 = vmatprep.subr.bf16.mxu0 %v15428_v27 }
 0x3a3   :  { %8732 = vmatprep.subr.bf16.mxu1 %v15431_v59  ;;  %v15479_v59 = vld [vmem:[%s22300_s2 + $0x10ec] ss:$16 sps:$4 sm:$0xff]  }
 0x3a5   :  { %8692 = vmatpush1.bf16.msra.mxu0 %v15426_v7  ;;  %v15477_v7 = vld [vmem:[%s22300_s2 + $0x10e8] ss:$16 sps:$4 sm:$0xff]  }
 0x3a6   :  { %8733 = vmatpush1.bf16.msra.mxu1 %v15429_v19  ;;  %9070 = vmatprep.subr.bf16.mxu0 %v15434_v13  ;;  %v15482_v19 = vld [vmem:[%s22300_s2 + $0x1104] ss:$16 sps:$4 sm:$0xff]   ;;  %v15485_v13 = vld [vmem:[%s22300_s2 + $0x110c] ss:$16 sps:$4 sm:$0xff]  }
 0x3a7   :  { %9111 = vmatprep.subr.bf16.mxu1 %v15437_v39  ;;  %v15480_v39 = vld [vmem:[%s22300_s2 + $0x1100] ss:$16 sps:$4 sm:$0xff]  }
 0x3a8   :  { %8694 = vmatmul.mubr.bf16.vlgmr.msra.gmra.mrb[44].mxu0 %v14045_v51 }
 0x3a9   :  { %8735 = vmatmul.mubr.bf16.vlgmr.msra.gmra.mrb[44].mxu1 %v14045_v51  ;;  %9071 = vmatpush1.bf16.msra.mxu0 %v15432_v33  ;;  %v15483_v33 = vld [vmem:[%s22300_s2 + $0x1108] ss:$16 sps:$4 sm:$0xff]   ;;  %v15488_v51 = vld [vmem:[%s22300_s2 + $0x1124] ss:$16 sps:$4 sm:$0xff]  }
 0x3aa   :  { %9102 = vmatprep.mubr.bf16.mxu0 %v14048_v25  ;;  %9112 = vmatpush1.bf16.msra.mxu1 %v15435_v5  ;;  %v15491_v5 = vld [vmem:[%s22300_s2 + $0x112c] ss:$16 sps:$4 sm:$0xff]  }
 0x3ab   :  { %9143 = vmatprep.mubr.bf16.mxu1 %v14048_v25  ;;  %9072 = vmatprep.subr.bf16.mxu0 %v15440_v43  ;;  %v15486_v43 = vld [vmem:[%s22300_s2 + $0x1120] ss:$16 sps:$4 sm:$0xff]   ;;  %v15489_v25 = vld [vmem:[%s22300_s2 + $0x1128] ss:$16 sps:$4 sm:$0xff]  }
 0x3ac   :  { %9113 = vmatprep.subr.bf16.mxu1 %v15443_v20  ;;  %v15494_v20 = vld [vmem:[%s22300_s2 + $0x1144] ss:$16 sps:$4 sm:$0xff]  }
 0x3ad   :  { %9073 = vmatpush1.bf16.msra.mxu0 %v15438_v49  ;;  %v15497_v49 = vld [vmem:[%s22300_s2 + $0x114c] ss:$16 sps:$4 sm:$0xff]  }
 0x3ae   :  { %9114 = vmatpush1.bf16.msra.mxu1 %v15441_v18  ;;  %9074 = vmatprep.subr.bf16.mxu0 %v15446_v56  ;;  %v15492_v18 = vld [vmem:[%s22300_s2 + $0x1140] ss:$16 sps:$4 sm:$0xff]   ;;  %v15495_v56 = vld [vmem:[%s22300_s2 + $0x1148] ss:$16 sps:$4 sm:$0xff]  }
 0x3af   :  { %9115 = vmatprep.subr.bf16.mxu1 %v15449_v15  ;;  %v15500_v15 = vld [vmem:[%s22300_s2 + $0x1164] ss:$16 sps:$4 sm:$0xff]  }
 0x3b1   :  { %9075 = vmatpush1.bf16.msra.mxu0 %v15444_v44  ;;  %v15503_v44 = vld [vmem:[%s22300_s2 + $0x116c] ss:$16 sps:$4 sm:$0xff]  }
 0x3b2   :  { %9116 = vmatpush1.bf16.msra.mxu1 %v15447_v32  ;;  %9076 = vmatprep.subr.bf16.mxu0 %v15452_v23  ;;  %v15498_v32 = vld [vmem:[%s22300_s2 + $0x1160] ss:$16 sps:$4 sm:$0xff]   ;;  %v15501_v23 = vld [vmem:[%s22300_s2 + $0x1168] ss:$16 sps:$4 sm:$0xff]  }
 0x3b3   :  { %9117 = vmatprep.subr.bf16.mxu1 %v15455_v26  ;;  %v15506_v26 = vld [vmem:[%s22300_s2 + $0x1184] ss:$16 sps:$4 sm:$0xff]  }
 0x3b5   :  { %9077 = vmatpush1.bf16.msra.mxu0 %v15450_v41  ;;  %v15509_v41 = vld [vmem:[%s22300_s2 + $0x118c] ss:$16 sps:$4 sm:$0xff]  }
 0x3b6   :  { %9118 = vmatpush1.bf16.msra.mxu1 %v15453_v30  ;;  %9078 = vmatprep.subr.bf16.mxu0 %v15458_v35  ;;  %v15504_v30 = vld [vmem:[%s22300_s2 + $0x1180] ss:$16 sps:$4 sm:$0xff]   ;;  %v15507_v35 = vld [vmem:[%s22300_s2 + $0x1188] ss:$16 sps:$4 sm:$0xff]  }
 0x3b7   :  { %9119 = vmatprep.subr.bf16.mxu1 %v15461_v55  ;;  %v15512_v55 = vld [vmem:[%s22300_s2 + $0x11a4] ss:$16 sps:$4 sm:$0xff]  }
 0x3b9   :  { %9079 = vmatpush1.bf16.msra.mxu0 %v15456_v57  ;;  %v15515_v57 = vld [vmem:[%s22300_s2 + $0x11ac] ss:$16 sps:$4 sm:$0xff]  }
 0x3ba   :  { %9120 = vmatpush1.bf16.msra.mxu1 %v15459_v29  ;;  %9080 = vmatprep.subr.bf16.mxu0 %v15464_v63  ;;  %v15510_v29 = vld [vmem:[%s22300_s2 + $0x11a0] ss:$16 sps:$4 sm:$0xff]   ;;  %v15513_v63 = vld [vmem:[%s22300_s2 + $0x11a8] ss:$16 sps:$4 sm:$0xff]  }
 0x3bb   :  { %v7468_v52 = vpop.f32.mrb[32].mxu0  ;;  %9121 = vmatprep.subr.bf16.mxu1 %v15467_v0  ;;  %v15518_v0 = vld [vmem:[%s22300_s2 + $0x11c4] ss:$16 sps:$4 sm:$0xff]  }
 0x3bc   :  { %v20432_v17 = vadd.f32 %v20224_v62, %v7468_v52  ;;  %v7509_v47 = vpop.f32.mrb[32].mxu1  ;;  %v7470_v37 = vpop.f32.mrb[33].mxu0  ;;  %v15524_v52 = vld [vmem:[%s22300_s2 + $0x11e4] ss:$16 sps:$4 sm:$0xff]  }
 0x3bd   :  { %v20435_v12 = vadd.f32 %v20227_v60, %v7509_v47  ;;  %v20438_v8 = vadd.f32 %v20230_v31, %v7470_v37  ;;  %v7511_v48 = vpop.f32.mrb[33].mxu1  ;;  %v7472_v58 = vpop.f32.mrb[34].mxu0  ;;  %9081 = vmatpush1.bf16.msra.mxu0 %v15462_v45  ;;  %v15471_v60 = vld [vmem:[%s22300_s2 + $0x10c8] ss:$16 sps:$4 sm:$0xff]   ;;  %v15476_v31 = vld [vmem:[%s22300_s2 + $0x10e4] ss:$16 sps:$4 sm:$0xff]  }
 0x3be   :  { %v20444_v61 = vadd.f32 %v20236_v46, %v7511_v48  ;;  %v7513_v62 = vpop.f32.mrb[34].mxu1  ;;  %9122 = vmatpush1.bf16.msra.mxu1 %v15465_v10  ;;  %v7473_v24 = vpop.f32.mrb[35].mxu0  ;;  %9082 = vmatprep.subr.bf16.mxu0 %v15470_v34  ;;  %v15474_v46 = vld [vmem:[%s22300_s2 + $0x10e0] ss:$16 sps:$4 sm:$0xff]   ;;  %v15521_v45 = vld [vmem:[%s22300_s2 + $0x11cc] ss:$16 sps:$4 sm:$0xff]  }
 0x3bf   :  { %v7514_v27 = vpop.f32.mrb[35].mxu1  ;;  %9123 = vmatprep.subr.bf16.mxu1 %v15473_v42  ;;  %v15516_v10 = vld [vmem:[%s22300_s2 + $0x11c0] ss:$16 sps:$4 sm:$0xff]   ;;  %v15519_v34 = vld [vmem:[%s22300_s2 + $0x11c8] ss:$16 sps:$4 sm:$0xff]   ;;  %v14047_v62 = vpack.c.bf16 %v18881_v40, %v18881_v40 }
 0x3c0   :  { %v15527_v42 = vld [vmem:[%s22300_s2 + $0x11ec] ss:$16 sps:$4 sm:$0xff]   ;;  %v15522_v47 = vld [vmem:[%s22300_s2 + $0x11e0] ss:$16 sps:$4 sm:$0xff]   ;;  %v15525_v37 = vld [vmem:[%s22300_s2 + $0x11e8] ss:$16 sps:$4 sm:$0xff]  }
 0x3c1   :  { %9083 = vmatpush1.bf16.msra.mxu0 %v15468_v1  ;;  %v15530_v48 = vld [vmem:[%s22300_s2 + $0x1204] ss:$16 sps:$4 sm:$0xff]   ;;  %v15533_v58 = vld [vmem:[%s22300_s2 + $0x120c] ss:$16 sps:$4 sm:$0xff]   ;;  %v15528_v1 = vld [vmem:[%s22300_s2 + $0x1200] ss:$16 sps:$4 sm:$0xff]  }
 0x3c2   :  { %9124 = vmatpush1.bf16.msra.mxu1 %v15471_v60  ;;  %9084 = vmatprep.subr.bf16.mxu0 %v15476_v31  ;;  %v15531_v24 = vld [vmem:[%s22300_s2 + $0x1208] ss:$16 sps:$4 sm:$0xff]   ;;  %v15536_v60 = vld [vmem:[%s22300_s2 + $0x1224] ss:$16 sps:$4 sm:$0xff]   ;;  %v14050_v31 = vpack.c.bf16 %v18922_v4, %v18922_v4  ;;  %v15539_v27 = vld [vmem:[%s22300_s2 + $0x122c] ss:$16 sps:$4 sm:$0xff]  }
 0x3c3   :  { %9125 = vmatprep.subr.bf16.mxu1 %v15479_v59  ;;  %v15534_v40 = vld [vmem:[%s22300_s2 + $0x1220] ss:$16 sps:$4 sm:$0xff]   ;;  %v15537_v59 = vld [vmem:[%s22300_s2 + $0x1228] ss:$16 sps:$4 sm:$0xff]   ;;  %v15542_v4 = vld [vmem:[%s22300_s2 + $0x1244] ss:$16 sps:$4 sm:$0xff]  }
 0x3c5   :  { %9085 = vmatpush1.bf16.msra.mxu0 %v15474_v46  ;;  %v15545_v46 = vld [vmem:[%s22300_s2 + $0x124c] ss:$16 sps:$4 sm:$0xff]  }
 0x3c6   :  { %9126 = vmatpush1.bf16.msra.mxu1 %v15477_v7  ;;  %9086 = vmatprep.subr.bf16.mxu0 %v15482_v19  ;;  %v15540_v7 = vld [vmem:[%s22300_s2 + $0x1240] ss:$16 sps:$4 sm:$0xff]   ;;  %v15543_v19 = vld [vmem:[%s22300_s2 + $0x1248] ss:$16 sps:$4 sm:$0xff]  }
 0x3c7   :  { %9127 = vmatprep.subr.bf16.mxu1 %v15485_v13  ;;  %v15548_v13 = vld [vmem:[%s22300_s2 + $0x1264] ss:$16 sps:$4 sm:$0xff]  }
 0x3c9   :  { %9087 = vmatpush1.bf16.msra.mxu0 %v15480_v39  ;;  %v15551_v39 = vld [vmem:[%s22300_s2 + $0x126c] ss:$16 sps:$4 sm:$0xff]  }
 0x3ca   :  { %9128 = vmatpush1.bf16.msra.mxu1 %v15483_v33  ;;  %9088 = vmatprep.subr.bf16.mxu0 %v15488_v51  ;;  %v15546_v33 = vld [vmem:[%s22300_s2 + $0x1260] ss:$16 sps:$4 sm:$0xff]   ;;  %v15549_v51 = vld [vmem:[%s22300_s2 + $0x1268] ss:$16 sps:$4 sm:$0xff]  }
 0x3cb   :  { %9129 = vmatprep.subr.bf16.mxu1 %v15491_v5  ;;  %v15554_v5 = vld [vmem:[%s22300_s2 + $0x1284] ss:$16 sps:$4 sm:$0xff]  }
 0x3cd   :  { %9089 = vmatpush1.bf16.msra.mxu0 %v15486_v43  ;;  %v15557_v43 = vld [vmem:[%s22300_s2 + $0x128c] ss:$16 sps:$4 sm:$0xff]  }
 0x3ce   :  { %9130 = vmatpush1.bf16.msra.mxu1 %v15489_v25  ;;  %9090 = vmatprep.subr.bf16.mxu0 %v15494_v20  ;;  %v15552_v25 = vld [vmem:[%s22300_s2 + $0x1280] ss:$16 sps:$4 sm:$0xff]   ;;  %v15555_v20 = vld [vmem:[%s22300_s2 + $0x1288] ss:$16 sps:$4 sm:$0xff]  }
 0x3cf   :  { %9131 = vmatprep.subr.bf16.mxu1 %v15497_v49  ;;  %v15560_v49 = vld [vmem:[%s22300_s2 + $0x12a4] ss:$16 sps:$4 sm:$0xff]  }
 0x3d1   :  { %9091 = vmatpush1.bf16.msra.mxu0 %v15492_v18  ;;  %v15563_v18 = vld [vmem:[%s22300_s2 + $0x12ac] ss:$16 sps:$4 sm:$0xff]  }
 0x3d2   :  { %9132 = vmatpush1.bf16.msra.mxu1 %v15495_v56  ;;  %9092 = vmatprep.subr.bf16.mxu0 %v15500_v15  ;;  %v15558_v56 = vld [vmem:[%s22300_s2 + $0x12a0] ss:$16 sps:$4 sm:$0xff]   ;;  %v15561_v15 = vld [vmem:[%s22300_s2 + $0x12a8] ss:$16 sps:$4 sm:$0xff]  }
 0x3d3   :  { %9133 = vmatprep.subr.bf16.mxu1 %v15503_v44  ;;  %v15566_v44 = vld [vmem:[%s22300_s2 + $0x12c4] ss:$16 sps:$4 sm:$0xff]  }
 0x3d5   :  { %9093 = vmatpush1.bf16.msra.mxu0 %v15498_v32 }
 0x3d6   :  { %9134 = vmatpush1.bf16.msra.mxu1 %v15501_v23  ;;  %9094 = vmatprep.subr.bf16.mxu0 %v15506_v26  ;;  %v15569_v23 = vld [vmem:[%s22300_s2 + $0x12cc] ss:$16 sps:$4 sm:$0xff]  }
 0x3d7   :  { %9135 = vmatprep.subr.bf16.mxu1 %v15509_v41 }
 0x3d9   :  { %9095 = vmatpush1.bf16.msra.mxu0 %v15504_v30 }
 0x3da   :  { %9136 = vmatpush1.bf16.msra.mxu1 %v15507_v35  ;;  %9096 = vmatprep.subr.bf16.mxu0 %v15512_v55 }
 0x3db   :  { %9137 = vmatprep.subr.bf16.mxu1 %v15515_v57 }
 0x3dd   :  { %9097 = vmatpush1.bf16.msra.mxu0 %v15510_v29 }
 0x3de   :  { %9138 = vmatpush1.bf16.msra.mxu1 %v15513_v63  ;;  %9098 = vmatprep.subr.bf16.mxu0 %v15518_v0  ;;  %v15564_v63 = vld [vmem:[%s22300_s2 + $0x12c0] ss:$16 sps:$4 sm:$0xff]  }
 0x3df   :  { %9139 = vmatprep.subr.bf16.mxu1 %v15521_v45 }
 0x3e1   :  { %9099 = vmatpush1.bf16.msra.mxu0 %v15516_v10 }
 0x3e2   :  { %9140 = vmatpush1.bf16.msra.mxu1 %v15519_v34  ;;  %9100 = vmatprep.subr.bf16.mxu0 %v15524_v52  ;;  %v15575_v34 = vld [vmem:[%s22300_s2 + $0x12ec] ss:$16 sps:$4 sm:$0xff]   ;;  %v15573_v52 = vld [vmem:[%s22300_s2 + $0x12e8] ss:$16 sps:$4 sm:$0xff]  }
 0x3e3   :  { %9141 = vmatprep.subr.bf16.mxu1 %v15527_v42  ;;  %v15578_v42 = vld [vmem:[%s22300_s2 + $0x1304] ss:$16 sps:$4 sm:$0xff]  }
 0x3e5   :  { %9101 = vmatpush1.bf16.msra.mxu0 %v15522_v47  ;;  %v15581_v47 = vld [vmem:[%s22300_s2 + $0x130c] ss:$16 sps:$4 sm:$0xff]  }
 0x3e6   :  { %9142 = vmatpush1.bf16.msra.mxu1 %v15525_v37  ;;  %9479 = vmatprep.subr.bf16.mxu0 %v15530_v48  ;;  %v15576_v37 = vld [vmem:[%s22300_s2 + $0x1300] ss:$16 sps:$4 sm:$0xff]   ;;  %v15579_v48 = vld [vmem:[%s22300_s2 + $0x1308] ss:$16 sps:$4 sm:$0xff]  }
 0x3e7   :  { %9520 = vmatprep.subr.bf16.mxu1 %v15533_v58  ;;  %v15584_v58 = vld [vmem:[%s22300_s2 + $0x1324] ss:$16 sps:$4 sm:$0xff]  }
 0x3e8   :  { %9103 = vmatmul.mubr.bf16.vlgmr.msra.gmra.mrb[48].mxu0 %v14047_v62 }
 0x3e9   :  { %9144 = vmatmul.mubr.bf16.vlgmr.msra.gmra.mrb[48].mxu1 %v14047_v62  ;;  %9480 = vmatpush1.bf16.msra.mxu0 %v15528_v1  ;;  %v15587_v1 = vld [vmem:[%s22300_s2 + $0x132c] ss:$16 sps:$4 sm:$0xff]   ;;  %v15582_v62 = vld [vmem:[%s22300_s2 + $0x1320] ss:$16 sps:$4 sm:$0xff]  }
 0x3ea   :  { %9511 = vmatprep.mubr.bf16.mxu0 %v14050_v31  ;;  %9521 = vmatpush1.bf16.msra.mxu1 %v15531_v24  ;;  %v15585_v24 = vld [vmem:[%s22300_s2 + $0x1328] ss:$16 sps:$4 sm:$0xff]  }
 0x3eb   :  { %9552 = vmatprep.mubr.bf16.mxu1 %v14050_v31  ;;  %9481 = vmatprep.subr.bf16.mxu0 %v15536_v60  ;;  %v15590_v60 = vld [vmem:[%s22300_s2 + $0x1344] ss:$16 sps:$4 sm:$0xff]   ;;  %v15593_v31 = vld [vmem:[%s22300_s2 + $0x134c] ss:$16 sps:$4 sm:$0xff]  }
 0x3ec   :  { %9522 = vmatprep.subr.bf16.mxu1 %v15539_v27  ;;  %v15588_v27 = vld [vmem:[%s22300_s2 + $0x1340] ss:$16 sps:$4 sm:$0xff]  }
 0x3ed   :  { %9482 = vmatpush1.bf16.msra.mxu0 %v15534_v40  ;;  %v15591_v40 = vld [vmem:[%s22300_s2 + $0x1348] ss:$16 sps:$4 sm:$0xff]  }
 0x3ee   :  { %9523 = vmatpush1.bf16.msra.mxu1 %v15537_v59  ;;  %9483 = vmatprep.subr.bf16.mxu0 %v15542_v4  ;;  %v15596_v59 = vld [vmem:[%s22300_s2 + $0x1364] ss:$16 sps:$4 sm:$0xff]   ;;  %v15599_v4 = vld [vmem:[%s22300_s2 + $0x136c] ss:$16 sps:$4 sm:$0xff]  }
 0x3ef   :  { %9524 = vmatprep.subr.bf16.mxu1 %v15545_v46  ;;  %v15594_v46 = vld [vmem:[%s22300_s2 + $0x1360] ss:$16 sps:$4 sm:$0xff]  }
 0x3f1   :  { %9484 = vmatpush1.bf16.msra.mxu0 %v15540_v7  ;;  %v15597_v7 = vld [vmem:[%s22300_s2 + $0x1368] ss:$16 sps:$4 sm:$0xff]  }
 0x3f2   :  { %9525 = vmatpush1.bf16.msra.mxu1 %v15543_v19  ;;  %9485 = vmatprep.subr.bf16.mxu0 %v15548_v13  ;;  %v15602_v19 = vld [vmem:[%s22300_s2 + $0x1384] ss:$16 sps:$4 sm:$0xff]   ;;  %v15605_v13 = vld [vmem:[%s22300_s2 + $0x138c] ss:$16 sps:$4 sm:$0xff]  }
 0x3f3   :  { %9526 = vmatprep.subr.bf16.mxu1 %v15551_v39  ;;  %v15600_v39 = vld [vmem:[%s22300_s2 + $0x1380] ss:$16 sps:$4 sm:$0xff]  }
 0x3f5   :  { %9486 = vmatpush1.bf16.msra.mxu0 %v15546_v33  ;;  %v15603_v33 = vld [vmem:[%s22300_s2 + $0x1388] ss:$16 sps:$4 sm:$0xff]  }
 0x3f6   :  { %9527 = vmatpush1.bf16.msra.mxu1 %v15549_v51  ;;  %9487 = vmatprep.subr.bf16.mxu0 %v15554_v5  ;;  %v15608_v51 = vld [vmem:[%s22300_s2 + $0x13a4] ss:$16 sps:$4 sm:$0xff]   ;;  %v15611_v5 = vld [vmem:[%s22300_s2 + $0x13ac] ss:$16 sps:$4 sm:$0xff]  }
 0x3f7   :  { %9528 = vmatprep.subr.bf16.mxu1 %v15557_v43  ;;  %v15606_v43 = vld [vmem:[%s22300_s2 + $0x13a0] ss:$16 sps:$4 sm:$0xff]  }
 0x3f9   :  { %9488 = vmatpush1.bf16.msra.mxu0 %v15552_v25  ;;  %v15609_v25 = vld [vmem:[%s22300_s2 + $0x13a8] ss:$16 sps:$4 sm:$0xff]  }
 0x3fa   :  { %9529 = vmatpush1.bf16.msra.mxu1 %v15555_v20  ;;  %9489 = vmatprep.subr.bf16.mxu0 %v15560_v49  ;;  %v15614_v20 = vld [vmem:[%s22300_s2 + $0x13c4] ss:$16 sps:$4 sm:$0xff]   ;;  %v15617_v49 = vld [vmem:[%s22300_s2 + $0x13cc] ss:$16 sps:$4 sm:$0xff]  }
 0x3fb   :  { %v7877_v32 = vpop.f32.mrb[36].mxu0  ;;  %9530 = vmatprep.subr.bf16.mxu1 %v15563_v18  ;;  %v15612_v18 = vld [vmem:[%s22300_s2 + $0x13c0] ss:$16 sps:$4 sm:$0xff]  }
 0x3fc   :  { %v20640_v26 = vadd.f32 %v20432_v17, %v7877_v32  ;;  %v7918_v41 = vpop.f32.mrb[36].mxu1  ;;  %v7879_v30 = vpop.f32.mrb[37].mxu0  ;;  %v15618_v32 = vld [vmem:[%s22300_s2 + $0x13e0] ss:$16 sps:$4 sm:$0xff]  }
 0x3fd   :  { %v20643_v35 = vadd.f32 %v20435_v12, %v7918_v41  ;;  %v20646_v55 = vadd.f32 %v20438_v8, %v7879_v30  ;;  %v7920_v57 = vpop.f32.mrb[37].mxu1  ;;  %v7881_v29 = vpop.f32.mrb[38].mxu0  ;;  %9490 = vmatpush1.bf16.msra.mxu0 %v15558_v56  ;;  %v15567_v12 = vld [vmem:[%s22300_s2 + $0x12c8] ss:$16 sps:$4 sm:$0xff]   ;;  %v15572_v8 = vld [vmem:[%s22300_s2 + $0x12e4] ss:$16 sps:$4 sm:$0xff]  }
 0x3fe   :  { %v20652_v0 = vadd.f32 %v20444_v61, %v7920_v57  ;;  %v7922_v17 = vpop.f32.mrb[38].mxu1  ;;  %9531 = vmatpush1.bf16.msra.mxu1 %v15561_v15  ;;  %v7882_v45 = vpop.f32.mrb[39].mxu0  ;;  %9491 = vmatprep.subr.bf16.mxu0 %v15566_v44  ;;  %v15570_v61 = vld [vmem:[%s22300_s2 + $0x12e0] ss:$16 sps:$4 sm:$0xff]   ;;  %v15615_v56 = vld [vmem:[%s22300_s2 + $0x13c8] ss:$16 sps:$4 sm:$0xff]   ;;  %v14049_v29 = vpack.c.bf16 %v18931_v14, %v18931_v14 }
 0x3ff   :  { %v7923_v10 = vpop.f32.mrb[39].mxu1  ;;  %9532 = vmatprep.subr.bf16.mxu1 %v15569_v23  ;;  %v15620_v15 = vld [vmem:[%s22300_s2 + $0x13e4] ss:$16 sps:$4 sm:$0xff]   ;;  %v15623_v44 = vld [vmem:[%s22300_s2 + $0x13ec] ss:$16 sps:$4 sm:$0xff]   ;;  %v14052_v45 = vpack.c.bf16 %v18944_v38, %v18944_v38 }
 0x400   :  { %v15621_v23 = vld [vmem:[%s22300_s2 + $0x13e8] ss:$16 sps:$4 sm:$0xff]   ;;  %v15626_v41 = vld [vmem:[%s22300_s2 + $0x1404] ss:$16 sps:$4 sm:$0xff]   ;;  %v15629_v30 = vld [vmem:[%s22300_s2 + $0x140c] ss:$16 sps:$4 sm:$0xff]  }
 0x401   :  { %9492 = vmatpush1.bf16.msra.mxu0 %v15564_v63  ;;  %v15624_v57 = vld [vmem:[%s22300_s2 + $0x1400] ss:$16 sps:$4 sm:$0xff]   ;;  %v15627_v63 = vld [vmem:[%s22300_s2 + $0x1408] ss:$16 sps:$4 sm:$0xff]   ;;  %v15632_v17 = vld [vmem:[%s22300_s2 + $0x1424] ss:$16 sps:$4 sm:$0xff]  }
 0x402   :  { %9533 = vmatpush1.bf16.msra.mxu1 %v15567_v12  ;;  %9493 = vmatprep.subr.bf16.mxu0 %v15572_v8  ;;  %v15635_v12 = vld [vmem:[%s22300_s2 + $0x142c] ss:$16 sps:$4 sm:$0xff]   ;;  %v15630_v14 = vld [vmem:[%s22300_s2 + $0x1420] ss:$16 sps:$4 sm:$0xff]   ;;  %v15633_v8 = vld [vmem:[%s22300_s2 + $0x1428] ss:$16 sps:$4 sm:$0xff]  }
 0x403   :  { %9534 = vmatprep.subr.bf16.mxu1 %v15575_v34  ;;  %v15638_v38 = vld [vmem:[%s22300_s2 + $0x1444] ss:$16 sps:$4 sm:$0xff]   ;;  %v15641_v10 = vld [vmem:[%s22300_s2 + $0x144c] ss:$16 sps:$4 sm:$0xff]   ;;  %v15636_v34 = vld [vmem:[%s22300_s2 + $0x1440] ss:$16 sps:$4 sm:$0xff]  }
 0x405   :  { %9494 = vmatpush1.bf16.msra.mxu0 %v15570_v61  ;;  %v15639_v61 = vld [vmem:[%s22300_s2 + $0x1448] ss:$16 sps:$4 sm:$0xff]  }
 0x406   :  { %9535 = vmatpush1.bf16.msra.mxu1 %v15573_v52  ;;  %9495 = vmatprep.subr.bf16.mxu0 %v15578_v42  ;;  %v15644_v52 = vld [vmem:[%s22300_s2 + $0x1464] ss:$16 sps:$4 sm:$0xff]   ;;  %v15647_v42 = vld [vmem:[%s22300_s2 + $0x146c] ss:$16 sps:$4 sm:$0xff]  }
 0x407   :  { %9536 = vmatprep.subr.bf16.mxu1 %v15581_v47  ;;  %v15642_v47 = vld [vmem:[%s22300_s2 + $0x1460] ss:$16 sps:$4 sm:$0xff]  }
 0x409   :  { %9496 = vmatpush1.bf16.msra.mxu0 %v15576_v37  ;;  %v15645_v37 = vld [vmem:[%s22300_s2 + $0x1468] ss:$16 sps:$4 sm:$0xff]  }
 0x40a   :  { %9537 = vmatpush1.bf16.msra.mxu1 %v15579_v48  ;;  %9497 = vmatprep.subr.bf16.mxu0 %v15584_v58  ;;  %v15650_v48 = vld [vmem:[%s22300_s2 + $0x1484] ss:$16 sps:$4 sm:$0xff]   ;;  %v15653_v58 = vld [vmem:[%s22300_s2 + $0x148c] ss:$16 sps:$4 sm:$0xff]  }
 0x40b   :  { %9538 = vmatprep.subr.bf16.mxu1 %v15587_v1  ;;  %v15648_v1 = vld [vmem:[%s22300_s2 + $0x1480] ss:$16 sps:$4 sm:$0xff]  }
 0x40d   :  { %9498 = vmatpush1.bf16.msra.mxu0 %v15582_v62  ;;  %v15651_v62 = vld [vmem:[%s22300_s2 + $0x1488] ss:$16 sps:$4 sm:$0xff]  }
 0x40e   :  { %9539 = vmatpush1.bf16.msra.mxu1 %v15585_v24  ;;  %9499 = vmatprep.subr.bf16.mxu0 %v15590_v60  ;;  %v15656_v24 = vld [vmem:[%s22300_s2 + $0x14a4] ss:$16 sps:$4 sm:$0xff]   ;;  %v15659_v60 = vld [vmem:[%s22300_s2 + $0x14ac] ss:$16 sps:$4 sm:$0xff]  }
 0x40f   :  { %9540 = vmatprep.subr.bf16.mxu1 %v15593_v31  ;;  %v15654_v31 = vld [vmem:[%s22300_s2 + $0x14a0] ss:$16 sps:$4 sm:$0xff]  }
 0x411   :  { %9500 = vmatpush1.bf16.msra.mxu0 %v15588_v27  ;;  %v15657_v27 = vld [vmem:[%s22300_s2 + $0x14a8] ss:$16 sps:$4 sm:$0xff]  }
 0x412   :  { %9541 = vmatpush1.bf16.msra.mxu1 %v15591_v40  ;;  %9501 = vmatprep.subr.bf16.mxu0 %v15596_v59  ;;  %v15662_v40 = vld [vmem:[%s22300_s2 + $0x14c4] ss:$16 sps:$4 sm:$0xff]  }
 0x413   :  { %9542 = vmatprep.subr.bf16.mxu1 %v15599_v4  ;;  %v15665_v4 = vld [vmem:[%s22300_s2 + $0x14cc] ss:$16 sps:$4 sm:$0xff]  }
 0x415   :  { %9502 = vmatpush1.bf16.msra.mxu0 %v15594_v46 }
 0x416   :  { %9543 = vmatpush1.bf16.msra.mxu1 %v15597_v7  ;;  %9503 = vmatprep.subr.bf16.mxu0 %v15602_v19 }
 0x417   :  { %9544 = vmatprep.subr.bf16.mxu1 %v15605_v13 }
 0x419   :  { %9504 = vmatpush1.bf16.msra.mxu0 %v15600_v39 }
 0x41a   :  { %9545 = vmatpush1.bf16.msra.mxu1 %v15603_v33  ;;  %9505 = vmatprep.subr.bf16.mxu0 %v15608_v51 }
 0x41b   :  { %9546 = vmatprep.subr.bf16.mxu1 %v15611_v5  ;;  %v15660_v5 = vld [vmem:[%s22300_s2 + $0x14c0] ss:$16 sps:$4 sm:$0xff]  }
 0x41d   :  { %9506 = vmatpush1.bf16.msra.mxu0 %v15606_v43 }
 0x41e   :  { %9547 = vmatpush1.bf16.msra.mxu1 %v15609_v25  ;;  %9507 = vmatprep.subr.bf16.mxu0 %v15614_v20 }
 0x41f   :  { %9548 = vmatprep.subr.bf16.mxu1 %v15617_v49  ;;  %v15671_v49 = vld [vmem:[%s22300_s2 + $0x14ec] ss:$16 sps:$4 sm:$0xff]  }
 0x421   :  { %9508 = vmatpush1.bf16.msra.mxu0 %v15612_v18  ;;  %v15669_v18 = vld [vmem:[%s22300_s2 + $0x14e8] ss:$16 sps:$4 sm:$0xff]  }
 0x422   :  { %9549 = vmatpush1.bf16.msra.mxu1 %v15615_v56  ;;  %9509 = vmatprep.subr.bf16.mxu0 %v15620_v15  ;;  %v15674_v56 = vld [vmem:[%s22300_s2 + $0x1504] ss:$16 sps:$4 sm:$0xff]   ;;  %v15677_v15 = vld [vmem:[%s22300_s2 + $0x150c] ss:$16 sps:$4 sm:$0xff]  }
 0x423   :  { %9550 = vmatprep.subr.bf16.mxu1 %v15623_v44  ;;  %v15672_v44 = vld [vmem:[%s22300_s2 + $0x1500] ss:$16 sps:$4 sm:$0xff]  }
 0x425   :  { %9510 = vmatpush1.bf16.msra.mxu0 %v15618_v32  ;;  %v15675_v32 = vld [vmem:[%s22300_s2 + $0x1508] ss:$16 sps:$4 sm:$0xff]  }
 0x426   :  { %9551 = vmatpush1.bf16.msra.mxu1 %v15621_v23  ;;  %9888 = vmatprep.subr.bf16.mxu0 %v15626_v41  ;;  %v15680_v23 = vld [vmem:[%s22300_s2 + $0x1524] ss:$16 sps:$4 sm:$0xff]   ;;  %v15683_v41 = vld [vmem:[%s22300_s2 + $0x152c] ss:$16 sps:$4 sm:$0xff]  }
 0x427   :  { %9929 = vmatprep.subr.bf16.mxu1 %v15629_v30  ;;  %v15678_v30 = vld [vmem:[%s22300_s2 + $0x1520] ss:$16 sps:$4 sm:$0xff]  }
 0x428   :  { %9512 = vmatmul.mubr.bf16.vlgmr.msra.gmra.mrb[52].mxu0 %v14049_v29 }
 0x429   :  { %9553 = vmatmul.mubr.bf16.vlgmr.msra.gmra.mrb[52].mxu1 %v14049_v29  ;;  %9889 = vmatpush1.bf16.msra.mxu0 %v15624_v57  ;;  %v15681_v57 = vld [vmem:[%s22300_s2 + $0x1528] ss:$16 sps:$4 sm:$0xff]   ;;  %v15686_v29 = vld [vmem:[%s22300_s2 + $0x1544] ss:$16 sps:$4 sm:$0xff]  }
 0x42a   :  { %9920 = vmatprep.mubr.bf16.mxu0 %v14052_v45  ;;  %9930 = vmatpush1.bf16.msra.mxu1 %v15627_v63  ;;  %v15689_v63 = vld [vmem:[%s22300_s2 + $0x154c] ss:$16 sps:$4 sm:$0xff]  }
 0x42b   :  { %9961 = vmatprep.mubr.bf16.mxu1 %v14052_v45  ;;  %9890 = vmatprep.subr.bf16.mxu0 %v15632_v17  ;;  %v15684_v17 = vld [vmem:[%s22300_s2 + $0x1540] ss:$16 sps:$4 sm:$0xff]   ;;  %v15687_v45 = vld [vmem:[%s22300_s2 + $0x1548] ss:$16 sps:$4 sm:$0xff]  }
 0x42c   :  { %9931 = vmatprep.subr.bf16.mxu1 %v15635_v12  ;;  %v15692_v12 = vld [vmem:[%s22300_s2 + $0x1564] ss:$16 sps:$4 sm:$0xff]  }
 0x42d   :  { %9891 = vmatpush1.bf16.msra.mxu0 %v15630_v14  ;;  %v15695_v14 = vld [vmem:[%s22300_s2 + $0x156c] ss:$16 sps:$4 sm:$0xff]  }
 0x42e   :  { %9932 = vmatpush1.bf16.msra.mxu1 %v15633_v8  ;;  %9892 = vmatprep.subr.bf16.mxu0 %v15638_v38  ;;  %v15690_v8 = vld [vmem:[%s22300_s2 + $0x1560] ss:$16 sps:$4 sm:$0xff]   ;;  %v15693_v38 = vld [vmem:[%s22300_s2 + $0x1568] ss:$16 sps:$4 sm:$0xff]  }
 0x42f   :  { %9933 = vmatprep.subr.bf16.mxu1 %v15641_v10  ;;  %v15698_v10 = vld [vmem:[%s22300_s2 + $0x1584] ss:$16 sps:$4 sm:$0xff]  }
 0x431   :  { %9893 = vmatpush1.bf16.msra.mxu0 %v15636_v34  ;;  %v15701_v34 = vld [vmem:[%s22300_s2 + $0x158c] ss:$16 sps:$4 sm:$0xff]  }
 0x432   :  { %9934 = vmatpush1.bf16.msra.mxu1 %v15639_v61  ;;  %9894 = vmatprep.subr.bf16.mxu0 %v15644_v52  ;;  %v15696_v61 = vld [vmem:[%s22300_s2 + $0x1580] ss:$16 sps:$4 sm:$0xff]   ;;  %v15699_v52 = vld [vmem:[%s22300_s2 + $0x1588] ss:$16 sps:$4 sm:$0xff]  }
 0x433   :  { %9935 = vmatprep.subr.bf16.mxu1 %v15647_v42  ;;  %v15704_v42 = vld [vmem:[%s22300_s2 + $0x15a4] ss:$16 sps:$4 sm:$0xff]  }
 0x435   :  { %9895 = vmatpush1.bf16.msra.mxu0 %v15642_v47  ;;  %v15707_v47 = vld [vmem:[%s22300_s2 + $0x15ac] ss:$16 sps:$4 sm:$0xff]  }
 0x436   :  { %9936 = vmatpush1.bf16.msra.mxu1 %v15645_v37  ;;  %9896 = vmatprep.subr.bf16.mxu0 %v15650_v48  ;;  %v15702_v37 = vld [vmem:[%s22300_s2 + $0x15a0] ss:$16 sps:$4 sm:$0xff]   ;;  %v15705_v48 = vld [vmem:[%s22300_s2 + $0x15a8] ss:$16 sps:$4 sm:$0xff]  }
 0x437   :  { %9937 = vmatprep.subr.bf16.mxu1 %v15653_v58  ;;  %v15710_v58 = vld [vmem:[%s22300_s2 + $0x15c4] ss:$16 sps:$4 sm:$0xff]  }
 0x439   :  { %9897 = vmatpush1.bf16.msra.mxu0 %v15648_v1  ;;  %v15713_v1 = vld [vmem:[%s22300_s2 + $0x15cc] ss:$16 sps:$4 sm:$0xff]  }
 0x43a   :  { %9938 = vmatpush1.bf16.msra.mxu1 %v15651_v62  ;;  %9898 = vmatprep.subr.bf16.mxu0 %v15656_v24  ;;  %v15708_v62 = vld [vmem:[%s22300_s2 + $0x15c0] ss:$16 sps:$4 sm:$0xff]   ;;  %v15711_v24 = vld [vmem:[%s22300_s2 + $0x15c8] ss:$16 sps:$4 sm:$0xff]  }
 0x43b   :  { %v8286_v59 = vpop.f32.mrb[40].mxu0  ;;  %9939 = vmatprep.subr.bf16.mxu1 %v15659_v60  ;;  %v15716_v60 = vld [vmem:[%s22300_s2 + $0x15e4] ss:$16 sps:$4 sm:$0xff]  }
 0x43c   :  { %v20848_v46 = vadd.f32 %v20640_v26, %v8286_v59  ;;  %v8327_v7 = vpop.f32.mrb[40].mxu1  ;;  %v8288_v19 = vpop.f32.mrb[41].mxu0  ;;  %v15722_v59 = vld [vmem:[%s22300_s2 + $0x1604] ss:$16 sps:$4 sm:$0xff]  }
 0x43d   :  { %v20851_v13 = vadd.f32 %v20643_v35, %v8327_v7  ;;  %v20854_v39 = vadd.f32 %v20646_v55, %v8288_v19  ;;  %v8329_v33 = vpop.f32.mrb[41].mxu1  ;;  %v8290_v51 = vpop.f32.mrb[42].mxu0  ;;  %9899 = vmatpush1.bf16.msra.mxu0 %v15654_v31  ;;  %v15663_v35 = vld [vmem:[%s22300_s2 + $0x14c8] ss:$16 sps:$4 sm:$0xff]   ;;  %v15668_v55 = vld [vmem:[%s22300_s2 + $0x14e4] ss:$16 sps:$4 sm:$0xff]   ;;  %v14051_v19 = vpack.c.bf16 %v18947_v54, %v18947_v54 }
 0x43e   :  { %v20860_v43 = vadd.f32 %v20652_v0, %v8329_v33  ;;  %v8331_v26 = vpop.f32.mrb[42].mxu1  ;;  %9940 = vmatpush1.bf16.msra.mxu1 %v15657_v27  ;;  %v8291_v25 = vpop.f32.mrb[43].mxu0  ;;  %9900 = vmatprep.subr.bf16.mxu0 %v15662_v40  ;;  %v15666_v0 = vld [vmem:[%s22300_s2 + $0x14e0] ss:$16 sps:$4 sm:$0xff]   ;;  %v15719_v31 = vld [vmem:[%s22300_s2 + $0x15ec] ss:$16 sps:$4 sm:$0xff]  }
 0x43f   :  { %v8332_v20 = vpop.f32.mrb[43].mxu1  ;;  %9941 = vmatprep.subr.bf16.mxu1 %v15665_v4  ;;  %v15714_v27 = vld [vmem:[%s22300_s2 + $0x15e0] ss:$16 sps:$4 sm:$0xff]   ;;  %v15717_v40 = vld [vmem:[%s22300_s2 + $0x15e8] ss:$16 sps:$4 sm:$0xff]  }
 0x440   :  { %v15725_v4 = vld [vmem:[%s22300_s2 + $0x160c] ss:$16 sps:$4 sm:$0xff]   ;;  %v15720_v7 = vld [vmem:[%s22300_s2 + $0x1600] ss:$16 sps:$4 sm:$0xff]   ;;  %v15723_v33 = vld [vmem:[%s22300_s2 + $0x1608] ss:$16 sps:$4 sm:$0xff]  }
 0x441   :  { %9901 = vmatpush1.bf16.msra.mxu0 %v15660_v5  ;;  %v15728_v51 = vld [vmem:[%s22300_s2 + $0x1624] ss:$16 sps:$4 sm:$0xff]   ;;  %v14054_v5 = vpack.c.bf16 %v18998_v53, %v18998_v53  ;;  %v15731_v26 = vld [vmem:[%s22300_s2 + $0x162c] ss:$16 sps:$4 sm:$0xff]   ;;  %v15726_v54 = vld [vmem:[%s22300_s2 + $0x1620] ss:$16 sps:$4 sm:$0xff]  }
 0x442   :  { %9942 = vmatpush1.bf16.msra.mxu1 %v15663_v35  ;;  %9902 = vmatprep.subr.bf16.mxu0 %v15668_v55  ;;  %v15729_v25 = vld [vmem:[%s22300_s2 + $0x1628] ss:$16 sps:$4 sm:$0xff]   ;;  %v15734_v53 = vld [vmem:[%s22300_s2 + $0x1644] ss:$16 sps:$4 sm:$0xff]   ;;  %v15737_v35 = vld [vmem:[%s22300_s2 + $0x164c] ss:$16 sps:$4 sm:$0xff]  }
 0x443   :  { %9943 = vmatprep.subr.bf16.mxu1 %v15671_v49  ;;  %v15732_v55 = vld [vmem:[%s22300_s2 + $0x1640] ss:$16 sps:$4 sm:$0xff]   ;;  %v15735_v20 = vld [vmem:[%s22300_s2 + $0x1648] ss:$16 sps:$4 sm:$0xff]   ;;  %v15740_v49 = vld [vmem:[%s22300_s2 + $0x1664] ss:$16 sps:$4 sm:$0xff]  }
 0x445   :  { %9903 = vmatpush1.bf16.msra.mxu0 %v15666_v0  ;;  %v15743_v0 = vld [vmem:[%s22300_s2 + $0x166c] ss:$16 sps:$4 sm:$0xff]  }
 0x446   :  { %9944 = vmatpush1.bf16.msra.mxu1 %v15669_v18  ;;  %9904 = vmatprep.subr.bf16.mxu0 %v15674_v56  ;;  %v15738_v18 = vld [vmem:[%s22300_s2 + $0x1660] ss:$16 sps:$4 sm:$0xff]   ;;  %v15741_v56 = vld [vmem:[%s22300_s2 + $0x1668] ss:$16 sps:$4 sm:$0xff]  }
 0x447   :  { %9945 = vmatprep.subr.bf16.mxu1 %v15677_v15  ;;  %v15746_v15 = vld [vmem:[%s22300_s2 + $0x1684] ss:$16 sps:$4 sm:$0xff]  }
 0x449   :  { %9905 = vmatpush1.bf16.msra.mxu0 %v15672_v44  ;;  %v15749_v44 = vld [vmem:[%s22300_s2 + $0x168c] ss:$16 sps:$4 sm:$0xff]  }
 0x44a   :  { %9946 = vmatpush1.bf16.msra.mxu1 %v15675_v32  ;;  %9906 = vmatprep.subr.bf16.mxu0 %v15680_v23  ;;  %v15744_v32 = vld [vmem:[%s22300_s2 + $0x1680] ss:$16 sps:$4 sm:$0xff]   ;;  %v15747_v23 = vld [vmem:[%s22300_s2 + $0x1688] ss:$16 sps:$4 sm:$0xff]  }
 0x44b   :  { %9947 = vmatprep.subr.bf16.mxu1 %v15683_v41  ;;  %v15752_v41 = vld [vmem:[%s22300_s2 + $0x16a4] ss:$16 sps:$4 sm:$0xff]  }
 0x44d   :  { %9907 = vmatpush1.bf16.msra.mxu0 %v15678_v30  ;;  %v15755_v30 = vld [vmem:[%s22300_s2 + $0x16ac] ss:$16 sps:$4 sm:$0xff]  }
 0x44e   :  { %9948 = vmatpush1.bf16.msra.mxu1 %v15681_v57  ;;  %9908 = vmatprep.subr.bf16.mxu0 %v15686_v29  ;;  %v15750_v57 = vld [vmem:[%s22300_s2 + $0x16a0] ss:$16 sps:$4 sm:$0xff]   ;;  %v15753_v29 = vld [vmem:[%s22300_s2 + $0x16a8] ss:$16 sps:$4 sm:$0xff]  }
 0x44f   :  { %9949 = vmatprep.subr.bf16.mxu1 %v15689_v63  ;;  %v15758_v63 = vld [vmem:[%s22300_s2 + $0x16c4] ss:$16 sps:$4 sm:$0xff]  }
 0x451   :  { %9909 = vmatpush1.bf16.msra.mxu0 %v15684_v17 }
 0x452   :  { %9950 = vmatpush1.bf16.msra.mxu1 %v15687_v45  ;;  %9910 = vmatprep.subr.bf16.mxu0 %v15692_v12  ;;  %v15761_v45 = vld [vmem:[%s22300_s2 + $0x16cc] ss:$16 sps:$4 sm:$0xff]  }
 0x453   :  { %9951 = vmatprep.subr.bf16.mxu1 %v15695_v14 }
 0x455   :  { %9911 = vmatpush1.bf16.msra.mxu0 %v15690_v8 }
 0x456   :  { %9952 = vmatpush1.bf16.msra.mxu1 %v15693_v38  ;;  %9912 = vmatprep.subr.bf16.mxu0 %v15698_v10 }
 0x457   :  { %9953 = vmatprep.subr.bf16.mxu1 %v15701_v34 }
 0x459   :  { %9913 = vmatpush1.bf16.msra.mxu0 %v15696_v61 }
 0x45a   :  { %9954 = vmatpush1.bf16.msra.mxu1 %v15699_v52  ;;  %9914 = vmatprep.subr.bf16.mxu0 %v15704_v42  ;;  %v15756_v52 = vld [vmem:[%s22300_s2 + $0x16c0] ss:$16 sps:$4 sm:$0xff]  }
 0x45b   :  { %9955 = vmatprep.subr.bf16.mxu1 %v15707_v47 }
 0x45d   :  { %9915 = vmatpush1.bf16.msra.mxu0 %v15702_v37 }
 0x45e   :  { %9956 = vmatpush1.bf16.msra.mxu1 %v15705_v48  ;;  %9916 = vmatprep.subr.bf16.mxu0 %v15710_v58  ;;  %v15767_v48 = vld [vmem:[%s22300_s2 + $0x16ec] ss:$16 sps:$4 sm:$0xff]   ;;  %v15765_v58 = vld [vmem:[%s22300_s2 + $0x16e8] ss:$16 sps:$4 sm:$0xff]  }
 0x45f   :  { %9957 = vmatprep.subr.bf16.mxu1 %v15713_v1  ;;  %v15770_v1 = vld [vmem:[%s22300_s2 + $0x1704] ss:$16 sps:$4 sm:$0xff]  }
 0x461   :  { %9917 = vmatpush1.bf16.msra.mxu0 %v15708_v62  ;;  %v15773_v62 = vld [vmem:[%s22300_s2 + $0x170c] ss:$16 sps:$4 sm:$0xff]  }
 0x462   :  { %9958 = vmatpush1.bf16.msra.mxu1 %v15711_v24  ;;  %9918 = vmatprep.subr.bf16.mxu0 %v15716_v60  ;;  %v15768_v24 = vld [vmem:[%s22300_s2 + $0x1700] ss:$16 sps:$4 sm:$0xff]   ;;  %v15771_v60 = vld [vmem:[%s22300_s2 + $0x1708] ss:$16 sps:$4 sm:$0xff]  }
 0x463   :  { %9959 = vmatprep.subr.bf16.mxu1 %v15719_v31  ;;  %v15776_v31 = vld [vmem:[%s22300_s2 + $0x1724] ss:$16 sps:$4 sm:$0xff]  }
 0x465   :  { %9919 = vmatpush1.bf16.msra.mxu0 %v15714_v27  ;;  %v15779_v27 = vld [vmem:[%s22300_s2 + $0x172c] ss:$16 sps:$4 sm:$0xff]  }
 0x466   :  { %9960 = vmatpush1.bf16.msra.mxu1 %v15717_v40  ;;  %10297 = vmatprep.subr.bf16.mxu0 %v15722_v59  ;;  %v15774_v40 = vld [vmem:[%s22300_s2 + $0x1720] ss:$16 sps:$4 sm:$0xff]   ;;  %v15777_v59 = vld [vmem:[%s22300_s2 + $0x1728] ss:$16 sps:$4 sm:$0xff]  }
 0x467   :  { %10338 = vmatprep.subr.bf16.mxu1 %v15725_v4  ;;  %v15782_v4 = vld [vmem:[%s22300_s2 + $0x1744] ss:$16 sps:$4 sm:$0xff]  }
 0x468   :  { %9921 = vmatmul.mubr.bf16.vlgmr.msra.gmra.mrb[56].mxu0 %v14051_v19 }
 0x469   :  { %9962 = vmatmul.mubr.bf16.vlgmr.msra.gmra.mrb[56].mxu1 %v14051_v19  ;;  %10298 = vmatpush1.bf16.msra.mxu0 %v15720_v7  ;;  %v15785_v7 = vld [vmem:[%s22300_s2 + $0x174c] ss:$16 sps:$4 sm:$0xff]   ;;  %v15780_v19 = vld [vmem:[%s22300_s2 + $0x1740] ss:$16 sps:$4 sm:$0xff]  }
 0x46a   :  { %10329 = vmatprep.mubr.bf16.mxu0 %v14054_v5  ;;  %10339 = vmatpush1.bf16.msra.mxu1 %v15723_v33  ;;  %v15783_v33 = vld [vmem:[%s22300_s2 + $0x1748] ss:$16 sps:$4 sm:$0xff]  }
 0x46b   :  { %10370 = vmatprep.mubr.bf16.mxu1 %v14054_v5  ;;  %10299 = vmatprep.subr.bf16.mxu0 %v15728_v51  ;;  %v15788_v51 = vld [vmem:[%s22300_s2 + $0x1764] ss:$16 sps:$4 sm:$0xff]   ;;  %v15791_v5 = vld [vmem:[%s22300_s2 + $0x176c] ss:$16 sps:$4 sm:$0xff]  }
 0x46c   :  { %10340 = vmatprep.subr.bf16.mxu1 %v15731_v26  ;;  %v15786_v26 = vld [vmem:[%s22300_s2 + $0x1760] ss:$16 sps:$4 sm:$0xff]  }
 0x46d   :  { %10300 = vmatpush1.bf16.msra.mxu0 %v15726_v54  ;;  %v15789_v54 = vld [vmem:[%s22300_s2 + $0x1768] ss:$16 sps:$4 sm:$0xff]  }
 0x46e   :  { %10341 = vmatpush1.bf16.msra.mxu1 %v15729_v25  ;;  %10301 = vmatprep.subr.bf16.mxu0 %v15734_v53  ;;  %v15794_v25 = vld [vmem:[%s22300_s2 + $0x1784] ss:$16 sps:$4 sm:$0xff]   ;;  %v15797_v53 = vld [vmem:[%s22300_s2 + $0x178c] ss:$16 sps:$4 sm:$0xff]  }
 0x46f   :  { %10342 = vmatprep.subr.bf16.mxu1 %v15737_v35  ;;  %v15792_v35 = vld [vmem:[%s22300_s2 + $0x1780] ss:$16 sps:$4 sm:$0xff]  }
 0x471   :  { %10302 = vmatpush1.bf16.msra.mxu0 %v15732_v55  ;;  %v15795_v55 = vld [vmem:[%s22300_s2 + $0x1788] ss:$16 sps:$4 sm:$0xff]  }
 0x472   :  { %10343 = vmatpush1.bf16.msra.mxu1 %v15735_v20  ;;  %10303 = vmatprep.subr.bf16.mxu0 %v15740_v49  ;;  %v15800_v20 = vld [vmem:[%s22300_s2 + $0x17a4] ss:$16 sps:$4 sm:$0xff]   ;;  %v15803_v49 = vld [vmem:[%s22300_s2 + $0x17ac] ss:$16 sps:$4 sm:$0xff]  }
 0x473   :  { %10344 = vmatprep.subr.bf16.mxu1 %v15743_v0  ;;  %v15798_v0 = vld [vmem:[%s22300_s2 + $0x17a0] ss:$16 sps:$4 sm:$0xff]  }
 0x475   :  { %10304 = vmatpush1.bf16.msra.mxu0 %v15738_v18  ;;  %v15801_v18 = vld [vmem:[%s22300_s2 + $0x17a8] ss:$16 sps:$4 sm:$0xff]  }
 0x476   :  { %10345 = vmatpush1.bf16.msra.mxu1 %v15741_v56  ;;  %10305 = vmatprep.subr.bf16.mxu0 %v15746_v15  ;;  %v15806_v56 = vld [vmem:[%s22300_s2 + $0x17c4] ss:$16 sps:$4 sm:$0xff]   ;;  %v15809_v15 = vld [vmem:[%s22300_s2 + $0x17cc] ss:$16 sps:$4 sm:$0xff]  }
 0x477   :  { %10346 = vmatprep.subr.bf16.mxu1 %v15749_v44  ;;  %v15804_v44 = vld [vmem:[%s22300_s2 + $0x17c0] ss:$16 sps:$4 sm:$0xff]  }
 0x479   :  { %10306 = vmatpush1.bf16.msra.mxu0 %v15744_v32  ;;  %v15807_v32 = vld [vmem:[%s22300_s2 + $0x17c8] ss:$16 sps:$4 sm:$0xff]  }
 0x47a   :  { %10347 = vmatpush1.bf16.msra.mxu1 %v15747_v23  ;;  %10307 = vmatprep.subr.bf16.mxu0 %v15752_v41  ;;  %v15812_v23 = vld [vmem:[%s22300_s2 + $0x17e4] ss:$16 sps:$4 sm:$0xff]   ;;  %v15815_v41 = vld [vmem:[%s22300_s2 + $0x17ec] ss:$16 sps:$4 sm:$0xff]  }
 0x47b   :  { %v8695_v17 = vpop.f32.mrb[44].mxu0  ;;  %10348 = vmatprep.subr.bf16.mxu1 %v15755_v30  ;;  %v15810_v30 = vld [vmem:[%s22300_s2 + $0x17e0] ss:$16 sps:$4 sm:$0xff]  }
 0x47c   :  { %v21056_v12 = vadd.f32 %v20848_v46, %v8695_v17  ;;  %v8736_v14 = vpop.f32.mrb[44].mxu1  ;;  %v8697_v8 = vpop.f32.mrb[45].mxu0  ;;  %v15816_v17 = vld [vmem:[%s22300_s2 + $0x1800] ss:$16 sps:$4 sm:$0xff]  }
 0x47d   :  { %v21059_v38 = vadd.f32 %v20851_v13, %v8736_v14  ;;  %v21062_v10 = vadd.f32 %v20854_v39, %v8697_v8  ;;  %v8738_v34 = vpop.f32.mrb[45].mxu1  ;;  %v8699_v61 = vpop.f32.mrb[46].mxu0  ;;  %10308 = vmatpush1.bf16.msra.mxu0 %v15750_v57  ;;  %v15759_v13 = vld [vmem:[%s22300_s2 + $0x16c8] ss:$16 sps:$4 sm:$0xff]   ;;  %v15764_v39 = vld [vmem:[%s22300_s2 + $0x16e4] ss:$16 sps:$4 sm:$0xff]  }
 0x47e   :  { %v21068_v42 = vadd.f32 %v20860_v43, %v8738_v34  ;;  %v8740_v46 = vpop.f32.mrb[46].mxu1  ;;  %10349 = vmatpush1.bf16.msra.mxu1 %v15753_v29  ;;  %v8700_v47 = vpop.f32.mrb[47].mxu0  ;;  %10309 = vmatprep.subr.bf16.mxu0 %v15758_v63  ;;  %v15762_v43 = vld [vmem:[%s22300_s2 + $0x16e0] ss:$16 sps:$4 sm:$0xff]   ;;  %v15813_v57 = vld [vmem:[%s22300_s2 + $0x17e8] ss:$16 sps:$4 sm:$0xff]   ;;  %v14056_v34 = vpack.c.bf16 %v18982_v16, %v18982_v16 }
 0x47f   :  { %v8741_v37 = vpop.f32.mrb[47].mxu1  ;;  %10350 = vmatprep.subr.bf16.mxu1 %v15761_v45  ;;  %v15818_v29 = vld [vmem:[%s22300_s2 + $0x1804] ss:$16 sps:$4 sm:$0xff]   ;;  %v15821_v63 = vld [vmem:[%s22300_s2 + $0x180c] ss:$16 sps:$4 sm:$0xff]   ;;  %v14053_v45 = vpack.c.bf16 %v19001_v28, %v19001_v28 }
 0x480   :  { %v15819_v14 = vld [vmem:[%s22300_s2 + $0x1808] ss:$16 sps:$4 sm:$0xff]   ;;  %v15824_v8 = vld [vmem:[%s22300_s2 + $0x1824] ss:$16 sps:$4 sm:$0xff]   ;;  %v15827_v61 = vld [vmem:[%s22300_s2 + $0x182c] ss:$16 sps:$4 sm:$0xff]  }
 0x481   :  { %10310 = vmatpush1.bf16.msra.mxu0 %v15756_v52  ;;  %v15822_v28 = vld [vmem:[%s22300_s2 + $0x1820] ss:$16 sps:$4 sm:$0xff]   ;;  %v15825_v52 = vld [vmem:[%s22300_s2 + $0x1828] ss:$16 sps:$4 sm:$0xff]   ;;  %v15830_v16 = vld [vmem:[%s22300_s2 + $0x1844] ss:$16 sps:$4 sm:$0xff]  }
 0x482   :  { %10351 = vmatpush1.bf16.msra.mxu1 %v15759_v13  ;;  %10311 = vmatprep.subr.bf16.mxu0 %v15764_v39  ;;  %v15833_v46 = vld [vmem:[%s22300_s2 + $0x184c] ss:$16 sps:$4 sm:$0xff]   ;;  %v15828_v47 = vld [vmem:[%s22300_s2 + $0x1840] ss:$16 sps:$4 sm:$0xff]   ;;  %v15831_v13 = vld [vmem:[%s22300_s2 + $0x1848] ss:$16 sps:$4 sm:$0xff]  }
 0x483   :  { %10352 = vmatprep.subr.bf16.mxu1 %v15767_v48  ;;  %v15836_v39 = vld [vmem:[%s22300_s2 + $0x1864] ss:$16 sps:$4 sm:$0xff]   ;;  %v15839_v37 = vld [vmem:[%s22300_s2 + $0x186c] ss:$16 sps:$4 sm:$0xff]   ;;  %v15834_v48 = vld [vmem:[%s22300_s2 + $0x1860] ss:$16 sps:$4 sm:$0xff]  }
 0x485   :  { %10312 = vmatpush1.bf16.msra.mxu0 %v15762_v43  ;;  %v15837_v43 = vld [vmem:[%s22300_s2 + $0x1868] ss:$16 sps:$4 sm:$0xff]  }
 0x486   :  { %10353 = vmatpush1.bf16.msra.mxu1 %v15765_v58  ;;  %10313 = vmatprep.subr.bf16.mxu0 %v15770_v1  ;;  %v15842_v58 = vld [vmem:[%s22300_s2 + $0x1884] ss:$16 sps:$4 sm:$0xff]   ;;  %v15845_v1 = vld [vmem:[%s22300_s2 + $0x188c] ss:$16 sps:$4 sm:$0xff]  }
 0x487   :  { %10354 = vmatprep.subr.bf16.mxu1 %v15773_v62  ;;  %v15840_v62 = vld [vmem:[%s22300_s2 + $0x1880] ss:$16 sps:$4 sm:$0xff]  }
 0x489   :  { %10314 = vmatpush1.bf16.msra.mxu0 %v15768_v24  ;;  %v15843_v24 = vld [vmem:[%s22300_s2 + $0x1888] ss:$16 sps:$4 sm:$0xff]  }
 0x48a   :  { %10355 = vmatpush1.bf16.msra.mxu1 %v15771_v60  ;;  %10315 = vmatprep.subr.bf16.mxu0 %v15776_v31  ;;  %v15848_v60 = vld [vmem:[%s22300_s2 + $0x18a4] ss:$16 sps:$4 sm:$0xff]   ;;  %v15851_v31 = vld [vmem:[%s22300_s2 + $0x18ac] ss:$16 sps:$4 sm:$0xff]  }
 0x48b   :  { %10356 = vmatprep.subr.bf16.mxu1 %v15779_v27  ;;  %v15846_v27 = vld [vmem:[%s22300_s2 + $0x18a0] ss:$16 sps:$4 sm:$0xff]  }
 0x48d   :  { %10316 = vmatpush1.bf16.msra.mxu0 %v15774_v40  ;;  %v15849_v40 = vld [vmem:[%s22300_s2 + $0x18a8] ss:$16 sps:$4 sm:$0xff]  }
 0x48e   :  { %10357 = vmatpush1.bf16.msra.mxu1 %v15777_v59  ;;  %10317 = vmatprep.subr.bf16.mxu0 %v15782_v4  ;;  %v15854_v59 = vld [vmem:[%s22300_s2 + $0x18c4] ss:$16 sps:$4 sm:$0xff]  }
 0x48f   :  { %10358 = vmatprep.subr.bf16.mxu1 %v15785_v7  ;;  %v15857_v7 = vld [vmem:[%s22300_s2 + $0x18cc] ss:$16 sps:$4 sm:$0xff]  }
 0x491   :  { %10318 = vmatpush1.bf16.msra.mxu0 %v15780_v19 }
 0x492   :  { %10359 = vmatpush1.bf16.msra.mxu1 %v15783_v33  ;;  %10319 = vmatprep.subr.bf16.mxu0 %v15788_v51 }
 0x493   :  { %10360 = vmatprep.subr.bf16.mxu1 %v15791_v5 }
 0x495   :  { %10320 = vmatpush1.bf16.msra.mxu0 %v15786_v26 }
 0x496   :  { %10361 = vmatpush1.bf16.msra.mxu1 %v15789_v54  ;;  %10321 = vmatprep.subr.bf16.mxu0 %v15794_v25 }
 0x497   :  { %10362 = vmatprep.subr.bf16.mxu1 %v15797_v53  ;;  %v15852_v53 = vld [vmem:[%s22300_s2 + $0x18c0] ss:$16 sps:$4 sm:$0xff]  }
 0x499   :  { %10322 = vmatpush1.bf16.msra.mxu0 %v15792_v35 }
 0x49a   :  { %10363 = vmatpush1.bf16.msra.mxu1 %v15795_v55  ;;  %10323 = vmatprep.subr.bf16.mxu0 %v15800_v20 }
 0x49b   :  { %10364 = vmatprep.subr.bf16.mxu1 %v15803_v49  ;;  %v15863_v49 = vld [vmem:[%s22300_s2 + $0x18ec] ss:$16 sps:$4 sm:$0xff]  }
 0x49d   :  { %10324 = vmatpush1.bf16.msra.mxu0 %v15798_v0  ;;  %v15861_v0 = vld [vmem:[%s22300_s2 + $0x18e8] ss:$16 sps:$4 sm:$0xff]  }
 0x49e   :  { %10365 = vmatpush1.bf16.msra.mxu1 %v15801_v18  ;;  %10325 = vmatprep.subr.bf16.mxu0 %v15806_v56  ;;  %v15866_v18 = vld [vmem:[%s22300_s2 + $0x1904] ss:$16 sps:$4 sm:$0xff]   ;;  %v15869_v56 = vld [vmem:[%s22300_s2 + $0x190c] ss:$16 sps:$4 sm:$0xff]  }
 0x49f   :  { %10366 = vmatprep.subr.bf16.mxu1 %v15809_v15  ;;  %v15864_v15 = vld [vmem:[%s22300_s2 + $0x1900] ss:$16 sps:$4 sm:$0xff]  }
 0x4a1   :  { %10326 = vmatpush1.bf16.msra.mxu0 %v15804_v44  ;;  %v15867_v44 = vld [vmem:[%s22300_s2 + $0x1908] ss:$16 sps:$4 sm:$0xff]  }
 0x4a2   :  { %10367 = vmatpush1.bf16.msra.mxu1 %v15807_v32  ;;  %10327 = vmatprep.subr.bf16.mxu0 %v15812_v23  ;;  %v15872_v32 = vld [vmem:[%s22300_s2 + $0x1924] ss:$16 sps:$4 sm:$0xff]   ;;  %v15875_v23 = vld [vmem:[%s22300_s2 + $0x192c] ss:$16 sps:$4 sm:$0xff]  }
 0x4a3   :  { %10368 = vmatprep.subr.bf16.mxu1 %v15815_v41  ;;  %v15870_v41 = vld [vmem:[%s22300_s2 + $0x1920] ss:$16 sps:$4 sm:$0xff]  }
 0x4a5   :  { %10328 = vmatpush1.bf16.msra.mxu0 %v15810_v30  ;;  %v15873_v30 = vld [vmem:[%s22300_s2 + $0x1928] ss:$16 sps:$4 sm:$0xff]  }
 0x4a6   :  { %10369 = vmatpush1.bf16.msra.mxu1 %v15813_v57  ;;  %10706 = vmatprep.subr.bf16.mxu0 %v15818_v29  ;;  %v15878_v57 = vld [vmem:[%s22300_s2 + $0x1944] ss:$16 sps:$4 sm:$0xff]   ;;  %v15881_v29 = vld [vmem:[%s22300_s2 + $0x194c] ss:$16 sps:$4 sm:$0xff]  }
 0x4a7   :  { %10747 = vmatprep.subr.bf16.mxu1 %v15821_v63  ;;  %v15876_v63 = vld [vmem:[%s22300_s2 + $0x1940] ss:$16 sps:$4 sm:$0xff]  }
 0x4a8   :  { %10330 = vmatmul.mubr.bf16.vlgmr.msra.gmra.mrb[60].mxu0 %v14053_v45 }
 0x4a9   :  { %10371 = vmatmul.mubr.bf16.vlgmr.msra.gmra.mrb[60].mxu1 %v14053_v45  ;;  %10707 = vmatpush1.bf16.msra.mxu0 %v15816_v17  ;;  %v15879_v17 = vld [vmem:[%s22300_s2 + $0x1948] ss:$16 sps:$4 sm:$0xff]   ;;  %v15884_v45 = vld [vmem:[%s22300_s2 + $0x1964] ss:$16 sps:$4 sm:$0xff]  }
 0x4aa   :  { %10738 = vmatprep.mubr.bf16.mxu0 %v14056_v34  ;;  %10748 = vmatpush1.bf16.msra.mxu1 %v15819_v14  ;;  %v15887_v14 = vld [vmem:[%s22300_s2 + $0x196c] ss:$16 sps:$4 sm:$0xff]  }
 0x4ab   :  { %10779 = vmatprep.mubr.bf16.mxu1 %v14056_v34  ;;  %10708 = vmatprep.subr.bf16.mxu0 %v15824_v8  ;;  %v15882_v8 = vld [vmem:[%s22300_s2 + $0x1960] ss:$16 sps:$4 sm:$0xff]   ;;  %v15885_v34 = vld [vmem:[%s22300_s2 + $0x1968] ss:$16 sps:$4 sm:$0xff]  }
 0x4ac   :  { %10749 = vmatprep.subr.bf16.mxu1 %v15827_v61  ;;  %v15890_v61 = vld [vmem:[%s22300_s2 + $0x1984] ss:$16 sps:$4 sm:$0xff]  }
 0x4ad   :  { %10709 = vmatpush1.bf16.msra.mxu0 %v15822_v28  ;;  %v15893_v28 = vld [vmem:[%s22300_s2 + $0x198c] ss:$16 sps:$4 sm:$0xff]  }
 0x4ae   :  { %10750 = vmatpush1.bf16.msra.mxu1 %v15825_v52  ;;  %10710 = vmatprep.subr.bf16.mxu0 %v15830_v16  ;;  %v15888_v52 = vld [vmem:[%s22300_s2 + $0x1980] ss:$16 sps:$4 sm:$0xff]   ;;  %v15891_v16 = vld [vmem:[%s22300_s2 + $0x1988] ss:$16 sps:$4 sm:$0xff]  }
 0x4af   :  { %10751 = vmatprep.subr.bf16.mxu1 %v15833_v46  ;;  %v15896_v46 = vld [vmem:[%s22300_s2 + $0x19a4] ss:$16 sps:$4 sm:$0xff]  }
 0x4b1   :  { %10711 = vmatpush1.bf16.msra.mxu0 %v15828_v47  ;;  %v15899_v47 = vld [vmem:[%s22300_s2 + $0x19ac] ss:$16 sps:$4 sm:$0xff]  }
 0x4b2   :  { %10752 = vmatpush1.bf16.msra.mxu1 %v15831_v13  ;;  %10712 = vmatprep.subr.bf16.mxu0 %v15836_v39  ;;  %v15894_v13 = vld [vmem:[%s22300_s2 + $0x19a0] ss:$16 sps:$4 sm:$0xff]   ;;  %v15897_v39 = vld [vmem:[%s22300_s2 + $0x19a8] ss:$16 sps:$4 sm:$0xff]  }
 0x4b3   :  { %10753 = vmatprep.subr.bf16.mxu1 %v15839_v37  ;;  %v15902_v37 = vld [vmem:[%s22300_s2 + $0x19c4] ss:$16 sps:$4 sm:$0xff]  }
 0x4b5   :  { %10713 = vmatpush1.bf16.msra.mxu0 %v15834_v48  ;;  %v15905_v48 = vld [vmem:[%s22300_s2 + $0x19cc] ss:$16 sps:$4 sm:$0xff]  }
 0x4b6   :  { %10754 = vmatpush1.bf16.msra.mxu1 %v15837_v43  ;;  %10714 = vmatprep.subr.bf16.mxu0 %v15842_v58  ;;  %v15900_v43 = vld [vmem:[%s22300_s2 + $0x19c0] ss:$16 sps:$4 sm:$0xff]   ;;  %v15903_v58 = vld [vmem:[%s22300_s2 + $0x19c8] ss:$16 sps:$4 sm:$0xff]  }
 0x4b7   :  { %10755 = vmatprep.subr.bf16.mxu1 %v15845_v1  ;;  %v15908_v1 = vld [vmem:[%s22300_s2 + $0x19e4] ss:$16 sps:$4 sm:$0xff]  }
 0x4b9   :  { %10715 = vmatpush1.bf16.msra.mxu0 %v15840_v62  ;;  %v15911_v62 = vld [vmem:[%s22300_s2 + $0x19ec] ss:$16 sps:$4 sm:$0xff]  }
 0x4ba   :  { %10756 = vmatpush1.bf16.msra.mxu1 %v15843_v24  ;;  %10716 = vmatprep.subr.bf16.mxu0 %v15848_v60  ;;  %v15906_v24 = vld [vmem:[%s22300_s2 + $0x19e0] ss:$16 sps:$4 sm:$0xff]   ;;  %v15909_v60 = vld [vmem:[%s22300_s2 + $0x19e8] ss:$16 sps:$4 sm:$0xff]  }
 0x4bb   :  { %v9104_v4 = vpop.f32.mrb[48].mxu0  ;;  %10757 = vmatprep.subr.bf16.mxu1 %v15851_v31  ;;  %v15914_v31 = vld [vmem:[%s22300_s2 + $0x1a04] ss:$16 sps:$4 sm:$0xff]  }
 0x4bc   :  { %v21264_v19 = vadd.f32 %v21056_v12, %v9104_v4  ;;  %v9145_v33 = vpop.f32.mrb[48].mxu1  ;;  %v9106_v51 = vpop.f32.mrb[49].mxu0  ;;  %v15915_v4 = vld [vmem:[%s22300_s2 + $0x1a08] ss:$16 sps:$4 sm:$0xff]  }
 0x4bd   :  { %v21267_v5 = vadd.f32 %v21059_v38, %v9145_v33  ;;  %v21270_v26 = vadd.f32 %v21062_v10, %v9106_v51  ;;  %v9147_v54 = vpop.f32.mrb[49].mxu1  ;;  %v9108_v25 = vpop.f32.mrb[50].mxu0  ;;  %10717 = vmatpush1.bf16.msra.mxu0 %v15846_v27  ;;  %v15855_v38 = vld [vmem:[%s22300_s2 + $0x18c8] ss:$16 sps:$4 sm:$0xff]   ;;  %v15860_v10 = vld [vmem:[%s22300_s2 + $0x18e4] ss:$16 sps:$4 sm:$0xff]   ;;  %v14058_v33 = vpack.c.bf16 %v19020_v50, %v19020_v50 }
 0x4be   :  { %v21276_v35 = vadd.f32 %v21068_v42, %v9147_v54  ;;  %v9149_v12 = vpop.f32.mrb[50].mxu1  ;;  %10758 = vmatpush1.bf16.msra.mxu1 %v15849_v40  ;;  %v9109_v55 = vpop.f32.mrb[51].mxu0  ;;  %10718 = vmatprep.subr.bf16.mxu0 %v15854_v59  ;;  %v15858_v42 = vld [vmem:[%s22300_s2 + $0x18e0] ss:$16 sps:$4 sm:$0xff]   ;;  %v15917_v27 = vld [vmem:[%s22300_s2 + $0x1a0c] ss:$16 sps:$4 sm:$0xff]   ;;  %v14055_v59 = vpack.c.bf16 %v18985_v11, %v18985_v11 }
 0x4bf   :  { %v9150_v20 = vpop.f32.mrb[51].mxu1  ;;  %10759 = vmatprep.subr.bf16.mxu1 %v15857_v7  ;;  %v15912_v40 = vld [vmem:[%s22300_s2 + $0x1a00] ss:$16 sps:$4 sm:$0xff]   ;;  %v15920_v7 = vld [vmem:[%s22300_s2 + $0x1a24] ss:$16 sps:$4 sm:$0xff]  }
 0x4c0   :  { %v15923_v51 = vld [vmem:[%s22300_s2 + $0x1a2c] ss:$16 sps:$4 sm:$0xff]   ;;  %v15918_v11 = vld [vmem:[%s22300_s2 + $0x1a20] ss:$16 sps:$4 sm:$0xff]   ;;  %v15921_v54 = vld [vmem:[%s22300_s2 + $0x1a28] ss:$16 sps:$4 sm:$0xff]  }
 0x4c1   :  { %10719 = vmatpush1.bf16.msra.mxu0 %v15852_v53  ;;  %v15926_v50 = vld [vmem:[%s22300_s2 + $0x1a44] ss:$16 sps:$4 sm:$0xff]   ;;  %v15929_v25 = vld [vmem:[%s22300_s2 + $0x1a4c] ss:$16 sps:$4 sm:$0xff]   ;;  %v15924_v53 = vld [vmem:[%s22300_s2 + $0x1a40] ss:$16 sps:$4 sm:$0xff]  }
 0x4c2   :  { %10760 = vmatpush1.bf16.msra.mxu1 %v15855_v38  ;;  %10720 = vmatprep.subr.bf16.mxu0 %v15860_v10  ;;  %v15927_v12 = vld [vmem:[%s22300_s2 + $0x1a48] ss:$16 sps:$4 sm:$0xff]   ;;  %v15932_v55 = vld [vmem:[%s22300_s2 + $0x1a64] ss:$16 sps:$4 sm:$0xff]   ;;  %v15935_v38 = vld [vmem:[%s22300_s2 + $0x1a6c] ss:$16 sps:$4 sm:$0xff]  }
 0x4c3   :  { %10761 = vmatprep.subr.bf16.mxu1 %v15863_v49  ;;  %v15930_v10 = vld [vmem:[%s22300_s2 + $0x1a60] ss:$16 sps:$4 sm:$0xff]   ;;  %v15933_v20 = vld [vmem:[%s22300_s2 + $0x1a68] ss:$16 sps:$4 sm:$0xff]   ;;  %v15938_v49 = vld [vmem:[%s22300_s2 + $0x1a84] ss:$16 sps:$4 sm:$0xff]  }
 0x4c5   :  { %10721 = vmatpush1.bf16.msra.mxu0 %v15858_v42  ;;  %v15941_v42 = vld [vmem:[%s22300_s2 + $0x1a8c] ss:$16 sps:$4 sm:$0xff]  }
 0x4c6   :  { %10762 = vmatpush1.bf16.msra.mxu1 %v15861_v0  ;;  %10722 = vmatprep.subr.bf16.mxu0 %v15866_v18  ;;  %v15936_v0 = vld [vmem:[%s22300_s2 + $0x1a80] ss:$16 sps:$4 sm:$0xff]   ;;  %v15939_v18 = vld [vmem:[%s22300_s2 + $0x1a88] ss:$16 sps:$4 sm:$0xff]  }
 0x4c7   :  { %10763 = vmatprep.subr.bf16.mxu1 %v15869_v56  ;;  %v15944_v56 = vld [vmem:[%s22300_s2 + $0x1aa4] ss:$16 sps:$4 sm:$0xff]  }
 0x4c9   :  { %10723 = vmatpush1.bf16.msra.mxu0 %v15864_v15  ;;  %v15947_v15 = vld [vmem:[%s22300_s2 + $0x1aac] ss:$16 sps:$4 sm:$0xff]  }
 0x4ca   :  { %10764 = vmatpush1.bf16.msra.mxu1 %v15867_v44  ;;  %10724 = vmatprep.subr.bf16.mxu0 %v15872_v32  ;;  %v15942_v44 = vld [vmem:[%s22300_s2 + $0x1aa0] ss:$16 sps:$4 sm:$0xff]   ;;  %v15945_v32 = vld [vmem:[%s22300_s2 + $0x1aa8] ss:$16 sps:$4 sm:$0xff]  }
 0x4cb   :  { %10765 = vmatprep.subr.bf16.mxu1 %v15875_v23  ;;  %v15950_v23 = vld [vmem:[%s22300_s2 + $0x1ac4] ss:$16 sps:$4 sm:$0xff]  }
 0x4cd   :  { %10725 = vmatpush1.bf16.msra.mxu0 %v15870_v41 }
 0x4ce   :  { %10766 = vmatpush1.bf16.msra.mxu1 %v15873_v30  ;;  %10726 = vmatprep.subr.bf16.mxu0 %v15878_v57  ;;  %v15953_v30 = vld [vmem:[%s22300_s2 + $0x1acc] ss:$16 sps:$4 sm:$0xff]  }
 0x4cf   :  { %10767 = vmatprep.subr.bf16.mxu1 %v15881_v29 }
 0x4d1   :  { %10727 = vmatpush1.bf16.msra.mxu0 %v15876_v63 }
 0x4d2   :  { %10768 = vmatpush1.bf16.msra.mxu1 %v15879_v17  ;;  %10728 = vmatprep.subr.bf16.mxu0 %v15884_v45 }
 0x4d3   :  { %10769 = vmatprep.subr.bf16.mxu1 %v15887_v14 }
 0x4d5   :  { %10729 = vmatpush1.bf16.msra.mxu0 %v15882_v8 }
 0x4d6   :  { %10770 = vmatpush1.bf16.msra.mxu1 %v15885_v34  ;;  %10730 = vmatprep.subr.bf16.mxu0 %v15890_v61  ;;  %v15948_v34 = vld [vmem:[%s22300_s2 + $0x1ac0] ss:$16 sps:$4 sm:$0xff]  }
 0x4d7   :  { %10771 = vmatprep.subr.bf16.mxu1 %v15893_v28 }
 0x4d9   :  { %10731 = vmatpush1.bf16.msra.mxu0 %v15888_v52 }
 0x4da   :  { %10772 = vmatpush1.bf16.msra.mxu1 %v15891_v16  ;;  %10732 = vmatprep.subr.bf16.mxu0 %v15896_v46  ;;  %v15959_v16 = vld [vmem:[%s22300_s2 + $0x1aec] ss:$16 sps:$4 sm:$0xff]   ;;  %v15957_v46 = vld [vmem:[%s22300_s2 + $0x1ae8] ss:$16 sps:$4 sm:$0xff]  }
 0x4db   :  { %10773 = vmatprep.subr.bf16.mxu1 %v15899_v47  ;;  %v15962_v47 = vld [vmem:[%s22300_s2 + $0x1b04] ss:$16 sps:$4 sm:$0xff]  }
 0x4dd   :  { %10733 = vmatpush1.bf16.msra.mxu0 %v15894_v13  ;;  %v15965_v13 = vld [vmem:[%s22300_s2 + $0x1b0c] ss:$16 sps:$4 sm:$0xff]  }
 0x4de   :  { %10774 = vmatpush1.bf16.msra.mxu1 %v15897_v39  ;;  %10734 = vmatprep.subr.bf16.mxu0 %v15902_v37  ;;  %v15960_v39 = vld [vmem:[%s22300_s2 + $0x1b00] ss:$16 sps:$4 sm:$0xff]   ;;  %v15963_v37 = vld [vmem:[%s22300_s2 + $0x1b08] ss:$16 sps:$4 sm:$0xff]  }
 0x4df   :  { %10775 = vmatprep.subr.bf16.mxu1 %v15905_v48  ;;  %v15968_v48 = vld [vmem:[%s22300_s2 + $0x1b24] ss:$16 sps:$4 sm:$0xff]  }
 0x4e1   :  { %10735 = vmatpush1.bf16.msra.mxu0 %v15900_v43  ;;  %v15971_v43 = vld [vmem:[%s22300_s2 + $0x1b2c] ss:$16 sps:$4 sm:$0xff]  }
 0x4e2   :  { %10776 = vmatpush1.bf16.msra.mxu1 %v15903_v58  ;;  %10736 = vmatprep.subr.bf16.mxu0 %v15908_v1  ;;  %v15966_v58 = vld [vmem:[%s22300_s2 + $0x1b20] ss:$16 sps:$4 sm:$0xff]   ;;  %v15969_v1 = vld [vmem:[%s22300_s2 + $0x1b28] ss:$16 sps:$4 sm:$0xff]  }
 0x4e3   :  { %10777 = vmatprep.subr.bf16.mxu1 %v15911_v62  ;;  %v15974_v62 = vld [vmem:[%s22300_s2 + $0x1b44] ss:$16 sps:$4 sm:$0xff]  }
 0x4e5   :  { %10737 = vmatpush1.bf16.msra.mxu0 %v15906_v24  ;;  %v15977_v24 = vld [vmem:[%s22300_s2 + $0x1b4c] ss:$16 sps:$4 sm:$0xff]  }
 0x4e6   :  { %10778 = vmatpush1.bf16.msra.mxu1 %v15909_v60  ;;  %11115 = vmatprep.subr.bf16.mxu0 %v15914_v31  ;;  %v15972_v60 = vld [vmem:[%s22300_s2 + $0x1b40] ss:$16 sps:$4 sm:$0xff]   ;;  %v15975_v31 = vld [vmem:[%s22300_s2 + $0x1b48] ss:$16 sps:$4 sm:$0xff]  }
 0x4e7   :  { %11156 = vmatprep.subr.bf16.mxu1 %v15917_v27  ;;  %v15980_v27 = vld [vmem:[%s22300_s2 + $0x1b64] ss:$16 sps:$4 sm:$0xff]  }
 0x4e8   :  { %10739 = vmatmul.mubr.bf16.vlgmr.msra.gmra.mrb[64].mxu0 %v14055_v59 }
 0x4e9   :  { %10780 = vmatmul.mubr.bf16.vlgmr.msra.gmra.mrb[64].mxu1 %v14055_v59  ;;  %11116 = vmatpush1.bf16.msra.mxu0 %v15912_v40  ;;  %v15983_v40 = vld [vmem:[%s22300_s2 + $0x1b6c] ss:$16 sps:$4 sm:$0xff]   ;;  %v15978_v59 = vld [vmem:[%s22300_s2 + $0x1b60] ss:$16 sps:$4 sm:$0xff]  }
 0x4ea   :  { %11147 = vmatprep.mubr.bf16.mxu0 %v14058_v33  ;;  %11157 = vmatpush1.bf16.msra.mxu1 %v15915_v4  ;;  %v15981_v4 = vld [vmem:[%s22300_s2 + $0x1b68] ss:$16 sps:$4 sm:$0xff]  }
 0x4eb   :  { %11188 = vmatprep.mubr.bf16.mxu1 %v14058_v33  ;;  %11117 = vmatprep.subr.bf16.mxu0 %v15920_v7  ;;  %v15986_v7 = vld [vmem:[%s22300_s2 + $0x1b84] ss:$16 sps:$4 sm:$0xff]   ;;  %v15989_v33 = vld [vmem:[%s22300_s2 + $0x1b8c] ss:$16 sps:$4 sm:$0xff]  }
 0x4ec   :  { %11158 = vmatprep.subr.bf16.mxu1 %v15923_v51  ;;  %v15984_v51 = vld [vmem:[%s22300_s2 + $0x1b80] ss:$16 sps:$4 sm:$0xff]  }
 0x4ed   :  { %11118 = vmatpush1.bf16.msra.mxu0 %v15918_v11  ;;  %v15987_v11 = vld [vmem:[%s22300_s2 + $0x1b88] ss:$16 sps:$4 sm:$0xff]  }
 0x4ee   :  { %11159 = vmatpush1.bf16.msra.mxu1 %v15921_v54  ;;  %11119 = vmatprep.subr.bf16.mxu0 %v15926_v50  ;;  %v15992_v54 = vld [vmem:[%s22300_s2 + $0x1ba4] ss:$16 sps:$4 sm:$0xff]   ;;  %v15995_v50 = vld [vmem:[%s22300_s2 + $0x1bac] ss:$16 sps:$4 sm:$0xff]  }
 0x4ef   :  { %11160 = vmatprep.subr.bf16.mxu1 %v15929_v25  ;;  %v15990_v25 = vld [vmem:[%s22300_s2 + $0x1ba0] ss:$16 sps:$4 sm:$0xff]  }
 0x4f1   :  { %11120 = vmatpush1.bf16.msra.mxu0 %v15924_v53  ;;  %v15993_v53 = vld [vmem:[%s22300_s2 + $0x1ba8] ss:$16 sps:$4 sm:$0xff]  }
 0x4f2   :  { %11161 = vmatpush1.bf16.msra.mxu1 %v15927_v12  ;;  %11121 = vmatprep.subr.bf16.mxu0 %v15932_v55  ;;  %v15998_v12 = vld [vmem:[%s22300_s2 + $0x1bc4] ss:$16 sps:$4 sm:$0xff]   ;;  %v16001_v55 = vld [vmem:[%s22300_s2 + $0x1bcc] ss:$16 sps:$4 sm:$0xff]  }
 0x4f3   :  { %11162 = vmatprep.subr.bf16.mxu1 %v15935_v38  ;;  %v15996_v38 = vld [vmem:[%s22300_s2 + $0x1bc0] ss:$16 sps:$4 sm:$0xff]  }
 0x4f5   :  { %11122 = vmatpush1.bf16.msra.mxu0 %v15930_v10  ;;  %v15999_v10 = vld [vmem:[%s22300_s2 + $0x1bc8] ss:$16 sps:$4 sm:$0xff]  }
 0x4f6   :  { %11163 = vmatpush1.bf16.msra.mxu1 %v15933_v20  ;;  %11123 = vmatprep.subr.bf16.mxu0 %v15938_v49  ;;  %v16004_v20 = vld [vmem:[%s22300_s2 + $0x1be4] ss:$16 sps:$4 sm:$0xff]   ;;  %v16007_v49 = vld [vmem:[%s22300_s2 + $0x1bec] ss:$16 sps:$4 sm:$0xff]  }
 0x4f7   :  { %11164 = vmatprep.subr.bf16.mxu1 %v15941_v42  ;;  %v16002_v42 = vld [vmem:[%s22300_s2 + $0x1be0] ss:$16 sps:$4 sm:$0xff]  }
 0x4f9   :  { %11124 = vmatpush1.bf16.msra.mxu0 %v15936_v0  ;;  %v16005_v0 = vld [vmem:[%s22300_s2 + $0x1be8] ss:$16 sps:$4 sm:$0xff]  }
 0x4fa   :  { %11165 = vmatpush1.bf16.msra.mxu1 %v15939_v18  ;;  %11125 = vmatprep.subr.bf16.mxu0 %v15944_v56  ;;  %v16010_v18 = vld [vmem:[%s22300_s2 + $0x1c04] ss:$16 sps:$4 sm:$0xff]   ;;  %v16013_v56 = vld [vmem:[%s22300_s2 + $0x1c0c] ss:$16 sps:$4 sm:$0xff]  }
 0x4fb   :  { %v9513_v41 = vpop.f32.mrb[52].mxu0  ;;  %11166 = vmatprep.subr.bf16.mxu1 %v15947_v15  ;;  %v16008_v15 = vld [vmem:[%s22300_s2 + $0x1c00] ss:$16 sps:$4 sm:$0xff]  }
 0x4fc   :  { %v21472_v57 = vadd.f32 %v21264_v19, %v9513_v41  ;;  %v9554_v29 = vpop.f32.mrb[52].mxu1  ;;  %v9515_v63 = vpop.f32.mrb[53].mxu0  ;;  %v14060_v41 = vpack.c.bf16 %v19038_v6, %v19038_v6  ;;  %v16022_v6 = vld [vmem:[%s22300_s2 + $0x1c44] ss:$16 sps:$4 sm:$0xff]  }
 0x4fd   :  { %v21475_v17 = vadd.f32 %v21267_v5, %v9554_v29  ;;  %v21478_v45 = vadd.f32 %v21270_v26, %v9515_v63  ;;  %v9556_v14 = vpop.f32.mrb[53].mxu1  ;;  %v9517_v8 = vpop.f32.mrb[54].mxu0  ;;  %11126 = vmatpush1.bf16.msra.mxu0 %v15942_v44  ;;  %v15951_v5 = vld [vmem:[%s22300_s2 + $0x1ac8] ss:$16 sps:$4 sm:$0xff]   ;;  %v15956_v26 = vld [vmem:[%s22300_s2 + $0x1ae4] ss:$16 sps:$4 sm:$0xff]   ;;  %v14057_v44 = vpack.c.bf16 %v19031_v2, %v19031_v2 }
 0x4fe   :  { %v21484_v61 = vadd.f32 %v21276_v35, %v9556_v14  ;;  %v9558_v19 = vpop.f32.mrb[54].mxu1  ;;  %11167 = vmatpush1.bf16.msra.mxu1 %v15945_v32  ;;  %v9518_v28 = vpop.f32.mrb[55].mxu0  ;;  %11127 = vmatprep.subr.bf16.mxu0 %v15950_v23  ;;  %v15954_v35 = vld [vmem:[%s22300_s2 + $0x1ae0] ss:$16 sps:$4 sm:$0xff]   ;;  %v16011_v32 = vld [vmem:[%s22300_s2 + $0x1c08] ss:$16 sps:$4 sm:$0xff]  }
 0x4ff   :  { %v9559_v52 = vpop.f32.mrb[55].mxu1  ;;  %11168 = vmatprep.subr.bf16.mxu1 %v15953_v30  ;;  %v16016_v23 = vld [vmem:[%s22300_s2 + $0x1c24] ss:$16 sps:$4 sm:$0xff]   ;;  %v16019_v30 = vld [vmem:[%s22300_s2 + $0x1c2c] ss:$16 sps:$4 sm:$0xff]  }
 0x500   :  { %v16014_v2 = vld [vmem:[%s22300_s2 + $0x1c20] ss:$16 sps:$4 sm:$0xff]   ;;  %v16017_v29 = vld [vmem:[%s22300_s2 + $0x1c28] ss:$16 sps:$4 sm:$0xff]   ;;  %v16025_v63 = vld [vmem:[%s22300_s2 + $0x1c4c] ss:$16 sps:$4 sm:$0xff]  }
 0x501   :  { %11128 = vmatpush1.bf16.msra.mxu0 %v15948_v34  ;;  %v16020_v14 = vld [vmem:[%s22300_s2 + $0x1c40] ss:$16 sps:$4 sm:$0xff]   ;;  %v16023_v8 = vld [vmem:[%s22300_s2 + $0x1c48] ss:$16 sps:$4 sm:$0xff]   ;;  %v16028_v34 = vld [vmem:[%s22300_s2 + $0x1c64] ss:$16 sps:$4 sm:$0xff]  }
 0x502   :  { %11169 = vmatpush1.bf16.msra.mxu1 %v15951_v5  ;;  %11129 = vmatprep.subr.bf16.mxu0 %v15956_v26  ;;  %v16031_v19 = vld [vmem:[%s22300_s2 + $0x1c6c] ss:$16 sps:$4 sm:$0xff]   ;;  %v16026_v28 = vld [vmem:[%s22300_s2 + $0x1c60] ss:$16 sps:$4 sm:$0xff]   ;;  %v16029_v5 = vld [vmem:[%s22300_s2 + $0x1c68] ss:$16 sps:$4 sm:$0xff]  }
 0x503   :  { %11170 = vmatprep.subr.bf16.mxu1 %v15959_v16  ;;  %v16034_v26 = vld [vmem:[%s22300_s2 + $0x1c84] ss:$16 sps:$4 sm:$0xff]   ;;  %v16037_v52 = vld [vmem:[%s22300_s2 + $0x1c8c] ss:$16 sps:$4 sm:$0xff]   ;;  %v16032_v16 = vld [vmem:[%s22300_s2 + $0x1c80] ss:$16 sps:$4 sm:$0xff]  }
 0x505   :  { %11130 = vmatpush1.bf16.msra.mxu0 %v15954_v35  ;;  %v16035_v35 = vld [vmem:[%s22300_s2 + $0x1c88] ss:$16 sps:$4 sm:$0xff]  }
 0x506   :  { %11171 = vmatpush1.bf16.msra.mxu1 %v15957_v46  ;;  %11131 = vmatprep.subr.bf16.mxu0 %v15962_v47  ;;  %v16040_v46 = vld [vmem:[%s22300_s2 + $0x1ca4] ss:$16 sps:$4 sm:$0xff]   ;;  %v16043_v47 = vld [vmem:[%s22300_s2 + $0x1cac] ss:$16 sps:$4 sm:$0xff]  }
 0x507   :  { %11172 = vmatprep.subr.bf16.mxu1 %v15965_v13  ;;  %v16038_v13 = vld [vmem:[%s22300_s2 + $0x1ca0] ss:$16 sps:$4 sm:$0xff]  }
 0x509   :  { %11132 = vmatpush1.bf16.msra.mxu0 %v15960_v39  ;;  %v16041_v39 = vld [vmem:[%s22300_s2 + $0x1ca8] ss:$16 sps:$4 sm:$0xff]  }
 0x50a   :  { %11173 = vmatpush1.bf16.msra.mxu1 %v15963_v37  ;;  %11133 = vmatprep.subr.bf16.mxu0 %v15968_v48  ;;  %v16046_v37 = vld [vmem:[%s22300_s2 + $0x1cc4] ss:$16 sps:$4 sm:$0xff]  }
 0x50b   :  { %11174 = vmatprep.subr.bf16.mxu1 %v15971_v43  ;;  %v16049_v43 = vld [vmem:[%s22300_s2 + $0x1ccc] ss:$16 sps:$4 sm:$0xff]  }
 0x50d   :  { %11134 = vmatpush1.bf16.msra.mxu0 %v15966_v58 }
 0x50e   :  { %11175 = vmatpush1.bf16.msra.mxu1 %v15969_v1  ;;  %11135 = vmatprep.subr.bf16.mxu0 %v15974_v62 }
 0x50f   :  { %11176 = vmatprep.subr.bf16.mxu1 %v15977_v24 }
 0x511   :  { %11136 = vmatpush1.bf16.msra.mxu0 %v15972_v60 }
 0x512   :  { %11177 = vmatpush1.bf16.msra.mxu1 %v15975_v31  ;;  %11137 = vmatprep.subr.bf16.mxu0 %v15980_v27 }
 0x513   :  { %11178 = vmatprep.subr.bf16.mxu1 %v15983_v40  ;;  %v16044_v40 = vld [vmem:[%s22300_s2 + $0x1cc0] ss:$16 sps:$4 sm:$0xff]  }
 0x515   :  { %11138 = vmatpush1.bf16.msra.mxu0 %v15978_v59 }
 0x516   :  { %11179 = vmatpush1.bf16.msra.mxu1 %v15981_v4  ;;  %11139 = vmatprep.subr.bf16.mxu0 %v15986_v7 }
 0x517   :  { %11180 = vmatprep.subr.bf16.mxu1 %v15989_v33  ;;  %v16055_v33 = vld [vmem:[%s22300_s2 + $0x1cec] ss:$16 sps:$4 sm:$0xff]  }
 0x519   :  { %11140 = vmatpush1.bf16.msra.mxu0 %v15984_v51  ;;  %v16053_v51 = vld [vmem:[%s22300_s2 + $0x1ce8] ss:$16 sps:$4 sm:$0xff]  }
 0x51a   :  { %11181 = vmatpush1.bf16.msra.mxu1 %v15987_v11  ;;  %11141 = vmatprep.subr.bf16.mxu0 %v15992_v54  ;;  %v16058_v11 = vld [vmem:[%s22300_s2 + $0x1d04] ss:$16 sps:$4 sm:$0xff]   ;;  %v16061_v54 = vld [vmem:[%s22300_s2 + $0x1d0c] ss:$16 sps:$4 sm:$0xff]  }
 0x51b   :  { %11182 = vmatprep.subr.bf16.mxu1 %v15995_v50  ;;  %v16056_v50 = vld [vmem:[%s22300_s2 + $0x1d00] ss:$16 sps:$4 sm:$0xff]  }
 0x51d   :  { %11142 = vmatpush1.bf16.msra.mxu0 %v15990_v25  ;;  %v16059_v25 = vld [vmem:[%s22300_s2 + $0x1d08] ss:$16 sps:$4 sm:$0xff]  }
 0x51e   :  { %11183 = vmatpush1.bf16.msra.mxu1 %v15993_v53  ;;  %11143 = vmatprep.subr.bf16.mxu0 %v15998_v12  ;;  %v16064_v53 = vld [vmem:[%s22300_s2 + $0x1d24] ss:$16 sps:$4 sm:$0xff]   ;;  %v16067_v12 = vld [vmem:[%s22300_s2 + $0x1d2c] ss:$16 sps:$4 sm:$0xff]  }
 0x51f   :  { %11184 = vmatprep.subr.bf16.mxu1 %v16001_v55  ;;  %v16062_v55 = vld [vmem:[%s22300_s2 + $0x1d20] ss:$16 sps:$4 sm:$0xff]  }
 0x521   :  { %11144 = vmatpush1.bf16.msra.mxu0 %v15996_v38  ;;  %v16065_v38 = vld [vmem:[%s22300_s2 + $0x1d28] ss:$16 sps:$4 sm:$0xff]  }
 0x522   :  { %11185 = vmatpush1.bf16.msra.mxu1 %v15999_v10  ;;  %11145 = vmatprep.subr.bf16.mxu0 %v16004_v20  ;;  %v16070_v10 = vld [vmem:[%s22300_s2 + $0x1d44] ss:$16 sps:$4 sm:$0xff]   ;;  %v16073_v20 = vld [vmem:[%s22300_s2 + $0x1d4c] ss:$16 sps:$4 sm:$0xff]  }
 0x523   :  { %11186 = vmatprep.subr.bf16.mxu1 %v16007_v49  ;;  %v16068_v49 = vld [vmem:[%s22300_s2 + $0x1d40] ss:$16 sps:$4 sm:$0xff]  }
 0x525   :  { %11146 = vmatpush1.bf16.msra.mxu0 %v16002_v42  ;;  %v16071_v42 = vld [vmem:[%s22300_s2 + $0x1d48] ss:$16 sps:$4 sm:$0xff]  }
 0x526   :  { %11187 = vmatpush1.bf16.msra.mxu1 %v16005_v0  ;;  %11524 = vmatprep.subr.bf16.mxu0 %v16010_v18  ;;  %v16076_v0 = vld [vmem:[%s22300_s2 + $0x1d64] ss:$16 sps:$4 sm:$0xff]   ;;  %v16079_v18 = vld [vmem:[%s22300_s2 + $0x1d6c] ss:$16 sps:$4 sm:$0xff]  }
 0x527   :  { %11565 = vmatprep.subr.bf16.mxu1 %v16013_v56  ;;  %v16074_v56 = vld [vmem:[%s22300_s2 + $0x1d60] ss:$16 sps:$4 sm:$0xff]  }
 0x528   :  { %11148 = vmatmul.mubr.bf16.vlgmr.msra.gmra.mrb[68].mxu0 %v14057_v44 }
 0x529   :  { %11189 = vmatmul.mubr.bf16.vlgmr.msra.gmra.mrb[68].mxu1 %v14057_v44  ;;  %11525 = vmatpush1.bf16.msra.mxu0 %v16008_v15  ;;  %v16077_v15 = vld [vmem:[%s22300_s2 + $0x1d68] ss:$16 sps:$4 sm:$0xff]   ;;  %v16082_v44 = vld [vmem:[%s22300_s2 + $0x1d84] ss:$16 sps:$4 sm:$0xff]  }
 0x52a   :  { %11556 = vmatprep.mubr.bf16.mxu0 %v14060_v41  ;;  %11566 = vmatpush1.bf16.msra.mxu1 %v16011_v32  ;;  %v16085_v32 = vld [vmem:[%s22300_s2 + $0x1d8c] ss:$16 sps:$4 sm:$0xff]  }
 0x52b   :  { %11597 = vmatprep.mubr.bf16.mxu1 %v14060_v41  ;;  %11526 = vmatprep.subr.bf16.mxu0 %v16016_v23  ;;  %v16080_v23 = vld [vmem:[%s22300_s2 + $0x1d80] ss:$16 sps:$4 sm:$0xff]   ;;  %v16083_v41 = vld [vmem:[%s22300_s2 + $0x1d88] ss:$16 sps:$4 sm:$0xff]  }
 0x52c   :  { %11567 = vmatprep.subr.bf16.mxu1 %v16019_v30  ;;  %v16088_v30 = vld [vmem:[%s22300_s2 + $0x1da4] ss:$16 sps:$4 sm:$0xff]  }
 0x52d   :  { %11527 = vmatpush1.bf16.msra.mxu0 %v16014_v2  ;;  %v16091_v2 = vld [vmem:[%s22300_s2 + $0x1dac] ss:$16 sps:$4 sm:$0xff]  }
 0x52e   :  { %11568 = vmatpush1.bf16.msra.mxu1 %v16017_v29  ;;  %11528 = vmatprep.subr.bf16.mxu0 %v16022_v6  ;;  %v16086_v29 = vld [vmem:[%s22300_s2 + $0x1da0] ss:$16 sps:$4 sm:$0xff]   ;;  %v16089_v6 = vld [vmem:[%s22300_s2 + $0x1da8] ss:$16 sps:$4 sm:$0xff]  }
 0x52f   :  { %11569 = vmatprep.subr.bf16.mxu1 %v16025_v63  ;;  %v16094_v63 = vld [vmem:[%s22300_s2 + $0x1dc4] ss:$16 sps:$4 sm:$0xff]  }
 0x531   :  { %11529 = vmatpush1.bf16.msra.mxu0 %v16020_v14  ;;  %v16097_v14 = vld [vmem:[%s22300_s2 + $0x1dcc] ss:$16 sps:$4 sm:$0xff]  }
 0x532   :  { %11570 = vmatpush1.bf16.msra.mxu1 %v16023_v8  ;;  %11530 = vmatprep.subr.bf16.mxu0 %v16028_v34  ;;  %v16092_v8 = vld [vmem:[%s22300_s2 + $0x1dc0] ss:$16 sps:$4 sm:$0xff]   ;;  %v16095_v34 = vld [vmem:[%s22300_s2 + $0x1dc8] ss:$16 sps:$4 sm:$0xff]  }
 0x533   :  { %11571 = vmatprep.subr.bf16.mxu1 %v16031_v19  ;;  %v16100_v19 = vld [vmem:[%s22300_s2 + $0x1de4] ss:$16 sps:$4 sm:$0xff]  }
 0x535   :  { %11531 = vmatpush1.bf16.msra.mxu0 %v16026_v28  ;;  %v16103_v28 = vld [vmem:[%s22300_s2 + $0x1dec] ss:$16 sps:$4 sm:$0xff]  }
 0x536   :  { %11572 = vmatpush1.bf16.msra.mxu1 %v16029_v5  ;;  %11532 = vmatprep.subr.bf16.mxu0 %v16034_v26  ;;  %v16098_v5 = vld [vmem:[%s22300_s2 + $0x1de0] ss:$16 sps:$4 sm:$0xff]   ;;  %v16101_v26 = vld [vmem:[%s22300_s2 + $0x1de8] ss:$16 sps:$4 sm:$0xff]  }
 0x537   :  { %11573 = vmatprep.subr.bf16.mxu1 %v16037_v52  ;;  %v16106_v52 = vld [vmem:[%s22300_s2 + $0x1e04] ss:$16 sps:$4 sm:$0xff]  }
 0x539   :  { %11533 = vmatpush1.bf16.msra.mxu0 %v16032_v16  ;;  %v16109_v16 = vld [vmem:[%s22300_s2 + $0x1e0c] ss:$16 sps:$4 sm:$0xff]  }
 0x53a   :  { %11574 = vmatpush1.bf16.msra.mxu1 %v16035_v35  ;;  %11534 = vmatprep.subr.bf16.mxu0 %v16040_v46  ;;  %v16104_v35 = vld [vmem:[%s22300_s2 + $0x1e00] ss:$16 sps:$4 sm:$0xff]   ;;  %v14059_v46 = vpack.c.bf16 %v19041_v36, %v19041_v36 }
 0x53b   :  { %v9922_v48 = vpop.f32.mrb[56].mxu0  ;;  %11575 = vmatprep.subr.bf16.mxu1 %v16043_v47  ;;  %v16107_v47 = vld [vmem:[%s22300_s2 + $0x1e08] ss:$16 sps:$4 sm:$0xff]   ;;  %v16110_v36 = vld [vmem:[%s22300_s2 + $0x1e20] ss:$16 sps:$4 sm:$0xff]  }
 0x53c   :  { %v21680_v58 = vadd.f32 %v21472_v57, %v9922_v48  ;;  %v9963_v1 = vpop.f32.mrb[56].mxu1  ;;  %v9924_v62 = vpop.f32.mrb[57].mxu0  ;;  %v16113_v48 = vld [vmem:[%s22300_s2 + $0x1e28] ss:$16 sps:$4 sm:$0xff]  }
 0x53d   :  { %v21683_v24 = vadd.f32 %v21475_v17, %v9963_v1  ;;  %v21686_v60 = vadd.f32 %v21478_v45, %v9924_v62  ;;  %v9965_v31 = vpop.f32.mrb[57].mxu1  ;;  %v9926_v27 = vpop.f32.mrb[58].mxu0  ;;  %11535 = vmatpush1.bf16.msra.mxu0 %v16038_v13  ;;  %v16047_v17 = vld [vmem:[%s22300_s2 + $0x1cc8] ss:$16 sps:$4 sm:$0xff]   ;;  %v16052_v45 = vld [vmem:[%s22300_s2 + $0x1ce4] ss:$16 sps:$4 sm:$0xff]  }
 0x53e   :  { %v21692_v59 = vadd.f32 %v21484_v61, %v9965_v31  ;;  %v9967_v57 = vpop.f32.mrb[58].mxu1  ;;  %11576 = vmatpush1.bf16.msra.mxu1 %v16041_v39  ;;  %v9927_v4 = vpop.f32.mrb[59].mxu0  ;;  %11536 = vmatprep.subr.bf16.mxu0 %v16046_v37  ;;  %v16050_v61 = vld [vmem:[%s22300_s2 + $0x1ce0] ss:$16 sps:$4 sm:$0xff]   ;;  %v16112_v13 = vld [vmem:[%s22300_s2 + $0x1e24] ss:$16 sps:$4 sm:$0xff]   ;;  %v14062_v39 = vpack.c.bf16 %v19064_v9, %v19064_v9 }
 0x53f   :  { %v9968_v7 = vpop.f32.mrb[59].mxu1  ;;  %11577 = vmatprep.subr.bf16.mxu1 %v16049_v43  ;;  %v16115_v37 = vld [vmem:[%s22300_s2 + $0x1e2c] ss:$16 sps:$4 sm:$0xff]   ;;  %v16118_v9 = vld [vmem:[%s22300_s2 + $0x1e44] ss:$16 sps:$4 sm:$0xff]  }
 0x540   :  { %v16121_v43 = vld [vmem:[%s22300_s2 + $0x1e4c] ss:$16 sps:$4 sm:$0xff]   ;;  %v16116_v1 = vld [vmem:[%s22300_s2 + $0x1e40] ss:$16 sps:$4 sm:$0xff]   ;;  %v16119_v62 = vld [vmem:[%s22300_s2 + $0x1e48] ss:$16 sps:$4 sm:$0xff]  }
 0x541   :  { %11537 = vmatpush1.bf16.msra.mxu0 %v16044_v40  ;;  %v16124_v31 = vld [vmem:[%s22300_s2 + $0x1e64] ss:$16 sps:$4 sm:$0xff]   ;;  %v16127_v27 = vld [vmem:[%s22300_s2 + $0x1e6c] ss:$16 sps:$4 sm:$0xff]   ;;  %v16122_v40 = vld [vmem:[%s22300_s2 + $0x1e60] ss:$16 sps:$4 sm:$0xff]  }
 0x542   :  { %11578 = vmatpush1.bf16.msra.mxu1 %v16047_v17  ;;  %11538 = vmatprep.subr.bf16.mxu0 %v16052_v45  ;;  %v16125_v57 = vld [vmem:[%s22300_s2 + $0x1e68] ss:$16 sps:$4 sm:$0xff]   ;;  %v16130_v4 = vld [vmem:[%s22300_s2 + $0x1e84] ss:$16 sps:$4 sm:$0xff]   ;;  %v16133_v17 = vld [vmem:[%s22300_s2 + $0x1e8c] ss:$16 sps:$4 sm:$0xff]  }
 0x543   :  { %11579 = vmatprep.subr.bf16.mxu1 %v16055_v33  ;;  %v16128_v45 = vld [vmem:[%s22300_s2 + $0x1e80] ss:$16 sps:$4 sm:$0xff]   ;;  %v16131_v7 = vld [vmem:[%s22300_s2 + $0x1e88] ss:$16 sps:$4 sm:$0xff]   ;;  %v16136_v33 = vld [vmem:[%s22300_s2 + $0x1ea4] ss:$16 sps:$4 sm:$0xff]  }
 0x545   :  { %11539 = vmatpush1.bf16.msra.mxu0 %v16050_v61  ;;  %v16139_v61 = vld [vmem:[%s22300_s2 + $0x1eac] ss:$16 sps:$4 sm:$0xff]  }
 0x546   :  { %11580 = vmatpush1.bf16.msra.mxu1 %v16053_v51  ;;  %11540 = vmatprep.subr.bf16.mxu0 %v16058_v11  ;;  %v16134_v51 = vld [vmem:[%s22300_s2 + $0x1ea0] ss:$16 sps:$4 sm:$0xff]   ;;  %v16137_v11 = vld [vmem:[%s22300_s2 + $0x1ea8] ss:$16 sps:$4 sm:$0xff]  }
 0x547   :  { %11581 = vmatprep.subr.bf16.mxu1 %v16061_v54  ;;  %v16142_v54 = vld [vmem:[%s22300_s2 + $0x1ec4] ss:$16 sps:$4 sm:$0xff]  }
 0x549   :  { %11541 = vmatpush1.bf16.msra.mxu0 %v16056_v50 }
 0x54a   :  { %11582 = vmatpush1.bf16.msra.mxu1 %v16059_v25  ;;  %11542 = vmatprep.subr.bf16.mxu0 %v16064_v53  ;;  %v16145_v25 = vld [vmem:[%s22300_s2 + $0x1ecc] ss:$16 sps:$4 sm:$0xff]  }
 0x54b   :  { %11583 = vmatprep.subr.bf16.mxu1 %v16067_v12 }
 0x54d   :  { %11543 = vmatpush1.bf16.msra.mxu0 %v16062_v55 }
 0x54e   :  { %11584 = vmatpush1.bf16.msra.mxu1 %v16065_v38  ;;  %11544 = vmatprep.subr.bf16.mxu0 %v16070_v10 }
 0x54f   :  { %11585 = vmatprep.subr.bf16.mxu1 %v16073_v20 }
 0x551   :  { %11545 = vmatpush1.bf16.msra.mxu0 %v16068_v49 }
 0x552   :  { %11586 = vmatpush1.bf16.msra.mxu1 %v16071_v42  ;;  %11546 = vmatprep.subr.bf16.mxu0 %v16076_v0  ;;  %v16140_v42 = vld [vmem:[%s22300_s2 + $0x1ec0] ss:$16 sps:$4 sm:$0xff]  }
 0x553   :  { %11587 = vmatprep.subr.bf16.mxu1 %v16079_v18 }
 0x555   :  { %11547 = vmatpush1.bf16.msra.mxu0 %v16074_v56 }
 0x556   :  { %11588 = vmatpush1.bf16.msra.mxu1 %v16077_v15  ;;  %11548 = vmatprep.subr.bf16.mxu0 %v16082_v44  ;;  %v16151_v15 = vld [vmem:[%s22300_s2 + $0x1eec] ss:$16 sps:$4 sm:$0xff]   ;;  %v16149_v44 = vld [vmem:[%s22300_s2 + $0x1ee8] ss:$16 sps:$4 sm:$0xff]  }
 0x557   :  { %11589 = vmatprep.subr.bf16.mxu1 %v16085_v32  ;;  %v16154_v32 = vld [vmem:[%s22300_s2 + $0x1f04] ss:$16 sps:$4 sm:$0xff]  }
 0x559   :  { %11549 = vmatpush1.bf16.msra.mxu0 %v16080_v23  ;;  %v16157_v23 = vld [vmem:[%s22300_s2 + $0x1f0c] ss:$16 sps:$4 sm:$0xff]  }
 0x55a   :  { %11590 = vmatpush1.bf16.msra.mxu1 %v16083_v41  ;;  %11550 = vmatprep.subr.bf16.mxu0 %v16088_v30  ;;  %v16152_v41 = vld [vmem:[%s22300_s2 + $0x1f00] ss:$16 sps:$4 sm:$0xff]   ;;  %v16155_v30 = vld [vmem:[%s22300_s2 + $0x1f08] ss:$16 sps:$4 sm:$0xff]  }
 0x55b   :  { %11591 = vmatprep.subr.bf16.mxu1 %v16091_v2  ;;  %v16160_v2 = vld [vmem:[%s22300_s2 + $0x1f24] ss:$16 sps:$4 sm:$0xff]  }
 0x55d   :  { %11551 = vmatpush1.bf16.msra.mxu0 %v16086_v29  ;;  %v16163_v29 = vld [vmem:[%s22300_s2 + $0x1f2c] ss:$16 sps:$4 sm:$0xff]  }
 0x55e   :  { %11592 = vmatpush1.bf16.msra.mxu1 %v16089_v6  ;;  %11552 = vmatprep.subr.bf16.mxu0 %v16094_v63  ;;  %v16158_v6 = vld [vmem:[%s22300_s2 + $0x1f20] ss:$16 sps:$4 sm:$0xff]   ;;  %v16161_v63 = vld [vmem:[%s22300_s2 + $0x1f28] ss:$16 sps:$4 sm:$0xff]  }
 0x55f   :  { %11593 = vmatprep.subr.bf16.mxu1 %v16097_v14  ;;  %v16166_v14 = vld [vmem:[%s22300_s2 + $0x1f44] ss:$16 sps:$4 sm:$0xff]  }
 0x561   :  { %11553 = vmatpush1.bf16.msra.mxu0 %v16092_v8  ;;  %v16169_v8 = vld [vmem:[%s22300_s2 + $0x1f4c] ss:$16 sps:$4 sm:$0xff]  }
 0x562   :  { %11594 = vmatpush1.bf16.msra.mxu1 %v16095_v34  ;;  %11554 = vmatprep.subr.bf16.mxu0 %v16100_v19  ;;  %v16164_v34 = vld [vmem:[%s22300_s2 + $0x1f40] ss:$16 sps:$4 sm:$0xff]   ;;  %v16167_v19 = vld [vmem:[%s22300_s2 + $0x1f48] ss:$16 sps:$4 sm:$0xff]  }
 0x563   :  { %11595 = vmatprep.subr.bf16.mxu1 %v16103_v28  ;;  %v16172_v28 = vld [vmem:[%s22300_s2 + $0x1f64] ss:$16 sps:$4 sm:$0xff]  }
 0x565   :  { %11555 = vmatpush1.bf16.msra.mxu0 %v16098_v5  ;;  %v16175_v5 = vld [vmem:[%s22300_s2 + $0x1f6c] ss:$16 sps:$4 sm:$0xff]  }
 0x566   :  { %11596 = vmatpush1.bf16.msra.mxu1 %v16101_v26  ;;  %11933 = vmatprep.subr.bf16.mxu0 %v16106_v52  ;;  %v16170_v26 = vld [vmem:[%s22300_s2 + $0x1f60] ss:$16 sps:$4 sm:$0xff]   ;;  %v16173_v52 = vld [vmem:[%s22300_s2 + $0x1f68] ss:$16 sps:$4 sm:$0xff]  }
 0x567   :  { %11974 = vmatprep.subr.bf16.mxu1 %v16109_v16  ;;  %v16178_v16 = vld [vmem:[%s22300_s2 + $0x1f84] ss:$16 sps:$4 sm:$0xff]  }
 0x568   :  { %11557 = vmatmul.mubr.bf16.vlgmr.msra.gmra.mrb[72].mxu0 %v14059_v46 }
 0x569   :  { %11598 = vmatmul.mubr.bf16.vlgmr.msra.gmra.mrb[72].mxu1 %v14059_v46  ;;  %11934 = vmatpush1.bf16.msra.mxu0 %v16104_v35  ;;  %v16181_v35 = vld [vmem:[%s22300_s2 + $0x1f8c] ss:$16 sps:$4 sm:$0xff]   ;;  %v16176_v46 = vld [vmem:[%s22300_s2 + $0x1f80] ss:$16 sps:$4 sm:$0xff]  }
 0x56a   :  { %11965 = vmatprep.mubr.bf16.mxu0 %v14062_v39  ;;  %11975 = vmatpush1.bf16.msra.mxu1 %v16107_v47  ;;  %v16179_v47 = vld [vmem:[%s22300_s2 + $0x1f88] ss:$16 sps:$4 sm:$0xff]  }
 0x56b   :  { %12006 = vmatprep.mubr.bf16.mxu1 %v14062_v39  ;;  %11935 = vmatprep.subr.bf16.mxu0 %v16112_v13  ;;  %v16184_v13 = vld [vmem:[%s22300_s2 + $0x1fa4] ss:$16 sps:$4 sm:$0xff]   ;;  %v16187_v39 = vld [vmem:[%s22300_s2 + $0x1fac] ss:$16 sps:$4 sm:$0xff]  }
 0x56c   :  { %11976 = vmatprep.subr.bf16.mxu1 %v16115_v37  ;;  %v16182_v37 = vld [vmem:[%s22300_s2 + $0x1fa0] ss:$16 sps:$4 sm:$0xff]  }
 0x56d   :  { %11936 = vmatpush1.bf16.msra.mxu0 %v16110_v36  ;;  %v16185_v36 = vld [vmem:[%s22300_s2 + $0x1fa8] ss:$16 sps:$4 sm:$0xff]  }
 0x56e   :  { %11977 = vmatpush1.bf16.msra.mxu1 %v16113_v48  ;;  %11937 = vmatprep.subr.bf16.mxu0 %v16118_v9  ;;  %v16190_v48 = vld [vmem:[%s22300_s2 + $0x1fc4] ss:$16 sps:$4 sm:$0xff]   ;;  %v16193_v9 = vld [vmem:[%s22300_s2 + $0x1fcc] ss:$16 sps:$4 sm:$0xff]  }
 0x56f   :  { %11978 = vmatprep.subr.bf16.mxu1 %v16121_v43  ;;  %v16188_v43 = vld [vmem:[%s22300_s2 + $0x1fc0] ss:$16 sps:$4 sm:$0xff]  }
 0x571   :  { %11938 = vmatpush1.bf16.msra.mxu0 %v16116_v1  ;;  %v16191_v1 = vld [vmem:[%s22300_s2 + $0x1fc8] ss:$16 sps:$4 sm:$0xff]  }
 0x572   :  { %11979 = vmatpush1.bf16.msra.mxu1 %v16119_v62  ;;  %11939 = vmatprep.subr.bf16.mxu0 %v16124_v31  ;;  %v16196_v62 = vld [vmem:[%s22300_s2 + $0x1fe4] ss:$16 sps:$4 sm:$0xff]   ;;  %v16199_v31 = vld [vmem:[%s22300_s2 + $0x1fec] ss:$16 sps:$4 sm:$0xff]  }
 0x573   :  { %11980 = vmatprep.subr.bf16.mxu1 %v16127_v27  ;;  %v16194_v27 = vld [vmem:[%s22300_s2 + $0x1fe0] ss:$16 sps:$4 sm:$0xff]  }
 0x575   :  { %11940 = vmatpush1.bf16.msra.mxu0 %v16122_v40  ;;  %v16197_v40 = vld [vmem:[%s22300_s2 + $0x1fe8] ss:$16 sps:$4 sm:$0xff]  }
 0x576   :  { %11981 = vmatpush1.bf16.msra.mxu1 %v16125_v57  ;;  %11941 = vmatprep.subr.bf16.mxu0 %v16130_v4  ;;  %v14061_v57 = vpack.c.bf16 %v19067_v3, %v19067_v3 }
 0x577   :  { %11982 = vmatprep.subr.bf16.mxu1 %v16133_v17 }
 0x579   :  { %11942 = vmatpush1.bf16.msra.mxu0 %v16128_v45 }
 0x57a   :  { %11983 = vmatpush1.bf16.msra.mxu1 %v16131_v7  ;;  %11943 = vmatprep.subr.bf16.mxu0 %v16136_v33 }
 0x57b   :  { %v10331_v50 = vpop.f32.mrb[60].mxu0  ;;  %11984 = vmatprep.subr.bf16.mxu1 %v16139_v61 }
 0x57c   :  { %v21888_v53 = vadd.f32 %v21680_v58, %v10331_v50  ;;  %v10372_v12 = vpop.f32.mrb[60].mxu1  ;;  %v10333_v55 = vpop.f32.mrb[61].mxu0 }
 0x57d   :  { %v21891_v38 = vadd.f32 %v21683_v24, %v10372_v12  ;;  %v21894_v10 = vadd.f32 %v21686_v60, %v10333_v55  ;;  %v10374_v20 = vpop.f32.mrb[61].mxu1  ;;  %v10335_v49 = vpop.f32.mrb[62].mxu0  ;;  %11944 = vmatpush1.bf16.msra.mxu0 %v16134_v51  ;;  %v16143_v24 = vld [vmem:[%s22300_s2 + $0x1ec8] ss:$16 sps:$4 sm:$0xff]   ;;  %v16148_v60 = vld [vmem:[%s22300_s2 + $0x1ee4] ss:$16 sps:$4 sm:$0xff]  }
 0x57e   :  { %v21900_v0 = vadd.f32 %v21692_v59, %v10374_v20  ;;  %v10376_v58 = vpop.f32.mrb[62].mxu1  ;;  %11985 = vmatpush1.bf16.msra.mxu1 %v16137_v11  ;;  %v10336_v18 = vpop.f32.mrb[63].mxu0  ;;  %11945 = vmatprep.subr.bf16.mxu0 %v16142_v54  ;;  %v16146_v59 = vld [vmem:[%s22300_s2 + $0x1ee0] ss:$16 sps:$4 sm:$0xff]   ;;  %v12153_v12 = vld [vmem:[%s22301_s4 + $0x88] sm:$0xff] }
 0x57f   :  { %v10377_v56 = vpop.f32.mrb[63].mxu1  ;;  %11986 = vmatprep.subr.bf16.mxu1 %v16145_v25  ;;  %v12184_v55 = vld [vmem:[%s22301_s4 + $0x180] sm:$0xff]  ;;  %v12137_v49 = vld [vmem:[%s22301_s4 + $0x8] sm:$0xff] }
 0x580   :  { %v12136_v20 = vld [vmem:[%s22301_s4] sm:$0xff]  ;;  %v12169_v18 = vld [vmem:[%s22301_s4 + $0x108] sm:$0xff]  ;;  %v12155_v56 = vld [vmem:[%s22301_s4 + $0x98] sm:$0xff] }
 0x581   :  { %11946 = vmatpush1.bf16.msra.mxu0 %v16140_v42  ;;  %v12168_v58 = vld [vmem:[%s22301_s4 + $0x100] sm:$0xff] }
 0x582   :  { %11987 = vmatpush1.bf16.msra.mxu1 %v16143_v24  ;;  %11947 = vmatprep.subr.bf16.mxu0 %v16148_v60  ;;  %v12154_v24 = vld [vmem:[%s22301_s4 + $0x90] sm:$0xff]  ;;  %v14219_v60 = vpack.c.bf16 %v12169_v18, %v12168_v58 }
 0x583   :  { %11988 = vmatprep.subr.bf16.mxu1 %v16151_v15  ;;  %v12186_v15 = vld [vmem:[%s22301_s4 + $0x190] sm:$0xff] }
 0x584   :  { %v12178_v18 = vld [vmem:[%s22301_s4 + $0x150] sm:$0xff] }
 0x585   :  { %11948 = vmatpush1.bf16.msra.mxu0 %v16146_v59  ;;  %v12187_v59 = vld [vmem:[%s22301_s4 + $0x198] sm:$0xff] }
 0x586   :  { %11989 = vmatpush1.bf16.msra.mxu1 %v16149_v44  ;;  %11949 = vmatprep.subr.bf16.mxu0 %v16154_v32  ;;  %v14189_v44 = vpack.c.bf16 %v12155_v56, %v12154_v24  ;;  %v14221_v32 = vpack.c.bf16 %v12187_v59, %v12186_v15  ;;  %v12179_v24 = vld [vmem:[%s22301_s4 + $0x158] sm:$0xff] }
 0x587   :  { %11990 = vmatprep.subr.bf16.mxu1 %v16157_v23  ;;  %v12138_v23 = vld [vmem:[%s22301_s4 + $0x10] sm:$0xff]  ;;  %v14239_v56 = vpack.c.bf16 %v12179_v24, %v12178_v18 }
 0x589   :  { %11950 = vmatpush1.bf16.msra.mxu0 %v16152_v41  ;;  %v12139_v41 = vld [vmem:[%s22301_s4 + $0x18] sm:$0xff] }
 0x58a   :  { %11991 = vmatpush1.bf16.msra.mxu1 %v16155_v30  ;;  %11951 = vmatprep.subr.bf16.mxu0 %v16160_v2  ;;  %v12170_v30 = vld [vmem:[%s22301_s4 + $0x110] sm:$0xff]  ;;  %v14191_v2 = vpack.c.bf16 %v12139_v41, %v12138_v23 }
 0x58b   :  { %11992 = vmatprep.subr.bf16.mxu1 %v16163_v29  ;;  %v12171_v29 = vld [vmem:[%s22301_s4 + $0x118] sm:$0xff] }
 0x58d   :  { %11952 = vmatpush1.bf16.msra.mxu0 %v16158_v6  ;;  %v12156_v6 = vld [vmem:[%s22301_s4 + $0xa0] sm:$0xff] }
 0x58e   :  { %11993 = vmatpush1.bf16.msra.mxu1 %v16161_v63  ;;  %11953 = vmatprep.subr.bf16.mxu0 %v16166_v14  ;;  %v12157_v63 = vld [vmem:[%s22301_s4 + $0xa8] sm:$0xff]  ;;  %v14223_v14 = vpack.c.bf16 %v12171_v29, %v12170_v30 }
 0x58f   :  { %11994 = vmatprep.subr.bf16.mxu1 %v16169_v8  ;;  %v14193_v8 = vpack.c.bf16 %v12157_v63, %v12156_v6 }
 0x591   :  { %11954 = vmatpush1.bf16.msra.mxu0 %v16164_v34  ;;  %v12188_v34 = vld [vmem:[%s22301_s4 + $0x1a0] sm:$0xff] }
 0x592   :  { %11995 = vmatpush1.bf16.msra.mxu1 %v16167_v19  ;;  %11955 = vmatprep.subr.bf16.mxu0 %v16172_v28  ;;  %v12189_v19 = vld [vmem:[%s22301_s4 + $0x1a8] sm:$0xff]  ;;  %v12140_v28 = vld [vmem:[%s22301_s4 + $0x20] sm:$0xff] }
 0x593   :  { %11996 = vmatprep.subr.bf16.mxu1 %v16175_v5  ;;  %v14225_v5 = vpack.c.bf16 %v12189_v19, %v12188_v34  ;;  %v12148_v34 = vld [vmem:[%s22301_s4 + $0x60] sm:$0xff]  ;;  %v12149_v19 = vld [vmem:[%s22301_s4 + $0x68] sm:$0xff] }
 0x595   :  { %11956 = vmatpush1.bf16.msra.mxu0 %v16170_v26  ;;  %v12141_v26 = vld [vmem:[%s22301_s4 + $0x28] sm:$0xff] }
 0x596   :  { %11997 = vmatpush1.bf16.msra.mxu1 %v16173_v52  ;;  %11957 = vmatprep.subr.bf16.mxu0 %v16178_v16  ;;  %v12172_v52 = vld [vmem:[%s22301_s4 + $0x120] sm:$0xff]  ;;  %v12173_v16 = vld [vmem:[%s22301_s4 + $0x128] sm:$0xff] }
 0x597   :  { %11998 = vmatprep.subr.bf16.mxu1 %v16181_v35  ;;  %v14195_v35 = vpack.c.bf16 %v12141_v26, %v12140_v28  ;;  %v12180_v26 = vld [vmem:[%s22301_s4 + $0x160] sm:$0xff] }
 0x599   :  { %11958 = vmatpush1.bf16.msra.mxu0 %v16176_v46  ;;  %v12158_v46 = vld [vmem:[%s22301_s4 + $0xb0] sm:$0xff] }
 0x59a   :  { %11999 = vmatpush1.bf16.msra.mxu1 %v16179_v47  ;;  %11959 = vmatprep.subr.bf16.mxu0 %v16184_v13  ;;  %v12159_v47 = vld [vmem:[%s22301_s4 + $0xb8] sm:$0xff]  ;;  %v12190_v13 = vld [vmem:[%s22301_s4 + $0x1b0] sm:$0xff] }
 0x59b   :  { %12000 = vmatprep.subr.bf16.mxu1 %v16187_v39  ;;  %v14227_v39 = vpack.c.bf16 %v12173_v16, %v12172_v52  ;;  %v12181_v52 = vld [vmem:[%s22301_s4 + $0x168] sm:$0xff]  ;;  %v12166_v16 = vld [vmem:[%s22301_s4 + $0xf0] sm:$0xff] }
 0x59d   :  { %11960 = vmatpush1.bf16.msra.mxu0 %v16182_v37  ;;  %v14197_v37 = vpack.c.bf16 %v12159_v47, %v12158_v46  ;;  %v12167_v46 = vld [vmem:[%s22301_s4 + $0xf8] sm:$0xff]  ;;  %v12198_v47 = vld [vmem:[%s22301_s4 + $0x1f0] sm:$0xff] }
 0x59e   :  { %12001 = vmatpush1.bf16.msra.mxu1 %v16185_v36  ;;  %11961 = vmatprep.subr.bf16.mxu0 %v16190_v48  ;;  %v12191_v36 = vld [vmem:[%s22301_s4 + $0x1b8] sm:$0xff]  ;;  %v12142_v48 = vld [vmem:[%s22301_s4 + $0x30] sm:$0xff] }
 0x59f   :  { %12002 = vmatprep.subr.bf16.mxu1 %v16193_v9  ;;  %v12143_v9 = vld [vmem:[%s22301_s4 + $0x38] sm:$0xff] }
 0x5a1   :  { %11962 = vmatpush1.bf16.msra.mxu0 %v16188_v43  ;;  %v14229_v43 = vpack.c.bf16 %v12191_v36, %v12190_v13  ;;  %v12199_v13 = vld [vmem:[%s22301_s4 + $0x1f8] sm:$0xff]  ;;  %v12150_v36 = vld [vmem:[%s22301_s4 + $0x70] sm:$0xff] }
 0x5a2   :  { %12003 = vmatpush1.bf16.msra.mxu1 %v16191_v1  ;;  %11963 = vmatprep.subr.bf16.mxu0 %v16196_v62  ;;  %v12174_v1 = vld [vmem:[%s22301_s4 + $0x130] sm:$0xff]  ;;  %v12175_v62 = vld [vmem:[%s22301_s4 + $0x138] sm:$0xff] }
 0x5a3   :  { %12004 = vmatprep.subr.bf16.mxu1 %v16199_v31  ;;  %v12160_v31 = vld [vmem:[%s22301_s4 + $0xc0] sm:$0xff] }
 0x5a5   :  { %11964 = vmatpush1.bf16.msra.mxu0 %v16194_v27  ;;  %v12161_v27 = vld [vmem:[%s22301_s4 + $0xc8] sm:$0xff] }
 0x5a6   :  { %12005 = vmatpush1.bf16.msra.mxu1 %v16197_v40  ;;  %v12192_v40 = vld [vmem:[%s22301_s4 + $0x1c0] sm:$0xff] }
 0x5a8   :  { %11966 = vmatmul.mubr.bf16.vlgmr.msra.gmra.mrb[76].mxu0 %v14061_v57 }
 0x5a9   :  { %12007 = vmatmul.mubr.bf16.vlgmr.msra.gmra.mrb[76].mxu1 %v14061_v57  ;;  %v12193_v57 = vld [vmem:[%s22301_s4 + $0x1c8] sm:$0xff] }
 0x5bb   :  { %v10740_v4 = vpop.f32.mrb[64].mxu0 }
 0x5bc   :  { %v22016_v17 = vadd.f32 %v21888_v53, %v10740_v4  ;;  %v10781_v45 = vpop.f32.mrb[64].mxu1  ;;  %v10742_v7 = vpop.f32.mrb[65].mxu0  ;;  %v12152_v53 = vld [vmem:[%s22301_s4 + $0x80] sm:$0xff]  ;;  %v14199_v4 = vpack.c.bf16 %v12143_v9, %v12142_v48  ;;  %v12151_v48 = vld [vmem:[%s22301_s4 + $0x78] sm:$0xff]  ;;  %v12182_v9 = vld [vmem:[%s22301_s4 + $0x170] sm:$0xff] }
 0x5bd   :  { %v22019_v33 = vadd.f32 %v21891_v38, %v10781_v45  ;;  %v22022_v61 = vadd.f32 %v21894_v10, %v10742_v7  ;;  %v10783_v51 = vpop.f32.mrb[65].mxu1  ;;  %v10744_v11 = vpop.f32.mrb[66].mxu0  ;;  %v14185_v38 = vpack.c.bf16 %v12153_v12, %v12152_v53  ;;  %v12185_v10 = vld [vmem:[%s22301_s4 + $0x188] sm:$0xff]  ;;  %v14231_v45 = vpack.c.bf16 %v12175_v62, %v12174_v1  ;;  %v12162_v53 = vld [vmem:[%s22301_s4 + $0xd0] sm:$0xff]  ;;  %v12163_v12 = vld [vmem:[%s22301_s4 + $0xd8] sm:$0xff] }
 0x5be   :  { %v22025_v54 = vadd.f32 %v21900_v0, %v10783_v51  ;;  %v10785_v3 = vpop.f32.mrb[66].mxu1  ;;  %v10745_v50 = vpop.f32.mrb[67].mxu0  ;;  %v14217_v42 = vpack.c.bf16 %v12185_v10, %v12184_v55  ;;  %v14187_v0 = vpack.c.bf16 %v12137_v49, %v12136_v20  ;;  %v14201_v7 = vpack.c.bf16 %v12161_v27, %v12160_v31  ;;  %v12144_v51 = vld [vmem:[%s22301_s4 + $0x40] sm:$0xff]  ;;  %v12145_v11 = vld [vmem:[%s22301_s4 + $0x48] sm:$0xff]  ;;  %v12194_v55 = vld [vmem:[%s22301_s4 + $0x1d0] sm:$0xff] }
 0x5bf   :  { %v10786_v25 = vpop.f32.mrb[67].mxu1  ;;  %14186 = vmatprep.subr.bf16.mxu0 %v14185_v38  ;;  %v12176_v3 = vld [vmem:[%s22301_s4 + $0x140] sm:$0xff]  ;;  %v14233_v50 = vpack.c.bf16 %v12193_v57, %v12192_v40  ;;  %v12195_v38 = vld [vmem:[%s22301_s4 + $0x1d8] sm:$0xff]  ;;  %v14203_v10 = vpack.c.bf16 %v12145_v11, %v12144_v51  ;;  %v14205_v49 = vpack.c.bf16 %v12163_v12, %v12162_v53  ;;  %v16203_v31 = vmov 0.0|0.0  }
 0x5c0   :  { %14218 = vmatprep.subr.bf16.mxu1 %v14217_v42  ;;  %14188 = vmatpush3.bf16.msra.mxu0 %v14187_v0  ;;  %v12177_v25 = vld [vmem:[%s22301_s4 + $0x148] sm:$0xff]  ;;  %v12146_v42 = vld [vmem:[%s22301_s4 + $0x50] sm:$0xff]  ;;  %v12147_v0 = vld [vmem:[%s22301_s4 + $0x58] sm:$0xff]  ;;  %v14237_v58 = vpack.c.bf16 %v12195_v38, %v12194_v55 }
 0x5c1   :  { %14220 = vmatpush3.bf16.msra.mxu1 %v14219_v60  ;;  %14190 = vmatprep.subr.bf16.mxu0 %v14189_v44  ;;  %v14235_v20 = vpack.c.bf16 %v12177_v25, %v12176_v3  ;;  %v14207_v60 = vpack.c.bf16 %v12147_v0, %v12146_v42  ;;  %v12183_v1 = vld [vmem:[%s22301_s4 + $0x178] sm:$0xff]  ;;  %v12097_v12 = vld [vmem:[%s22302_s3] sm:$0xf] }
 0x5c2   :  { %14222 = vmatprep.subr.bf16.mxu1 %v14221_v32  ;;  %v14247_v62 = vpack.c.bf16 %v12183_v1, %v12182_v9  ;;  %v22483_v55 = vld [vmem:[#allocation5_spill] sm:$0xff]  ;;  %v12106_v0 = vrot.slane %v12097_v12, %v17065_v22  ;;  %v12358_v22 = vld [vmem:[%s22303_s6 + $0x8] sm:$0xff]  ;;  %v12367_v9 = vld [vmem:[%s22303_s6 + $0x50] sm:$0xff] }
 0x5c3   :  { %v12109_v38 = vsub.s32 2, %v22483_v55 }
 0x5c4   :  { %14192 = vmatpush3.bf16.msra.mxu0 %v14191_v2 }
 0x5c5   :  { %14224 = vmatpush3.bf16.msra.mxu1 %v14223_v14  ;;  %14194 = vmatprep.subr.bf16.mxu0 %v14193_v8  ;;  %v12164_v8 = vld [vmem:[%s22301_s4 + $0xe0] sm:$0xff]  ;;  %v12110_v42 = vrot.slane %v12097_v12, %v12109_v38 }
 0x5c6   :  { %14226 = vmatprep.subr.bf16.mxu1 %v14225_v5  ;;  %v14211_v5 = vpack.c.bf16 %v12149_v19, %v12148_v34  ;;  %v12359_v34 = vld [vmem:[%s22303_s6 + $0x10] sm:$0xff]  ;;  %v12360_v19 = vld [vmem:[%s22303_s6 + $0x18] sm:$0xff] }
 0x5c8   :  { %14196 = vmatpush3.bf16.msra.mxu0 %v14195_v35  ;;  %v14243_v35 = vpack.c.bf16 %v12181_v52, %v12180_v26  ;;  %v14253_v52 = vpack.c.bf16 %v12360_v19, %v12359_v34 }
 0x5c9   :  { %14228 = vmatpush3.bf16.msra.mxu1 %v14227_v39  ;;  %14198 = vmatprep.subr.bf16.mxu0 %v14197_v37  ;;  %v14213_v39 = vpack.c.bf16 %v12167_v46, %v12166_v16  ;;  %v14245_v37 = vpack.c.bf16 %v12199_v13, %v12198_v47  ;;  %v12361_v16 = vld [vmem:[%s22303_s6 + $0x20] sm:$0xff]  ;;  %v12363_v47 = vld [vmem:[%s22303_s6 + $0x30] sm:$0xff]  ;;  %v12364_v13 = vld [vmem:[%s22303_s6 + $0x38] sm:$0xff] }
 0x5ca   :  { %14230 = vmatprep.subr.bf16.mxu1 %v14229_v43  ;;  %v14215_v43 = vpack.c.bf16 %v12151_v48, %v12150_v36  ;;  %v12366_v36 = vld [vmem:[%s22303_s6 + $0x48] sm:$0xff] }
 0x5cc   :  { %14200 = vmatpush3.bf16.msra.mxu0 %v14199_v4 }
 0x5cd   :  { %14232 = vmatpush3.bf16.msra.mxu1 %v14231_v45  ;;  %14202 = vmatprep.subr.bf16.mxu0 %v14201_v7 }
 0x5ce   :  { %14234 = vmatprep.subr.bf16.mxu1 %v14233_v50 }
 0x5d0   :  { %14204 = vmatpush3.bf16.msra.mxu0 %v14203_v10  ;;  %v12113_v10 = vsub.s32 3, %v22483_v55 }
 0x5d1   :  { %14236 = vmatpush3.bf16.msra.mxu1 %v14235_v20  ;;  %14206 = vmatprep.subr.bf16.mxu0 %v14205_v49  ;;  %v12102_v20 = vrot.slane %v12097_v12, %v17062_v21  ;;  %v12357_v21 = vld [vmem:[%s22303_s6] sm:$0xff] }
 0x5d2   :  { %14238 = vmatprep.subr.bf16.mxu1 %v14237_v58 }
 0x5d4   :  { %14208 = vmatpush3.bf16.msra.mxu0 %v14207_v60  ;;  %v12114_v60 = vrot.slane %v12097_v12, %v12113_v10  ;;  %v14013_v12 = vld [vmem:[%s22304_s5] ss:$0 sm:$0xff] }
 0x5d5   :  { %14240 = vmatpush3.bf16.msra.mxu1 %v14239_v56 }
 0x5fb   :  { %v11149_v15 = vpop.f32.mrb[68].mxu0 }
 0x5fc   :  { %v12034_v59 = vadd.f32 %v22016_v17, %v11149_v15  ;;  %v11190_v44 = vpop.f32.mrb[68].mxu1  ;;  %v11151_v32 = vpop.f32.mrb[69].mxu0  ;;  %v12165_v17 = vld [vmem:[%s22301_s4 + $0xe8] sm:$0xff] }
 0x5fd   :  { %v12064_v23 = vadd.f32 %v22019_v33, %v11190_v44  ;;  %v12049_v41 = vadd.f32 %v22022_v61, %v11151_v32  ;;  %v11192_v30 = vpop.f32.mrb[69].mxu1  ;;  %v11153_v2 = vpop.f32.mrb[70].mxu0  ;;  %v12196_v33 = vld [vmem:[%s22301_s4 + $0x1e0] sm:$0xff]  ;;  %v14209_v61 = vpack.c.bf16 %v12165_v17, %v12164_v8 }
 0x5fe   :  { %v12079_v29 = vadd.f32 %v22025_v54, %v11192_v30  ;;  %v11194_v6 = vpop.f32.mrb[70].mxu1  ;;  %v11154_v63 = vpop.f32.mrb[71].mxu0  ;;  %v12197_v54 = vld [vmem:[%s22301_s4 + $0x1e8] sm:$0xff] }
 0x5ff   :  { %v11195_v14 = vpop.f32.mrb[71].mxu1  ;;  %v14241_v28 = vpack.c.bf16 %v12197_v54, %v12196_v33  ;;  %14210 = vmatprep.subr.bf16.mxu0 %v14209_v61  ;;  %v14250_v61 = vpack.c.bf16 %v12358_v22, %v12357_v21 }
 0x600   :  { %14212 = vmatpush3.bf16.msra.mxu0 %v14211_v5 }
 0x601   :  { %14242 = vmatprep.subr.bf16.mxu1 %v14241_v28  ;;  %14214 = vmatprep.subr.bf16.mxu0 %v14213_v39  ;;  %v14259_v39 = vpack.c.bf16 %v12364_v13, %v12363_v47 }
 0x602   :  { %14244 = vmatpush3.bf16.msra.mxu1 %v14243_v35  ;;  %v12362_v35 = vld [vmem:[%s22303_s6 + $0x28] sm:$0xff] }
 0x603   :  { %14246 = vmatprep.subr.bf16.mxu1 %v14245_v37  ;;  %v14256_v46 = vpack.c.bf16 %v12362_v35, %v12361_v16  ;;  %v12365_v37 = vld [vmem:[%s22303_s6 + $0x40] sm:$0xff] }
 0x604   :  { %14216 = vmatpush3.bf16.msra.mxu0 %v14215_v43  ;;  %v14262_v48 = vpack.c.bf16 %v12366_v36, %v12365_v37  ;;  %v12368_v43 = vld [vmem:[%s22303_s6 + $0x58] sm:$0xff] }
 0x605   :  { %14249 = vmatprep.subr.bf16.mxu0 %v16203_v31  ;;  %v14265_v1 = vpack.c.bf16 %v12368_v43, %v12367_v9 }
 0x606   :  { %14248 = vmatpush3.bf16.msra.mxu1 %v14247_v62  ;;  %v12369_v62 = vld [vmem:[%s22303_s6 + $0x60] sm:$0xff] }
 0x63b   :  { %v11558_v27 = vpop.f32.mrb[72].mxu0 }
 0x63c   :  { %v12035_v40 = vadd.f32 %v12034_v59, %v11558_v27  ;;  %v11599_v57 = vpop.f32.mrb[72].mxu1  ;;  %v11560_v4 = vpop.f32.mrb[73].mxu0  ;;  %v12370_v27 = vld [vmem:[%s22303_s6 + $0x68] sm:$0xff] }
 0x63d   :  { %v12065_v45 = vadd.f32 %v12064_v23, %v11599_v57  ;;  %v12050_v7 = vadd.f32 %v12049_v41, %v11560_v4  ;;  %v11601_v51 = vpop.f32.mrb[73].mxu1  ;;  %v11562_v11 = vpop.f32.mrb[74].mxu0  ;;  %v14268_v57 = vpack.c.bf16 %v12370_v27, %v12369_v62  ;;  %v12372_v4 = vld [vmem:[%s22303_s6 + $0x78] sm:$0xff] }
 0x63e   :  { %v12080_v3 = vadd.f32 %v12079_v29, %v11601_v51  ;;  %v11603_v50 = vpop.f32.mrb[74].mxu1  ;;  %v11563_v25 = vpop.f32.mrb[75].mxu0 }
 0x63f   :  { %v11604_v53 = vpop.f32.mrb[75].mxu1 }
 0x67b   :  { %v11967_v49 = vpop.f32.mrb[76].mxu0 }
 0x67c   :  { %v12036_v58 = vadd.f32 %v12035_v40, %v11967_v49  ;;  %v12008_v18 = vpop.f32.mrb[76].mxu1  ;;  %v11969_v24 = vpop.f32.mrb[77].mxu0  ;;  %v12371_v40 = vld [vmem:[%s22303_s6 + $0x70] sm:$0xff] }
 0x67d   :  { %v12066_v56 = vadd.f32 %v12065_v45, %v12008_v18  ;;  %v12051_v15 = vadd.f32 %v12050_v7, %v11969_v24  ;;  %v12010_v59 = vpop.f32.mrb[77].mxu1  ;;  %v11971_v44 = vpop.f32.mrb[78].mxu0  ;;  %v16205_v45 = vmov 0.0   ;;  %v14271_v7 = vpack.c.bf16 %v12372_v4, %v12371_v40 }
 0x67e   :  { %v12119_v32 = vadd.f32 %v12102_v20, %v12036_v58  ;;  %v12081_v23 = vadd.f32 %v12080_v3, %v12010_v59  ;;  %v12012_v41 = vpop.f32.mrb[78].mxu1  ;;  %v11972_v30 = vpop.f32.mrb[79].mxu0 }
 0x67f   :  { %v12121_v2 = vadd.f32 %v12110_v42, %v12066_v56  ;;  %v12120_v29 = vadd.f32 %v12106_v0, %v12051_v15  ;;  %v12013_v6 = vpop.f32.mrb[79].mxu1 }
 0x680   :  { %v12127_v63 = vmul.f32 0.01, %v12119_v32  ;;  %v12122_v14 = vadd.f32 %v12114_v60, %v12081_v23  ;;  %vm12123_vm8 = vcmp.gt.f32.partialorder %v12119_v32, 0.0 }
 0x681   :  { %v12129_v8 = vmul.f32 0.01, %v12121_v2  ;;  %vm12124_vm7 = vcmp.gt.f32.partialorder %v12120_v29, 0.0  ;;  %v12128_v17 = vmul.f32 0.01, %v12120_v29  ;;  %vm12125_vm10 = vcmp.gt.f32.partialorder %v12121_v2, 0.0 }
 0x682   :  { %vm12126_vm9 = vcmp.gt.f32.partialorder %v12122_v14, 0.0  ;;  %v12130_v33 = vmul.f32 0.01, %v12122_v14  ;;  %v12131_v5 = vsel %vm12123_vm8, %v12119_v32, %v12127_v63 }
 0x683   :  { %v12132_v54 = vsel %vm12124_vm7, %v12120_v29, %v12128_v17  ;;  %v12133_v26 = vsel %vm12125_vm10, %v12121_v2, %v12129_v8 }
 0x684   :  { %12264 = vmatprep.mubr.f32.mxu0 %v12132_v54  ;;  %v12134_v28 = vsel %vm12126_vm9, %v12122_v14, %v12130_v33 }
 0x685   :  { %12334 = vmatprep.mubr.f32.mxu1 %v12134_v28  ;;  %12265 = vmatmul.mubr.f32.vlgmr.msra.gmra.mrb[80].mxu0 %v12131_v5 }
 0x686   :  { %12335 = vmatmul.mubr.f32.vlgmr.msra.gmra.mrb[80].mxu1 %v12133_v26  ;;  %14251 = vmatpush3.bf16.msra.mxu0 %v14250_v61 }
 0x687   :  { %14252 = vmatprep.subr.bf16.mxu0 %v16203_v31  ;;  %14182 = vmatprep.mubr.msk.f32.mxu0 %vm16204_vm11, %v16205_v45 }
 0x68a   :  { %14254 = vmatpush3.bf16.msra.mxu0 %v14253_v52 }
 0x68b   :  { %14255 = vmatprep.subr.bf16.mxu0 %v16203_v31 }
 0x68e   :  { %14257 = vmatpush3.bf16.msra.mxu0 %v14256_v46 }
 0x68f   :  { %14258 = vmatprep.subr.bf16.mxu0 %v16203_v31 }
 0x692   :  { %14260 = vmatpush3.bf16.msra.mxu0 %v14259_v39 }
 0x693   :  { %14261 = vmatprep.subr.bf16.mxu0 %v16203_v31 }
 0x696   :  { %14263 = vmatpush3.bf16.msra.mxu0 %v14262_v48 }
 0x697   :  { %14264 = vmatprep.subr.bf16.mxu0 %v16203_v31 }
 0x69a   :  { %14266 = vmatpush3.bf16.msra.mxu0 %v14265_v1 }
 0x69b   :  { %14267 = vmatprep.subr.bf16.mxu0 %v16203_v31 }
 0x69e   :  { %14269 = vmatpush3.bf16.msra.mxu0 %v14268_v57 }
 0x69f   :  { %14270 = vmatprep.subr.bf16.mxu0 %v16203_v31  ;;  %v14014_v31 = vld [vmem:[%s22306_s7] ss:$0 sm:$0xff] }
 0x6a2   :  { %14272 = vmatpush3.bf16.msra.mxu0 %v14271_v7 }
 0x758   :  { %v14095_v51 = vpop.f32.mrb[80].mxu0 }
 0x759   :  { %v14130_v11 = vpop.f32.mrb[80].mxu1  ;;  %v14096_v3 = vpop.f32.mrb[81].mxu0 }
 0x75a   :  { %v14097_v50 = vadd.f32 %v14096_v3, %v14095_v51  ;;  %v14131_v25 = vpop.f32.mrb[81].mxu1 }
 0x75b   :  { %v14132_v53 = vadd.f32 %v14131_v25, %v14130_v11 }
 0x75d   :  { %v12337_v55 = vadd.f32 %v14132_v53, %v14097_v50 }
 0x75f   :  { %v12352_v38 = vadd.f32 %v14013_v12, %v12337_v55 }
 0x761   :  { %vm12353_vm12 = vcmp.gt.f32.partialorder %v12352_v38, 0.0  ;;  %v12354_v10 = vmul.f32 0.01, %v12352_v38 }
 0x763   :  { %v12355_v20 = vsel %vm12353_vm12, %v12352_v38, %v12354_v10 }
 0x764   :  { %12356 = vst [vmem:[%s22305_s9] sm:$0xff] %v12355_v20  ;;  %14183 = vmatmul.mubr.f32.vlgmr.msra.gmra.mrb[82].mxu0 %v12355_v20 }
 0x837   :  { %v12446_v49 = vpop.f32.mrb[82].mxu0 }
 0x838   :  { %v12447_v42 = vadd.f32 %v14014_v31, %v12446_v49  ;;  %v14184_v0 = vpop.f32.mrb[83].mxu0 }
 0x83a   :  { %12450 = vst [vmem:[%s22307_s8] sm:$0xff] %v12447_v42 }

</bundles_post_ra>
